<compile_context>
chip_gen: v7x
topology: tpu7x:2x2x1
jax: 0.10.0
libtpu: 0.0.40
codegen_flags: <defaults>
</compile_context>

<pallas_src>
import functools

import jax
import jax.numpy as jnp
from jax.experimental import pallas as pl
from jax.experimental.pallas import tpu as pltpu


# ------------------------------ fused kernel --------------------------------

def _pixelconv_kernel(xf_ref, xi_ref,
                      w1_ref, b1_ref, w2_ref, b2_ref, w3_ref, b3_ref,
                      out_ref,
                      pad1_ref, pad2_ref,
                      *, H, W, cin, cmid, ksize):
    """One batch element per grid step.

    xf_ref : (H+2, W+2, cin)      zero-padded x_feature (pad=1 for the 3x3 convs)
    xi_ref : (H+2p, W+2p, 3)      zero-padded x (p = (ksize-1)//2)
    w*_ref : (9, cin_l, cout_l)   tap-major conv weights, b*_ref: (1, cout_l)
    out_ref: (H*W, 3)
    pad*_ref: VMEM (H+2, W+2, cmid) padded intermediate activations
    """
    HW = H * W
    KC = 3      # kernel_conv always uses 3x3 convs with padding 1
    PC = 1

    def conv3x3(src_ref, w_ref, b_ref, ci):
        """'same' 3x3 conv of zero-padded src -> (H*W, cout), f32 accumulation."""
        cout = w_ref.shape[-1]
        acc = jnp.zeros((HW, cout), jnp.float32)
        for du in range(KC):
            for dv in range(KC):
                k = du * KC + dv
                win = src_ref[du:du + H, dv:dv + W, :].reshape(HW, ci)
                acc = acc + jnp.dot(win, w_ref[k],
                                    preferred_element_type=jnp.float32)
        return acc + b_ref[...]

    # ---- kernel_conv: three stacked 3x3 convs (no nonlinearity) -------------
    t1 = conv3x3(xf_ref, w1_ref, b1_ref, cin)                   # (HW, cmid)
    pad1_ref[...] = jnp.zeros_like(pad1_ref)
    pad1_ref[PC:PC + H, PC:PC + W, :] = t1.reshape(H, W, cmid)

    t2 = conv3x3(pad1_ref, w2_ref, b2_ref, cmid)                # (HW, cmid)
    pad2_ref[...] = jnp.zeros_like(pad2_ref)
    pad2_ref[PC:PC + H, PC:PC + W, :] = t2.reshape(H, W, cmid)

    ks = conv3x3(pad2_ref, w3_ref, b3_ref, cmid)                # (HW, 3*ksize**2)

    # ---- apply the per-pixel dynamic ksize x ksize filter to x --------------
    acc = jnp.zeros((HW, 3), jnp.float32)
    for du in range(ksize):
        for dv in range(ksize):
            k = du * ksize + dv
            xwin = xi_ref[du:du + H, dv:dv + W, :].reshape(HW, 3)
            acc = acc + xwin * ks[:, 3 * k:3 * (k + 1)]
    out_ref[...] = acc


# -------------------------------- wrapper ------------------------------------

def pixel_conv_forward(params, x_feature, x, ksize=3):
    """PixelConv.forward (scale=1). x_feature: [B, Cin, H, W], x: [B, 3, H, W] (NCHW)."""
    B, cin, H, W = x_feature.shape
    cmid = params['w1'].shape[-1]
    kout = params['w3'].shape[-1]
    assert kout == 3 * ksize * ksize
    pd = (ksize - 1) // 2
    HW = H * W
    Hc, Wc = H + 2, W + 2            # pad=1 for kernel_conv
    Hd, Wd = H + 2 * pd, W + 2 * pd  # pad for the dynamic filter

    # NCHW -> NHWC + zero pad (tiny boundary glue; everything else is in-kernel)
    xf = jnp.transpose(x_feature, (0, 2, 3, 1)).astype(jnp.float32)
    xi = jnp.transpose(x, (0, 2, 3, 1)).astype(jnp.float32)
    xf_pad = jnp.pad(xf, ((0, 0), (1, 1), (1, 1), (0, 0)))
    xi_pad = jnp.pad(xi, ((0, 0), (pd, pd), (pd, pd), (0, 0)))

    # (3,3,Cin,Cout) -> (9, Cin, Cout) tap-major slabs; biases -> (1, Cout)
    w1r = params['w1'].reshape(9, cin, cmid)
    w2r = params['w2'].reshape(9, cmid, cmid)
    w3r = params['w3'].reshape(9, cmid, kout)
    b1r = params['b1'].reshape(1, cmid)
    b2r = params['b2'].reshape(1, cmid)
    b3r = params['b3'].reshape(1, kout)

    kernel = functools.partial(_pixelconv_kernel,
                               H=H, W=W, cin=cin, cmid=cmid, ksize=ksize)

    out = pl.pallas_call(
        kernel,
        out_shape=jax.ShapeDtypeStruct((B, HW, 3), jnp.float32),
        grid=(B,),
        in_specs=[
            pl.BlockSpec((None, Hc, Wc, cin), lambda b: (b, 0, 0, 0)),
            pl.BlockSpec((None, Hd, Wd, 3), lambda b: (b, 0, 0, 0)),
            pl.BlockSpec((9, cin, cmid), lambda b: (0, 0, 0)),
            pl.BlockSpec((1, cmid), lambda b: (0, 0)),
            pl.BlockSpec((9, cmid, cmid), lambda b: (0, 0, 0)),
            pl.BlockSpec((1, cmid), lambda b: (0, 0)),
            pl.BlockSpec((9, cmid, kout), lambda b: (0, 0, 0)),
            pl.BlockSpec((1, kout), lambda b: (0, 0)),
        ],
        out_specs=pl.BlockSpec((None, HW, 3), lambda b: (b, 0, 0)),
        scratch_shapes=[
            pltpu.VMEM((Hc, Wc, cmid), jnp.float32),   # padded conv1 output
            pltpu.VMEM((Hc, Wc, cmid), jnp.float32),   # padded conv2 output
        ],
        compiler_params=pltpu.CompilerParams(
            dimension_semantics=("parallel",)),
    )(xf_pad, xi_pad, w1r, b1r, w2r, b2r, w3r, b3r)

    return jnp.transpose(out.reshape(B, H, W, 3), (0, 3, 1, 2))   # back to NCHW


# ------------------------------ params / reference ---------------------------

def init_params(key, in_feats, rate=4, ksize=3, scale=1):
    """Weights in (KH, KW, Cin, Cout) cross-correlation layout.
    (To load a real PyTorch Conv2d weight [Cout, Cin, KH, KW]: w.transpose(2, 3, 1, 0).)"""
    mid = in_feats * rate ** 2
    kout = 3 * ksize ** 2 * scale ** 2
    shapes = {
        'w1': (3, 3, in_feats, mid), 'b1': (mid,),
        'w2': (3, 3, mid, mid),      'b2': (mid,),
        'w3': (3, 3, mid, kout),     'b3': (kout,),
    }
    names = sorted(shapes)
    keys = jax.random.split(key, len(names))
    params = {}
    for k, name in zip(keys, names):
        s = 0.1 if name.startswith('w') else 0.05
        params[name] = s * jax.random.normal(k, shapes[name], jnp.float32)
    return params


def _reference_forward(params, x_feature, x, ksize=3):
    """Plain-JAX reference of PixelConv.forward (scale=1) for validation."""
    B, cin, H, W = x_feature.shape
    pd = (ksize - 1) // 2
    xf = jnp.transpose(x_feature, (0, 2, 3, 1)).astype(jnp.float32)
    xi = jnp.transpose(x, (0, 2, 3, 1)).astype(jnp.float32)

    def conv3x3(a, w, b):
        ap = jnp.pad(a, ((0, 0), (1, 1), (1, 1), (0, 0)))
        out = jnp.zeros(a.shape[:3] + (w.shape[-1],), jnp.float32)
        for du in range(3):
            for dv in range(3):
                out = out + jnp.einsum('bhwc,cd->bhwd',
                                       ap[:, du:du + H, dv:dv + W, :], w[du, dv])
        return out + b

    t = conv3x3(xf, params['w1'], params['b1'])
    t = conv3x3(t, params['w2'], params['b2'])
    ks = conv3x3(t, params['w3'], params['b3'])            # [B, H, W, 3*ksize**2]

    xp = jnp.pad(xi, ((0, 0), (pd, pd), (pd, pd), (0, 0)))
    out = jnp.zeros((B, H, W, 3), jnp.float32)
    for du in range(ksize):
        for dv in range(ksize):
            k = du * ksize + dv
            out = out + xp[:, du:du + H, dv:dv + W, :] * ks[..., 3 * k:3 * (k + 1)]
    return jnp.transpose(out, (0, 3, 1, 2))


# ---------------------------------- main --------------------------------------

if __name__ == "__main__":
    B, IN_FEATS, RATE, KSIZE, H, W = 2, 4, 4, 3, 16, 16   # mid_feats = 4*16 = 64
    key = jax.random.PRNGKey(0)
    kp, kf, kx = jax.random.split(key, 3)
    params = init_params(kp, IN_FEATS, rate=RATE, ksize=KSIZE)
    x_feature = jax.random.normal(kf, (B, IN_FEATS, H, W), dtype=jnp.float32)
    x = jax.random.normal(kx, (B, 3, H, W), dtype=jnp.float32)

    fwd = jax.jit(pixel_conv_forward, static_argnames=("ksize",))
    out = jax.block_until_ready(fwd(params, x_feature, x, ksize=KSIZE))

    assert out.shape == (B, 3, H, W), out.shape
    assert bool(jnp.all(jnp.isfinite(out)))

    ref = _reference_forward(params, x_feature, x, ksize=KSIZE)
    rel_err = float(jnp.max(jnp.abs(out - ref)) / (jnp.max(jnp.abs(ref)) + 1e-8))
    assert rel_err < 5e-2, f"mismatch vs reference: rel_err={rel_err}"
    print("KERNEL_OK")
</pallas_src>

<mosaic_0001>
module attributes {stable_mosaic.version = 11 : i64} {
  func.func @_pixelconv_kernel(%arg0: i32, %arg1: memref<1x18x18x4xf32, #tpu.memory_space<vmem>>, %arg2: memref<1x18x18x3xf32, #tpu.memory_space<vmem>>, %arg3: memref<9x4x64xf32, #tpu.memory_space<vmem>>, %arg4: memref<1x64xf32, #tpu.memory_space<vmem>>, %arg5: memref<9x64x64xf32, #tpu.memory_space<vmem>>, %arg6: memref<1x64xf32, #tpu.memory_space<vmem>>, %arg7: memref<9x64x27xf32, #tpu.memory_space<vmem>>, %arg8: memref<1x27xf32, #tpu.memory_space<vmem>>, %arg9: memref<1x256x3xf32, #tpu.memory_space<vmem>>, %arg10: memref<18x18x64xf32, #tpu.memory_space<vmem>>, %arg11: memref<18x18x64xf32, #tpu.memory_space<vmem>>) attributes {dimension_semantics = [#tpu.dimension_semantics<parallel>], iteration_bounds = array<i64: 2>, scalar_prefetch = 0 : i64, scratch_operands = 2 : i64, tpu.core_type = #tpu.core_type<tc>, window_params = [{transform_indices = @transform_0, window_bounds = array<i64: 1, 18, 18, 4>}, {transform_indices = @transform_1, window_bounds = array<i64: 1, 18, 18, 3>}, {pipeline_mode = #tpu.pipeline_mode<synchronous>, transform_indices = @transform_2, window_bounds = array<i64: 9, 4, 64>}, {pipeline_mode = #tpu.pipeline_mode<synchronous>, transform_indices = @transform_3, window_bounds = array<i64: 1, 64>}, {pipeline_mode = #tpu.pipeline_mode<synchronous>, transform_indices = @transform_4, window_bounds = array<i64: 9, 64, 64>}, {pipeline_mode = #tpu.pipeline_mode<synchronous>, transform_indices = @transform_5, window_bounds = array<i64: 1, 64>}, {pipeline_mode = #tpu.pipeline_mode<synchronous>, transform_indices = @transform_6, window_bounds = array<i64: 9, 64, 27>}, {pipeline_mode = #tpu.pipeline_mode<synchronous>, transform_indices = @transform_7, window_bounds = array<i64: 1, 27>}, {transform_indices = @transform_8, window_bounds = array<i64: 1, 256, 3>}]} {
    %cst = arith.constant 0.000000e+00 : f32
    %0 = vector.broadcast %cst : f32 to vector<256x64xf32>
    %c0 = arith.constant 0 : index
    %c0_0 = arith.constant 0 : index
    %c0_1 = arith.constant 0 : index
    %c0_2 = arith.constant 0 : index
    %1 = vector.load %arg1[%c0, %c0_0, %c0_1, %c0_2] : memref<1x18x18x4xf32, #tpu.memory_space<vmem>>, vector<1x16x16x4xf32>
    %2 = vector.shape_cast %1 : vector<1x16x16x4xf32> to vector<16x16x4xf32>
    %3 = vector.shape_cast %2 : vector<16x16x4xf32> to vector<256x4xf32>
    %c0_3 = arith.constant 0 : index
    %c0_4 = arith.constant 0 : index
    %c0_5 = arith.constant 0 : index
    %4 = vector.load %arg3[%c0_3, %c0_4, %c0_5] : memref<9x4x64xf32, #tpu.memory_space<vmem>>, vector<1x4x64xf32>
    %5 = vector.shape_cast %4 : vector<1x4x64xf32> to vector<4x64xf32>
    %cst_6 = arith.constant dense<0.000000e+00> : vector<256x64xf32>
    %6 = tpu.matmul %3, %5, %cst_6 {dimension_numbers = #tpu.dot_dimension_numbers<[1], [0], [0], [1], [0, 0, 1, 1], [], []>} : vector<256x4xf32>, vector<4x64xf32>, vector<256x64xf32> -> vector<256x64xf32>
    %7 = arith.addf %0, %6 : vector<256x64xf32>
    %c0_7 = arith.constant 0 : index
    %c0_8 = arith.constant 0 : index
    %c1 = arith.constant 1 : index
    %c0_9 = arith.constant 0 : index
    %8 = vector.load %arg1[%c0_7, %c0_8, %c1, %c0_9] : memref<1x18x18x4xf32, #tpu.memory_space<vmem>>, vector<1x16x16x4xf32>
    %9 = vector.shape_cast %8 : vector<1x16x16x4xf32> to vector<16x16x4xf32>
    %10 = vector.shape_cast %9 : vector<16x16x4xf32> to vector<256x4xf32>
    %c1_10 = arith.constant 1 : index
    %c0_11 = arith.constant 0 : index
    %c0_12 = arith.constant 0 : index
    %11 = vector.load %arg3[%c1_10, %c0_11, %c0_12] : memref<9x4x64xf32, #tpu.memory_space<vmem>>, vector<1x4x64xf32>
    %12 = vector.shape_cast %11 : vector<1x4x64xf32> to vector<4x64xf32>
    %cst_13 = arith.constant dense<0.000000e+00> : vector<256x64xf32>
    %13 = tpu.matmul %10, %12, %cst_13 {dimension_numbers = #tpu.dot_dimension_numbers<[1], [0], [0], [1], [0, 0, 1, 1], [], []>} : vector<256x4xf32>, vector<4x64xf32>, vector<256x64xf32> -> vector<256x64xf32>
    %14 = arith.addf %7, %13 : vector<256x64xf32>
    %c0_14 = arith.constant 0 : index
    %c0_15 = arith.constant 0 : index
    %c2 = arith.constant 2 : index
    %c0_16 = arith.constant 0 : index
    %15 = vector.load %arg1[%c0_14, %c0_15, %c2, %c0_16] : memref<1x18x18x4xf32, #tpu.memory_space<vmem>>, vector<1x16x16x4xf32>
    %16 = vector.shape_cast %15 : vector<1x16x16x4xf32> to vector<16x16x4xf32>
    %17 = vector.shape_cast %16 : vector<16x16x4xf32> to vector<256x4xf32>
    %c2_17 = arith.constant 2 : index
    %c0_18 = arith.constant 0 : index
    %c0_19 = arith.constant 0 : index
    %18 = vector.load %arg3[%c2_17, %c0_18, %c0_19] : memref<9x4x64xf32, #tpu.memory_space<vmem>>, vector<1x4x64xf32>
    %19 = vector.shape_cast %18 : vector<1x4x64xf32> to vector<4x64xf32>
    %cst_20 = arith.constant dense<0.000000e+00> : vector<256x64xf32>
    %20 = tpu.matmul %17, %19, %cst_20 {dimension_numbers = #tpu.dot_dimension_numbers<[1], [0], [0], [1], [0, 0, 1, 1], [], []>} : vector<256x4xf32>, vector<4x64xf32>, vector<256x64xf32> -> vector<256x64xf32>
    %21 = arith.addf %14, %20 : vector<256x64xf32>
    %c0_21 = arith.constant 0 : index
    %c1_22 = arith.constant 1 : index
    %c0_23 = arith.constant 0 : index
    %c0_24 = arith.constant 0 : index
    %22 = vector.load %arg1[%c0_21, %c1_22, %c0_23, %c0_24] : memref<1x18x18x4xf32, #tpu.memory_space<vmem>>, vector<1x16x16x4xf32>
    %23 = vector.shape_cast %22 : vector<1x16x16x4xf32> to vector<16x16x4xf32>
    %24 = vector.shape_cast %23 : vector<16x16x4xf32> to vector<256x4xf32>
    %c3 = arith.constant 3 : index
    %c0_25 = arith.constant 0 : index
    %c0_26 = arith.constant 0 : index
    %25 = vector.load %arg3[%c3, %c0_25, %c0_26] : memref<9x4x64xf32, #tpu.memory_space<vmem>>, vector<1x4x64xf32>
    %26 = vector.shape_cast %25 : vector<1x4x64xf32> to vector<4x64xf32>
    %cst_27 = arith.constant dense<0.000000e+00> : vector<256x64xf32>
    %27 = tpu.matmul %24, %26, %cst_27 {dimension_numbers = #tpu.dot_dimension_numbers<[1], [0], [0], [1], [0, 0, 1, 1], [], []>} : vector<256x4xf32>, vector<4x64xf32>, vector<256x64xf32> -> vector<256x64xf32>
    %28 = arith.addf %21, %27 : vector<256x64xf32>
    %c0_28 = arith.constant 0 : index
    %c1_29 = arith.constant 1 : index
    %c1_30 = arith.constant 1 : index
    %c0_31 = arith.constant 0 : index
    %29 = vector.load %arg1[%c0_28, %c1_29, %c1_30, %c0_31] : memref<1x18x18x4xf32, #tpu.memory_space<vmem>>, vector<1x16x16x4xf32>
    %30 = vector.shape_cast %29 : vector<1x16x16x4xf32> to vector<16x16x4xf32>
    %31 = vector.shape_cast %30 : vector<16x16x4xf32> to vector<256x4xf32>
    %c4 = arith.constant 4 : index
    %c0_32 = arith.constant 0 : index
    %c0_33 = arith.constant 0 : index
    %32 = vector.load %arg3[%c4, %c0_32, %c0_33] : memref<9x4x64xf32, #tpu.memory_space<vmem>>, vector<1x4x64xf32>
    %33 = vector.shape_cast %32 : vector<1x4x64xf32> to vector<4x64xf32>
    %cst_34 = arith.constant dense<0.000000e+00> : vector<256x64xf32>
    %34 = tpu.matmul %31, %33, %cst_34 {dimension_numbers = #tpu.dot_dimension_numbers<[1], [0], [0], [1], [0, 0, 1, 1], [], []>} : vector<256x4xf32>, vector<4x64xf32>, vector<256x64xf32> -> vector<256x64xf32>
    %35 = arith.addf %28, %34 : vector<256x64xf32>
    %c0_35 = arith.constant 0 : index
    %c1_36 = arith.constant 1 : index
    %c2_37 = arith.constant 2 : index
    %c0_38 = arith.constant 0 : index
    %36 = vector.load %arg1[%c0_35, %c1_36, %c2_37, %c0_38] : memref<1x18x18x4xf32, #tpu.memory_space<vmem>>, vector<1x16x16x4xf32>
    %37 = vector.shape_cast %36 : vector<1x16x16x4xf32> to vector<16x16x4xf32>
    %38 = vector.shape_cast %37 : vector<16x16x4xf32> to vector<256x4xf32>
    %c5 = arith.constant 5 : index
    %c0_39 = arith.constant 0 : index
    %c0_40 = arith.constant 0 : index
    %39 = vector.load %arg3[%c5, %c0_39, %c0_40] : memref<9x4x64xf32, #tpu.memory_space<vmem>>, vector<1x4x64xf32>
    %40 = vector.shape_cast %39 : vector<1x4x64xf32> to vector<4x64xf32>
    %cst_41 = arith.constant dense<0.000000e+00> : vector<256x64xf32>
    %41 = tpu.matmul %38, %40, %cst_41 {dimension_numbers = #tpu.dot_dimension_numbers<[1], [0], [0], [1], [0, 0, 1, 1], [], []>} : vector<256x4xf32>, vector<4x64xf32>, vector<256x64xf32> -> vector<256x64xf32>
    %42 = arith.addf %35, %41 : vector<256x64xf32>
    %c0_42 = arith.constant 0 : index
    %c2_43 = arith.constant 2 : index
    %c0_44 = arith.constant 0 : index
    %c0_45 = arith.constant 0 : index
    %43 = vector.load %arg1[%c0_42, %c2_43, %c0_44, %c0_45] : memref<1x18x18x4xf32, #tpu.memory_space<vmem>>, vector<1x16x16x4xf32>
    %44 = vector.shape_cast %43 : vector<1x16x16x4xf32> to vector<16x16x4xf32>
    %45 = vector.shape_cast %44 : vector<16x16x4xf32> to vector<256x4xf32>
    %c6 = arith.constant 6 : index
    %c0_46 = arith.constant 0 : index
    %c0_47 = arith.constant 0 : index
    %46 = vector.load %arg3[%c6, %c0_46, %c0_47] : memref<9x4x64xf32, #tpu.memory_space<vmem>>, vector<1x4x64xf32>
    %47 = vector.shape_cast %46 : vector<1x4x64xf32> to vector<4x64xf32>
    %cst_48 = arith.constant dense<0.000000e+00> : vector<256x64xf32>
    %48 = tpu.matmul %45, %47, %cst_48 {dimension_numbers = #tpu.dot_dimension_numbers<[1], [0], [0], [1], [0, 0, 1, 1], [], []>} : vector<256x4xf32>, vector<4x64xf32>, vector<256x64xf32> -> vector<256x64xf32>
    %49 = arith.addf %42, %48 : vector<256x64xf32>
    %c0_49 = arith.constant 0 : index
    %c2_50 = arith.constant 2 : index
    %c1_51 = arith.constant 1 : index
    %c0_52 = arith.constant 0 : index
    %50 = vector.load %arg1[%c0_49, %c2_50, %c1_51, %c0_52] : memref<1x18x18x4xf32, #tpu.memory_space<vmem>>, vector<1x16x16x4xf32>
    %51 = vector.shape_cast %50 : vector<1x16x16x4xf32> to vector<16x16x4xf32>
    %52 = vector.shape_cast %51 : vector<16x16x4xf32> to vector<256x4xf32>
    %c7 = arith.constant 7 : index
    %c0_53 = arith.constant 0 : index
    %c0_54 = arith.constant 0 : index
    %53 = vector.load %arg3[%c7, %c0_53, %c0_54] : memref<9x4x64xf32, #tpu.memory_space<vmem>>, vector<1x4x64xf32>
    %54 = vector.shape_cast %53 : vector<1x4x64xf32> to vector<4x64xf32>
    %cst_55 = arith.constant dense<0.000000e+00> : vector<256x64xf32>
    %55 = tpu.matmul %52, %54, %cst_55 {dimension_numbers = #tpu.dot_dimension_numbers<[1], [0], [0], [1], [0, 0, 1, 1], [], []>} : vector<256x4xf32>, vector<4x64xf32>, vector<256x64xf32> -> vector<256x64xf32>
    %56 = arith.addf %49, %55 : vector<256x64xf32>
    %c0_56 = arith.constant 0 : index
    %c2_57 = arith.constant 2 : index
    %c2_58 = arith.constant 2 : index
    %c0_59 = arith.constant 0 : index
    %57 = vector.load %arg1[%c0_56, %c2_57, %c2_58, %c0_59] : memref<1x18x18x4xf32, #tpu.memory_space<vmem>>, vector<1x16x16x4xf32>
    %58 = vector.shape_cast %57 : vector<1x16x16x4xf32> to vector<16x16x4xf32>
    %59 = vector.shape_cast %58 : vector<16x16x4xf32> to vector<256x4xf32>
    %c8 = arith.constant 8 : index
    %c0_60 = arith.constant 0 : index
    %c0_61 = arith.constant 0 : index
    %60 = vector.load %arg3[%c8, %c0_60, %c0_61] : memref<9x4x64xf32, #tpu.memory_space<vmem>>, vector<1x4x64xf32>
    %61 = vector.shape_cast %60 : vector<1x4x64xf32> to vector<4x64xf32>
    %cst_62 = arith.constant dense<0.000000e+00> : vector<256x64xf32>
    %62 = tpu.matmul %59, %61, %cst_62 {dimension_numbers = #tpu.dot_dimension_numbers<[1], [0], [0], [1], [0, 0, 1, 1], [], []>} : vector<256x4xf32>, vector<4x64xf32>, vector<256x64xf32> -> vector<256x64xf32>
    %63 = arith.addf %56, %62 : vector<256x64xf32>
    %c0_63 = arith.constant 0 : index
    %c0_64 = arith.constant 0 : index
    %64 = vector.load %arg4[%c0_63, %c0_64] : memref<1x64xf32, #tpu.memory_space<vmem>>, vector<1x64xf32>
    %65 = vector.broadcast %64 : vector<1x64xf32> to vector<256x64xf32>
    %66 = arith.addf %63, %65 : vector<256x64xf32>
    %cst_65 = arith.constant 0.000000e+00 : f32
    %67 = vector.broadcast %cst_65 : f32 to vector<18x18x64xf32>
    %c0_66 = arith.constant 0 : index
    %c0_67 = arith.constant 0 : index
    %c0_68 = arith.constant 0 : index
    %68 = vector.load %arg10[%c0_66, %c0_67, %c0_68] : memref<18x18x64xf32, #tpu.memory_space<vmem>>, vector<18x18x64xf32>
    tpu.vector_store %arg10[%c0_66, %c0_67, %c0_68], %67 {strides = array<i32>} : memref<18x18x64xf32, #tpu.memory_space<vmem>>, vector<18x18x64xf32>,
    %69 = vector.shape_cast %66 : vector<256x64xf32> to vector<16x16x64xf32>
    %c1_69 = arith.constant 1 : index
    %c1_70 = arith.constant 1 : index
    %c0_71 = arith.constant 0 : index
    %70 = vector.load %arg10[%c1_69, %c1_70, %c0_71] : memref<18x18x64xf32, #tpu.memory_space<vmem>>, vector<16x16x64xf32>
    tpu.vector_store %arg10[%c1_69, %c1_70, %c0_71], %69 {strides = array<i32>} : memref<18x18x64xf32, #tpu.memory_space<vmem>>, vector<16x16x64xf32>,
    %cst_72 = arith.constant 0.000000e+00 : f32
    %71 = vector.broadcast %cst_72 : f32 to vector<256x64xf32>
    %c0_73 = arith.constant 0 : index
    %c0_74 = arith.constant 0 : index
    %c0_75 = arith.constant 0 : index
    %72 = vector.load %arg10[%c0_73, %c0_74, %c0_75] : memref<18x18x64xf32, #tpu.memory_space<vmem>>, vector<16x16x64xf32>
    %73 = vector.shape_cast %72 : vector<16x16x64xf32> to vector<256x64xf32>
    %c0_76 = arith.constant 0 : index
    %c0_77 = arith.constant 0 : index
    %c0_78 = arith.constant 0 : index
    %74 = vector.load %arg5[%c0_76, %c0_77, %c0_78] : memref<9x64x64xf32, #tpu.memory_space<vmem>>, vector<1x64x64xf32>
    %75 = vector.shape_cast %74 : vector<1x64x64xf32> to vector<64x64xf32>
    %cst_79 = arith.constant dense<0.000000e+00> : vector<256x64xf32>
    %76 = tpu.matmul %73, %75, %cst_79 {dimension_numbers = #tpu.dot_dimension_numbers<[1], [0], [0], [1], [0, 0, 1, 1], [], []>} : vector<256x64xf32>, vector<64x64xf32>, vector<256x64xf32> -> vector<256x64xf32>
    %77 = arith.addf %71, %76 : vector<256x64xf32>
    %c0_80 = arith.constant 0 : index
    %c1_81 = arith.constant 1 : index
    %c0_82 = arith.constant 0 : index
    %78 = vector.load %arg10[%c0_80, %c1_81, %c0_82] : memref<18x18x64xf32, #tpu.memory_space<vmem>>, vector<16x16x64xf32>
    %79 = vector.shape_cast %78 : vector<16x16x64xf32> to vector<256x64xf32>
    %c1_83 = arith.constant 1 : index
    %c0_84 = arith.constant 0 : index
    %c0_85 = arith.constant 0 : index
    %80 = vector.load %arg5[%c1_83, %c0_84, %c0_85] : memref<9x64x64xf32, #tpu.memory_space<vmem>>, vector<1x64x64xf32>
    %81 = vector.shape_cast %80 : vector<1x64x64xf32> to vector<64x64xf32>
    %cst_86 = arith.constant dense<0.000000e+00> : vector<256x64xf32>
    %82 = tpu.matmul %79, %81, %cst_86 {dimension_numbers = #tpu.dot_dimension_numbers<[1], [0], [0], [1], [0, 0, 1, 1], [], []>} : vector<256x64xf32>, vector<64x64xf32>, vector<256x64xf32> -> vector<256x64xf32>
    %83 = arith.addf %77, %82 : vector<256x64xf32>
    %c0_87 = arith.constant 0 : index
    %c2_88 = arith.constant 2 : index
    %c0_89 = arith.constant 0 : index
    %84 = vector.load %arg10[%c0_87, %c2_88, %c0_89] : memref<18x18x64xf32, #tpu.memory_space<vmem>>, vector<16x16x64xf32>
    %85 = vector.shape_cast %84 : vector<16x16x64xf32> to vector<256x64xf32>
    %c2_90 = arith.constant 2 : index
    %c0_91 = arith.constant 0 : index
    %c0_92 = arith.constant 0 : index
    %86 = vector.load %arg5[%c2_90, %c0_91, %c0_92] : memref<9x64x64xf32, #tpu.memory_space<vmem>>, vector<1x64x64xf32>
    %87 = vector.shape_cast %86 : vector<1x64x64xf32> to vector<64x64xf32>
    %cst_93 = arith.constant dense<0.000000e+00> : vector<256x64xf32>
    %88 = tpu.matmul %85, %87, %cst_93 {dimension_numbers = #tpu.dot_dimension_numbers<[1], [0], [0], [1], [0, 0, 1, 1], [], []>} : vector<256x64xf32>, vector<64x64xf32>, vector<256x64xf32> -> vector<256x64xf32>
    %89 = arith.addf %83, %88 : vector<256x64xf32>
    %c1_94 = arith.constant 1 : index
    %c0_95 = arith.constant 0 : index
    %c0_96 = arith.constant 0 : index
    %90 = vector.load %arg10[%c1_94, %c0_95, %c0_96] : memref<18x18x64xf32, #tpu.memory_space<vmem>>, vector<16x16x64xf32>
    %91 = vector.shape_cast %90 : vector<16x16x64xf32> to vector<256x64xf32>
    %c3_97 = arith.constant 3 : index
    %c0_98 = arith.constant 0 : index
    %c0_99 = arith.constant 0 : index
    %92 = vector.load %arg5[%c3_97, %c0_98, %c0_99] : memref<9x64x64xf32, #tpu.memory_space<vmem>>, vector<1x64x64xf32>
    %93 = vector.shape_cast %92 : vector<1x64x64xf32> to vector<64x64xf32>
    %cst_100 = arith.constant dense<0.000000e+00> : vector<256x64xf32>
    %94 = tpu.matmul %91, %93, %cst_100 {dimension_numbers = #tpu.dot_dimension_numbers<[1], [0], [0], [1], [0, 0, 1, 1], [], []>} : vector<256x64xf32>, vector<64x64xf32>, vector<256x64xf32> -> vector<256x64xf32>
    %95 = arith.addf %89, %94 : vector<256x64xf32>
    %c1_101 = arith.constant 1 : index
    %c1_102 = arith.constant 1 : index
    %c0_103 = arith.constant 0 : index
    %96 = vector.load %arg10[%c1_101, %c1_102, %c0_103] : memref<18x18x64xf32, #tpu.memory_space<vmem>>, vector<16x16x64xf32>
    %97 = vector.shape_cast %96 : vector<16x16x64xf32> to vector<256x64xf32>
    %c4_104 = arith.constant 4 : index
    %c0_105 = arith.constant 0 : index
    %c0_106 = arith.constant 0 : index
    %98 = vector.load %arg5[%c4_104, %c0_105, %c0_106] : memref<9x64x64xf32, #tpu.memory_space<vmem>>, vector<1x64x64xf32>
    %99 = vector.shape_cast %98 : vector<1x64x64xf32> to vector<64x64xf32>
    %cst_107 = arith.constant dense<0.000000e+00> : vector<256x64xf32>
    %100 = tpu.matmul %97, %99, %cst_107 {dimension_numbers = #tpu.dot_dimension_numbers<[1], [0], [0], [1], [0, 0, 1, 1], [], []>} : vector<256x64xf32>, vector<64x64xf32>, vector<256x64xf32> -> vector<256x64xf32>
    %101 = arith.addf %95, %100 : vector<256x64xf32>
    %c1_108 = arith.constant 1 : index
    %c2_109 = arith.constant 2 : index
    %c0_110 = arith.constant 0 : index
    %102 = vector.load %arg10[%c1_108, %c2_109, %c0_110] : memref<18x18x64xf32, #tpu.memory_space<vmem>>, vector<16x16x64xf32>
    %103 = vector.shape_cast %102 : vector<16x16x64xf32> to vector<256x64xf32>
    %c5_111 = arith.constant 5 : index
    %c0_112 = arith.constant 0 : index
    %c0_113 = arith.constant 0 : index
    %104 = vector.load %arg5[%c5_111, %c0_112, %c0_113] : memref<9x64x64xf32, #tpu.memory_space<vmem>>, vector<1x64x64xf32>
    %105 = vector.shape_cast %104 : vector<1x64x64xf32> to vector<64x64xf32>
    %cst_114 = arith.constant dense<0.000000e+00> : vector<256x64xf32>
    %106 = tpu.matmul %103, %105, %cst_114 {dimension_numbers = #tpu.dot_dimension_numbers<[1], [0], [0], [1], [0, 0, 1, 1], [], []>} : vector<256x64xf32>, vector<64x64xf32>, vector<256x64xf32> -> vector<256x64xf32>
    %107 = arith.addf %101, %106 : vector<256x64xf32>
    %c2_115 = arith.constant 2 : index
    %c0_116 = arith.constant 0 : index
    %c0_117 = arith.constant 0 : index
    %108 = vector.load %arg10[%c2_115, %c0_116, %c0_117] : memref<18x18x64xf32, #tpu.memory_space<vmem>>, vector<16x16x64xf32>
    %109 = vector.shape_cast %108 : vector<16x16x64xf32> to vector<256x64xf32>
    %c6_118 = arith.constant 6 : index
    %c0_119 = arith.constant 0 : index
    %c0_120 = arith.constant 0 : index
    %110 = vector.load %arg5[%c6_118, %c0_119, %c0_120] : memref<9x64x64xf32, #tpu.memory_space<vmem>>, vector<1x64x64xf32>
    %111 = vector.shape_cast %110 : vector<1x64x64xf32> to vector<64x64xf32>
    %cst_121 = arith.constant dense<0.000000e+00> : vector<256x64xf32>
    %112 = tpu.matmul %109, %111, %cst_121 {dimension_numbers = #tpu.dot_dimension_numbers<[1], [0], [0], [1], [0, 0, 1, 1], [], []>} : vector<256x64xf32>, vector<64x64xf32>, vector<256x64xf32> -> vector<256x64xf32>
    %113 = arith.addf %107, %112 : vector<256x64xf32>
    %c2_122 = arith.constant 2 : index
    %c1_123 = arith.constant 1 : index
    %c0_124 = arith.constant 0 : index
    %114 = vector.load %arg10[%c2_122, %c1_123, %c0_124] : memref<18x18x64xf32, #tpu.memory_space<vmem>>, vector<16x16x64xf32>
    %115 = vector.shape_cast %114 : vector<16x16x64xf32> to vector<256x64xf32>
    %c7_125 = arith.constant 7 : index
    %c0_126 = arith.constant 0 : index
    %c0_127 = arith.constant 0 : index
    %116 = vector.load %arg5[%c7_125, %c0_126, %c0_127] : memref<9x64x64xf32, #tpu.memory_space<vmem>>, vector<1x64x64xf32>
    %117 = vector.shape_cast %116 : vector<1x64x64xf32> to vector<64x64xf32>
    %cst_128 = arith.constant dense<0.000000e+00> : vector<256x64xf32>
    %118 = tpu.matmul %115, %117, %cst_128 {dimension_numbers = #tpu.dot_dimension_numbers<[1], [0], [0], [1], [0, 0, 1, 1], [], []>} : vector<256x64xf32>, vector<64x64xf32>, vector<256x64xf32> -> vector<256x64xf32>
    %119 = arith.addf %113, %118 : vector<256x64xf32>
    %c2_129 = arith.constant 2 : index
    %c2_130 = arith.constant 2 : index
    %c0_131 = arith.constant 0 : index
    %120 = vector.load %arg10[%c2_129, %c2_130, %c0_131] : memref<18x18x64xf32, #tpu.memory_space<vmem>>, vector<16x16x64xf32>
    %121 = vector.shape_cast %120 : vector<16x16x64xf32> to vector<256x64xf32>
    %c8_132 = arith.constant 8 : index
    %c0_133 = arith.constant 0 : index
    %c0_134 = arith.constant 0 : index
    %122 = vector.load %arg5[%c8_132, %c0_133, %c0_134] : memref<9x64x64xf32, #tpu.memory_space<vmem>>, vector<1x64x64xf32>
    %123 = vector.shape_cast %122 : vector<1x64x64xf32> to vector<64x64xf32>
    %cst_135 = arith.constant dense<0.000000e+00> : vector<256x64xf32>
    %124 = tpu.matmul %121, %123, %cst_135 {dimension_numbers = #tpu.dot_dimension_numbers<[1], [0], [0], [1], [0, 0, 1, 1], [], []>} : vector<256x64xf32>, vector<64x64xf32>, vector<256x64xf32> -> vector<256x64xf32>
    %125 = arith.addf %119, %124 : vector<256x64xf32>
    %c0_136 = arith.constant 0 : index
    %c0_137 = arith.constant 0 : index
    %126 = vector.load %arg6[%c0_136, %c0_137] : memref<1x64xf32, #tpu.memory_space<vmem>>, vector<1x64xf32>
    %127 = vector.broadcast %126 : vector<1x64xf32> to vector<256x64xf32>
    %128 = arith.addf %125, %127 : vector<256x64xf32>
    %cst_138 = arith.constant 0.000000e+00 : f32
    %129 = vector.broadcast %cst_138 : f32 to vector<18x18x64xf32>
    %c0_139 = arith.constant 0 : index
    %c0_140 = arith.constant 0 : index
    %c0_141 = arith.constant 0 : index
    %130 = vector.load %arg11[%c0_139, %c0_140, %c0_141] : memref<18x18x64xf32, #tpu.memory_space<vmem>>, vector<18x18x64xf32>
    tpu.vector_store %arg11[%c0_139, %c0_140, %c0_141], %129 {strides = array<i32>} : memref<18x18x64xf32, #tpu.memory_space<vmem>>, vector<18x18x64xf32>,
    %131 = vector.shape_cast %128 : vector<256x64xf32> to vector<16x16x64xf32>
    %c1_142 = arith.constant 1 : index
    %c1_143 = arith.constant 1 : index
    %c0_144 = arith.constant 0 : index
    %132 = vector.load %arg11[%c1_142, %c1_143, %c0_144] : memref<18x18x64xf32, #tpu.memory_space<vmem>>, vector<16x16x64xf32>
    tpu.vector_store %arg11[%c1_142, %c1_143, %c0_144], %131 {strides = array<i32>} : memref<18x18x64xf32, #tpu.memory_space<vmem>>, vector<16x16x64xf32>,
    %cst_145 = arith.constant 0.000000e+00 : f32
    %133 = vector.broadcast %cst_145 : f32 to vector<256x27xf32>
    %c0_146 = arith.constant 0 : index
    %c0_147 = arith.constant 0 : index
    %c0_148 = arith.constant 0 : index
    %134 = vector.load %arg11[%c0_146, %c0_147, %c0_148] : memref<18x18x64xf32, #tpu.memory_space<vmem>>, vector<16x16x64xf32>
    %135 = vector.shape_cast %134 : vector<16x16x64xf32> to vector<256x64xf32>
    %c0_149 = arith.constant 0 : index
    %c0_150 = arith.constant 0 : index
    %c0_151 = arith.constant 0 : index
    %136 = vector.load %arg7[%c0_149, %c0_150, %c0_151] : memref<9x64x27xf32, #tpu.memory_space<vmem>>, vector<1x64x27xf32>
    %137 = vector.shape_cast %136 : vector<1x64x27xf32> to vector<64x27xf32>
    %cst_152 = arith.constant dense<0.000000e+00> : vector<256x27xf32>
    %138 = tpu.matmul %135, %137, %cst_152 {dimension_numbers = #tpu.dot_dimension_numbers<[1], [0], [0], [1], [0, 0, 1, 1], [], []>} : vector<256x64xf32>, vector<64x27xf32>, vector<256x27xf32> -> vector<256x27xf32>
    %139 = arith.addf %133, %138 : vector<256x27xf32>
    %c0_153 = arith.constant 0 : index
    %c1_154 = arith.constant 1 : index
    %c0_155 = arith.constant 0 : index
    %140 = vector.load %arg11[%c0_153, %c1_154, %c0_155] : memref<18x18x64xf32, #tpu.memory_space<vmem>>, vector<16x16x64xf32>
    %141 = vector.shape_cast %140 : vector<16x16x64xf32> to vector<256x64xf32>
    %c1_156 = arith.constant 1 : index
    %c0_157 = arith.constant 0 : index
    %c0_158 = arith.constant 0 : index
    %142 = vector.load %arg7[%c1_156, %c0_157, %c0_158] : memref<9x64x27xf32, #tpu.memory_space<vmem>>, vector<1x64x27xf32>
    %143 = vector.shape_cast %142 : vector<1x64x27xf32> to vector<64x27xf32>
    %cst_159 = arith.constant dense<0.000000e+00> : vector<256x27xf32>
    %144 = tpu.matmul %141, %143, %cst_159 {dimension_numbers = #tpu.dot_dimension_numbers<[1], [0], [0], [1], [0, 0, 1, 1], [], []>} : vector<256x64xf32>, vector<64x27xf32>, vector<256x27xf32> -> vector<256x27xf32>
    %145 = arith.addf %139, %144 : vector<256x27xf32>
    %c0_160 = arith.constant 0 : index
    %c2_161 = arith.constant 2 : index
    %c0_162 = arith.constant 0 : index
    %146 = vector.load %arg11[%c0_160, %c2_161, %c0_162] : memref<18x18x64xf32, #tpu.memory_space<vmem>>, vector<16x16x64xf32>
    %147 = vector.shape_cast %146 : vector<16x16x64xf32> to vector<256x64xf32>
    %c2_163 = arith.constant 2 : index
    %c0_164 = arith.constant 0 : index
    %c0_165 = arith.constant 0 : index
    %148 = vector.load %arg7[%c2_163, %c0_164, %c0_165] : memref<9x64x27xf32, #tpu.memory_space<vmem>>, vector<1x64x27xf32>
    %149 = vector.shape_cast %148 : vector<1x64x27xf32> to vector<64x27xf32>
    %cst_166 = arith.constant dense<0.000000e+00> : vector<256x27xf32>
    %150 = tpu.matmul %147, %149, %cst_166 {dimension_numbers = #tpu.dot_dimension_numbers<[1], [0], [0], [1], [0, 0, 1, 1], [], []>} : vector<256x64xf32>, vector<64x27xf32>, vector<256x27xf32> -> vector<256x27xf32>
    %151 = arith.addf %145, %150 : vector<256x27xf32>
    %c1_167 = arith.constant 1 : index
    %c0_168 = arith.constant 0 : index
    %c0_169 = arith.constant 0 : index
    %152 = vector.load %arg11[%c1_167, %c0_168, %c0_169] : memref<18x18x64xf32, #tpu.memory_space<vmem>>, vector<16x16x64xf32>
    %153 = vector.shape_cast %152 : vector<16x16x64xf32> to vector<256x64xf32>
    %c3_170 = arith.constant 3 : index
    %c0_171 = arith.constant 0 : index
    %c0_172 = arith.constant 0 : index
    %154 = vector.load %arg7[%c3_170, %c0_171, %c0_172] : memref<9x64x27xf32, #tpu.memory_space<vmem>>, vector<1x64x27xf32>
    %155 = vector.shape_cast %154 : vector<1x64x27xf32> to vector<64x27xf32>
    %cst_173 = arith.constant dense<0.000000e+00> : vector<256x27xf32>
    %156 = tpu.matmul %153, %155, %cst_173 {dimension_numbers = #tpu.dot_dimension_numbers<[1], [0], [0], [1], [0, 0, 1, 1], [], []>} : vector<256x64xf32>, vector<64x27xf32>, vector<256x27xf32> -> vector<256x27xf32>
    %157 = arith.addf %151, %156 : vector<256x27xf32>
    %c1_174 = arith.constant 1 : index
    %c1_175 = arith.constant 1 : index
    %c0_176 = arith.constant 0 : index
    %158 = vector.load %arg11[%c1_174, %c1_175, %c0_176] : memref<18x18x64xf32, #tpu.memory_space<vmem>>, vector<16x16x64xf32>
    %159 = vector.shape_cast %158 : vector<16x16x64xf32> to vector<256x64xf32>
    %c4_177 = arith.constant 4 : index
    %c0_178 = arith.constant 0 : index
    %c0_179 = arith.constant 0 : index
    %160 = vector.load %arg7[%c4_177, %c0_178, %c0_179] : memref<9x64x27xf32, #tpu.memory_space<vmem>>, vector<1x64x27xf32>
    %161 = vector.shape_cast %160 : vector<1x64x27xf32> to vector<64x27xf32>
    %cst_180 = arith.constant dense<0.000000e+00> : vector<256x27xf32>
    %162 = tpu.matmul %159, %161, %cst_180 {dimension_numbers = #tpu.dot_dimension_numbers<[1], [0], [0], [1], [0, 0, 1, 1], [], []>} : vector<256x64xf32>, vector<64x27xf32>, vector<256x27xf32> -> vector<256x27xf32>
    %163 = arith.addf %157, %162 : vector<256x27xf32>
    %c1_181 = arith.constant 1 : index
    %c2_182 = arith.constant 2 : index
    %c0_183 = arith.constant 0 : index
    %164 = vector.load %arg11[%c1_181, %c2_182, %c0_183] : memref<18x18x64xf32, #tpu.memory_space<vmem>>, vector<16x16x64xf32>
    %165 = vector.shape_cast %164 : vector<16x16x64xf32> to vector<256x64xf32>
    %c5_184 = arith.constant 5 : index
    %c0_185 = arith.constant 0 : index
    %c0_186 = arith.constant 0 : index
    %166 = vector.load %arg7[%c5_184, %c0_185, %c0_186] : memref<9x64x27xf32, #tpu.memory_space<vmem>>, vector<1x64x27xf32>
    %167 = vector.shape_cast %166 : vector<1x64x27xf32> to vector<64x27xf32>
    %cst_187 = arith.constant dense<0.000000e+00> : vector<256x27xf32>
    %168 = tpu.matmul %165, %167, %cst_187 {dimension_numbers = #tpu.dot_dimension_numbers<[1], [0], [0], [1], [0, 0, 1, 1], [], []>} : vector<256x64xf32>, vector<64x27xf32>, vector<256x27xf32> -> vector<256x27xf32>
    %169 = arith.addf %163, %168 : vector<256x27xf32>
    %c2_188 = arith.constant 2 : index
    %c0_189 = arith.constant 0 : index
    %c0_190 = arith.constant 0 : index
    %170 = vector.load %arg11[%c2_188, %c0_189, %c0_190] : memref<18x18x64xf32, #tpu.memory_space<vmem>>, vector<16x16x64xf32>
    %171 = vector.shape_cast %170 : vector<16x16x64xf32> to vector<256x64xf32>
    %c6_191 = arith.constant 6 : index
    %c0_192 = arith.constant 0 : index
    %c0_193 = arith.constant 0 : index
    %172 = vector.load %arg7[%c6_191, %c0_192, %c0_193] : memref<9x64x27xf32, #tpu.memory_space<vmem>>, vector<1x64x27xf32>
    %173 = vector.shape_cast %172 : vector<1x64x27xf32> to vector<64x27xf32>
    %cst_194 = arith.constant dense<0.000000e+00> : vector<256x27xf32>
    %174 = tpu.matmul %171, %173, %cst_194 {dimension_numbers = #tpu.dot_dimension_numbers<[1], [0], [0], [1], [0, 0, 1, 1], [], []>} : vector<256x64xf32>, vector<64x27xf32>, vector<256x27xf32> -> vector<256x27xf32>
    %175 = arith.addf %169, %174 : vector<256x27xf32>
    %c2_195 = arith.constant 2 : index
    %c1_196 = arith.constant 1 : index
    %c0_197 = arith.constant 0 : index
    %176 = vector.load %arg11[%c2_195, %c1_196, %c0_197] : memref<18x18x64xf32, #tpu.memory_space<vmem>>, vector<16x16x64xf32>
    %177 = vector.shape_cast %176 : vector<16x16x64xf32> to vector<256x64xf32>
    %c7_198 = arith.constant 7 : index
    %c0_199 = arith.constant 0 : index
    %c0_200 = arith.constant 0 : index
    %178 = vector.load %arg7[%c7_198, %c0_199, %c0_200] : memref<9x64x27xf32, #tpu.memory_space<vmem>>, vector<1x64x27xf32>
    %179 = vector.shape_cast %178 : vector<1x64x27xf32> to vector<64x27xf32>
    %cst_201 = arith.constant dense<0.000000e+00> : vector<256x27xf32>
    %180 = tpu.matmul %177, %179, %cst_201 {dimension_numbers = #tpu.dot_dimension_numbers<[1], [0], [0], [1], [0, 0, 1, 1], [], []>} : vector<256x64xf32>, vector<64x27xf32>, vector<256x27xf32> -> vector<256x27xf32>
    %181 = arith.addf %175, %180 : vector<256x27xf32>
    %c2_202 = arith.constant 2 : index
    %c2_203 = arith.constant 2 : index
    %c0_204 = arith.constant 0 : index
    %182 = vector.load %arg11[%c2_202, %c2_203, %c0_204] : memref<18x18x64xf32, #tpu.memory_space<vmem>>, vector<16x16x64xf32>
    %183 = vector.shape_cast %182 : vector<16x16x64xf32> to vector<256x64xf32>
    %c8_205 = arith.constant 8 : index
    %c0_206 = arith.constant 0 : index
    %c0_207 = arith.constant 0 : index
    %184 = vector.load %arg7[%c8_205, %c0_206, %c0_207] : memref<9x64x27xf32, #tpu.memory_space<vmem>>, vector<1x64x27xf32>
    %185 = vector.shape_cast %184 : vector<1x64x27xf32> to vector<64x27xf32>
    %cst_208 = arith.constant dense<0.000000e+00> : vector<256x27xf32>
    %186 = tpu.matmul %183, %185, %cst_208 {dimension_numbers = #tpu.dot_dimension_numbers<[1], [0], [0], [1], [0, 0, 1, 1], [], []>} : vector<256x64xf32>, vector<64x27xf32>, vector<256x27xf32> -> vector<256x27xf32>
    %187 = arith.addf %181, %186 : vector<256x27xf32>
    %c0_209 = arith.constant 0 : index
    %c0_210 = arith.constant 0 : index
    %188 = vector.load %arg8[%c0_209, %c0_210] : memref<1x27xf32, #tpu.memory_space<vmem>>, vector<1x27xf32>
    %189 = vector.broadcast %188 : vector<1x27xf32> to vector<256x27xf32>
    %190 = arith.addf %187, %189 : vector<256x27xf32>
    %cst_211 = arith.constant 0.000000e+00 : f32
    %191 = vector.broadcast %cst_211 : f32 to vector<256x3xf32>
    %c0_212 = arith.constant 0 : index
    %c0_213 = arith.constant 0 : index
    %c0_214 = arith.constant 0 : index
    %c0_215 = arith.constant 0 : index
    %192 = vector.load %arg2[%c0_212, %c0_213, %c0_214, %c0_215] : memref<1x18x18x3xf32, #tpu.memory_space<vmem>>, vector<1x16x16x3xf32>
    %193 = vector.shape_cast %192 : vector<1x16x16x3xf32> to vector<16x16x3xf32>
    %194 = vector.shape_cast %193 : vector<16x16x3xf32> to vector<256x3xf32>
    %195 = vector.extract_strided_slice %190 {offsets = [0, 0], sizes = [256, 3], strides = [1, 1]} : vector<256x27xf32> to vector<256x3xf32>
    %196 = arith.mulf %194, %195 : vector<256x3xf32>
    %197 = arith.addf %191, %196 : vector<256x3xf32>
    %c0_216 = arith.constant 0 : index
    %c0_217 = arith.constant 0 : index
    %c1_218 = arith.constant 1 : index
    %c0_219 = arith.constant 0 : index
    %198 = vector.load %arg2[%c0_216, %c0_217, %c1_218, %c0_219] : memref<1x18x18x3xf32, #tpu.memory_space<vmem>>, vector<1x16x16x3xf32>
    %199 = vector.shape_cast %198 : vector<1x16x16x3xf32> to vector<16x16x3xf32>
    %200 = vector.shape_cast %199 : vector<16x16x3xf32> to vector<256x3xf32>
    %201 = vector.extract_strided_slice %190 {offsets = [0, 3], sizes = [256, 3], strides = [1, 1]} : vector<256x27xf32> to vector<256x3xf32>
    %202 = arith.mulf %200, %201 : vector<256x3xf32>
    %203 = arith.addf %197, %202 : vector<256x3xf32>
    %c0_220 = arith.constant 0 : index
    %c0_221 = arith.constant 0 : index
    %c2_222 = arith.constant 2 : index
    %c0_223 = arith.constant 0 : index
    %204 = vector.load %arg2[%c0_220, %c0_221, %c2_222, %c0_223] : memref<1x18x18x3xf32, #tpu.memory_space<vmem>>, vector<1x16x16x3xf32>
    %205 = vector.shape_cast %204 : vector<1x16x16x3xf32> to vector<16x16x3xf32>
    %206 = vector.shape_cast %205 : vector<16x16x3xf32> to vector<256x3xf32>
    %207 = vector.extract_strided_slice %190 {offsets = [0, 6], sizes = [256, 3], strides = [1, 1]} : vector<256x27xf32> to vector<256x3xf32>
    %208 = arith.mulf %206, %207 : vector<256x3xf32>
    %209 = arith.addf %203, %208 : vector<256x3xf32>
    %c0_224 = arith.constant 0 : index
    %c1_225 = arith.constant 1 : index
    %c0_226 = arith.constant 0 : index
    %c0_227 = arith.constant 0 : index
    %210 = vector.load %arg2[%c0_224, %c1_225, %c0_226, %c0_227] : memref<1x18x18x3xf32, #tpu.memory_space<vmem>>, vector<1x16x16x3xf32>
    %211 = vector.shape_cast %210 : vector<1x16x16x3xf32> to vector<16x16x3xf32>
    %212 = vector.shape_cast %211 : vector<16x16x3xf32> to vector<256x3xf32>
    %213 = vector.extract_strided_slice %190 {offsets = [0, 9], sizes = [256, 3], strides = [1, 1]} : vector<256x27xf32> to vector<256x3xf32>
    %214 = arith.mulf %212, %213 : vector<256x3xf32>
    %215 = arith.addf %209, %214 : vector<256x3xf32>
    %c0_228 = arith.constant 0 : index
    %c1_229 = arith.constant 1 : index
    %c1_230 = arith.constant 1 : index
    %c0_231 = arith.constant 0 : index
    %216 = vector.load %arg2[%c0_228, %c1_229, %c1_230, %c0_231] : memref<1x18x18x3xf32, #tpu.memory_space<vmem>>, vector<1x16x16x3xf32>
    %217 = vector.shape_cast %216 : vector<1x16x16x3xf32> to vector<16x16x3xf32>
    %218 = vector.shape_cast %217 : vector<16x16x3xf32> to vector<256x3xf32>
    %219 = vector.extract_strided_slice %190 {offsets = [0, 12], sizes = [256, 3], strides = [1, 1]} : vector<256x27xf32> to vector<256x3xf32>
    %220 = arith.mulf %218, %219 : vector<256x3xf32>
    %221 = arith.addf %215, %220 : vector<256x3xf32>
    %c0_232 = arith.constant 0 : index
    %c1_233 = arith.constant 1 : index
    %c2_234 = arith.constant 2 : index
    %c0_235 = arith.constant 0 : index
    %222 = vector.load %arg2[%c0_232, %c1_233, %c2_234, %c0_235] : memref<1x18x18x3xf32, #tpu.memory_space<vmem>>, vector<1x16x16x3xf32>
    %223 = vector.shape_cast %222 : vector<1x16x16x3xf32> to vector<16x16x3xf32>
    %224 = vector.shape_cast %223 : vector<16x16x3xf32> to vector<256x3xf32>
    %225 = vector.extract_strided_slice %190 {offsets = [0, 15], sizes = [256, 3], strides = [1, 1]} : vector<256x27xf32> to vector<256x3xf32>
    %226 = arith.mulf %224, %225 : vector<256x3xf32>
    %227 = arith.addf %221, %226 : vector<256x3xf32>
    %c0_236 = arith.constant 0 : index
    %c2_237 = arith.constant 2 : index
    %c0_238 = arith.constant 0 : index
    %c0_239 = arith.constant 0 : index
    %228 = vector.load %arg2[%c0_236, %c2_237, %c0_238, %c0_239] : memref<1x18x18x3xf32, #tpu.memory_space<vmem>>, vector<1x16x16x3xf32>
    %229 = vector.shape_cast %228 : vector<1x16x16x3xf32> to vector<16x16x3xf32>
    %230 = vector.shape_cast %229 : vector<16x16x3xf32> to vector<256x3xf32>
    %231 = vector.extract_strided_slice %190 {offsets = [0, 18], sizes = [256, 3], strides = [1, 1]} : vector<256x27xf32> to vector<256x3xf32>
    %232 = arith.mulf %230, %231 : vector<256x3xf32>
    %233 = arith.addf %227, %232 : vector<256x3xf32>
    %c0_240 = arith.constant 0 : index
    %c2_241 = arith.constant 2 : index
    %c1_242 = arith.constant 1 : index
    %c0_243 = arith.constant 0 : index
    %234 = vector.load %arg2[%c0_240, %c2_241, %c1_242, %c0_243] : memref<1x18x18x3xf32, #tpu.memory_space<vmem>>, vector<1x16x16x3xf32>
    %235 = vector.shape_cast %234 : vector<1x16x16x3xf32> to vector<16x16x3xf32>
    %236 = vector.shape_cast %235 : vector<16x16x3xf32> to vector<256x3xf32>
    %237 = vector.extract_strided_slice %190 {offsets = [0, 21], sizes = [256, 3], strides = [1, 1]} : vector<256x27xf32> to vector<256x3xf32>
    %238 = arith.mulf %236, %237 : vector<256x3xf32>
    %239 = arith.addf %233, %238 : vector<256x3xf32>
    %c0_244 = arith.constant 0 : index
    %c2_245 = arith.constant 2 : index
    %c2_246 = arith.constant 2 : index
    %c0_247 = arith.constant 0 : index
    %240 = vector.load %arg2[%c0_244, %c2_245, %c2_246, %c0_247] : memref<1x18x18x3xf32, #tpu.memory_space<vmem>>, vector<1x16x16x3xf32>
    %241 = vector.shape_cast %240 : vector<1x16x16x3xf32> to vector<16x16x3xf32>
    %242 = vector.shape_cast %241 : vector<16x16x3xf32> to vector<256x3xf32>
    %243 = vector.extract_strided_slice %190 {offsets = [0, 24], sizes = [256, 3], strides = [1, 1]} : vector<256x27xf32> to vector<256x3xf32>
    %244 = arith.mulf %242, %243 : vector<256x3xf32>
    %245 = arith.addf %239, %244 : vector<256x3xf32>
    %c0_248 = arith.constant 0 : index
    %c0_249 = arith.constant 0 : index
    %c0_250 = arith.constant 0 : index
    %246 = vector.load %arg9[%c0_248, %c0_249, %c0_250] : memref<1x256x3xf32, #tpu.memory_space<vmem>>, vector<1x256x3xf32>
    %247 = vector.shape_cast %246 : vector<1x256x3xf32> to vector<256x3xf32>
    %248 = vector.shape_cast %245 : vector<256x3xf32> to vector<1x256x3xf32>
    tpu.vector_store %arg9[%c0_248, %c0_249, %c0_250], %248 {strides = array<i32>} : memref<1x256x3xf32, #tpu.memory_space<vmem>>, vector<1x256x3xf32>,
    return
  }
  func.func @transform_0(%arg0: i32) -> (i32, i32, i32, i32) {
    %c0_i32 = arith.constant 0 : i32
    %c0_i32_0 = arith.constant 0 : i32
    %c0_i32_1 = arith.constant 0 : i32
    %c0_i32_2 = arith.constant 0 : i32
    return %arg0, %c0_i32, %c0_i32_0, %c0_i32_1 : i32, i32, i32, i32
  }
  func.func @transform_1(%arg0: i32) -> (i32, i32, i32, i32) {
    %c0_i32 = arith.constant 0 : i32
    %c0_i32_0 = arith.constant 0 : i32
    %c0_i32_1 = arith.constant 0 : i32
    %c0_i32_2 = arith.constant 0 : i32
    return %arg0, %c0_i32, %c0_i32_0, %c0_i32_1 : i32, i32, i32, i32
  }
  func.func @transform_2(%arg0: i32) -> (i32, i32, i32) {
    %c0_i32 = arith.constant 0 : i32
    %c0_i32_0 = arith.constant 0 : i32
    %c0_i32_1 = arith.constant 0 : i32
    %c0_i32_2 = arith.constant 0 : i32
    return %c0_i32, %c0_i32_0, %c0_i32_1 : i32, i32, i32
  }
  func.func @transform_3(%arg0: i32) -> (i32, i32) {
    %c0_i32 = arith.constant 0 : i32
    %c0_i32_0 = arith.constant 0 : i32
    %c0_i32_1 = arith.constant 0 : i32
    return %c0_i32, %c0_i32_0 : i32, i32
  }
  func.func @transform_4(%arg0: i32) -> (i32, i32, i32) {
    %c0_i32 = arith.constant 0 : i32
    %c0_i32_0 = arith.constant 0 : i32
    %c0_i32_1 = arith.constant 0 : i32
    %c0_i32_2 = arith.constant 0 : i32
    return %c0_i32, %c0_i32_0, %c0_i32_1 : i32, i32, i32
  }
  func.func @transform_5(%arg0: i32) -> (i32, i32) {
    %c0_i32 = arith.constant 0 : i32
    %c0_i32_0 = arith.constant 0 : i32
    %c0_i32_1 = arith.constant 0 : i32
    return %c0_i32, %c0_i32_0 : i32, i32
  }
  func.func @transform_6(%arg0: i32) -> (i32, i32, i32) {
    %c0_i32 = arith.constant 0 : i32
    %c0_i32_0 = arith.constant 0 : i32
    %c0_i32_1 = arith.constant 0 : i32
    %c0_i32_2 = arith.constant 0 : i32
    return %c0_i32, %c0_i32_0, %c0_i32_1 : i32, i32, i32
  }
  func.func @transform_7(%arg0: i32) -> (i32, i32) {
    %c0_i32 = arith.constant 0 : i32
    %c0_i32_0 = arith.constant 0 : i32
    %c0_i32_1 = arith.constant 0 : i32
    return %c0_i32, %c0_i32_0 : i32, i32
  }
  func.func @transform_8(%arg0: i32) -> (i32, i32, i32) {
    %c0_i32 = arith.constant 0 : i32
    %c0_i32_0 = arith.constant 0 : i32
    %c0_i32_1 = arith.constant 0 : i32
    return %arg0, %c0_i32, %c0_i32_0 : i32, i32, i32
  }
}

</mosaic_0001>

<bundles_post_ra>
// kernel: pixel_conv_forward.1
= control target key start
LH: loop header
LB: loop body
LE: loop exit
PB: predicated region body
PF: predicated region fallthrough
CT: control target
= control target key end

     0   :  { %s17963_s27 = smov 0   ;;  %s22445_s0 = inlined_call_operand.vmem [shape: f32[2,18,18,4], index: 0, kind: input, shape index: {}]   ;;  %s22446_s1 = inlined_call_operand.vmem [shape: f32[2,18,18,3], index: 1, kind: input, shape index: {}]   ;;  %s22447_s2 = inlined_call_operand.vmem [shape: f32[9,4,64], index: 2, kind: input, shape index: {}]   ;;  %s22448_s3 = inlined_call_operand.vmem [shape: f32[1,64], index: 3, kind: input, shape index: {}]   ;;  %s22449_s4 = inlined_call_operand.vmem [shape: f32[9,64,64], index: 4, kind: input, shape index: {}]   ;;  %s22450_s5 = inlined_call_operand.vmem [shape: f32[1,64], index: 5, kind: input, shape index: {}]   ;;  %s22451_s6 = inlined_call_operand.vmem [shape: f32[9,64,27], index: 6, kind: input, shape index: {}]   ;;  %s22452_s7 = inlined_call_operand.vmem [shape: f32[1,27], index: 7, kind: input, shape index: {}]   ;;  %s22453_s8 = inlined_call_operand.vmem [shape: f32[2,256,3], index: 8, kind: output, shape index: {}]  }
   0x1 LB: > { %s12798_s28 = sadd.s32 4294967295, %s17907_s27   ;;  %p12802_p0 = scmp.ge.s32.totalorder %s17907_s27, 1  ;;  %s17907_s27 = sphi %s17963_s27, %s18_s27  }
   0x2   : > { %p272_p1 = scmp.lt.s32.totalorder %s17907_s27, 3 }
   0x4   : > { %p273_p2 = pnand %p12802_p0, %p272_p1 }
   0x6   : > { %276 = sbr.rel (%p273_p2) target bundleno = 2553 (0x9f9), region = 52 }
   0xd   : > { %v12807_v0 = vld [vmem:[%s22447_s2 + $0x4] sm:$0xf]  ;;  %vm490_vm0 = vcmask 1043456   ;;  %v17977_v1 = vld [vmem:[%s22447_s2 + $0x10] sm:$0xf]  ;;  %p311_p3 = scmp.lt.s32.totalorder %s12798_s28, 1 }
   0xe   : > { %15223 = vmatprep.subr.msk.mxu1 %vm490_vm0, %v12807_v0  ;;  %15423 = vmatprep.subr.msk.mxu0 %vm490_vm0, %v17977_v1  ;;  %v358_v2 = vld [vmem:[%s22447_s2] sm:$0xf]  ;;  %v13072_v3 = vld [vmem:[%s22447_s2 + $0x14] sm:$0xf]  ;;  %vm393_vm1 = vcmask 31744   ;;  %vm3814_vm2 = vcmask 523264  }
   0xf   : > { %15224 = vmatpush3.msk.msra.mxu1 %vm490_vm0, %v12807_v0  ;;  %15424 = vmatpush3.msk.msra.mxu0 %vm490_vm0, %v17977_v1  ;;  %s22830_s28 = smov (!%p311_p3, %s12798_s28), 1  ;;  %v13138_v9 = vld [vmem:[%s22447_s2 + $0x18] sm:$0xf]  ;;  %v18020_v10 = vld [vmem:[%s22447_s2 + $0x8] sm:$0xf]  ;;  %vm3817_vm3 = vcmask 517120  }
  0x10   : > { %15273 = vmatprep.subr.msk.mxu1 %vm490_vm0, %v358_v2  ;;  %15473 = vmatprep.subr.msk.mxu0 %vm490_vm0, %v13072_v3  ;;  %s17883_s15 = smul.u32 432, %s22830_s28  ;;  %v18139_v28 = vld [vmem:[%s22447_s2 + $0x1c] sm:$0xf]  ;;  %v18302_v61 = vld [vmem:[%s22447_s2 + $0xc] sm:$0xf]  ;;  %s17910_s19 = smov 122  }
  0x11   : > { %s17911_s20 = smov 125   ;;  %s17912_s21 = smov 119   ;;  %vm12698_vm4 = vcmask 23552  }
  0x12   : > { %s18001_s18 = scalar_lea.vmem %s22445_s0, %s17883_s15  ;;  %s17913_s22 = smov 116  }
  0x13   : > { %v359_v4 = vld [vmem:[%s18001_s18 + $0x1] sm:$0xff]  ;;  %v12974_v5 = vld [vmem:[%s18001_s18 + $0x19] sm:$0xff]  ;;  %v360_v6 = vld [vmem:[%s18001_s18 + $0x9] sm:$0xff]  ;;  %s17914_s23 = smov 113   ;;  %s17915_s24 = smov 110  }
  0x14   : > { %15225 = vmatprep.mubr.msk.f32.mxu1 %vm393_vm1, %v359_v4  ;;  %15425 = vmatprep.mubr.msk.f32.mxu0 %vm393_vm1, %v12974_v5  ;;  %v12975_v7 = vld [vmem:[%s18001_s18 + $0x21] sm:$0xff]  ;;  %v18010_v8 = vld [vmem:[%s18001_s18 + $0x31] sm:$0xff]  ;;  %v18025_v11 = vld [vmem:[%s18001_s18 + $0x39] sm:$0xff]  ;;  %s17916_s25 = smov 107   ;;  %s17917_s26 = smov 104  }
  0x15   : > { %15226 = vmatmul.mubr.msk.f32.vlgmr.msra.gmra.mrb[0].mxu1 %vm393_vm1, %v360_v6  ;;  %15426 = vmatmul.mubr.msk.f32.vlgmr.msra.gmra.mrb[0].mxu0 %vm393_vm1, %v12975_v7  ;;  %v18031_v12 = vld [vmem:[%s18001_s18 + $0x49] sm:$0xff]  ;;  %v18044_v13 = vld [vmem:[%s18001_s18 + $0x51] sm:$0xff]  ;;  %v18047_v14 = vld [vmem:[%s18001_s18 + $0x61] sm:$0xff]  ;;  %s21390_s9 = scalar_lea.vmem %s22446_s1, %s17883_s15  ;;  %s14205_s15 = sshll.u32 %s22830_s28, 8 }
  0x16   : > { %15274 = vmatpush3.msk.msra.mxu1 %vm490_vm0, %v358_v2  ;;  %15474 = vmatpush3.msk.msra.mxu0 %vm490_vm0, %v13072_v3  ;;  %v18058_v15 = vld [vmem:[%s18001_s18 + $0x69] sm:$0xff]  ;;  %v18061_v16 = vld [vmem:[%s18001_s18 + $0x79] sm:$0xff]  ;;  %v18072_v17 = vld [vmem:[%s18001_s18 + $0x81] sm:$0xff]  ;;  %s21464_s12 = scalar_lea.vmem %s22453_s8, %s14205_s15 }
  0x17   : > { %15228 = vmatprep.mubr.msk.f32.mxu1 %vm393_vm1, %v12974_v5  ;;  %15428 = vmatprep.mubr.msk.f32.mxu0 %vm393_vm1, %v18010_v8  ;;  %v18075_v18 = vld [vmem:[%s18001_s18 + $0x91] sm:$0xff]  ;;  %v18086_v19 = vld [vmem:[%s18001_s18 + $0x99] sm:$0xff]  ;;  %v18089_v20 = vld [vmem:[%s18001_s18 + $0xa9] sm:$0xff] }
  0x18   : > { %15523 = vmatprep.subr.msk.mxu0 %vm490_vm0, %v13138_v9  ;;  %15323 = vmatprep.subr.msk.mxu1 %vm490_vm0, %v18020_v10  ;;  %v18100_v21 = vld [vmem:[%s18001_s18 + $0xb1] sm:$0xff]  ;;  %v18103_v22 = vld [vmem:[%s18001_s18 + $0xc1] sm:$0xff]  ;;  %v18114_v23 = vld [vmem:[%s18001_s18 + $0xc9] sm:$0xff] }
  0x19   : > { %15229 = vmatmul.mubr.msk.f32.gmra.mrb[2].mxu1 %vm393_vm1, %v12975_v7  ;;  %15429 = vmatmul.mubr.msk.f32.gmra.mrb[2].mxu0 %vm393_vm1, %v18025_v11  ;;  %v18117_v24 = vld [vmem:[%s18001_s18 + $0x1a] sm:$0xff]  ;;  %v18128_v25 = vld [vmem:[%s18001_s18 + $0x22] sm:$0xff]  ;;  %v18134_v27 = vld [vmem:[%s18001_s18 + $0x32] sm:$0xff] }
  0x1a   : > { %15231 = vmatprep.mubr.msk.f32.mxu1 %vm393_vm1, %v18010_v8  ;;  %15431 = vmatprep.mubr.msk.f32.mxu0 %vm393_vm1, %v18031_v12  ;;  %v18131_v26 = vld [vmem:[%s18001_s18 + $0xd9] sm:$0xff]  ;;  %v18149_v29 = vld [vmem:[%s18001_s18 + $0xe1] sm:$0xff]  ;;  %v18157_v31 = vld [vmem:[%s18001_s18 + $0xf1] sm:$0xff] }
  0x1b   : > { %22619 = vst [vmem:[#allocation4_spill] sm:$0xff] %v18149_v29  ;;  %v18152_v30 = vld [vmem:[%s18001_s18 + $0x3a] sm:$0xff]  ;;  %22620 = vst [vmem:[#allocation5_spill] sm:$0xff] %v18157_v31  ;;  %v18160_v32 = vld [vmem:[%s18001_s18 + $0x4a] sm:$0xff] }
  0x1c   : > { %v18173_v33 = vld [vmem:[%s18001_s18 + $0xf9] sm:$0xff]  ;;  %v18179_v35 = vld [vmem:[%s18001_s18 + $0x109] sm:$0xff]  ;;  %v18193_v37 = vld [vmem:[%s18001_s18 + $0x111] sm:$0xff] }
  0x1d   : > { %15232 = vmatmul.mubr.msk.f32.gmra.mrb[4].mxu1 %vm393_vm1, %v18025_v11  ;;  %15432 = vmatmul.mubr.msk.f32.gmra.mrb[4].mxu0 %vm393_vm1, %v18044_v13  ;;  %22621 = vst [vmem:[#allocation6_spill] sm:$0xff] %v18173_v33  ;;  %v18176_v34 = vld [vmem:[%s18001_s18 + $0x52] sm:$0xff]  ;;  %22622 = vst [vmem:[#allocation7_spill] sm:$0xff] %v18179_v35  ;;  %v18182_v36 = vld [vmem:[%s18001_s18 + $0x62] sm:$0xff] }
  0x1e   : > { %15234 = vmatprep.mubr.msk.f32.mxu1 %vm393_vm1, %v18031_v12  ;;  %15434 = vmatprep.mubr.msk.f32.mxu0 %vm393_vm1, %v18047_v14  ;;  %22623 = vst [vmem:[#allocation8_spill] sm:$0xff] %v18193_v37  ;;  %v18196_v38 = vld [vmem:[%s18001_s18 + $0x6a] sm:$0xff]  ;;  %v18199_v39 = vld [vmem:[%s18001_s18 + $0x121] sm:$0xff]  ;;  %v18219_v43 = vld [vmem:[%s18001_s18 + $0x139] sm:$0xff] }
  0x1f   : > { %22624 = vst [vmem:[#allocation9_spill] sm:$0xff] %v18199_v39  ;;  %v18202_v40 = vld [vmem:[%s18001_s18 + $0x7a] sm:$0xff]  ;;  %v18213_v41 = vld [vmem:[%s18001_s18 + $0x129] sm:$0xff]  ;;  %22626 = vst [vmem:[#allocation11_spill] sm:$0xff] %v18219_v43 }
  0x20   : > { %22625 = vst [vmem:[#allocation10_spill] sm:$0xff] %v18213_v41  ;;  %v18216_v42 = vld [vmem:[%s18001_s18 + $0x82] sm:$0xff]  ;;  %v18222_v44 = vld [vmem:[%s18001_s18 + $0x92] sm:$0xff]  ;;  %v18236_v46 = vld [vmem:[%s18001_s18 + $0x9a] sm:$0xff] }
  0x21   : > { %15235 = vmatmul.mubr.msk.f32.gmra.mrb[6].mxu1 %vm393_vm1, %v18044_v13  ;;  %15435 = vmatmul.mubr.msk.f32.gmra.mrb[6].mxu0 %vm393_vm1, %v18058_v15  ;;  %v18233_v45 = vld [vmem:[%s18001_s18 + $0x141] sm:$0xff]  ;;  %v18239_v47 = vld [vmem:[%s18001_s18 + $0x151] sm:$0xff]  ;;  %v18253_v49 = vld [vmem:[%s18001_s18 + $0x159] sm:$0xff] }
  0x22   : > { %15237 = vmatprep.mubr.msk.f32.mxu1 %vm393_vm1, %v18047_v14  ;;  %15437 = vmatprep.mubr.msk.f32.mxu0 %vm393_vm1, %v18061_v16  ;;  %22627 = vst [vmem:[#allocation12_spill] sm:$0xff] %v18233_v45  ;;  %22628 = vst [vmem:[#allocation13_spill] sm:$0xff] %v18239_v47  ;;  %v18242_v48 = vld [vmem:[%s18001_s18 + $0xaa] sm:$0xff]  ;;  %v18256_v50 = vld [vmem:[%s18001_s18 + $0xb2] sm:$0xff] }
  0x23   : > { %22629 = vst [vmem:[#allocation14_spill] sm:$0xff] %v18253_v49  ;;  %v18259_v51 = vld [vmem:[%s18001_s18 + $0x169] sm:$0xff]  ;;  %v18273_v53 = vld [vmem:[%s18001_s18 + $0x171] sm:$0xff]  ;;  %v326_v55 = vld [vmem:[%s18001_s18] sm:$0xff] }
  0x24   : > { %22630 = vst [vmem:[#allocation15_spill] sm:$0xff] %v18259_v51  ;;  %v18262_v52 = vld [vmem:[%s18001_s18 + $0xc2] sm:$0xff]  ;;  %22631 = vst [vmem:[#allocation16_spill] sm:$0xff] %v18273_v53  ;;  %v18276_v54 = vld [vmem:[%s18001_s18 + $0xca] sm:$0xff] }
  0x25   : > { %15238 = vmatmul.mubr.msk.f32.gmra.mrb[8].mxu1 %vm393_vm1, %v18058_v15  ;;  %15438 = vmatmul.mubr.msk.f32.gmra.mrb[8].mxu0 %vm393_vm1, %v18072_v17  ;;  %v18280_v56 = vld [vmem:[%s18001_s18 + $0xda] sm:$0xff]  ;;  %v327_v57 = vld [vmem:[%s18001_s18 + $0x8] sm:$0xff]  ;;  %v18297_v60 = vld [vmem:[%s18001_s18 + $0xf2] sm:$0xff] }
  0x26   : > { %15240 = vmatprep.mubr.msk.f32.mxu1 %vm393_vm1, %v18061_v16  ;;  %15440 = vmatprep.mubr.msk.f32.mxu0 %vm393_vm1, %v18075_v18  ;;  %v18291_v58 = vld [vmem:[%s18001_s18 + $0xe2] sm:$0xff]  ;;  %v18294_v59 = vld [vmem:[%s18001_s18 + $0x18] sm:$0xff]  ;;  %v18320_v0 = vld [vmem:[%s18001_s18 + $0x30] sm:$0xff] }
  0x27   : > { %22632 = vst [vmem:[#allocation17_spill] sm:$0xff] %v18294_v59  ;;  %v18312_v62 = vld [vmem:[%s18001_s18 + $0x20] sm:$0xff]  ;;  %22634 = vst [vmem:[#allocation19_spill] sm:$0xff] %v18320_v0  ;;  %v18323_v2 = vld [vmem:[%s18001_s18 + $0x10a] sm:$0xff] }
  0x28   : > { %22633 = vst [vmem:[#allocation18_spill] sm:$0xff] %v18312_v62  ;;  %v18315_v63 = vld [vmem:[%s18001_s18 + $0xfa] sm:$0xff]  ;;  %v18339_v4 = vld [vmem:[%s18001_s18 + $0x112] sm:$0xff]  ;;  %v18342_v5 = vld [vmem:[%s18001_s18 + $0x48] sm:$0xff] }
  0x29   : > { %15241 = vmatmul.mubr.msk.f32.gmra.mrb[10].mxu1 %vm393_vm1, %v18072_v17  ;;  %15441 = vmatmul.mubr.msk.f32.gmra.mrb[10].mxu0 %vm393_vm1, %v18086_v19  ;;  %v18336_v3 = vld [vmem:[%s18001_s18 + $0x38] sm:$0xff]  ;;  %22636 = vst [vmem:[#allocation21_spill] sm:$0xff] %v18342_v5  ;;  %v18345_v6 = vld [vmem:[%s18001_s18 + $0x122] sm:$0xff]  ;;  %v18356_v7 = vld [vmem:[%s18001_s18 + $0x50] sm:$0xff] }
  0x2a   : > { %15243 = vmatprep.mubr.msk.f32.mxu1 %vm393_vm1, %v18075_v18  ;;  %15443 = vmatprep.mubr.msk.f32.mxu0 %vm393_vm1, %v18089_v20  ;;  %22635 = vst [vmem:[#allocation20_spill] sm:$0xff] %v18336_v3  ;;  %22637 = vst [vmem:[#allocation22_spill] sm:$0xff] %v18356_v7 }
  0x2d   : > { %15244 = vmatmul.mubr.msk.f32.gmra.mrb[12].mxu1 %vm393_vm1, %v18086_v19  ;;  %15444 = vmatmul.mubr.msk.f32.gmra.mrb[12].mxu0 %vm393_vm1, %v18100_v21 }
  0x2e   : > { %15246 = vmatprep.mubr.msk.f32.mxu1 %vm393_vm1, %v18089_v20  ;;  %15446 = vmatprep.mubr.msk.f32.mxu0 %vm393_vm1, %v18103_v22 }
  0x31   : > { %15247 = vmatmul.mubr.msk.f32.gmra.mrb[14].mxu1 %vm393_vm1, %v18100_v21  ;;  %15447 = vmatmul.mubr.msk.f32.gmra.mrb[14].mxu0 %vm393_vm1, %v18114_v23 }
  0x32   : > { %15249 = vmatprep.mubr.msk.f32.mxu1 %vm393_vm1, %v18103_v22  ;;  %15475 = vmatprep.mubr.msk.f32.mxu0 %vm393_vm1, %v18117_v24 }
  0x35   : > { %15250 = vmatmul.mubr.msk.f32.gmra.mrb[16].mxu1 %vm393_vm1, %v18114_v23  ;;  %15476 = vmatmul.mubr.msk.f32.vlgmr.msra.gmra.mrb[0].mxu0 %vm393_vm1, %v18128_v25 }
  0x36   : > { %15524 = vmatpush3.msk.msra.mxu0 %vm490_vm0, %v13138_v9  ;;  %15252 = vmatprep.mubr.msk.f32.mxu1 %vm393_vm1, %v18131_v26  ;;  %v18359_v9 = vld [vmem:[%s18001_s18 + $0x12a] sm:$0xff] }
  0x37   : > { %15478 = vmatprep.mubr.msk.f32.mxu0 %vm393_vm1, %v18134_v27  ;;  %15573 = vmatprep.subr.msk.mxu0 %vm490_vm0, %v18139_v28 }
  0x39   : > { %15253 = vmatmul.mubr.msk.f32.gmra.mrb[18].mxu1 %vm393_vm1, %v18149_v29  ;;  %15479 = vmatmul.mubr.msk.f32.gmra.mrb[2].mxu0 %vm393_vm1, %v18152_v30  ;;  %v18456_v29 = vld [vmem:[%s18001_s18 + $0xd8] sm:$0xff] }
  0x3a   : > { %15255 = vmatprep.mubr.msk.f32.mxu1 %vm393_vm1, %v18157_v31  ;;  %15481 = vmatprep.mubr.msk.f32.mxu0 %vm393_vm1, %v18160_v32  ;;  %v18439_v31 = vld [vmem:[%s18001_s18 + $0x18a] sm:$0xff] }
  0x3b   : > { %22648 = vst [vmem:[#allocation33_spill] sm:$0xff] %v18439_v31 }
  0x3d   : > { %15256 = vmatmul.mubr.msk.f32.gmra.mrb[20].mxu1 %vm393_vm1, %v18173_v33  ;;  %15482 = vmatmul.mubr.msk.f32.gmra.mrb[4].mxu0 %vm393_vm1, %v18176_v34  ;;  %v18425_v33 = vld [vmem:[%s18001_s18 + $0x182] sm:$0xff] }
  0x3e   : > { %15258 = vmatprep.mubr.msk.f32.mxu1 %vm393_vm1, %v18179_v35  ;;  %15484 = vmatprep.mubr.msk.f32.mxu0 %vm393_vm1, %v18182_v36  ;;  %v18422_v35 = vld [vmem:[%s18001_s18 + $0xa8] sm:$0xff]  ;;  %22646 = vst [vmem:[#allocation31_spill] sm:$0xff] %v18425_v33 }
  0x3f   : > { %22645 = vst [vmem:[#allocation30_spill] sm:$0xff] %v18422_v35 }
  0x41   : > { %15259 = vmatmul.mubr.msk.f32.gmra.mrb[22].mxu1 %vm393_vm1, %v18193_v37  ;;  %15485 = vmatmul.mubr.msk.f32.gmra.mrb[6].mxu0 %vm393_vm1, %v18196_v38  ;;  %v18419_v37 = vld [vmem:[%s18001_s18 + $0x172] sm:$0xff] }
  0x42   : > { %15261 = vmatprep.mubr.msk.f32.mxu1 %vm393_vm1, %v18199_v39  ;;  %15487 = vmatprep.mubr.msk.f32.mxu0 %vm393_vm1, %v18202_v40  ;;  %v18416_v39 = vld [vmem:[%s18001_s18 + $0x98] sm:$0xff]  ;;  %22644 = vst [vmem:[#allocation29_spill] sm:$0xff] %v18419_v37 }
  0x43   : > { %22643 = vst [vmem:[#allocation28_spill] sm:$0xff] %v18416_v39 }
  0x45   : > { %15262 = vmatmul.mubr.msk.f32.gmra.mrb[24].mxu1 %vm393_vm1, %v18213_v41  ;;  %15488 = vmatmul.mubr.msk.f32.gmra.mrb[8].mxu0 %vm393_vm1, %v18216_v42  ;;  %v18405_v41 = vld [vmem:[%s18001_s18 + $0x16a] sm:$0xff] }
  0x46   : > { %15264 = vmatprep.mubr.msk.f32.mxu1 %vm393_vm1, %v18219_v43  ;;  %15490 = vmatprep.mubr.msk.f32.mxu0 %vm393_vm1, %v18222_v44  ;;  %v18402_v43 = vld [vmem:[%s18001_s18 + $0x90] sm:$0xff] }
  0x47   : > { %22642 = vst [vmem:[#allocation27_spill] sm:$0xff] %v18402_v43 }
  0x49   : > { %15265 = vmatmul.mubr.msk.f32.gmra.mrb[26].mxu1 %vm393_vm1, %v18233_v45  ;;  %15491 = vmatmul.mubr.msk.f32.gmra.mrb[10].mxu0 %vm393_vm1, %v18236_v46  ;;  %v18399_v45 = vld [vmem:[%s18001_s18 + $0x15a] sm:$0xff] }
  0x4a   : > { %15267 = vmatprep.mubr.msk.f32.mxu1 %vm393_vm1, %v18239_v47  ;;  %15493 = vmatprep.mubr.msk.f32.mxu0 %vm393_vm1, %v18242_v48  ;;  %v18396_v47 = vld [vmem:[%s18001_s18 + $0x80] sm:$0xff] }
  0x4b   : > { %22641 = vst [vmem:[#allocation26_spill] sm:$0xff] %v18396_v47 }
  0x4d   : > { %15268 = vmatmul.mubr.msk.f32.gmra.mrb[28].mxu1 %vm393_vm1, %v18253_v49  ;;  %15494 = vmatmul.mubr.msk.f32.gmra.mrb[12].mxu0 %vm393_vm1, %v18256_v50  ;;  %v18385_v49 = vld [vmem:[%s18001_s18 + $0x152] sm:$0xff] }
  0x4e   : > { %15270 = vmatprep.mubr.msk.f32.mxu1 %vm393_vm1, %v18259_v51  ;;  %15496 = vmatprep.mubr.msk.f32.mxu0 %vm393_vm1, %v18262_v52  ;;  %v18382_v51 = vld [vmem:[%s18001_s18 + $0x78] sm:$0xff] }
  0x4f   : > { %22640 = vst [vmem:[#allocation25_spill] sm:$0xff] %v18382_v51 }
  0x51   : > { %15271 = vmatmul.mubr.msk.f32.gmra.mrb[30].mxu1 %vm393_vm1, %v18273_v53  ;;  %15497 = vmatmul.mubr.msk.f32.gmra.mrb[14].mxu0 %vm393_vm1, %v18276_v54  ;;  %v18379_v53 = vld [vmem:[%s18001_s18 + $0x142] sm:$0xff] }
  0x52   : > { %15275 = vmatprep.mubr.msk.f32.mxu1 %vm393_vm1, %v326_v55  ;;  %15499 = vmatprep.mubr.msk.f32.mxu0 %vm393_vm1, %v18280_v56  ;;  %v18365_v55 = vld [vmem:[%s18001_s18 + $0x13a] sm:$0xff] }
  0x55   : > { %15276 = vmatmul.mubr.msk.f32.vlgmr.msra.gmra.mrb[0].mxu1 %vm393_vm1, %v327_v57  ;;  %15500 = vmatmul.mubr.msk.f32.gmra.mrb[16].mxu0 %vm393_vm1, %v18291_v58  ;;  %v18376_v57 = vld [vmem:[%s18001_s18 + $0x68] sm:$0xff] }
  0x56   : > { %15324 = vmatpush3.msk.msra.mxu1 %vm490_vm0, %v18020_v10  ;;  %15278 = vmatprep.mubr.msk.f32.mxu1 %vm393_vm1, %v18294_v59  ;;  %v18362_v10 = vld [vmem:[%s18001_s18 + $0x60] sm:$0xff]  ;;  %22639 = vst [vmem:[#allocation24_spill] sm:$0xff] %v18376_v57 }
  0x57   : > { %15502 = vmatprep.mubr.msk.f32.mxu0 %vm393_vm1, %v18297_v60  ;;  %15373 = vmatprep.subr.msk.mxu1 %vm490_vm0, %v18302_v61  ;;  %22638 = vst [vmem:[#allocation23_spill] sm:$0xff] %v18362_v10  ;;  %v18442_v59 = vld [vmem:[%s18001_s18 + $0xc0] sm:$0xff] }
  0x59   : > { %15279 = vmatmul.mubr.msk.f32.gmra.mrb[2].mxu1 %vm393_vm1, %v18312_v62  ;;  %15503 = vmatmul.mubr.msk.f32.gmra.mrb[18].mxu0 %vm393_vm1, %v18315_v63  ;;  %v18436_v62 = vld [vmem:[%s18001_s18 + $0xb0] sm:$0xff] }
  0x5a   : > { %15281 = vmatprep.mubr.msk.f32.mxu1 %vm393_vm1, %v18320_v0  ;;  %15505 = vmatprep.mubr.msk.f32.mxu0 %vm393_vm1, %v18323_v2  ;;  %22647 = vst [vmem:[#allocation32_spill] sm:$0xff] %v18436_v62 }
  0x5d   : > { %15282 = vmatmul.mubr.msk.f32.gmra.mrb[4].mxu1 %vm393_vm1, %v18336_v3  ;;  %15506 = vmatmul.mubr.msk.f32.gmra.mrb[20].mxu0 %vm393_vm1, %v18339_v4 }
  0x5e   : > { %15284 = vmatprep.mubr.msk.f32.mxu1 %vm393_vm1, %v18342_v5  ;;  %15508 = vmatprep.mubr.msk.f32.mxu0 %vm393_vm1, %v18345_v6 }
  0x61   : > { %15285 = vmatmul.mubr.msk.f32.gmra.mrb[6].mxu1 %vm393_vm1, %v18356_v7  ;;  %15509 = vmatmul.mubr.msk.f32.gmra.mrb[22].mxu0 %vm393_vm1, %v18359_v9 }
  0x62   : > { %15287 = vmatprep.mubr.msk.f32.mxu1 %vm393_vm1, %v18362_v10  ;;  %15511 = vmatprep.mubr.msk.f32.mxu0 %vm393_vm1, %v18365_v55 }
  0x65   : > { %15288 = vmatmul.mubr.msk.f32.gmra.mrb[8].mxu1 %vm393_vm1, %v18376_v57  ;;  %15512 = vmatmul.mubr.msk.f32.gmra.mrb[24].mxu0 %vm393_vm1, %v18379_v53 }
  0x66   : > { %15290 = vmatprep.mubr.msk.f32.mxu1 %vm393_vm1, %v18382_v51  ;;  %15514 = vmatprep.mubr.msk.f32.mxu0 %vm393_vm1, %v18385_v49 }
  0x69   : > { %15291 = vmatmul.mubr.msk.f32.gmra.mrb[10].mxu1 %vm393_vm1, %v18396_v47  ;;  %15515 = vmatmul.mubr.msk.f32.gmra.mrb[26].mxu0 %vm393_vm1, %v18399_v45 }
  0x6a   : > { %15293 = vmatprep.mubr.msk.f32.mxu1 %vm393_vm1, %v18402_v43  ;;  %15517 = vmatprep.mubr.msk.f32.mxu0 %vm393_vm1, %v18405_v41 }
  0x6d   : > { %15294 = vmatmul.mubr.msk.f32.gmra.mrb[12].mxu1 %vm393_vm1, %v18416_v39  ;;  %15518 = vmatmul.mubr.msk.f32.gmra.mrb[28].mxu0 %vm393_vm1, %v18419_v37  ;;  %v18461_v37 = vld [vmem:[%s22447_s2 + $0x20] sm:$0xf] }
  0x6e   : > { %15296 = vmatprep.mubr.msk.f32.mxu1 %vm393_vm1, %v18422_v35  ;;  %15520 = vmatprep.mubr.msk.f32.mxu0 %vm393_vm1, %v18425_v33  ;;  %v18453_v33 = vld [vmem:[%s18001_s18 + $0xc8] sm:$0xff] }
  0x6f   : > { %22649 = vst [vmem:[#allocation34_spill] sm:$0xff] %v18453_v33 }
  0x71   : > { %15297 = vmatmul.mubr.msk.f32.gmra.mrb[14].mxu1 %vm393_vm1, %v18436_v62  ;;  %15521 = vmatmul.mubr.msk.f32.gmra.mrb[30].mxu0 %vm393_vm1, %v18439_v31  ;;  %v18472_v31 = vld [vmem:[%s18001_s18 + $0xe0] sm:$0xff] }
  0x72   : > { %15299 = vmatprep.mubr.msk.f32.mxu1 %vm393_vm1, %v18442_v59  ;;  %15525 = vmatprep.mubr.msk.f32.mxu0 %vm393_vm1, %v18320_v0  ;;  %v18477_v0 = vld [vmem:[%s18001_s18 + $0xf0] sm:$0xff] }
  0x75   : > { %15300 = vmatmul.mubr.msk.f32.gmra.mrb[16].mxu1 %vm393_vm1, %v18453_v33  ;;  %15526 = vmatmul.mubr.msk.f32.vlgmr.msra.gmra.mrb[0].mxu0 %vm393_vm1, %v18336_v3  ;;  %v1043_v3 = vld [vmem:[%s18001_s18 + $0x2] sm:$0xff] }
  0x76   : > { %15574 = vmatpush3.msk.msra.mxu0 %vm490_vm0, %v18139_v28  ;;  %15302 = vmatprep.mubr.msk.f32.mxu1 %vm393_vm1, %v18456_v29  ;;  %v18490_v28 = vld [vmem:[%s18001_s18 + $0xf8] sm:$0xff] }
  0x77   : > { %15528 = vmatprep.mubr.msk.f32.mxu0 %vm393_vm1, %v18342_v5  ;;  %15623 = vmatprep.subr.msk.mxu0 %vm490_vm0, %v18461_v37  ;;  %v18493_v5 = vld [vmem:[%s18001_s18 + $0x108] sm:$0xff] }
  0x79   : > { %15303 = vmatmul.mubr.msk.f32.gmra.mrb[18].mxu1 %vm393_vm1, %v18472_v31  ;;  %15529 = vmatmul.mubr.msk.f32.gmra.mrb[2].mxu0 %vm393_vm1, %v18356_v7  ;;  %v18504_v7 = vld [vmem:[%s18001_s18 + $0x110] sm:$0xff] }
  0x7a   : > { %15305 = vmatprep.mubr.msk.f32.mxu1 %vm393_vm1, %v18477_v0  ;;  %15531 = vmatprep.mubr.msk.f32.mxu0 %vm393_vm1, %v18362_v10  ;;  %v18507_v10 = vld [vmem:[%s18001_s18 + $0x120] sm:$0xff] }
  0x7d   : > { %15306 = vmatmul.mubr.msk.f32.gmra.mrb[20].mxu1 %vm393_vm1, %v18490_v28  ;;  %15532 = vmatmul.mubr.msk.f32.gmra.mrb[4].mxu0 %vm393_vm1, %v18376_v57  ;;  %v18518_v57 = vld [vmem:[%s18001_s18 + $0x128] sm:$0xff] }
  0x7e   : > { %15308 = vmatprep.mubr.msk.f32.mxu1 %vm393_vm1, %v18493_v5  ;;  %15534 = vmatprep.mubr.msk.f32.mxu0 %vm393_vm1, %v18382_v51  ;;  %v18521_v51 = vld [vmem:[%s18001_s18 + $0x138] sm:$0xff] }
  0x81   : > { %15309 = vmatmul.mubr.msk.f32.gmra.mrb[22].mxu1 %vm393_vm1, %v18504_v7  ;;  %15535 = vmatmul.mubr.msk.f32.gmra.mrb[6].mxu0 %vm393_vm1, %v18396_v47  ;;  %v18532_v47 = vld [vmem:[%s18001_s18 + $0x140] sm:$0xff] }
  0x82   : > { %15311 = vmatprep.mubr.msk.f32.mxu1 %vm393_vm1, %v18507_v10  ;;  %15537 = vmatprep.mubr.msk.f32.mxu0 %vm393_vm1, %v18402_v43  ;;  %v18535_v43 = vld [vmem:[%s18001_s18 + $0x150] sm:$0xff] }
  0x85   : > { %15312 = vmatmul.mubr.msk.f32.gmra.mrb[24].mxu1 %vm393_vm1, %v18518_v57  ;;  %15538 = vmatmul.mubr.msk.f32.gmra.mrb[8].mxu0 %vm393_vm1, %v18416_v39  ;;  %v18546_v39 = vld [vmem:[%s18001_s18 + $0x158] sm:$0xff] }
  0x86   : > { %15314 = vmatprep.mubr.msk.f32.mxu1 %vm393_vm1, %v18521_v51  ;;  %15540 = vmatprep.mubr.msk.f32.mxu0 %vm393_vm1, %v18422_v35  ;;  %v18549_v35 = vld [vmem:[%s18001_s18 + $0x168] sm:$0xff] }
  0x89   : > { %15315 = vmatmul.mubr.msk.f32.gmra.mrb[26].mxu1 %vm393_vm1, %v18532_v47  ;;  %15541 = vmatmul.mubr.msk.f32.gmra.mrb[10].mxu0 %vm393_vm1, %v18436_v62  ;;  %v18560_v62 = vld [vmem:[%s18001_s18 + $0x170] sm:$0xff] }
  0x8a   : > { %15317 = vmatprep.mubr.msk.f32.mxu1 %vm393_vm1, %v18535_v43  ;;  %15543 = vmatprep.mubr.msk.f32.mxu0 %vm393_vm1, %v18442_v59 }
  0x8d   : > { %15318 = vmatmul.mubr.msk.f32.gmra.mrb[28].mxu1 %vm393_vm1, %v18546_v39  ;;  %15544 = vmatmul.mubr.msk.f32.gmra.mrb[12].mxu0 %vm393_vm1, %v18453_v33  ;;  %v1044_v33 = vld [vmem:[%s18001_s18 + $0xa] sm:$0xff] }
  0x8e   : > { %15320 = vmatprep.mubr.msk.f32.mxu1 %vm393_vm1, %v18549_v35  ;;  %15546 = vmatprep.mubr.msk.f32.mxu0 %vm393_vm1, %v18456_v29 }
  0x91   : > { %15321 = vmatmul.mubr.msk.f32.gmra.mrb[30].mxu1 %vm393_vm1, %v18560_v62  ;;  %15547 = vmatmul.mubr.msk.f32.gmra.mrb[14].mxu0 %vm393_vm1, %v18472_v31 }
  0x92   : > { %15325 = vmatprep.mubr.msk.f32.mxu1 %vm393_vm1, %v1043_v3  ;;  %15549 = vmatprep.mubr.msk.f32.mxu0 %vm393_vm1, %v18477_v0  ;;  %v22666_v3 = vld [vmem:[#allocation24_spill] sm:$0xff] }
  0x95   : > { %15326 = vmatmul.mubr.msk.f32.vlgmr.msra.gmra.mrb[0].mxu1 %vm393_vm1, %v1044_v33  ;;  %15550 = vmatmul.mubr.msk.f32.gmra.mrb[16].mxu0 %vm393_vm1, %v18490_v28  ;;  %v13136_v33 = vld [vmem:[%s18001_s18 + $0x198] sm:$0xff] }
  0x96   : > { %15374 = vmatpush3.msk.msra.mxu1 %vm490_vm0, %v18302_v61  ;;  %15328 = vmatprep.mubr.msk.f32.mxu1 %vm393_vm1, %v18117_v24  ;;  %v18615_v24 = vld [vmem:[%s18001_s18 + $0x180] sm:$0xff] }
  0x97   : > { %15552 = vmatprep.mubr.msk.f32.mxu0 %vm393_vm1, %v18493_v5  ;;  %17113 = vmatprep.subr.msk.mxu1 %vm490_vm0, %v17977_v1  ;;  %v13137_v61 = vld [vmem:[%s18001_s18 + $0x1a0] sm:$0xff] }
  0x99   : > { %15329 = vmatmul.mubr.msk.f32.gmra.mrb[2].mxu1 %vm393_vm1, %v18128_v25  ;;  %15553 = vmatmul.mubr.msk.f32.gmra.mrb[18].mxu0 %vm393_vm1, %v18504_v7  ;;  %v18626_v25 = vld [vmem:[%s18001_s18 + $0x188] sm:$0xff] }
  0x9a   : > { %15331 = vmatprep.mubr.msk.f32.mxu1 %vm393_vm1, %v18134_v27  ;;  %15555 = vmatprep.mubr.msk.f32.mxu0 %vm393_vm1, %v18507_v10 }
  0x9d   : > { %15332 = vmatmul.mubr.msk.f32.gmra.mrb[4].mxu1 %vm393_vm1, %v18152_v30  ;;  %15556 = vmatmul.mubr.msk.f32.gmra.mrb[20].mxu0 %vm393_vm1, %v18518_v57 }
  0x9e   : > { %15334 = vmatprep.mubr.msk.f32.mxu1 %vm393_vm1, %v18160_v32  ;;  %15558 = vmatprep.mubr.msk.f32.mxu0 %vm393_vm1, %v18521_v51 }
  0xa1   : > { %15335 = vmatmul.mubr.msk.f32.gmra.mrb[6].mxu1 %vm393_vm1, %v18176_v34  ;;  %15559 = vmatmul.mubr.msk.f32.gmra.mrb[22].mxu0 %vm393_vm1, %v18532_v47 }
  0xa2   : > { %15337 = vmatprep.mubr.msk.f32.mxu1 %vm393_vm1, %v18182_v36  ;;  %15561 = vmatprep.mubr.msk.f32.mxu0 %vm393_vm1, %v18535_v43 }
  0xa5   : > { %15338 = vmatmul.mubr.msk.f32.gmra.mrb[8].mxu1 %vm393_vm1, %v18196_v38  ;;  %15562 = vmatmul.mubr.msk.f32.gmra.mrb[24].mxu0 %vm393_vm1, %v18546_v39 }
  0xa6   : > { %15340 = vmatprep.mubr.msk.f32.mxu1 %vm393_vm1, %v18202_v40  ;;  %15564 = vmatprep.mubr.msk.f32.mxu0 %vm393_vm1, %v18549_v35 }
  0xa9   : > { %15341 = vmatmul.mubr.msk.f32.gmra.mrb[10].mxu1 %vm393_vm1, %v18216_v42  ;;  %15565 = vmatmul.mubr.msk.f32.gmra.mrb[26].mxu0 %vm393_vm1, %v18560_v62 }
  0xaa   : > { %15343 = vmatprep.mubr.msk.f32.mxu1 %vm393_vm1, %v18222_v44  ;;  %15567 = vmatprep.mubr.msk.f32.mxu0 %vm393_vm1, %v18615_v24 }
  0xad   : > { %15344 = vmatmul.mubr.msk.f32.gmra.mrb[12].mxu1 %vm393_vm1, %v18236_v46  ;;  %15568 = vmatmul.mubr.msk.f32.gmra.mrb[28].mxu0 %vm393_vm1, %v18626_v25 }
  0xae   : > { %15346 = vmatprep.mubr.msk.f32.mxu1 %vm393_vm1, %v18242_v48  ;;  %15570 = vmatprep.mubr.msk.f32.mxu0 %vm393_vm1, %v13136_v33  ;;  %v22667_v33 = vld [vmem:[#allocation12_spill] sm:$0xff] }
  0xb1   : > { %15347 = vmatmul.mubr.msk.f32.gmra.mrb[14].mxu1 %vm393_vm1, %v18256_v50  ;;  %15571 = vmatmul.mubr.msk.f32.gmra.mrb[30].mxu0 %vm393_vm1, %v13137_v61  ;;  %v22668_v61 = vld [vmem:[#allocation25_spill] sm:$0xff] }
  0xb2   : > { %15349 = vmatprep.mubr.msk.f32.mxu1 %vm393_vm1, %v18262_v52  ;;  %15575 = vmatprep.mubr.msk.f32.mxu0 %vm393_vm1, %v18010_v8  ;;  %v22650_v8 = vld [vmem:[#allocation29_spill] sm:$0xff] }
  0xb5   : > { %15350 = vmatmul.mubr.msk.f32.gmra.mrb[16].mxu1 %vm393_vm1, %v18276_v54  ;;  %15576 = vmatmul.mubr.msk.f32.vlgmr.msra.gmra.mrb[0].mxu0 %vm393_vm1, %v18025_v11  ;;  %v22651_v11 = vld [vmem:[#allocation4_spill] sm:$0xff] }
  0xb6   : > { %15624 = vmatpush3.msk.msra.mxu0 %vm490_vm0, %v18461_v37  ;;  %15352 = vmatprep.mubr.msk.f32.mxu1 %vm393_vm1, %v18280_v56  ;;  %v22665_v37 = vld [vmem:[#allocation11_spill] sm:$0xff] }
  0xb7   : > { %15578 = vmatprep.mubr.msk.f32.mxu0 %vm393_vm1, %v18031_v12  ;;  %v22652_v12 = vld [vmem:[#allocation17_spill] sm:$0xff] }
  0xb9   : > { %15353 = vmatmul.mubr.msk.f32.gmra.mrb[18].mxu1 %vm393_vm1, %v18291_v58  ;;  %15579 = vmatmul.mubr.msk.f32.gmra.mrb[2].mxu0 %vm393_vm1, %v18044_v13  ;;  %v22653_v13 = vld [vmem:[#allocation5_spill] sm:$0xff] }
  0xba   : > { %15355 = vmatprep.mubr.msk.f32.mxu1 %vm393_vm1, %v18297_v60  ;;  %15581 = vmatprep.mubr.msk.f32.mxu0 %vm393_vm1, %v18047_v14  ;;  %v22654_v14 = vld [vmem:[#allocation18_spill] sm:$0xff] }
  0xbd   : > { %15356 = vmatmul.mubr.msk.f32.gmra.mrb[20].mxu1 %vm393_vm1, %v18315_v63  ;;  %15582 = vmatmul.mubr.msk.f32.gmra.mrb[4].mxu0 %vm393_vm1, %v18058_v15  ;;  %v22655_v15 = vld [vmem:[#allocation6_spill] sm:$0xff] }
  0xbe   : > { %15358 = vmatprep.mubr.msk.f32.mxu1 %vm393_vm1, %v18323_v2  ;;  %15584 = vmatprep.mubr.msk.f32.mxu0 %vm393_vm1, %v18061_v16  ;;  %v22656_v16 = vld [vmem:[#allocation19_spill] sm:$0xff] }
  0xc1   : > { %15359 = vmatmul.mubr.msk.f32.gmra.mrb[22].mxu1 %vm393_vm1, %v18339_v4  ;;  %15585 = vmatmul.mubr.msk.f32.gmra.mrb[6].mxu0 %vm393_vm1, %v18072_v17  ;;  %v22657_v17 = vld [vmem:[#allocation7_spill] sm:$0xff] }
  0xc2   : > { %15361 = vmatprep.mubr.msk.f32.mxu1 %vm393_vm1, %v18345_v6  ;;  %15587 = vmatprep.mubr.msk.f32.mxu0 %vm393_vm1, %v18075_v18  ;;  %v22658_v18 = vld [vmem:[#allocation20_spill] sm:$0xff] }
  0xc5   : > { %15362 = vmatmul.mubr.msk.f32.gmra.mrb[24].mxu1 %vm393_vm1, %v18359_v9  ;;  %15588 = vmatmul.mubr.msk.f32.gmra.mrb[8].mxu0 %vm393_vm1, %v18086_v19  ;;  %v22659_v19 = vld [vmem:[#allocation8_spill] sm:$0xff] }
  0xc6   : > { %15364 = vmatprep.mubr.msk.f32.mxu1 %vm393_vm1, %v18365_v55  ;;  %15590 = vmatprep.mubr.msk.f32.mxu0 %vm393_vm1, %v18089_v20  ;;  %v22660_v20 = vld [vmem:[#allocation21_spill] sm:$0xff] }
  0xc9   : > { %15365 = vmatmul.mubr.msk.f32.gmra.mrb[26].mxu1 %vm393_vm1, %v18379_v53  ;;  %15591 = vmatmul.mubr.msk.f32.gmra.mrb[10].mxu0 %vm393_vm1, %v18100_v21  ;;  %v22661_v21 = vld [vmem:[#allocation9_spill] sm:$0xff] }
  0xca   : > { %15367 = vmatprep.mubr.msk.f32.mxu1 %vm393_vm1, %v18385_v49  ;;  %15593 = vmatprep.mubr.msk.f32.mxu0 %vm393_vm1, %v18103_v22  ;;  %v22663_v22 = vld [vmem:[#allocation10_spill] sm:$0xff] }
  0xcd   : > { %15368 = vmatmul.mubr.msk.f32.gmra.mrb[28].mxu1 %vm393_vm1, %v18399_v45  ;;  %15594 = vmatmul.mubr.msk.f32.gmra.mrb[12].mxu0 %vm393_vm1, %v18114_v23  ;;  %v22664_v23 = vld [vmem:[#allocation23_spill] sm:$0xff] }
  0xce   : > { %15370 = vmatprep.mubr.msk.f32.mxu1 %vm393_vm1, %v18405_v41  ;;  %15596 = vmatprep.mubr.msk.f32.mxu0 %vm393_vm1, %v18131_v26 }
  0xd1   : > { %15371 = vmatmul.mubr.msk.f32.gmra.mrb[30].mxu1 %vm393_vm1, %v22650_v8  ;;  %15597 = vmatmul.mubr.msk.f32.gmra.mrb[14].mxu0 %vm393_vm1, %v22651_v11  ;;  %v22677_v8 = vld [vmem:[#allocation32_spill] sm:$0xff] }
  0xd2   : > { %15375 = vmatprep.mubr.msk.f32.mxu1 %vm393_vm1, %v22652_v12  ;;  %15599 = vmatprep.mubr.msk.f32.mxu0 %vm393_vm1, %v22653_v13  ;;  %v22669_v12 = vld [vmem:[#allocation13_spill] sm:$0xff] }
  0xd5   : > { %15376 = vmatmul.mubr.msk.f32.vlgmr.msra.gmra.mrb[0].mxu1 %vm393_vm1, %v22654_v14  ;;  %15600 = vmatmul.mubr.msk.f32.gmra.mrb[16].mxu0 %vm393_vm1, %v22655_v15  ;;  %v22670_v14 = vld [vmem:[#allocation26_spill] sm:$0xff] }
  0xd6   : > { %17114 = vmatpush3.msk.msra.mxu1 %vm490_vm0, %v17977_v1  ;;  %15378 = vmatprep.mubr.msk.f32.mxu1 %vm393_vm1, %v22656_v16  ;;  %v22662_v1 = vld [vmem:[#allocation22_spill] sm:$0xff] }
  0xd7   : > { %15602 = vmatprep.mubr.msk.f32.mxu0 %vm393_vm1, %v22657_v17  ;;  %v22671_v16 = vld [vmem:[#allocation14_spill] sm:$0xff] }
  0xd9   : > { %15379 = vmatmul.mubr.msk.f32.gmra.mrb[2].mxu1 %vm393_vm1, %v22658_v18  ;;  %15603 = vmatmul.mubr.msk.f32.gmra.mrb[18].mxu0 %vm393_vm1, %v22659_v19  ;;  %v22672_v18 = vld [vmem:[#allocation27_spill] sm:$0xff] }
  0xda   : > { %15381 = vmatprep.mubr.msk.f32.mxu1 %vm393_vm1, %v22660_v20  ;;  %15605 = vmatprep.mubr.msk.f32.mxu0 %vm393_vm1, %v22661_v21  ;;  %v22673_v20 = vld [vmem:[#allocation15_spill] sm:$0xff] }
  0xdd   : > { %15382 = vmatmul.mubr.msk.f32.gmra.mrb[4].mxu1 %vm393_vm1, %v22662_v1  ;;  %15606 = vmatmul.mubr.msk.f32.gmra.mrb[20].mxu0 %vm393_vm1, %v22663_v22  ;;  %v18753_v1 = vld [vmem:[%s18001_s18 + $0x181] sm:$0xff] }
  0xde   : > { %15384 = vmatprep.mubr.msk.f32.mxu1 %vm393_vm1, %v22664_v23  ;;  %15608 = vmatprep.mubr.msk.f32.mxu0 %vm393_vm1, %v22665_v37  ;;  %v22674_v23 = vld [vmem:[#allocation28_spill] sm:$0xff] }
  0xe1   : > { %15385 = vmatmul.mubr.msk.f32.gmra.mrb[6].mxu1 %vm393_vm1, %v22666_v3  ;;  %15609 = vmatmul.mubr.msk.f32.gmra.mrb[22].mxu0 %vm393_vm1, %v22667_v33  ;;  %v22675_v3 = vld [vmem:[#allocation16_spill] sm:$0xff] }
  0xe2   : > { %15387 = vmatprep.mubr.msk.f32.mxu1 %vm393_vm1, %v22668_v61  ;;  %15611 = vmatprep.mubr.msk.f32.mxu0 %vm393_vm1, %v22669_v12  ;;  %v22676_v61 = vld [vmem:[#allocation30_spill] sm:$0xff] }
  0xe5   : > { %15388 = vmatmul.mubr.msk.f32.gmra.mrb[8].mxu1 %vm393_vm1, %v22670_v14  ;;  %15612 = vmatmul.mubr.msk.f32.gmra.mrb[24].mxu0 %vm393_vm1, %v22671_v16  ;;  %v18764_v14 = vld [vmem:[%s18001_s18 + $0x189] sm:$0xff] }
  0xe6   : > { %15390 = vmatprep.mubr.msk.f32.mxu1 %vm393_vm1, %v22672_v18  ;;  %15614 = vmatprep.mubr.msk.f32.mxu0 %vm393_vm1, %v22673_v20  ;;  %v13202_v18 = vld [vmem:[%s18001_s18 + $0x199] sm:$0xff] }
  0xe9   : > { %15391 = vmatmul.mubr.msk.f32.gmra.mrb[10].mxu1 %vm393_vm1, %v22674_v23  ;;  %15615 = vmatmul.mubr.msk.f32.gmra.mrb[26].mxu0 %vm393_vm1, %v22675_v3  ;;  %v13203_v23 = vld [vmem:[%s18001_s18 + $0x1a1] sm:$0xff]  ;;  %v22678_v3 = vld [vmem:[#allocation34_spill] sm:$0xff] }
  0xea   : > { %15393 = vmatprep.mubr.msk.f32.mxu1 %vm393_vm1, %v22676_v61  ;;  %15617 = vmatprep.mubr.msk.f32.mxu0 %vm393_vm1, %v18753_v1 }
  0xed   : > { %15394 = vmatmul.mubr.msk.f32.gmra.mrb[12].mxu1 %vm393_vm1, %v22677_v8  ;;  %15618 = vmatmul.mubr.msk.f32.gmra.mrb[28].mxu0 %vm393_vm1, %v18764_v14 }
  0xee   : > { %15396 = vmatprep.mubr.msk.f32.mxu1 %vm393_vm1, %v18442_v59  ;;  %15620 = vmatprep.mubr.msk.f32.mxu0 %vm393_vm1, %v13202_v18  ;;  %v3940_v59 = vld [vmem:[%s22449_s4 + $0x28] sm:$0xff] }
  0xf1   : > { %15397 = vmatmul.mubr.msk.f32.gmra.mrb[14].mxu1 %vm393_vm1, %v22678_v3  ;;  %15621 = vmatmul.mubr.msk.f32.gmra.mrb[30].mxu0 %vm393_vm1, %v13203_v23 }
  0xf2   : > { %15399 = vmatprep.mubr.msk.f32.mxu1 %vm393_vm1, %v18456_v29  ;;  %15625 = vmatprep.mubr.msk.f32.mxu0 %vm393_vm1, %v18134_v27  ;;  %v22680_v27 = vld [vmem:[#allocation31_spill] sm:$0xff] }
  0xf3   : > { %v13268_v29 = vld [vmem:[%s18001_s18 + $0x19a] sm:$0xff] }
  0xf5   : > { %15400 = vmatmul.mubr.msk.f32.gmra.mrb[16].mxu1 %vm393_vm1, %v18472_v31  ;;  %15626 = vmatmul.mubr.msk.f32.vlgmr.msra.gmra.mrb[0].mxu0 %vm393_vm1, %v18152_v30  ;;  %v22681_v30 = vld [vmem:[#allocation16_spill] sm:$0xff]  ;;  %v22682_v31 = vld [vmem:[#allocation33_spill] sm:$0xff] }
  0xf6   : > { %15402 = vmatprep.mubr.msk.f32.mxu1 %vm393_vm1, %v18477_v0  ;;  %15628 = vmatprep.mubr.msk.f32.mxu0 %vm393_vm1, %v18160_v32  ;;  %v13269_v32 = vld [vmem:[%s18001_s18 + $0x1a2] sm:$0xff] }
  0xf9   : > { %15403 = vmatmul.mubr.msk.f32.gmra.mrb[18].mxu1 %vm393_vm1, %v18490_v28  ;;  %15629 = vmatmul.mubr.msk.f32.gmra.mrb[2].mxu0 %vm393_vm1, %v18176_v34  ;;  %v13305_v34 = vld [vmem:[%s22449_s4 + $0x40] sm:$0xff] }
  0xfa   : > { %15405 = vmatprep.mubr.msk.f32.mxu1 %vm393_vm1, %v18493_v5  ;;  %15631 = vmatprep.mubr.msk.f32.mxu0 %vm393_vm1, %v18182_v36 }
  0xfd   : > { %15406 = vmatmul.mubr.msk.f32.gmra.mrb[20].mxu1 %vm393_vm1, %v18504_v7  ;;  %15632 = vmatmul.mubr.msk.f32.gmra.mrb[4].mxu0 %vm393_vm1, %v18196_v38  ;;  %v13307_v38 = vld [vmem:[%s22449_s4 + $0x50] sm:$0xff] }
  0xfe   : > { %15408 = vmatprep.mubr.msk.f32.mxu1 %vm393_vm1, %v18507_v10  ;;  %15634 = vmatprep.mubr.msk.f32.mxu0 %vm393_vm1, %v18202_v40 }
 0x101   : > { %15409 = vmatmul.mubr.msk.f32.gmra.mrb[22].mxu1 %vm393_vm1, %v18518_v57  ;;  %15635 = vmatmul.mubr.msk.f32.gmra.mrb[6].mxu0 %vm393_vm1, %v18216_v42  ;;  %v13310_v42 = vld [vmem:[%s22449_s4 + $0x68] sm:$0xff] }
 0x102   : > { %15411 = vmatprep.mubr.msk.f32.mxu1 %vm393_vm1, %v18521_v51  ;;  %15637 = vmatprep.mubr.msk.f32.mxu0 %vm393_vm1, %v18222_v44  ;;  %v17909_v44 = vmov 0.0   ;;  %v3936_v51 = vld [vmem:[%s22449_s4 + $0x8] sm:$0xff] }
 0x103   : > { %3820 = vst.msk [vmem:[#allocation2 + $0x20] sm:$0xff] %vm3814_vm2, %v17909_v44  ;;  %3815 = vst.msk [vmem:[#allocation2] sm:$0xff] %vm3814_vm2, %v17909_v44 }
 0x104   : > { %3816 = vst.msk [vmem:[#allocation2 + $0x8] sm:$0xff] %vm3814_vm2, %v17909_v44  ;;  %3819 = vst.msk [vmem:[#allocation2 + $0x18] sm:$0xff] %vm3814_vm2, %v17909_v44 }
 0x105   : > { %15412 = vmatmul.mubr.msk.f32.gmra.mrb[24].mxu1 %vm393_vm1, %v18532_v47  ;;  %15638 = vmatmul.mubr.msk.f32.gmra.mrb[8].mxu0 %vm393_vm1, %v18236_v46  ;;  %3822 = vst.msk [vmem:[#allocation2 + $0x30] sm:$0xff] %vm3814_vm2, %v17909_v44  ;;  %3823 = vst.msk [vmem:[#allocation2 + $0x38] sm:$0xff] %vm3814_vm2, %v17909_v44  ;;  %v13312_v46 = vld [vmem:[%s22449_s4 + $0x78] sm:$0xff] }
 0x106   : > { %15414 = vmatprep.mubr.msk.f32.mxu1 %vm393_vm1, %v18535_v43  ;;  %15640 = vmatprep.mubr.msk.f32.mxu0 %vm393_vm1, %v18242_v48  ;;  %3825 = vst.msk [vmem:[#allocation2 + $0x48] sm:$0xff] %vm3814_vm2, %v17909_v44  ;;  %3826 = vst.msk [vmem:[#allocation2 + $0x50] sm:$0xff] %vm3814_vm2, %v17909_v44 }
 0x107   : > { %3828 = vst.msk [vmem:[#allocation2 + $0x60] sm:$0xff] %vm3814_vm2, %v17909_v44  ;;  %3829 = vst.msk [vmem:[#allocation2 + $0x68] sm:$0xff] %vm3814_vm2, %v17909_v44 }
 0x108   : > { %3831 = vst.msk [vmem:[#allocation2 + $0x78] sm:$0xff] %vm3814_vm2, %v17909_v44  ;;  %3832 = vst.msk [vmem:[#allocation2 + $0x80] sm:$0xff] %vm3814_vm2, %v17909_v44 }
 0x109   : > { %15415 = vmatmul.mubr.msk.f32.gmra.mrb[26].mxu1 %vm393_vm1, %v18546_v39  ;;  %15641 = vmatmul.mubr.msk.f32.gmra.mrb[10].mxu0 %vm393_vm1, %v18256_v50  ;;  %v13308_v39 = vld [vmem:[%s22449_s4 + $0x58] sm:$0xff]  ;;  %3834 = vst.msk [vmem:[#allocation2 + $0x90] sm:$0xff] %vm3814_vm2, %v17909_v44  ;;  %3835 = vst.msk [vmem:[#allocation2 + $0x98] sm:$0xff] %vm3814_vm2, %v17909_v44  ;;  %v3935_v50 = vld [vmem:[%s22449_s4] sm:$0xff] }
 0x10a   : > { %15417 = vmatprep.mubr.msk.f32.mxu1 %vm393_vm1, %v18549_v35  ;;  %15643 = vmatprep.mubr.msk.f32.mxu0 %vm393_vm1, %v18262_v52  ;;  %v13306_v35 = vld [vmem:[%s22449_s4 + $0x48] sm:$0xff]  ;;  %v16829_v40 = vpack.c.bf16 %v13308_v39, %v13307_v38  ;;  %3837 = vst.msk [vmem:[#allocation2 + $0xa8] sm:$0xff] %vm3814_vm2, %v17909_v44  ;;  %3838 = vst.msk [vmem:[#allocation2 + $0xb0] sm:$0xff] %vm3814_vm2, %v17909_v44  ;;  %v16841_v52 = vpack.c.bf16 %v3936_v51, %v3935_v50 }
 0x10b   : > { %v16825_v36 = vpack.c.bf16 %v13306_v35, %v13305_v34  ;;  %3840 = vst.msk [vmem:[#allocation2 + $0xc0] sm:$0xff] %vm3814_vm2, %v17909_v44  ;;  %3841 = vst.msk [vmem:[#allocation2 + $0xc8] sm:$0xff] %vm3814_vm2, %v17909_v44  ;;  %v3943_v48 = vld [vmem:[#allocation2 + $0x1] sm:$0xff] }
 0x10c   : > { %3843 = vst.msk [vmem:[#allocation2 + $0xd8] sm:$0xff] %vm3814_vm2, %v17909_v44  ;;  %3844 = vst.msk [vmem:[#allocation2 + $0xe0] sm:$0xff] %vm3814_vm2, %v17909_v44 }
 0x10d   : > { %15418 = vmatmul.mubr.msk.f32.gmra.mrb[28].mxu1 %vm393_vm1, %v18560_v62  ;;  %15644 = vmatmul.mubr.msk.f32.gmra.mrb[12].mxu0 %vm393_vm1, %v18276_v54  ;;  %3846 = vst.msk [vmem:[#allocation2 + $0xf0] sm:$0xff] %vm3814_vm2, %v17909_v44  ;;  %3847 = vst.msk [vmem:[#allocation2 + $0xf8] sm:$0xff] %vm3814_vm2, %v17909_v44  ;;  %v3938_v54 = vld [vmem:[%s22449_s4 + $0x18] sm:$0xff]  ;;  %v3941_v62 = vld [vmem:[%s22449_s4 + $0x30] sm:$0xff] }
 0x10e   : > { %15420 = vmatprep.mubr.msk.f32.mxu1 %vm393_vm1, %v18615_v24  ;;  %15646 = vmatprep.mubr.msk.f32.mxu0 %vm393_vm1, %v18280_v56  ;;  %3849 = vst.msk [vmem:[#allocation2 + $0x108] sm:$0xff] %vm3814_vm2, %v17909_v44  ;;  %3850 = vst.msk [vmem:[#allocation2 + $0x110] sm:$0xff] %vm3814_vm2, %v17909_v44 }
 0x10f   : > { %16826 = vmatprep.subr.bf16.mxu1 %v16825_v36  ;;  %3852 = vst.msk [vmem:[#allocation2 + $0x120] sm:$0xff] %vm3814_vm2, %v17909_v44  ;;  %3853 = vst.msk [vmem:[#allocation2 + $0x128] sm:$0xff] %vm3814_vm2, %v17909_v44 }
 0x110   : > { %3855 = vst.msk [vmem:[#allocation2 + $0x138] sm:$0xff] %vm3814_vm2, %v17909_v44  ;;  %3856 = vst.msk [vmem:[#allocation2 + $0x140] sm:$0xff] %vm3814_vm2, %v17909_v44 }
 0x111   : > { %15421 = vmatmul.mubr.msk.f32.gmra.mrb[30].mxu1 %vm393_vm1, %v18626_v25  ;;  %15647 = vmatmul.mubr.msk.f32.gmra.mrb[14].mxu0 %vm393_vm1, %v18291_v58  ;;  %3858 = vst.msk [vmem:[#allocation2 + $0x150] sm:$0xff] %vm3814_vm2, %v17909_v44  ;;  %3859 = vst.msk [vmem:[#allocation2 + $0x158] sm:$0xff] %vm3814_vm2, %v17909_v44  ;;  %v3939_v58 = vld [vmem:[%s22449_s4 + $0x20] sm:$0xff] }
 0x112   : > { %15449 = vmatprep.mubr.msk.f32.mxu1 %vm393_vm1, %v18131_v26  ;;  %15649 = vmatprep.mubr.msk.f32.mxu0 %vm393_vm1, %v18297_v60  ;;  %v22679_v26 = vld [vmem:[#allocation29_spill] sm:$0xff]  ;;  %3861 = vst.msk [vmem:[#allocation2 + $0x168] sm:$0xff] %vm3814_vm2, %v17909_v44  ;;  %3862 = vst.msk [vmem:[#allocation2 + $0x170] sm:$0xff] %vm3814_vm2, %v17909_v44  ;;  %v16849_v60 = vpack.c.bf16 %v3940_v59, %v3939_v58 }
 0x113   : > { %3864 = vst.msk [vmem:[#allocation2 + $0x180] sm:$0xff] %vm3814_vm2, %v17909_v44  ;;  %3865 = vst.msk [vmem:[#allocation2 + $0x188] sm:$0xff] %vm3814_vm2, %v17909_v44 }
 0x114   : > { %3867 = vst.msk [vmem:[#allocation2 + $0x198] sm:$0xff] %vm3814_vm2, %v17909_v44  ;;  %3868 = vst.msk [vmem:[#allocation2 + $0x1a0] sm:$0xff] %vm3814_vm2, %v17909_v44 }
 0x115   : > { %15450 = vmatmul.mubr.msk.f32.vlgmr.msra.gmra.mrb[16].mxu1 %vm393_vm1, %v22651_v11  ;;  %15650 = vmatmul.mubr.msk.f32.gmra.mrb[16].mxu0 %vm393_vm1, %v18315_v63  ;;  %7424 = vst.msk [vmem:[#allocation3] sm:$0xff] %vm3814_vm2, %v17909_v44  ;;  %7425 = vst.msk [vmem:[#allocation3 + $0x8] sm:$0xff] %vm3814_vm2, %v17909_v44  ;;  %v3942_v63 = vld [vmem:[%s22449_s4 + $0x38] sm:$0xff] }
 0x116   : > { %15452 = vmatprep.mubr.msk.f32.mxu1 %vm393_vm1, %v22653_v13  ;;  %15652 = vmatprep.mubr.msk.f32.mxu0 %vm393_vm1, %v18323_v2  ;;  %7427 = vst.msk [vmem:[#allocation3 + $0x18] sm:$0xff] %vm3814_vm2, %v17909_v44  ;;  %7428 = vst.msk [vmem:[#allocation3 + $0x20] sm:$0xff] %vm3814_vm2, %v17909_v44  ;;  %v16853_v0 = vpack.c.bf16 %v3942_v63, %v3941_v62  ;;  %v13377_v2 = vld [vmem:[%s22449_s4 + $0x80] sm:$0xff] }
 0x117   : > { %16828 = vmatpush3.bf16.msra.mxu1 %v16825_v36  ;;  %7430 = vst.msk [vmem:[#allocation3 + $0x30] sm:$0xff] %vm3814_vm2, %v17909_v44  ;;  %7431 = vst.msk [vmem:[#allocation3 + $0x38] sm:$0xff] %vm3814_vm2, %v17909_v44 }
 0x118   : > { %16830 = vmatprep.subr.bf16.mxu1 %v16829_v40  ;;  %7433 = vst.msk [vmem:[#allocation3 + $0x48] sm:$0xff] %vm3814_vm2, %v17909_v44  ;;  %7434 = vst.msk [vmem:[#allocation3 + $0x50] sm:$0xff] %vm3814_vm2, %v17909_v44 }
 0x119   : > { %15453 = vmatmul.mubr.msk.f32.gmra.mrb[18].mxu1 %vm393_vm1, %v22655_v15  ;;  %15653 = vmatmul.mubr.msk.f32.gmra.mrb[18].mxu0 %vm393_vm1, %v18339_v4  ;;  %7436 = vst.msk [vmem:[#allocation3 + $0x60] sm:$0xff] %vm3814_vm2, %v17909_v44  ;;  %7437 = vst.msk [vmem:[#allocation3 + $0x68] sm:$0xff] %vm3814_vm2, %v17909_v44  ;;  %v13378_v4 = vld [vmem:[%s22449_s4 + $0x88] sm:$0xff] }
 0x11a   : > { %15455 = vmatprep.mubr.msk.f32.mxu1 %vm393_vm1, %v22657_v17  ;;  %15655 = vmatprep.mubr.msk.f32.mxu0 %vm393_vm1, %v18345_v6  ;;  %7439 = vst.msk [vmem:[#allocation3 + $0x78] sm:$0xff] %vm3814_vm2, %v17909_v44  ;;  %7440 = vst.msk [vmem:[#allocation3 + $0x80] sm:$0xff] %vm3814_vm2, %v17909_v44  ;;  %v19178_v5 = vpack.c.bf16 %v13378_v4, %v13377_v2 }
 0x11b   : > { %16832 = vmatpush3.bf16.msra.mxu1 %v16829_v40  ;;  %7442 = vst.msk [vmem:[#allocation3 + $0x90] sm:$0xff] %vm3814_vm2, %v17909_v44  ;;  %7443 = vst.msk [vmem:[#allocation3 + $0x98] sm:$0xff] %vm3814_vm2, %v17909_v44 }
 0x11c   : > { %7445 = vst.msk [vmem:[#allocation3 + $0xa8] sm:$0xff] %vm3814_vm2, %v17909_v44  ;;  %7446 = vst.msk [vmem:[#allocation3 + $0xb0] sm:$0xff] %vm3814_vm2, %v17909_v44 }
 0x11d   : > { %15456 = vmatmul.mubr.msk.f32.gmra.mrb[20].mxu1 %vm393_vm1, %v22659_v19  ;;  %15656 = vmatmul.mubr.msk.f32.gmra.mrb[20].mxu0 %vm393_vm1, %v18359_v9  ;;  %7448 = vst.msk [vmem:[#allocation3 + $0xc0] sm:$0xff] %vm3814_vm2, %v17909_v44  ;;  %7449 = vst.msk [vmem:[#allocation3 + $0xc8] sm:$0xff] %vm3814_vm2, %v17909_v44 }
 0x11e   : > { %15458 = vmatprep.mubr.msk.f32.mxu1 %vm393_vm1, %v22661_v21  ;;  %15658 = vmatprep.mubr.msk.f32.mxu0 %vm393_vm1, %v18365_v55  ;;  %7451 = vst.msk [vmem:[#allocation3 + $0xd8] sm:$0xff] %vm3814_vm2, %v17909_v44  ;;  %7452 = vst.msk [vmem:[#allocation3 + $0xe0] sm:$0xff] %vm3814_vm2, %v17909_v44 }
 0x11f   : > { %7454 = vst.msk [vmem:[#allocation3 + $0xf0] sm:$0xff] %vm3814_vm2, %v17909_v44  ;;  %7455 = vst.msk [vmem:[#allocation3 + $0xf8] sm:$0xff] %vm3814_vm2, %v17909_v44 }
 0x120   : > { %7457 = vst.msk [vmem:[#allocation3 + $0x108] sm:$0xff] %vm3814_vm2, %v17909_v44  ;;  %7458 = vst.msk [vmem:[#allocation3 + $0x110] sm:$0xff] %vm3814_vm2, %v17909_v44 }
 0x121   : > { %15459 = vmatmul.mubr.msk.f32.gmra.mrb[22].mxu1 %vm393_vm1, %v22663_v22  ;;  %15659 = vmatmul.mubr.msk.f32.gmra.mrb[22].mxu0 %vm393_vm1, %v18379_v53  ;;  %7460 = vst.msk [vmem:[#allocation3 + $0x120] sm:$0xff] %vm3814_vm2, %v17909_v44  ;;  %7461 = vst.msk [vmem:[#allocation3 + $0x128] sm:$0xff] %vm3814_vm2, %v17909_v44  ;;  %v3937_v53 = vld [vmem:[%s22449_s4 + $0x10] sm:$0xff] }
 0x122   : > { %15461 = vmatprep.mubr.msk.f32.mxu1 %vm393_vm1, %v22665_v37  ;;  %15661 = vmatprep.mubr.msk.f32.mxu0 %vm393_vm1, %v18385_v49  ;;  %7463 = vst.msk [vmem:[#allocation3 + $0x138] sm:$0xff] %vm3814_vm2, %v17909_v44  ;;  %7464 = vst.msk [vmem:[#allocation3 + $0x140] sm:$0xff] %vm3814_vm2, %v17909_v44  ;;  %v16845_v56 = vpack.c.bf16 %v3938_v54, %v3937_v53  ;;  %v19192_v37 = vld [vmem:[%s22448_s3] ss:$0 sm:$0xff] }
 0x123   : > { %7466 = vst.msk [vmem:[#allocation3 + $0x150] sm:$0xff] %vm3814_vm2, %v17909_v44  ;;  %7467 = vst.msk [vmem:[#allocation3 + $0x158] sm:$0xff] %vm3814_vm2, %v17909_v44 }
 0x124   : > { %7469 = vst.msk [vmem:[#allocation3 + $0x168] sm:$0xff] %vm3814_vm2, %v17909_v44  ;;  %7470 = vst.msk [vmem:[#allocation3 + $0x170] sm:$0xff] %vm3814_vm2, %v17909_v44 }
 0x125   : > { %15462 = vmatmul.mubr.msk.f32.gmra.mrb[24].mxu1 %vm393_vm1, %v22667_v33  ;;  %15662 = vmatmul.mubr.msk.f32.gmra.mrb[24].mxu0 %vm393_vm1, %v18399_v45  ;;  %7472 = vst.msk [vmem:[#allocation3 + $0x180] sm:$0xff] %vm3814_vm2, %v17909_v44  ;;  %7473 = vst.msk [vmem:[#allocation3 + $0x188] sm:$0xff] %vm3814_vm2, %v17909_v44  ;;  %v13311_v45 = vld [vmem:[%s22449_s4 + $0x70] sm:$0xff] }
 0x126   : > { %15464 = vmatprep.mubr.msk.f32.mxu1 %vm393_vm1, %v22669_v12  ;;  %15664 = vmatprep.mubr.msk.f32.mxu0 %vm393_vm1, %v18405_v41  ;;  %v13309_v41 = vld [vmem:[%s22449_s4 + $0x60] sm:$0xff]  ;;  %7475 = vst.msk [vmem:[#allocation3 + $0x198] sm:$0xff] %vm3814_vm2, %v17909_v44  ;;  %7476 = vst.msk [vmem:[#allocation3 + $0x1a0] sm:$0xff] %vm3814_vm2, %v17909_v44  ;;  %v16837_v47 = vpack.c.bf16 %v13312_v46, %v13311_v45 }
 0x127   : > { %v16833_v43 = vpack.c.bf16 %v13310_v42, %v13309_v41  ;;  %3821 = vst.msk [vmem:[#allocation2 + $0x28] sm:$0x3] %vm3817_vm3, %v17909_v44  ;;  %3818 = vst.msk [vmem:[#allocation2 + $0x10] sm:$0x3] %vm3817_vm3, %v17909_v44 }
 0x128   : > { %3824 = vst.msk [vmem:[#allocation2 + $0x40] sm:$0x3] %vm3817_vm3, %v17909_v44  ;;  %3827 = vst.msk [vmem:[#allocation2 + $0x58] sm:$0x3] %vm3817_vm3, %v17909_v44 }
 0x129   : > { %15465 = vmatmul.mubr.msk.f32.gmra.mrb[26].mxu1 %vm393_vm1, %v22671_v16  ;;  %15665 = vmatmul.mubr.msk.f32.gmra.mrb[26].mxu0 %vm393_vm1, %v22679_v26  ;;  %3830 = vst.msk [vmem:[#allocation2 + $0x70] sm:$0x3] %vm3817_vm3, %v17909_v44  ;;  %3833 = vst.msk [vmem:[#allocation2 + $0x88] sm:$0x3] %vm3817_vm3, %v17909_v44 }
 0x12a   : > { %15467 = vmatprep.mubr.msk.f32.mxu1 %vm393_vm1, %v22673_v20  ;;  %15667 = vmatprep.mubr.msk.f32.mxu0 %vm393_vm1, %v22680_v27  ;;  %3836 = vst.msk [vmem:[#allocation2 + $0xa0] sm:$0x3] %vm3817_vm3, %v17909_v44  ;;  %3839 = vst.msk [vmem:[#allocation2 + $0xb8] sm:$0x3] %vm3817_vm3, %v17909_v44 }
 0x12b   : > { %16834 = vmatprep.subr.bf16.mxu1 %v16833_v43  ;;  %3842 = vst.msk [vmem:[#allocation2 + $0xd0] sm:$0x3] %vm3817_vm3, %v17909_v44  ;;  %3845 = vst.msk [vmem:[#allocation2 + $0xe8] sm:$0x3] %vm3817_vm3, %v17909_v44 }
 0x12c   : > { %16836 = vmatpush3.bf16.msra.mxu1 %v16833_v43  ;;  %3848 = vst.msk [vmem:[#allocation2 + $0x100] sm:$0x3] %vm3817_vm3, %v17909_v44  ;;  %3851 = vst.msk [vmem:[#allocation2 + $0x118] sm:$0x3] %vm3817_vm3, %v17909_v44 }
 0x12d   : > { %15468 = vmatmul.mubr.msk.f32.gmra.mrb[28].mxu1 %vm393_vm1, %v22681_v30  ;;  %15668 = vmatmul.mubr.msk.f32.gmra.mrb[28].mxu0 %vm393_vm1, %v22682_v31  ;;  %3854 = vst.msk [vmem:[#allocation2 + $0x130] sm:$0x3] %vm3817_vm3, %v17909_v44  ;;  %3857 = vst.msk [vmem:[#allocation2 + $0x148] sm:$0x3] %vm3817_vm3, %v17909_v44 }
 0x12e   : > { %15470 = vmatprep.mubr.msk.f32.mxu1 %vm393_vm1, %v18753_v1  ;;  %15670 = vmatprep.mubr.msk.f32.mxu0 %vm393_vm1, %v13268_v29  ;;  %3860 = vst.msk [vmem:[#allocation2 + $0x160] sm:$0x3] %vm3817_vm3, %v17909_v44  ;;  %3863 = vst.msk [vmem:[#allocation2 + $0x178] sm:$0x3] %vm3817_vm3, %v17909_v44  ;;  %v3944_v49 = vld [vmem:[#allocation2 + $0x9] sm:$0xff] }
 0x12f   : > { %3866 = vst.msk [vmem:[#allocation2 + $0x190] sm:$0x3] %vm3817_vm3, %v17909_v44  ;;  %3869 = vst.msk [vmem:[#allocation2 + $0x1a8] sm:$0x3] %vm3817_vm3, %v17909_v44  ;;  %16838 = vmatprep.subr.bf16.mxu1 %v16837_v47 }
 0x130   : > { %7426 = vst.msk [vmem:[#allocation3 + $0x10] sm:$0x3] %vm3817_vm3, %v17909_v44  ;;  %7429 = vst.msk [vmem:[#allocation3 + $0x28] sm:$0x3] %vm3817_vm3, %v17909_v44  ;;  %16840 = vmatpush3.bf16.msra.mxu1 %v16837_v47 }
 0x131   : > { %15471 = vmatmul.mubr.msk.f32.gmra.mrb[30].mxu1 %vm393_vm1, %v18764_v14  ;;  %15671 = vmatmul.mubr.msk.f32.gmra.mrb[30].mxu0 %vm393_vm1, %v13269_v32  ;;  %7432 = vst.msk [vmem:[#allocation3 + $0x40] sm:$0x3] %vm3817_vm3, %v17909_v44  ;;  %7435 = vst.msk [vmem:[#allocation3 + $0x58] sm:$0x3] %vm3817_vm3, %v17909_v44 }
 0x132   : > { %7438 = vst.msk [vmem:[#allocation3 + $0x70] sm:$0x3] %vm3817_vm3, %v17909_v44  ;;  %7441 = vst.msk [vmem:[#allocation3 + $0x88] sm:$0x3] %vm3817_vm3, %v17909_v44  ;;  %15689 = vmatprep.mubr.msk.f32.mxu1 %vm3814_vm2, %v3943_v48  ;;  %16842 = vmatprep.subr.bf16.mxu1 %v16841_v52 }
 0x133   : > { %7444 = vst.msk [vmem:[#allocation3 + $0xa0] sm:$0x3] %vm3817_vm3, %v17909_v44  ;;  %7447 = vst.msk [vmem:[#allocation3 + $0xb8] sm:$0x3] %vm3817_vm3, %v17909_v44 }
 0x134   : > { %7450 = vst.msk [vmem:[#allocation3 + $0xd0] sm:$0x3] %vm3817_vm3, %v17909_v44  ;;  %7453 = vst.msk [vmem:[#allocation3 + $0xe8] sm:$0x3] %vm3817_vm3, %v17909_v44 }
 0x135   : > { %7456 = vst.msk [vmem:[#allocation3 + $0x100] sm:$0x3] %vm3817_vm3, %v17909_v44  ;;  %7459 = vst.msk [vmem:[#allocation3 + $0x118] sm:$0x3] %vm3817_vm3, %v17909_v44  ;;  %15690 = vmatmul.mubr.msk.f32.vlgmr.msra.gmra.mrb[32].mxu1 %vm3814_vm2, %v3944_v49 }
 0x136   : > { %7462 = vst.msk [vmem:[#allocation3 + $0x130] sm:$0x3] %vm3817_vm3, %v17909_v44  ;;  %7465 = vst.msk [vmem:[#allocation3 + $0x148] sm:$0x3] %vm3817_vm3, %v17909_v44  ;;  %16844 = vmatpush3.bf16.msra.mxu1 %v16841_v52 }
 0x137   : > { %7468 = vst.msk [vmem:[#allocation3 + $0x160] sm:$0x3] %vm3817_vm3, %v17909_v44  ;;  %7471 = vst.msk [vmem:[#allocation3 + $0x178] sm:$0x3] %vm3817_vm3, %v17909_v44  ;;  %16846 = vmatprep.subr.bf16.mxu1 %v16845_v56 }
 0x138   : > { %7474 = vst.msk [vmem:[#allocation3 + $0x190] sm:$0x3] %vm3817_vm3, %v17909_v44  ;;  %7477 = vst.msk [vmem:[#allocation3 + $0x1a8] sm:$0x3] %vm3817_vm3, %v17909_v44 }
 0x13a   : > { %16848 = vmatpush3.bf16.msra.mxu1 %v16845_v56 }
 0x13b   : > { %16850 = vmatprep.subr.bf16.mxu1 %v16849_v60 }
 0x13e   : > { %16852 = vmatpush3.bf16.msra.mxu1 %v16849_v60 }
 0x13f   : > { %16854 = vmatprep.subr.bf16.mxu1 %v16853_v0 }
 0x142   : > { %16856 = vmatpush3.bf16.msra.mxu1 %v16853_v0 }
 0x143   : > { %16858 = vmatprep.subr.bf16.mxu1 %v19178_v5 }
 0x1a8   : > { %v15377_v6 = vpop.f32.mrb[0].mxu1 }
 0x1a9   : > { %v1633_v7 = vpop.f32.mrb[1].mxu1 }
 0x1ac   : > { %v15380_v9 = vpop.f32.mrb[2].mxu1 }
 0x1ad   : > { %v1643_v10 = vpop.f32.mrb[3].mxu1 }
 0x1b0   : > { %v15383_v55 = vpop.f32.mrb[4].mxu1 }
 0x1b1   : > { %v1653_v57 = vpop.f32.mrb[5].mxu1 }
 0x1b4   : > { %v15386_v28 = vpop.f32.mrb[6].mxu1 }
 0x1b5   : > { %v1663_v24 = vpop.f32.mrb[7].mxu1 }
 0x1b8   : > { %v15389_v25 = vpop.f32.mrb[8].mxu1 }
 0x1b9   : > { %v1673_v8 = vpop.f32.mrb[9].mxu1 }
 0x1bc   : > { %v15392_v11 = vpop.f32.mrb[10].mxu1 }
 0x1bd   : > { %v1683_v13 = vpop.f32.mrb[11].mxu1 }
 0x1c0   : > { %v19181_v15 = vpop.f32.mrb[12].mxu1 }
 0x1c1   : > { %v19183_v17 = vpop.f32.mrb[13].mxu1 }
 0x1c4   : > { %v19185_v19 = vpop.f32.mrb[14].mxu1 }
 0x1c5   : > { %v19187_v21 = vpop.f32.mrb[15].mxu1 }
 0x1c8   : > { %v15627_v22 = vpop.f32.mrb[0].mxu0 }
 0x1c9   : > { %v17115_v33 = vadd.f32 %v15627_v22, %v15377_v6  ;;  %v3584_v12 = vpop.f32.mrb[1].mxu0 }
 0x1ca   : > { %v17116_v16 = vadd.f32 %v3584_v12, %v1633_v7 }
 0x1cb   : > { %v3783_v20 = vadd.f32 %v17115_v33, %v19192_v37 }
 0x1cc   : > { %v3782_v1 = vadd.f32 %v17116_v16, %v19192_v37  ;;  %v15630_v3 = vpop.f32.mrb[2].mxu0 }
 0x1cd   : > { %3872 = vst.msk [vmem:[#allocation2 + $0x21] sm:$0xff] %vm3814_vm2, %v3783_v20  ;;  %v17117_v61 = vadd.f32 %v15630_v3, %v15380_v9  ;;  %v3594_v14 = vpop.f32.mrb[3].mxu0 }
 0x1ce   : > { %3871 = vst.msk [vmem:[#allocation2 + $0x19] sm:$0xff] %vm3814_vm2, %v3782_v1  ;;  %v17118_v18 = vadd.f32 %v3594_v14, %v1643_v10 }
 0x1cf   : > { %v3785_v23 = vadd.f32 %v17117_v61, %v19192_v37 }
 0x1d0   : > { %v3784_v26 = vadd.f32 %v17118_v18, %v19192_v37  ;;  %v15633_v27 = vpop.f32.mrb[4].mxu0 }
 0x1d1   : > { %3874 = vst.msk [vmem:[#allocation2 + $0x39] sm:$0xff] %vm3814_vm2, %v3785_v23  ;;  %v17119_v29 = vadd.f32 %v15633_v27, %v15383_v55  ;;  %v3604_v30 = vpop.f32.mrb[5].mxu0 }
 0x1d2   : > { %3873 = vst.msk [vmem:[#allocation2 + $0x31] sm:$0xff] %vm3814_vm2, %v3784_v26  ;;  %v17120_v31 = vadd.f32 %v3604_v30, %v1653_v57 }
 0x1d3   : > { %v3787_v32 = vadd.f32 %v17119_v29, %v19192_v37 }
 0x1d4   : > { %v3786_v34 = vadd.f32 %v17120_v31, %v19192_v37  ;;  %v15636_v35 = vpop.f32.mrb[6].mxu0  ;;  %v19210_v41 = vld [vmem:[#allocation2 + $0x21] sm:$0xff] }
 0x1d5   : > { %3876 = vst.msk [vmem:[#allocation2 + $0x51] sm:$0xff] %vm3814_vm2, %v3787_v32  ;;  %v17121_v36 = vadd.f32 %v15636_v35, %v15386_v28  ;;  %v3614_v38 = vpop.f32.mrb[7].mxu0  ;;  %v19205_v39 = vld [vmem:[#allocation2 + $0x19] sm:$0xff] }
 0x1d6   : > { %3875 = vst.msk [vmem:[#allocation2 + $0x49] sm:$0xff] %vm3814_vm2, %v3786_v34  ;;  %v17122_v40 = vadd.f32 %v3614_v38, %v1663_v24  ;;  %15692 = vmatprep.mubr.msk.f32.mxu1 %vm3814_vm2, %v19205_v39 }
 0x1d7   : > { %v3789_v42 = vadd.f32 %v17121_v36, %v19192_v37  ;;  %15693 = vmatmul.mubr.msk.f32.gmra.mrb[34].mxu1 %vm3814_vm2, %v19210_v41 }
 0x1d8   : > { %v3788_v43 = vadd.f32 %v17122_v40, %v19192_v37  ;;  %v15639_v44 = vpop.f32.mrb[8].mxu0  ;;  %v19222_v49 = vld [vmem:[#allocation2 + $0x39] sm:$0xff] }
 0x1d9   : > { %3878 = vst.msk [vmem:[#allocation2 + $0x69] sm:$0xff] %vm3814_vm2, %v3789_v42  ;;  %v17123_v45 = vadd.f32 %v15639_v44, %v15389_v25  ;;  %v3624_v46 = vpop.f32.mrb[9].mxu0  ;;  %v19217_v47 = vld [vmem:[#allocation2 + $0x31] sm:$0xff] }
 0x1da   : > { %3877 = vst.msk [vmem:[#allocation2 + $0x61] sm:$0xff] %vm3814_vm2, %v3788_v43  ;;  %v17124_v48 = vadd.f32 %v3624_v46, %v1673_v8  ;;  %15695 = vmatprep.mubr.msk.f32.mxu1 %vm3814_vm2, %v19217_v47 }
 0x1db   : > { %v3791_v50 = vadd.f32 %v17123_v45, %v19192_v37  ;;  %15696 = vmatmul.mubr.msk.f32.gmra.mrb[36].mxu1 %vm3814_vm2, %v19222_v49 }
 0x1dc   : > { %v3790_v51 = vadd.f32 %v17124_v48, %v19192_v37  ;;  %v15642_v52 = vpop.f32.mrb[10].mxu0  ;;  %v19234_v59 = vld [vmem:[#allocation2 + $0x51] sm:$0xff] }
 0x1dd   : > { %3880 = vst.msk [vmem:[#allocation2 + $0x81] sm:$0xff] %vm3814_vm2, %v3791_v50  ;;  %v17125_v53 = vadd.f32 %v15642_v52, %v15392_v11  ;;  %v3634_v54 = vpop.f32.mrb[11].mxu0  ;;  %v19229_v56 = vld [vmem:[#allocation2 + $0x49] sm:$0xff] }
 0x1de   : > { %3879 = vst.msk [vmem:[#allocation2 + $0x79] sm:$0xff] %vm3814_vm2, %v3790_v51  ;;  %v17126_v58 = vadd.f32 %v3634_v54, %v1683_v13  ;;  %15698 = vmatprep.mubr.msk.f32.mxu1 %vm3814_vm2, %v19229_v56 }
 0x1df   : > { %v3793_v60 = vadd.f32 %v17125_v53, %v19192_v37  ;;  %15699 = vmatmul.mubr.msk.f32.gmra.mrb[38].mxu1 %vm3814_vm2, %v19234_v59 }
 0x1e0   : > { %v3792_v62 = vadd.f32 %v17126_v58, %v19192_v37  ;;  %v15645_v63 = vpop.f32.mrb[12].mxu0  ;;  %v19248_v7 = vld [vmem:[#allocation2 + $0x69] sm:$0xff] }
 0x1e1   : > { %3882 = vst.msk [vmem:[#allocation2 + $0x99] sm:$0xff] %vm3814_vm2, %v3793_v60  ;;  %v17127_v0 = vadd.f32 %v15645_v63, %v19181_v15  ;;  %v3644_v2 = vpop.f32.mrb[13].mxu0  ;;  %v19242_v4 = vld [vmem:[#allocation2 + $0x61] sm:$0xff] }
 0x1e2   : > { %3881 = vst.msk [vmem:[#allocation2 + $0x91] sm:$0xff] %vm3814_vm2, %v3792_v62  ;;  %v17128_v6 = vadd.f32 %v3644_v2, %v19183_v17  ;;  %15701 = vmatprep.mubr.msk.f32.mxu1 %vm3814_vm2, %v19242_v4 }
 0x1e3   : > { %v3795_v9 = vadd.f32 %v17127_v0, %v19192_v37  ;;  %15702 = vmatmul.mubr.msk.f32.gmra.mrb[40].mxu1 %vm3814_vm2, %v19248_v7 }
 0x1e4   : > { %v3794_v10 = vadd.f32 %v17128_v6, %v19192_v37  ;;  %v15648_v55 = vpop.f32.mrb[14].mxu0  ;;  %v19262_v8 = vld [vmem:[#allocation2 + $0x81] sm:$0xff] }
 0x1e5   : > { %3884 = vst.msk [vmem:[#allocation2 + $0xb1] sm:$0xff] %vm3814_vm2, %v3795_v9  ;;  %v17129_v57 = vadd.f32 %v15648_v55, %v19185_v19  ;;  %v3654_v28 = vpop.f32.mrb[15].mxu0  ;;  %v19256_v24 = vld [vmem:[#allocation2 + $0x79] sm:$0xff] }
 0x1e6   : > { %3883 = vst.msk [vmem:[#allocation2 + $0xa9] sm:$0xff] %vm3814_vm2, %v3794_v10  ;;  %v17130_v25 = vadd.f32 %v3654_v28, %v19187_v21  ;;  %15704 = vmatprep.mubr.msk.f32.mxu1 %vm3814_vm2, %v19256_v24 }
 0x1e7   : > { %v3797_v11 = vadd.f32 %v17129_v57, %v19192_v37  ;;  %15705 = vmatmul.mubr.msk.f32.gmra.mrb[42].mxu1 %vm3814_vm2, %v19262_v8 }
 0x1e8   : > { %v3796_v13 = vadd.f32 %v17130_v25, %v19192_v37  ;;  %v15451_v15 = vpop.f32.mrb[16].mxu1  ;;  %v15651_v17 = vpop.f32.mrb[16].mxu0  ;;  %v19274_v16 = vld [vmem:[#allocation2 + $0x99] sm:$0xff] }
 0x1e9   : > { %3886 = vst.msk [vmem:[#allocation2 + $0xc9] sm:$0xff] %vm3814_vm2, %v3797_v11  ;;  %v17131_v19 = vadd.f32 %v15651_v17, %v15451_v15  ;;  %v2103_v22 = vpop.f32.mrb[17].mxu1  ;;  %v3664_v33 = vpop.f32.mrb[17].mxu0  ;;  %v19269_v21 = vld [vmem:[#allocation2 + $0x91] sm:$0xff] }
 0x1ea   : > { %3885 = vst.msk [vmem:[#allocation2 + $0xc1] sm:$0xff] %vm3814_vm2, %v3796_v13  ;;  %v17132_v12 = vadd.f32 %v3664_v33, %v2103_v22  ;;  %15707 = vmatprep.mubr.msk.f32.mxu1 %vm3814_vm2, %v19269_v21 }
 0x1eb   : > { %v3799_v20 = vadd.f32 %v17131_v19, %v19192_v37  ;;  %15708 = vmatmul.mubr.msk.f32.gmra.mrb[44].mxu1 %vm3814_vm2, %v19274_v16 }
 0x1ec   : > { %v3798_v1 = vadd.f32 %v17132_v12, %v19192_v37  ;;  %v15454_v3 = vpop.f32.mrb[18].mxu1  ;;  %v15654_v61 = vpop.f32.mrb[18].mxu0  ;;  %v19286_v29 = vld [vmem:[#allocation2 + $0xb1] sm:$0xff] }
 0x1ed   : > { %3888 = vst.msk [vmem:[#allocation2 + $0xe1] sm:$0xff] %vm3814_vm2, %v3799_v20  ;;  %v17133_v14 = vadd.f32 %v15654_v61, %v15454_v3  ;;  %v2113_v18 = vpop.f32.mrb[19].mxu1  ;;  %v3674_v23 = vpop.f32.mrb[19].mxu0  ;;  %v19281_v26 = vld [vmem:[#allocation2 + $0xa9] sm:$0xff] }
 0x1ee   : > { %3887 = vst.msk [vmem:[#allocation2 + $0xd9] sm:$0xff] %vm3814_vm2, %v3798_v1  ;;  %v17134_v27 = vadd.f32 %v3674_v23, %v2113_v18  ;;  %15710 = vmatprep.mubr.msk.f32.mxu1 %vm3814_vm2, %v19281_v26 }
 0x1ef   : > { %v3801_v30 = vadd.f32 %v17133_v14, %v19192_v37  ;;  %15711 = vmatmul.mubr.msk.f32.gmra.mrb[46].mxu1 %vm3814_vm2, %v19286_v29 }
 0x1f0   : > { %v3800_v31 = vadd.f32 %v17134_v27, %v19192_v37  ;;  %v15457_v32 = vpop.f32.mrb[20].mxu1  ;;  %v15657_v34 = vpop.f32.mrb[20].mxu0  ;;  %v19298_v43 = vld [vmem:[#allocation2 + $0xc9] sm:$0xff] }
 0x1f1   : > { %3890 = vst.msk [vmem:[#allocation2 + $0xf9] sm:$0xff] %vm3814_vm2, %v3801_v30  ;;  %v17135_v35 = vadd.f32 %v15657_v34, %v15457_v32  ;;  %v2123_v36 = vpop.f32.mrb[21].mxu1  ;;  %v3684_v38 = vpop.f32.mrb[21].mxu0  ;;  %v19293_v40 = vld [vmem:[#allocation2 + $0xc1] sm:$0xff] }
 0x1f2   : > { %3889 = vst.msk [vmem:[#allocation2 + $0xf1] sm:$0xff] %vm3814_vm2, %v3800_v31  ;;  %v17136_v42 = vadd.f32 %v3684_v38, %v2123_v36  ;;  %15713 = vmatprep.mubr.msk.f32.mxu1 %vm3814_vm2, %v19293_v40 }
 0x1f3   : > { %v3803_v44 = vadd.f32 %v17135_v35, %v19192_v37  ;;  %15714 = vmatmul.mubr.msk.f32.gmra.mrb[48].mxu1 %vm3814_vm2, %v19298_v43 }
 0x1f4   : > { %v3802_v45 = vadd.f32 %v17136_v42, %v19192_v37  ;;  %v15460_v46 = vpop.f32.mrb[22].mxu1  ;;  %v15660_v48 = vpop.f32.mrb[22].mxu0  ;;  %v19310_v58 = vld [vmem:[#allocation2 + $0xe1] sm:$0xff] }
 0x1f5   : > { %3892 = vst.msk [vmem:[#allocation2 + $0x111] sm:$0xff] %vm3814_vm2, %v3803_v44  ;;  %v17137_v50 = vadd.f32 %v15660_v48, %v15460_v46  ;;  %v2133_v51 = vpop.f32.mrb[23].mxu1  ;;  %v3694_v52 = vpop.f32.mrb[23].mxu0  ;;  %v19305_v53 = vld [vmem:[#allocation2 + $0xd9] sm:$0xff] }
 0x1f6   : > { %3891 = vst.msk [vmem:[#allocation2 + $0x109] sm:$0xff] %vm3814_vm2, %v3802_v45  ;;  %v17138_v54 = vadd.f32 %v3694_v52, %v2133_v51  ;;  %15716 = vmatprep.mubr.msk.f32.mxu1 %vm3814_vm2, %v19305_v53 }
 0x1f7   : > { %v3805_v60 = vadd.f32 %v17137_v50, %v19192_v37  ;;  %15717 = vmatmul.mubr.msk.f32.gmra.mrb[50].mxu1 %vm3814_vm2, %v19310_v58 }
 0x1f8   : > { %v3804_v62 = vadd.f32 %v17138_v54, %v19192_v37  ;;  %v15463_v63 = vpop.f32.mrb[24].mxu1  ;;  %v15663_v0 = vpop.f32.mrb[24].mxu0  ;;  %v19322_v57 = vld [vmem:[#allocation2 + $0xf9] sm:$0xff] }
 0x1f9   : > { %3894 = vst.msk [vmem:[#allocation2 + $0x129] sm:$0xff] %vm3814_vm2, %v3805_v60  ;;  %v17139_v2 = vadd.f32 %v15663_v0, %v15463_v63  ;;  %v2143_v6 = vpop.f32.mrb[25].mxu1  ;;  %v3704_v9 = vpop.f32.mrb[25].mxu0  ;;  %v19317_v10 = vld [vmem:[#allocation2 + $0xf1] sm:$0xff] }
 0x1fa   : > { %3893 = vst.msk [vmem:[#allocation2 + $0x121] sm:$0xff] %vm3814_vm2, %v3804_v62  ;;  %v17140_v55 = vadd.f32 %v3704_v9, %v2143_v6  ;;  %15719 = vmatprep.mubr.msk.f32.mxu1 %vm3814_vm2, %v19317_v10  ;;  %v3903_v62 = vld [vmem:[#allocation2] sm:$0xff]  ;;  %v13379_v63 = vld [vmem:[%s22449_s4 + $0x90] sm:$0xff]  ;;  %v13380_v0 = vld [vmem:[%s22449_s4 + $0x98] sm:$0xff] }
 0x1fb   : > { %v3807_v28 = vadd.f32 %v17139_v2, %v19192_v37  ;;  %15720 = vmatmul.mubr.msk.f32.gmra.mrb[52].mxu1 %vm3814_vm2, %v19322_v57  ;;  %v3904_v2 = vld [vmem:[#allocation2 + $0x8] sm:$0xff]  ;;  %v16861_v6 = vpack.c.bf16 %v13380_v0, %v13379_v63  ;;  %v13381_v9 = vld [vmem:[%s22449_s4 + $0xa0] sm:$0xff] }
 0x1fc   : > { %v3806_v25 = vadd.f32 %v17140_v55, %v19192_v37  ;;  %v15466_v11 = vpop.f32.mrb[26].mxu1  ;;  %v15666_v13 = vpop.f32.mrb[26].mxu0  ;;  %v19334_v12 = vld [vmem:[#allocation2 + $0x111] sm:$0xff]  ;;  %v13382_v55 = vld [vmem:[%s22449_s4 + $0xa8] sm:$0xff] }
 0x1fd   : > { %3896 = vst.msk [vmem:[#allocation2 + $0x141] sm:$0xff] %vm3814_vm2, %v3807_v28  ;;  %v17141_v15 = vadd.f32 %v15666_v13, %v15466_v11  ;;  %v2153_v17 = vpop.f32.mrb[27].mxu1  ;;  %v3714_v19 = vpop.f32.mrb[27].mxu0  ;;  %v19329_v22 = vld [vmem:[#allocation2 + $0x109] sm:$0xff]  ;;  %v19396_v28 = vld [vmem:[#allocation2 + $0x18] sm:$0xff]  ;;  %v19401_v11 = vld [vmem:[#allocation2 + $0x20] sm:$0xff] }
 0x1fe   : > { %3895 = vst.msk [vmem:[#allocation2 + $0x139] sm:$0xff] %vm3814_vm2, %v3806_v25  ;;  %v17142_v33 = vadd.f32 %v3714_v19, %v2153_v17  ;;  %15722 = vmatprep.mubr.msk.f32.mxu1 %vm3814_vm2, %v19329_v22  ;;  %v16865_v25 = vpack.c.bf16 %v13382_v55, %v13381_v9  ;;  %v13383_v13 = vld [vmem:[%s22449_s4 + $0xb0] sm:$0xff]  ;;  %v19415_v19 = vld [vmem:[#allocation2 + $0x38] sm:$0xff] }
 0x1ff   : > { %v3809_v20 = vadd.f32 %v17141_v15, %v19192_v37  ;;  %15723 = vmatmul.mubr.msk.f32.gmra.mrb[54].mxu1 %vm3814_vm2, %v19334_v12  ;;  %v13384_v15 = vld [vmem:[%s22449_s4 + $0xb8] sm:$0xff]  ;;  %v19411_v17 = vld [vmem:[#allocation2 + $0x30] sm:$0xff] }
 0x200   : > { %v3808_v1 = vadd.f32 %v17142_v33, %v19192_v37  ;;  %v15469_v3 = vpop.f32.mrb[28].mxu1  ;;  %v15669_v61 = vpop.f32.mrb[28].mxu0  ;;  %v19346_v31 = vld [vmem:[#allocation2 + $0x129] sm:$0xff]  ;;  %v13417_v33 = vld [vmem:[%s22449_s4 + $0xc0] sm:$0xff] }
 0x201   : > { %3898 = vst.msk [vmem:[#allocation2 + $0x159] sm:$0xff] %vm3814_vm2, %v3809_v20  ;;  %v17143_v14 = vadd.f32 %v15669_v61, %v15469_v3  ;;  %v2163_v18 = vpop.f32.mrb[29].mxu1  ;;  %v3724_v23 = vpop.f32.mrb[29].mxu0  ;;  %v19341_v27 = vld [vmem:[#allocation2 + $0x121] sm:$0xff]  ;;  %v19429_v61 = vld [vmem:[#allocation2 + $0x50] sm:$0xff] }
 0x202   : > { %3897 = vst.msk [vmem:[#allocation2 + $0x151] sm:$0xff] %vm3814_vm2, %v3808_v1  ;;  %v17144_v30 = vadd.f32 %v3724_v23, %v2163_v18  ;;  %15725 = vmatprep.mubr.msk.f32.mxu1 %vm3814_vm2, %v19341_v27  ;;  %v13418_v20 = vld [vmem:[%s22449_s4 + $0xc8] sm:$0xff]  ;;  %v19441_v23 = vld [vmem:[#allocation2 + $0x78] sm:$0xff]  ;;  %v19493_v63 = vld [vmem:[#allocation2 + $0x110] sm:$0xff] }
 0x203   : > { %v3811_v32 = vadd.f32 %v17143_v14, %v19192_v37  ;;  %15726 = vmatmul.mubr.msk.f32.gmra.mrb[56].mxu1 %vm3814_vm2, %v19346_v31  ;;  %v19425_v1 = vld [vmem:[#allocation2 + $0x48] sm:$0xff]  ;;  %v16873_v3 = vpack.c.bf16 %v13418_v20, %v13417_v33  ;;  %v19433_v14 = vld [vmem:[#allocation2 + $0x60] sm:$0xff]  ;;  %v13419_v33 = vld [vmem:[%s22449_s4 + $0xd0] sm:$0xff] }
 0x204   : > { %v3810_v34 = vadd.f32 %v17144_v30, %v19192_v37  ;;  %v15472_v35 = vpop.f32.mrb[30].mxu1  ;;  %v15672_v36 = vpop.f32.mrb[30].mxu0  ;;  %v19358_v48 = vld [vmem:[#allocation2 + $0x141] sm:$0xff]  ;;  %v13420_v20 = vld [vmem:[%s22449_s4 + $0xd8] sm:$0xff] }
 0x205   : > { %3900 = vst.msk [vmem:[#allocation2 + $0x171] sm:$0xff] %vm3814_vm2, %v3811_v32  ;;  %v17145_v38 = vadd.f32 %v15672_v36, %v15472_v35  ;;  %v2173_v42 = vpop.f32.mrb[31].mxu1  ;;  %v3734_v44 = vpop.f32.mrb[31].mxu0  ;;  %v19353_v45 = vld [vmem:[#allocation2 + $0x139] sm:$0xff]  ;;  %22684 = vst [vmem:[#allocation17_spill] sm:$0xff] %v19358_v48  ;;  %v19437_v18 = vld [vmem:[#allocation2 + $0x68] sm:$0xff] }
 0x206   : > { %22683 = vst [vmem:[#allocation4_spill] sm:$0xff] %v19353_v45  ;;  %3899 = vst.msk [vmem:[#allocation2 + $0x169] sm:$0xff] %vm3814_vm2, %v3810_v34  ;;  %v17146_v46 = vadd.f32 %v3734_v44, %v2173_v42  ;;  %15728 = vmatprep.mubr.msk.f32.mxu1 %vm3814_vm2, %v19353_v45  ;;  %v19445_v30 = vld [vmem:[#allocation2 + $0x80] sm:$0xff]  ;;  %v19449_v32 = vld [vmem:[#allocation2 + $0x90] sm:$0xff] }
 0x207   : > { %v3813_v50 = vadd.f32 %v17145_v38, %v19192_v37  ;;  %15729 = vmatmul.mubr.msk.f32.gmra.mrb[58].mxu1 %vm3814_vm2, %v19358_v48  ;;  %v19453_v34 = vld [vmem:[#allocation2 + $0x98] sm:$0xff]  ;;  %v19457_v35 = vld [vmem:[#allocation2 + $0xa8] sm:$0xff]  ;;  %v19461_v36 = vld [vmem:[#allocation2 + $0xb0] sm:$0xff] }
 0x208   : > { %v3812_v51 = vadd.f32 %v17146_v46, %v19192_v37  ;;  %v19370_v54 = vld [vmem:[#allocation2 + $0x159] sm:$0xff]  ;;  %v19469_v42 = vld [vmem:[#allocation2 + $0xc8] sm:$0xff] }
 0x209   : > { %3902 = vst.msk [vmem:[#allocation2 + $0x189] sm:$0xff] %vm3814_vm2, %v3813_v50  ;;  %v19365_v52 = vld [vmem:[#allocation2 + $0x151] sm:$0xff]  ;;  %22686 = vst [vmem:[#allocation18_spill] sm:$0xff] %v19370_v54  ;;  %v19465_v38 = vld [vmem:[#allocation2 + $0xc0] sm:$0xff] }
 0x20a   : > { %22685 = vst [vmem:[#allocation5_spill] sm:$0xff] %v19365_v52  ;;  %3901 = vst.msk [vmem:[#allocation2 + $0x181] sm:$0xff] %vm3814_vm2, %v3812_v51  ;;  %15731 = vmatprep.mubr.msk.f32.mxu1 %vm3814_vm2, %v19365_v52  ;;  %v19473_v44 = vld [vmem:[#allocation2 + $0xd8] sm:$0xff]  ;;  %v19477_v46 = vld [vmem:[#allocation2 + $0xe0] sm:$0xff] }
 0x20b   : > { %15732 = vmatmul.mubr.msk.f32.gmra.mrb[60].mxu1 %vm3814_vm2, %v19370_v54  ;;  %v19481_v50 = vld [vmem:[#allocation2 + $0xf0] sm:$0xff]  ;;  %v19485_v51 = vld [vmem:[#allocation2 + $0xf8] sm:$0xff]  ;;  %v19497_v0 = vld [vmem:[#allocation2 + $0x120] sm:$0xff] }
 0x20c   : > { %v19378_v37 = vld [vmem:[#allocation2 + $0x171] sm:$0xff]  ;;  %v19509_v9 = vld [vmem:[#allocation2 + $0x140] sm:$0xff]  ;;  %v13422_v52 = vld [vmem:[%s22449_s4 + $0xe8] sm:$0xff] }
 0x20d   : > { %v19374_v60 = vld [vmem:[#allocation2 + $0x169] sm:$0xff]  ;;  %22688 = vst [vmem:[#allocation19_spill] sm:$0xff] %v19378_v37  ;;  %v13421_v54 = vld [vmem:[%s22449_s4 + $0xe0] sm:$0xff] }
 0x20e   : > { %22687 = vst [vmem:[#allocation6_spill] sm:$0xff] %v19374_v60  ;;  %15734 = vmatprep.mubr.msk.f32.mxu1 %vm3814_vm2, %v19374_v60  ;;  %v19513_v55 = vld [vmem:[#allocation2 + $0x150] sm:$0xff]  ;;  %v16877_v60 = vpack.c.bf16 %v13420_v20, %v13419_v33  ;;  %v19543_v48 = vld [vmem:[#allocation2 + $0x1a] sm:$0xff]  ;;  %v19547_v45 = vld [vmem:[#allocation2 + $0x22] sm:$0xff] }
 0x20f   : > { %15735 = vmatmul.mubr.msk.f32.gmra.mrb[62].mxu1 %vm3814_vm2, %v19378_v37  ;;  %v4627_v37 = vld [vmem:[#allocation2 + $0xa] sm:$0xff]  ;;  %22689 = vst [vmem:[#allocation7_spill] sm:$0xff] %v19543_v48  ;;  %22690 = vst [vmem:[#allocation20_spill] sm:$0xff] %v19547_v45  ;;  %v13424_v20 = vld [vmem:[%s22449_s4 + $0xf8] sm:$0xff] }
 0x210   : > { %15753 = vmatprep.mubr.msk.f32.mxu1 %vm3814_vm2, %v3903_v62  ;;  %v19489_v62 = vld [vmem:[#allocation2 + $0x108] sm:$0xff]  ;;  %v13423_v33 = vld [vmem:[%s22449_s4 + $0xf0] sm:$0xff] }
 0x213   : > { %15754 = vmatmul.mubr.msk.f32.vlgmr.msra.gmra.mrb[32].mxu1 %vm3814_vm2, %v3904_v2  ;;  %v19501_v2 = vld [vmem:[#allocation2 + $0x128] sm:$0xff] }
 0x214   : > { %16860 = vmatpush3.bf16.msra.mxu1 %v19178_v5  ;;  %15756 = vmatprep.mubr.msk.f32.mxu1 %vm3814_vm2, %v19396_v28  ;;  %v16869_v5 = vpack.c.bf16 %v13384_v15, %v13383_v13  ;;  %v19521_v13 = vld [vmem:[#allocation2 + $0x168] sm:$0xff] }
 0x215   : > { %16862 = vmatprep.subr.bf16.mxu1 %v16861_v6  ;;  %v4626_v15 = vld [vmem:[#allocation2 + $0x2] sm:$0xff] }
 0x217   : > { %15757 = vmatmul.mubr.msk.f32.gmra.mrb[34].mxu1 %vm3814_vm2, %v19401_v11 }
 0x218   : > { %15759 = vmatprep.mubr.msk.f32.mxu1 %vm3814_vm2, %v19411_v17  ;;  %16864 = vmatpush3.bf16.msra.mxu1 %v16861_v6  ;;  %v19505_v6 = vld [vmem:[#allocation2 + $0x138] sm:$0xff] }
 0x219   : > { %16866 = vmatprep.subr.bf16.mxu1 %v16865_v25 }
 0x21b   : > { %15760 = vmatmul.mubr.msk.f32.gmra.mrb[36].mxu1 %vm3814_vm2, %v19415_v19 }
 0x21c   : > { %15762 = vmatprep.mubr.msk.f32.mxu1 %vm3814_vm2, %v19425_v1  ;;  %16868 = vmatpush3.bf16.msra.mxu1 %v16865_v25  ;;  %v19517_v25 = vld [vmem:[#allocation2 + $0x158] sm:$0xff] }
 0x21d   : > { %16870 = vmatprep.subr.bf16.mxu1 %v16869_v5 }
 0x21f   : > { %15763 = vmatmul.mubr.msk.f32.gmra.mrb[38].mxu1 %vm3814_vm2, %v19429_v61 }
 0x220   : > { %15765 = vmatprep.mubr.msk.f32.mxu1 %vm3814_vm2, %v19433_v14  ;;  %16872 = vmatpush3.bf16.msra.mxu1 %v16869_v5  ;;  %v19525_v5 = vld [vmem:[#allocation2 + $0x170] sm:$0xff] }
 0x221   : > { %16874 = vmatprep.subr.bf16.mxu1 %v16873_v3 }
 0x223   : > { %15766 = vmatmul.mubr.msk.f32.gmra.mrb[40].mxu1 %vm3814_vm2, %v19437_v18 }
 0x224   : > { %15768 = vmatprep.mubr.msk.f32.mxu1 %vm3814_vm2, %v19441_v23 }
 0x227   : > { %15769 = vmatmul.mubr.msk.f32.gmra.mrb[42].mxu1 %vm3814_vm2, %v19445_v30 }
 0x228   : > { %15771 = vmatprep.mubr.msk.f32.mxu1 %vm3814_vm2, %v19449_v32 }
 0x22b   : > { %15772 = vmatmul.mubr.msk.f32.gmra.mrb[44].mxu1 %vm3814_vm2, %v19453_v34 }
 0x22c   : > { %15774 = vmatprep.mubr.msk.f32.mxu1 %vm3814_vm2, %v19457_v35 }
 0x22f   : > { %15775 = vmatmul.mubr.msk.f32.gmra.mrb[46].mxu1 %vm3814_vm2, %v19461_v36 }
 0x230   : > { %15777 = vmatprep.mubr.msk.f32.mxu1 %vm3814_vm2, %v19465_v38 }
 0x233   : > { %15778 = vmatmul.mubr.msk.f32.gmra.mrb[48].mxu1 %vm3814_vm2, %v19469_v42 }
 0x234   : > { %15780 = vmatprep.mubr.msk.f32.mxu1 %vm3814_vm2, %v19473_v44 }
 0x237   : > { %15781 = vmatmul.mubr.msk.f32.gmra.mrb[50].mxu1 %vm3814_vm2, %v19477_v46 }
 0x238   : > { %15783 = vmatprep.mubr.msk.f32.mxu1 %vm3814_vm2, %v19481_v50 }
 0x23b   : > { %15784 = vmatmul.mubr.msk.f32.gmra.mrb[52].mxu1 %vm3814_vm2, %v19485_v51 }
 0x23c   : > { %15786 = vmatprep.mubr.msk.f32.mxu1 %vm3814_vm2, %v19489_v62 }
 0x23f   : > { %15787 = vmatmul.mubr.msk.f32.gmra.mrb[54].mxu1 %vm3814_vm2, %v19493_v63 }
 0x240   : > { %15789 = vmatprep.mubr.msk.f32.mxu1 %vm3814_vm2, %v19497_v0 }
 0x243   : > { %15790 = vmatmul.mubr.msk.f32.gmra.mrb[56].mxu1 %vm3814_vm2, %v19501_v2 }
 0x244   : > { %15792 = vmatprep.mubr.msk.f32.mxu1 %vm3814_vm2, %v19505_v6 }
 0x247   : > { %15793 = vmatmul.mubr.msk.f32.gmra.mrb[58].mxu1 %vm3814_vm2, %v19509_v9 }
 0x248   : > { %15795 = vmatprep.mubr.msk.f32.mxu1 %vm3814_vm2, %v19513_v55 }
 0x24b   : > { %15796 = vmatmul.mubr.msk.f32.gmra.mrb[60].mxu1 %vm3814_vm2, %v19517_v25 }
 0x24c   : > { %15798 = vmatprep.mubr.msk.f32.mxu1 %vm3814_vm2, %v19521_v13 }
 0x24f   : > { %15799 = vmatmul.mubr.msk.f32.gmra.mrb[62].mxu1 %vm3814_vm2, %v19525_v5 }
 0x250   : > { %15817 = vmatprep.mubr.msk.f32.mxu1 %vm3814_vm2, %v4626_v15  ;;  %v16881_v15 = vpack.c.bf16 %v13422_v52, %v13421_v54  ;;  %v16885_v52 = vpack.c.bf16 %v13424_v20, %v13423_v33  ;;  %v19561_v54 = vld [vmem:[#allocation2 + $0x3a] sm:$0xff]  ;;  %v19575_v33 = vld [vmem:[#allocation2 + $0x52] sm:$0xff]  ;;  %v19579_v20 = vld [vmem:[#allocation2 + $0x62] sm:$0xff] }
 0x251   : > { %22691 = vst [vmem:[#allocation8_spill] sm:$0xff] %v19561_v54  ;;  %22692 = vst [vmem:[#allocation21_spill] sm:$0xff] %v19579_v20 }
 0x253   : > { %15818 = vmatmul.mubr.msk.f32.vlgmr.msra.gmra.mrb[32].mxu1 %vm3814_vm2, %v4627_v37  ;;  %v19557_v37 = vld [vmem:[#allocation2 + $0x32] sm:$0xff] }
 0x254   : > { %16876 = vmatpush3.bf16.msra.mxu1 %v16873_v3  ;;  %15820 = vmatprep.mubr.msk.f32.mxu1 %vm3814_vm2, %v19543_v48  ;;  %v13457_v3 = vld [vmem:[%s22449_s4 + $0x100] sm:$0xff]  ;;  %v13458_v48 = vld [vmem:[%s22449_s4 + $0x108] sm:$0xff] }
 0x255   : > { %16878 = vmatprep.subr.bf16.mxu1 %v16877_v60 }
 0x257   : > { %15821 = vmatmul.mubr.msk.f32.gmra.mrb[34].mxu1 %vm3814_vm2, %v19547_v45  ;;  %v19571_v45 = vld [vmem:[#allocation2 + $0x4a] sm:$0xff] }
 0x258   : > { %15823 = vmatprep.mubr.msk.f32.mxu1 %vm3814_vm2, %v19557_v37  ;;  %16880 = vmatpush3.bf16.msra.mxu1 %v16877_v60  ;;  %v16889_v60 = vpack.c.bf16 %v13458_v48, %v13457_v3  ;;  %v19591_v48 = vld [vmem:[#allocation2 + $0x82] sm:$0xff]  ;;  %v19595_v3 = vld [vmem:[#allocation2 + $0x92] sm:$0xff] }
 0x259   : > { %16882 = vmatprep.subr.bf16.mxu1 %v16881_v15  ;;  %22695 = vst [vmem:[#allocation10_spill] sm:$0xff] %v19591_v48  ;;  %22696 = vst [vmem:[#allocation23_spill] sm:$0xff] %v19595_v3 }
 0x25b   : > { %15824 = vmatmul.mubr.msk.f32.gmra.mrb[36].mxu1 %vm3814_vm2, %v19561_v54  ;;  %v19583_v54 = vld [vmem:[#allocation2 + $0x6a] sm:$0xff] }
 0x25c   : > { %15826 = vmatprep.mubr.msk.f32.mxu1 %vm3814_vm2, %v19571_v45  ;;  %16884 = vmatpush3.bf16.msra.mxu1 %v16881_v15  ;;  %22693 = vst [vmem:[#allocation9_spill] sm:$0xff] %v19583_v54  ;;  %v19587_v15 = vld [vmem:[#allocation2 + $0x7a] sm:$0xff] }
 0x25d   : > { %16886 = vmatprep.subr.bf16.mxu1 %v16885_v52  ;;  %22694 = vst [vmem:[#allocation22_spill] sm:$0xff] %v19587_v15 }
 0x25f   : > { %15827 = vmatmul.mubr.msk.f32.gmra.mrb[38].mxu1 %vm3814_vm2, %v19575_v33 }
 0x260   : > { %15829 = vmatprep.mubr.msk.f32.mxu1 %vm3814_vm2, %v19579_v20  ;;  %16888 = vmatpush3.bf16.msra.mxu1 %v16885_v52  ;;  %v19599_v52 = vld [vmem:[#allocation2 + $0x9a] sm:$0xff]  ;;  %v13462_v20 = vld [vmem:[%s22449_s4 + $0x128] sm:$0xff] }
 0x261   : > { %16890 = vmatprep.subr.bf16.mxu1 %v16889_v60  ;;  %22697 = vst [vmem:[#allocation11_spill] sm:$0xff] %v19599_v52 }
 0x263   : > { %15830 = vmatmul.mubr.msk.f32.gmra.mrb[40].mxu1 %vm3814_vm2, %v19583_v54  ;;  %v19603_v54 = vld [vmem:[#allocation2 + $0xaa] sm:$0xff] }
 0x264   : > { %15832 = vmatprep.mubr.msk.f32.mxu1 %vm3814_vm2, %v19587_v15  ;;  %22698 = vst [vmem:[#allocation24_spill] sm:$0xff] %v19603_v54  ;;  %v19607_v15 = vld [vmem:[#allocation2 + $0xb2] sm:$0xff] }
 0x265   : > { %22699 = vst [vmem:[#allocation12_spill] sm:$0xff] %v19607_v15 }
 0x267   : > { %15833 = vmatmul.mubr.msk.f32.gmra.mrb[42].mxu1 %vm3814_vm2, %v19591_v48  ;;  %v19611_v48 = vld [vmem:[#allocation2 + $0xc2] sm:$0xff] }
 0x268   : > { %15835 = vmatprep.mubr.msk.f32.mxu1 %vm3814_vm2, %v19595_v3  ;;  %22700 = vst [vmem:[#allocation25_spill] sm:$0xff] %v19611_v48  ;;  %v19615_v3 = vld [vmem:[#allocation2 + $0xca] sm:$0xff] }
 0x269   : > { %22701 = vst [vmem:[#allocation13_spill] sm:$0xff] %v19615_v3 }
 0x26b   : > { %15836 = vmatmul.mubr.msk.f32.gmra.mrb[44].mxu1 %vm3814_vm2, %v19599_v52  ;;  %v19619_v52 = vld [vmem:[#allocation2 + $0xda] sm:$0xff] }
 0x26c   : > { %15838 = vmatprep.mubr.msk.f32.mxu1 %vm3814_vm2, %v19603_v54  ;;  %22702 = vst [vmem:[#allocation26_spill] sm:$0xff] %v19619_v52  ;;  %v19623_v54 = vld [vmem:[#allocation2 + $0xe2] sm:$0xff] }
 0x26d   : > { %22703 = vst [vmem:[#allocation14_spill] sm:$0xff] %v19623_v54 }
 0x26f   : > { %15839 = vmatmul.mubr.msk.f32.gmra.mrb[46].mxu1 %vm3814_vm2, %v19607_v15  ;;  %v19627_v15 = vld [vmem:[#allocation2 + $0xf2] sm:$0xff] }
 0x270   : > { %15841 = vmatprep.mubr.msk.f32.mxu1 %vm3814_vm2, %v19611_v48  ;;  %22704 = vst [vmem:[#allocation27_spill] sm:$0xff] %v19627_v15  ;;  %v19631_v48 = vld [vmem:[#allocation2 + $0xfa] sm:$0xff] }
 0x271   : > { %22705 = vst [vmem:[#allocation15_spill] sm:$0xff] %v19631_v48 }
 0x273   : > { %15842 = vmatmul.mubr.msk.f32.gmra.mrb[48].mxu1 %vm3814_vm2, %v19615_v3  ;;  %v19635_v3 = vld [vmem:[#allocation2 + $0x10a] sm:$0xff] }
 0x274   : > { %15844 = vmatprep.mubr.msk.f32.mxu1 %vm3814_vm2, %v19619_v52  ;;  %22706 = vst [vmem:[#allocation28_spill] sm:$0xff] %v19635_v3  ;;  %v19639_v52 = vld [vmem:[#allocation2 + $0x112] sm:$0xff] }
 0x275   : > { %22707 = vst [vmem:[#allocation30_spill] sm:$0xff] %v19639_v52 }
 0x277   : > { %15845 = vmatmul.mubr.msk.f32.gmra.mrb[50].mxu1 %vm3814_vm2, %v19623_v54  ;;  %v19643_v54 = vld [vmem:[#allocation2 + $0x122] sm:$0xff] }
 0x278   : > { %15847 = vmatprep.mubr.msk.f32.mxu1 %vm3814_vm2, %v19627_v15  ;;  %22708 = vst [vmem:[#allocation32_spill] sm:$0xff] %v19643_v54  ;;  %v19647_v15 = vld [vmem:[#allocation2 + $0x12a] sm:$0xff] }
 0x279   : > { %22709 = vst [vmem:[#allocation34_spill] sm:$0xff] %v19647_v15 }
 0x27b   : > { %15848 = vmatmul.mubr.msk.f32.gmra.mrb[52].mxu1 %vm3814_vm2, %v19631_v48  ;;  %v19651_v48 = vld [vmem:[#allocation2 + $0x13a] sm:$0xff] }
 0x27c   : > { %15850 = vmatprep.mubr.msk.f32.mxu1 %vm3814_vm2, %v19635_v3  ;;  %22710 = vst [vmem:[#allocation29_spill] sm:$0xff] %v19651_v48  ;;  %v19655_v3 = vld [vmem:[#allocation2 + $0x142] sm:$0xff] }
 0x27d   : > { %22711 = vst [vmem:[#allocation31_spill] sm:$0xff] %v19655_v3 }
 0x27f   : > { %15851 = vmatmul.mubr.msk.f32.gmra.mrb[54].mxu1 %vm3814_vm2, %v19639_v52  ;;  %v19659_v52 = vld [vmem:[#allocation2 + $0x152] sm:$0xff] }
 0x280   : > { %15853 = vmatprep.mubr.msk.f32.mxu1 %vm3814_vm2, %v19643_v54  ;;  %22712 = vst [vmem:[#allocation16_spill] sm:$0xff] %v19659_v52  ;;  %v19663_v54 = vld [vmem:[#allocation2 + $0x15a] sm:$0xff] }
 0x281   : > { %22713 = vst [vmem:[#allocation33_spill] sm:$0xff] %v19663_v54 }
 0x283   : > { %15854 = vmatmul.mubr.msk.f32.gmra.mrb[56].mxu1 %vm3814_vm2, %v19647_v15  ;;  %v19667_v15 = vld [vmem:[#allocation2 + $0x16a] sm:$0xff] }
 0x284   : > { %15856 = vmatprep.mubr.msk.f32.mxu1 %vm3814_vm2, %v19651_v48  ;;  %22714 = vst [vmem:[#allocation35_spill] sm:$0xff] %v19667_v15  ;;  %v19671_v48 = vld [vmem:[#allocation2 + $0x172] sm:$0xff] }
 0x285   : > { %22715 = vst [vmem:[#allocation36_spill] sm:$0xff] %v19671_v48 }
 0x287   : > { %15857 = vmatmul.mubr.msk.f32.gmra.mrb[58].mxu1 %vm3814_vm2, %v19655_v3  ;;  %v13459_v3 = vld [vmem:[%s22449_s4 + $0x110] sm:$0xff] }
 0x288   : > { %15859 = vmatprep.mubr.msk.f32.mxu1 %vm3814_vm2, %v19659_v52  ;;  %v13460_v52 = vld [vmem:[%s22449_s4 + $0x118] sm:$0xff] }
 0x28b   : > { %15860 = vmatmul.mubr.msk.f32.gmra.mrb[60].mxu1 %vm3814_vm2, %v19663_v54  ;;  %v16893_v54 = vpack.c.bf16 %v13460_v52, %v13459_v3  ;;  %v13464_v3 = vld [vmem:[%s22449_s4 + $0x138] sm:$0xff]  ;;  %v13499_v52 = vld [vmem:[%s22449_s4 + $0x150] sm:$0xff] }
 0x28c   : > { %15862 = vmatprep.mubr.msk.f32.mxu1 %vm3814_vm2, %v19667_v15  ;;  %v13461_v15 = vld [vmem:[%s22449_s4 + $0x120] sm:$0xff] }
 0x28f   : > { %15863 = vmatmul.mubr.msk.f32.gmra.mrb[62].mxu1 %vm3814_vm2, %v19671_v48  ;;  %v16897_v48 = vpack.c.bf16 %v13462_v20, %v13461_v15  ;;  %v13498_v20 = vld [vmem:[%s22449_s4 + $0x148] sm:$0xff] }
 0x290   : > { %15881 = vmatprep.mubr.msk.f32.mxu1 %vm3814_vm2, %v19396_v28  ;;  %v13463_v28 = vld [vmem:[%s22449_s4 + $0x130] sm:$0xff] }
 0x293   : > { %15882 = vmatmul.mubr.msk.f32.vlgmr.msra.gmra.mrb[32].mxu1 %vm3814_vm2, %v19401_v11  ;;  %v16901_v11 = vpack.c.bf16 %v13464_v3, %v13463_v28  ;;  %v13500_v28 = vld [vmem:[%s22449_s4 + $0x158] sm:$0xff] }
 0x294   : > { %16892 = vmatpush3.bf16.msra.mxu1 %v16889_v60  ;;  %15884 = vmatprep.mubr.msk.f32.mxu1 %vm3814_vm2, %v19411_v17  ;;  %v13497_v60 = vld [vmem:[%s22449_s4 + $0x140] sm:$0xff]  ;;  %v16909_v3 = vpack.c.bf16 %v13500_v28, %v13499_v52  ;;  %v13504_v52 = vld [vmem:[%s22449_s4 + $0x178] sm:$0xff] }
 0x295   : > { %16894 = vmatprep.subr.bf16.mxu1 %v16893_v54  ;;  %v16905_v15 = vpack.c.bf16 %v13498_v20, %v13497_v60  ;;  %v13502_v60 = vld [vmem:[%s22449_s4 + $0x168] sm:$0xff]  ;;  %v13577_v28 = vld [vmem:[%s22449_s4 + $0x1c0] sm:$0xff] }
 0x297   : > { %15885 = vmatmul.mubr.msk.f32.gmra.mrb[34].mxu1 %vm3814_vm2, %v19415_v19 }
 0x298   : > { %15887 = vmatprep.mubr.msk.f32.mxu1 %vm3814_vm2, %v19425_v1  ;;  %16896 = vmatpush3.bf16.msra.mxu1 %v16893_v54  ;;  %v19759_v54 = vld [vmem:[#allocation2 + $0x180] sm:$0xff] }
 0x299   : > { %16898 = vmatprep.subr.bf16.mxu1 %v16897_v48 }
 0x29b   : > { %15888 = vmatmul.mubr.msk.f32.gmra.mrb[36].mxu1 %vm3814_vm2, %v19429_v61 }
 0x29c   : > { %15890 = vmatprep.mubr.msk.f32.mxu1 %vm3814_vm2, %v19433_v14  ;;  %16900 = vmatpush3.bf16.msra.mxu1 %v16897_v48  ;;  %v19763_v48 = vld [vmem:[#allocation2 + $0x188] sm:$0xff] }
 0x29d   : > { %16902 = vmatprep.subr.bf16.mxu1 %v16901_v11 }
 0x29f   : > { %15891 = vmatmul.mubr.msk.f32.gmra.mrb[38].mxu1 %vm3814_vm2, %v19437_v18 }
 0x2a0   : > { %15893 = vmatprep.mubr.msk.f32.mxu1 %vm3814_vm2, %v19441_v23  ;;  %16904 = vmatpush3.bf16.msra.mxu1 %v16901_v11  ;;  %v13501_v11 = vld [vmem:[%s22449_s4 + $0x160] sm:$0xff] }
 0x2a1   : > { %16906 = vmatprep.subr.bf16.mxu1 %v16905_v15  ;;  %v16913_v20 = vpack.c.bf16 %v13502_v60, %v13501_v11  ;;  %v22725_v11 = vld [vmem:[#allocation21_spill] sm:$0xff] }
 0x2a3   : > { %15894 = vmatmul.mubr.msk.f32.gmra.mrb[40].mxu1 %vm3814_vm2, %v19445_v30 }
 0x2a4   : > { %15896 = vmatprep.mubr.msk.f32.mxu1 %vm3814_vm2, %v19449_v32 }
 0x2a7   : > { %15897 = vmatmul.mubr.msk.f32.gmra.mrb[42].mxu1 %vm3814_vm2, %v19453_v34 }
 0x2a8   : > { %15899 = vmatprep.mubr.msk.f32.mxu1 %vm3814_vm2, %v19457_v35 }
 0x2ab   : > { %15900 = vmatmul.mubr.msk.f32.gmra.mrb[44].mxu1 %vm3814_vm2, %v19461_v36 }
 0x2ac   : > { %15902 = vmatprep.mubr.msk.f32.mxu1 %vm3814_vm2, %v19465_v38 }
 0x2af   : > { %15903 = vmatmul.mubr.msk.f32.gmra.mrb[46].mxu1 %vm3814_vm2, %v19469_v42 }
 0x2b0   : > { %15905 = vmatprep.mubr.msk.f32.mxu1 %vm3814_vm2, %v19473_v44 }
 0x2b3   : > { %15906 = vmatmul.mubr.msk.f32.gmra.mrb[48].mxu1 %vm3814_vm2, %v19477_v46 }
 0x2b4   : > { %15908 = vmatprep.mubr.msk.f32.mxu1 %vm3814_vm2, %v19481_v50 }
 0x2b7   : > { %15909 = vmatmul.mubr.msk.f32.gmra.mrb[50].mxu1 %vm3814_vm2, %v19485_v51 }
 0x2b8   : > { %15911 = vmatprep.mubr.msk.f32.mxu1 %vm3814_vm2, %v19489_v62 }
 0x2bb   : > { %15912 = vmatmul.mubr.msk.f32.gmra.mrb[52].mxu1 %vm3814_vm2, %v19493_v63 }
 0x2bc   : > { %15914 = vmatprep.mubr.msk.f32.mxu1 %vm3814_vm2, %v19497_v0 }
 0x2bf   : > { %15915 = vmatmul.mubr.msk.f32.gmra.mrb[54].mxu1 %vm3814_vm2, %v19501_v2 }
 0x2c0   : > { %15917 = vmatprep.mubr.msk.f32.mxu1 %vm3814_vm2, %v19505_v6 }
 0x2c3   : > { %15918 = vmatmul.mubr.msk.f32.gmra.mrb[56].mxu1 %vm3814_vm2, %v19509_v9 }
 0x2c4   : > { %15920 = vmatprep.mubr.msk.f32.mxu1 %vm3814_vm2, %v19513_v55 }
 0x2c7   : > { %15921 = vmatmul.mubr.msk.f32.gmra.mrb[58].mxu1 %vm3814_vm2, %v19517_v25 }
 0x2c8   : > { %15923 = vmatprep.mubr.msk.f32.mxu1 %vm3814_vm2, %v19521_v13 }
 0x2cb   : > { %15924 = vmatmul.mubr.msk.f32.gmra.mrb[60].mxu1 %vm3814_vm2, %v19525_v5 }
 0x2cc   : > { %15926 = vmatprep.mubr.msk.f32.mxu1 %vm3814_vm2, %v19759_v54 }
 0x2cf   : > { %15927 = vmatmul.mubr.msk.f32.gmra.mrb[62].mxu1 %vm3814_vm2, %v19763_v48 }
 0x2d0   : > { %15945 = vmatprep.mubr.msk.f32.mxu1 %vm3814_vm2, %v19205_v39  ;;  %v13503_v39 = vld [vmem:[%s22449_s4 + $0x170] sm:$0xff] }
 0x2d3   : > { %15946 = vmatmul.mubr.msk.f32.vlgmr.msra.gmra.mrb[32].mxu1 %vm3814_vm2, %v19210_v41  ;;  %v16917_v41 = vpack.c.bf16 %v13504_v52, %v13503_v39  ;;  %v22727_v39 = vld [vmem:[#allocation22_spill] sm:$0xff] }
 0x2d4   : > { %16908 = vmatpush3.bf16.msra.mxu1 %v16905_v15  ;;  %15948 = vmatprep.mubr.msk.f32.mxu1 %vm3814_vm2, %v19217_v47  ;;  %v13537_v47 = vld [vmem:[%s22449_s4 + $0x180] sm:$0xff]  ;;  %v13538_v15 = vld [vmem:[%s22449_s4 + $0x188] sm:$0xff]  ;;  %v22728_v52 = vld [vmem:[#allocation10_spill] sm:$0xff] }
 0x2d5   : > { %16910 = vmatprep.subr.bf16.mxu1 %v16909_v3 }
 0x2d7   : > { %15949 = vmatmul.mubr.msk.f32.gmra.mrb[34].mxu1 %vm3814_vm2, %v19222_v49  ;;  %v16921_v49 = vpack.c.bf16 %v13538_v15, %v13537_v47  ;;  %v22730_v47 = vld [vmem:[#allocation11_spill] sm:$0xff]  ;;  %v22731_v15 = vld [vmem:[#allocation24_spill] sm:$0xff] }
 0x2d8   : > { %15951 = vmatprep.mubr.msk.f32.mxu1 %vm3814_vm2, %v19229_v56  ;;  %16912 = vmatpush3.bf16.msra.mxu1 %v16909_v3  ;;  %v22716_v56 = vld [vmem:[#allocation4_spill] sm:$0xff]  ;;  %v13578_v3 = vld [vmem:[%s22449_s4 + $0x1c8] sm:$0xff] }
 0x2d9   : > { %16914 = vmatprep.subr.bf16.mxu1 %v16913_v20  ;;  %v16937_v60 = vpack.c.bf16 %v13578_v3, %v13577_v28  ;;  %v19947_v28 = vld [vmem:[#allocation2 + $0x18a] sm:$0xff] }
 0x2da   : > { %v13579_v3 = vld [vmem:[%s22449_s4 + $0x1d0] sm:$0xff] }
 0x2db   : > { %15952 = vmatmul.mubr.msk.f32.gmra.mrb[36].mxu1 %vm3814_vm2, %v19234_v59  ;;  %v22717_v59 = vld [vmem:[#allocation17_spill] sm:$0xff] }
 0x2dc   : > { %15954 = vmatprep.mubr.msk.f32.mxu1 %vm3814_vm2, %v19242_v4  ;;  %16916 = vmatpush3.bf16.msra.mxu1 %v16913_v20  ;;  %v22718_v4 = vld [vmem:[#allocation5_spill] sm:$0xff]  ;;  %22750 = vst [vmem:[#allocation17_spill] sm:$0xff] %v19947_v28 }
 0x2dd   : > { %16918 = vmatprep.subr.bf16.mxu1 %v16917_v41  ;;  %v22726_v20 = vld [vmem:[#allocation9_spill] sm:$0xff] }
 0x2df   : > { %15955 = vmatmul.mubr.msk.f32.gmra.mrb[38].mxu1 %vm3814_vm2, %v19248_v7  ;;  %v22719_v7 = vld [vmem:[#allocation18_spill] sm:$0xff] }
 0x2e0   : > { %15957 = vmatprep.mubr.msk.f32.mxu1 %vm3814_vm2, %v19256_v24  ;;  %16920 = vmatpush3.bf16.msra.mxu1 %v16917_v41  ;;  %v22720_v24 = vld [vmem:[#allocation6_spill] sm:$0xff]  ;;  %v22729_v41 = vld [vmem:[#allocation23_spill] sm:$0xff] }
 0x2e1   : > { %16922 = vmatprep.subr.bf16.mxu1 %v16921_v49 }
 0x2e3   : > { %15958 = vmatmul.mubr.msk.f32.gmra.mrb[40].mxu1 %vm3814_vm2, %v19262_v8  ;;  %v22721_v8 = vld [vmem:[#allocation19_spill] sm:$0xff] }
 0x2e4   : > { %15960 = vmatprep.mubr.msk.f32.mxu1 %vm3814_vm2, %v19269_v21  ;;  %v19851_v21 = vld [vmem:[#allocation2 + $0x181] sm:$0xff] }
 0x2e7   : > { %15961 = vmatmul.mubr.msk.f32.gmra.mrb[42].mxu1 %vm3814_vm2, %v19274_v16  ;;  %v19855_v16 = vld [vmem:[#allocation2 + $0x189] sm:$0xff] }
 0x2e8   : > { %15963 = vmatprep.mubr.msk.f32.mxu1 %vm3814_vm2, %v19281_v26  ;;  %v13539_v26 = vld [vmem:[%s22449_s4 + $0x190] sm:$0xff] }
 0x2eb   : > { %15964 = vmatmul.mubr.msk.f32.gmra.mrb[44].mxu1 %vm3814_vm2, %v19286_v29  ;;  %v13540_v29 = vld [vmem:[%s22449_s4 + $0x198] sm:$0xff] }
 0x2ec   : > { %15966 = vmatprep.mubr.msk.f32.mxu1 %vm3814_vm2, %v19293_v40  ;;  %v22722_v40 = vld [vmem:[#allocation7_spill] sm:$0xff] }
 0x2ef   : > { %15967 = vmatmul.mubr.msk.f32.gmra.mrb[46].mxu1 %vm3814_vm2, %v19298_v43  ;;  %v16925_v43 = vpack.c.bf16 %v13540_v29, %v13539_v26  ;;  %v22739_v26 = vld [vmem:[#allocation28_spill] sm:$0xff]  ;;  %v22740_v29 = vld [vmem:[#allocation30_spill] sm:$0xff] }
 0x2f0   : > { %15969 = vmatprep.mubr.msk.f32.mxu1 %vm3814_vm2, %v19305_v53  ;;  %v13541_v53 = vld [vmem:[%s22449_s4 + $0x1a0] sm:$0xff] }
 0x2f3   : > { %15970 = vmatmul.mubr.msk.f32.gmra.mrb[48].mxu1 %vm3814_vm2, %v19310_v58  ;;  %v13542_v58 = vld [vmem:[%s22449_s4 + $0x1a8] sm:$0xff] }
 0x2f4   : > { %15972 = vmatprep.mubr.msk.f32.mxu1 %vm3814_vm2, %v19317_v10  ;;  %v22723_v10 = vld [vmem:[#allocation20_spill] sm:$0xff] }
 0x2f7   : > { %15973 = vmatmul.mubr.msk.f32.gmra.mrb[50].mxu1 %vm3814_vm2, %v19322_v57  ;;  %v16929_v57 = vpack.c.bf16 %v13542_v58, %v13541_v53  ;;  %v22743_v53 = vld [vmem:[#allocation29_spill] sm:$0xff]  ;;  %v22744_v58 = vld [vmem:[#allocation31_spill] sm:$0xff] }
 0x2f8   : > { %15975 = vmatprep.mubr.msk.f32.mxu1 %vm3814_vm2, %v19329_v22  ;;  %v13543_v22 = vld [vmem:[%s22449_s4 + $0x1b0] sm:$0xff] }
 0x2fb   : > { %15976 = vmatmul.mubr.msk.f32.gmra.mrb[52].mxu1 %vm3814_vm2, %v19334_v12  ;;  %v13544_v12 = vld [vmem:[%s22449_s4 + $0x1b8] sm:$0xff] }
 0x2fc   : > { %15978 = vmatprep.mubr.msk.f32.mxu1 %vm3814_vm2, %v19341_v27  ;;  %v22724_v27 = vld [vmem:[#allocation8_spill] sm:$0xff] }
 0x2ff   : > { %15979 = vmatmul.mubr.msk.f32.gmra.mrb[54].mxu1 %vm3814_vm2, %v19346_v31  ;;  %v16933_v31 = vpack.c.bf16 %v13544_v12, %v13543_v22  ;;  %v22747_v22 = vld [vmem:[#allocation35_spill] sm:$0xff]  ;;  %v22748_v12 = vld [vmem:[#allocation36_spill] sm:$0xff] }
 0x300   : > { %15981 = vmatprep.mubr.msk.f32.mxu1 %vm3814_vm2, %v22716_v56  ;;  %v22733_v56 = vld [vmem:[#allocation25_spill] sm:$0xff] }
 0x303   : > { %15982 = vmatmul.mubr.msk.f32.gmra.mrb[56].mxu1 %vm3814_vm2, %v22717_v59  ;;  %v22734_v59 = vld [vmem:[#allocation13_spill] sm:$0xff] }
 0x304   : > { %15984 = vmatprep.mubr.msk.f32.mxu1 %vm3814_vm2, %v22718_v4  ;;  %v22735_v4 = vld [vmem:[#allocation26_spill] sm:$0xff] }
 0x307   : > { %15985 = vmatmul.mubr.msk.f32.gmra.mrb[58].mxu1 %vm3814_vm2, %v22719_v7  ;;  %v22736_v7 = vld [vmem:[#allocation14_spill] sm:$0xff] }
 0x308   : > { %15987 = vmatprep.mubr.msk.f32.mxu1 %vm3814_vm2, %v22720_v24  ;;  %v22737_v24 = vld [vmem:[#allocation27_spill] sm:$0xff] }
 0x30b   : > { %15988 = vmatmul.mubr.msk.f32.gmra.mrb[60].mxu1 %vm3814_vm2, %v22721_v8  ;;  %v22738_v8 = vld [vmem:[#allocation15_spill] sm:$0xff] }
 0x30c   : > { %15990 = vmatprep.mubr.msk.f32.mxu1 %vm3814_vm2, %v19851_v21 }
 0x30f   : > { %15991 = vmatmul.mubr.msk.f32.gmra.mrb[62].mxu1 %vm3814_vm2, %v19855_v16 }
 0x310   : > { %16009 = vmatprep.mubr.msk.f32.mxu1 %vm3814_vm2, %v22722_v40  ;;  %v22741_v40 = vld [vmem:[#allocation32_spill] sm:$0xff] }
 0x313   : > { %16010 = vmatmul.mubr.msk.f32.vlgmr.msra.gmra.mrb[32].mxu1 %vm3814_vm2, %v22723_v10  ;;  %v22745_v10 = vld [vmem:[#allocation16_spill] sm:$0xff] }
 0x314   : > { %16924 = vmatpush3.bf16.msra.mxu1 %v16921_v49  ;;  %16012 = vmatprep.mubr.msk.f32.mxu1 %vm3814_vm2, %v19557_v37  ;;  %v22732_v49 = vld [vmem:[#allocation12_spill] sm:$0xff] }
 0x315   : > { %16926 = vmatprep.subr.bf16.mxu1 %v16925_v43 }
 0x317   : > { %16013 = vmatmul.mubr.msk.f32.gmra.mrb[34].mxu1 %vm3814_vm2, %v22724_v27 }
 0x318   : > { %16015 = vmatprep.mubr.msk.f32.mxu1 %vm3814_vm2, %v19571_v45  ;;  %16928 = vmatpush3.bf16.msra.mxu1 %v16925_v43  ;;  %v22742_v43 = vld [vmem:[#allocation34_spill] sm:$0xff] }
 0x319   : > { %16930 = vmatprep.subr.bf16.mxu1 %v16929_v57 }
 0x31b   : > { %16016 = vmatmul.mubr.msk.f32.gmra.mrb[36].mxu1 %vm3814_vm2, %v19575_v33 }
 0x31c   : > { %16018 = vmatprep.mubr.msk.f32.mxu1 %vm3814_vm2, %v22725_v11  ;;  %16932 = vmatpush3.bf16.msra.mxu1 %v16929_v57  ;;  %v22746_v57 = vld [vmem:[#allocation33_spill] sm:$0xff] }
 0x31d   : > { %16934 = vmatprep.subr.bf16.mxu1 %v16933_v31 }
 0x31f   : > { %16019 = vmatmul.mubr.msk.f32.gmra.mrb[38].mxu1 %vm3814_vm2, %v22726_v20 }
 0x320   : > { %16021 = vmatprep.mubr.msk.f32.mxu1 %vm3814_vm2, %v22727_v39  ;;  %16936 = vmatpush3.bf16.msra.mxu1 %v16933_v31  ;;  %v19943_v31 = vld [vmem:[#allocation2 + $0x182] sm:$0xff] }
 0x321   : > { %16938 = vmatprep.subr.bf16.mxu1 %v16937_v60  ;;  %22749 = vst [vmem:[#allocation4_spill] sm:$0xff] %v19943_v31 }
 0x323   : > { %16022 = vmatmul.mubr.msk.f32.gmra.mrb[40].mxu1 %vm3814_vm2, %v22728_v52 }
 0x324   : > { %16024 = vmatprep.mubr.msk.f32.mxu1 %vm3814_vm2, %v22729_v41 }
 0x327   : > { %16025 = vmatmul.mubr.msk.f32.gmra.mrb[42].mxu1 %vm3814_vm2, %v22730_v47 }
 0x328   : > { %16027 = vmatprep.mubr.msk.f32.mxu1 %vm3814_vm2, %v22731_v15 }
 0x32b   : > { %16028 = vmatmul.mubr.msk.f32.gmra.mrb[44].mxu1 %vm3814_vm2, %v22732_v49 }
 0x32c   : > { %16030 = vmatprep.mubr.msk.f32.mxu1 %vm3814_vm2, %v22733_v56 }
 0x32f   : > { %16031 = vmatmul.mubr.msk.f32.gmra.mrb[46].mxu1 %vm3814_vm2, %v22734_v59 }
 0x330   : > { %16033 = vmatprep.mubr.msk.f32.mxu1 %vm3814_vm2, %v22735_v4 }
 0x333   : > { %16034 = vmatmul.mubr.msk.f32.gmra.mrb[48].mxu1 %vm3814_vm2, %v22736_v7 }
 0x334   : > { %16036 = vmatprep.mubr.msk.f32.mxu1 %vm3814_vm2, %v22737_v24 }
 0x337   : > { %16037 = vmatmul.mubr.msk.f32.gmra.mrb[50].mxu1 %vm3814_vm2, %v22738_v8 }
 0x338   : > { %16039 = vmatprep.mubr.msk.f32.mxu1 %vm3814_vm2, %v22739_v26 }
 0x33b   : > { %16040 = vmatmul.mubr.msk.f32.gmra.mrb[52].mxu1 %vm3814_vm2, %v22740_v29 }
 0x33c   : > { %16042 = vmatprep.mubr.msk.f32.mxu1 %vm3814_vm2, %v22741_v40 }
 0x33f   : > { %16043 = vmatmul.mubr.msk.f32.gmra.mrb[54].mxu1 %vm3814_vm2, %v22742_v43 }
 0x340   : > { %16045 = vmatprep.mubr.msk.f32.mxu1 %vm3814_vm2, %v22743_v53 }
 0x343   : > { %16046 = vmatmul.mubr.msk.f32.gmra.mrb[56].mxu1 %vm3814_vm2, %v22744_v58 }
 0x344   : > { %16048 = vmatprep.mubr.msk.f32.mxu1 %vm3814_vm2, %v22745_v10 }
 0x347   : > { %16049 = vmatmul.mubr.msk.f32.gmra.mrb[58].mxu1 %vm3814_vm2, %v22746_v57  ;;  %v13580_v57 = vld [vmem:[%s22449_s4 + $0x1d8] sm:$0xff] }
 0x348   : > { %16051 = vmatprep.mubr.msk.f32.mxu1 %vm3814_vm2, %v22747_v22  ;;  %v13582_v22 = vld [vmem:[%s22449_s4 + $0x1e8] sm:$0xff] }
 0x34b   : > { %16052 = vmatmul.mubr.msk.f32.gmra.mrb[60].mxu1 %vm3814_vm2, %v22748_v12  ;;  %v16941_v12 = vpack.c.bf16 %v13580_v57, %v13579_v3  ;;  %v13584_v57 = vld [vmem:[%s22449_s4 + $0x1f8] sm:$0xff]  ;;  %v6604_v3 = vld [vmem:[#allocation2 + $0x81] sm:$0xff] }
 0x34c   : > { %16054 = vmatprep.mubr.msk.f32.mxu1 %vm3814_vm2, %v19943_v31  ;;  %v13581_v31 = vld [vmem:[%s22449_s4 + $0x1e0] sm:$0xff] }
 0x34f   : > { %16055 = vmatmul.mubr.msk.f32.gmra.mrb[62].mxu1 %vm3814_vm2, %v19947_v28  ;;  %v16945_v28 = vpack.c.bf16 %v13582_v22, %v13581_v31  ;;  %v6602_v31 = vld [vmem:[#allocation2 + $0x69] sm:$0xff] }
 0x350   : > { %16073 = vmatprep.mubr.msk.f32.mxu1 %vm3814_vm2, %v19411_v17  ;;  %v13583_v17 = vld [vmem:[%s22449_s4 + $0x1f0] sm:$0xff] }
 0x353   : > { %16074 = vmatmul.mubr.msk.f32.vlgmr.msra.gmra.mrb[32].mxu1 %vm3814_vm2, %v19415_v19  ;;  %v16949_v19 = vpack.c.bf16 %v13584_v57, %v13583_v17  ;;  %v6605_v17 = vld [vmem:[#allocation2 + $0x91] sm:$0xff]  ;;  %v6606_v57 = vld [vmem:[#allocation2 + $0x99] sm:$0xff] }
 0x354   : > { %16940 = vmatpush3.bf16.msra.mxu1 %v16937_v60  ;;  %16076 = vmatprep.mubr.msk.f32.mxu1 %vm3814_vm2, %v19425_v1  ;;  %v13617_v1 = vld [vmem:[%s22449_s4 + $0x200] sm:$0xff]  ;;  %v13618_v60 = vld [vmem:[%s22449_s4 + $0x208] sm:$0xff] }
 0x355   : > { %16942 = vmatprep.subr.bf16.mxu1 %v16941_v12 }
 0x357   : > { %16077 = vmatmul.mubr.msk.f32.gmra.mrb[34].mxu1 %vm3814_vm2, %v19429_v61  ;;  %v16953_v61 = vpack.c.bf16 %v13618_v60, %v13617_v1  ;;  %v6608_v1 = vld [vmem:[#allocation2 + $0xb1] sm:$0xff]  ;;  %v6609_v60 = vld [vmem:[#allocation2 + $0xc1] sm:$0xff] }
 0x358   : > { %16079 = vmatprep.mubr.msk.f32.mxu1 %vm3814_vm2, %v19433_v14  ;;  %16944 = vmatpush3.bf16.msra.mxu1 %v16941_v12  ;;  %v6233_v14 = vld [vmem:[#allocation2 + $0x198] sm:$0xff] }
 0x359   : > { %16946 = vmatprep.subr.bf16.mxu1 %v16945_v28 }
 0x35b   : > { %16080 = vmatmul.mubr.msk.f32.gmra.mrb[36].mxu1 %vm3814_vm2, %v19437_v18  ;;  %v6234_v18 = vld [vmem:[#allocation2 + $0x1a0] sm:$0xff] }
 0x35c   : > { %16082 = vmatprep.mubr.msk.f32.mxu1 %vm3814_vm2, %v19441_v23  ;;  %16948 = vmatpush3.bf16.msra.mxu1 %v16945_v28  ;;  %v6597_v23 = vld [vmem:[#allocation2 + $0x31] sm:$0xff]  ;;  %v6603_v28 = vld [vmem:[#allocation2 + $0x79] sm:$0xff] }
 0x35d   : > { %16950 = vmatprep.subr.bf16.mxu1 %v16949_v19 }
 0x35f   : > { %16083 = vmatmul.mubr.msk.f32.gmra.mrb[38].mxu1 %vm3814_vm2, %v19445_v30  ;;  %v13619_v30 = vld [vmem:[%s22449_s4 + $0x210] sm:$0xff] }
 0x360   : > { %16085 = vmatprep.mubr.msk.f32.mxu1 %vm3814_vm2, %v19449_v32  ;;  %16952 = vmatpush3.bf16.msra.mxu1 %v16949_v19  ;;  %v13620_v32 = vld [vmem:[%s22449_s4 + $0x218] sm:$0xff]  ;;  %v6607_v19 = vld [vmem:[#allocation2 + $0xa9] sm:$0xff] }
 0x361   : > { %16954 = vmatprep.subr.bf16.mxu1 %v16953_v61 }
 0x363   : > { %16086 = vmatmul.mubr.msk.f32.gmra.mrb[40].mxu1 %vm3814_vm2, %v19453_v34  ;;  %v13658_v34 = vld [vmem:[%s22451_s6 + $0x40] sm:$0xff] }
 0x364   : > { %16088 = vmatprep.mubr.msk.f32.mxu1 %vm3814_vm2, %v19457_v35  ;;  %v13659_v35 = vld [vmem:[%s22451_s6 + $0x48] sm:$0xff] }
 0x367   : > { %16089 = vmatmul.mubr.msk.f32.gmra.mrb[42].mxu1 %vm3814_vm2, %v19461_v36  ;;  %v13660_v36 = vld [vmem:[%s22451_s6 + $0x50] sm:$0xff] }
 0x368   : > { %16091 = vmatprep.mubr.msk.f32.mxu1 %vm3814_vm2, %v19465_v38  ;;  %v16969_v38 = vpack.c.bf16 %v13659_v35, %v13658_v34  ;;  %v6616_v34 = vld [vmem:[#allocation2 + $0x111] sm:$0xff]  ;;  %v6617_v35 = vld [vmem:[#allocation2 + $0x121] sm:$0xff] }
 0x36a   : > { %16970 = vmatprep.subr.bf16.mxu0 %v16969_v38 }
 0x36b   : > { %16092 = vmatmul.mubr.msk.f32.gmra.mrb[44].mxu1 %vm3814_vm2, %v19469_v42  ;;  %v13661_v42 = vld [vmem:[%s22451_s6 + $0x58] sm:$0xff]  ;;  %16972 = vmatpush3.bf16.msra.mxu0 %v16969_v38 }
 0x36c   : > { %16094 = vmatprep.mubr.msk.f32.mxu1 %vm3814_vm2, %v19473_v44  ;;  %v6598_v44 = vld [vmem:[#allocation2 + $0x39] sm:$0xff] }
 0x36d   : > { %v6619_v38 = vld [vmem:[#allocation2 + $0x139] sm:$0xff] }
 0x36f   : > { %16095 = vmatmul.mubr.msk.f32.gmra.mrb[46].mxu1 %vm3814_vm2, %v19477_v46  ;;  %v16957_v46 = vpack.c.bf16 %v13620_v32, %v13619_v30  ;;  %v6614_v30 = vld [vmem:[#allocation2 + $0xf9] sm:$0xff]  ;;  %v6615_v32 = vld [vmem:[#allocation2 + $0x109] sm:$0xff] }
 0x370   : > { %16097 = vmatprep.mubr.msk.f32.mxu1 %vm3814_vm2, %v19481_v50  ;;  %v13621_v50 = vld [vmem:[%s22449_s4 + $0x220] sm:$0xff] }
 0x373   : > { %16098 = vmatmul.mubr.msk.f32.gmra.mrb[48].mxu1 %vm3814_vm2, %v19485_v51  ;;  %v16973_v51 = vpack.c.bf16 %v13661_v42, %v13660_v36  ;;  %v6618_v36 = vld [vmem:[#allocation2 + $0x129] sm:$0xff]  ;;  %v6620_v42 = vld [vmem:[#allocation2 + $0x141] sm:$0xff] }
 0x374   : > { %16100 = vmatprep.mubr.msk.f32.mxu1 %vm3814_vm2, %v19489_v62  ;;  %v13622_v62 = vld [vmem:[%s22449_s4 + $0x228] sm:$0xff] }
 0x375   : > { %16974 = vmatprep.subr.bf16.mxu0 %v16973_v51 }
 0x376   : > { %16976 = vmatpush3.bf16.msra.mxu0 %v16973_v51  ;;  %v6624_v51 = vld [vmem:[#allocation2 + $0x171] sm:$0xff] }
 0x377   : > { %16101 = vmatmul.mubr.msk.f32.gmra.mrb[50].mxu1 %vm3814_vm2, %v19493_v63  ;;  %v13662_v63 = vld [vmem:[%s22451_s6 + $0x60] sm:$0xff] }
 0x378   : > { %16103 = vmatprep.mubr.msk.f32.mxu1 %vm3814_vm2, %v19497_v0  ;;  %v13663_v0 = vld [vmem:[%s22451_s6 + $0x68] sm:$0xff] }
 0x37b   : > { %16104 = vmatmul.mubr.msk.f32.gmra.mrb[52].mxu1 %vm3814_vm2, %v19501_v2  ;;  %v6599_v2 = vld [vmem:[#allocation2 + $0x49] sm:$0xff] }
 0x37c   : > { %16106 = vmatprep.mubr.msk.f32.mxu1 %vm3814_vm2, %v19505_v6  ;;  %v6600_v6 = vld [vmem:[#allocation2 + $0x51] sm:$0xff] }
 0x37f   : > { %16107 = vmatmul.mubr.msk.f32.gmra.mrb[54].mxu1 %vm3814_vm2, %v19509_v9  ;;  %v16961_v9 = vpack.c.bf16 %v13622_v62, %v13621_v50  ;;  %v6623_v50 = vld [vmem:[#allocation2 + $0x169] sm:$0xff]  ;;  %v6627_v62 = vld [vmem:[#allocation2 + $0x199] sm:$0xff] }
 0x380   : > { %16109 = vmatprep.mubr.msk.f32.mxu1 %vm3814_vm2, %v19513_v55  ;;  %v13623_v55 = vld [vmem:[%s22449_s4 + $0x230] sm:$0xff] }
 0x383   : > { %16110 = vmatmul.mubr.msk.f32.gmra.mrb[56].mxu1 %vm3814_vm2, %v19517_v25  ;;  %v16977_v25 = vpack.c.bf16 %v13663_v0, %v13662_v63  ;;  %v6628_v63 = vld [vmem:[#allocation2 + $0x1a1] sm:$0xff] }
 0x384   : > { %16112 = vmatprep.mubr.msk.f32.mxu1 %vm3814_vm2, %v19521_v13  ;;  %v13624_v13 = vld [vmem:[%s22449_s4 + $0x238] sm:$0xff] }
 0x385   : > { %v16965_v22 = vpack.c.bf16 %v13624_v13, %v13623_v55  ;;  %16978 = vmatprep.subr.bf16.mxu0 %v16977_v25 }
 0x386   : > { %16980 = vmatpush3.bf16.msra.mxu0 %v16977_v25 }
 0x387   : > { %16113 = vmatmul.mubr.msk.f32.gmra.mrb[58].mxu1 %vm3814_vm2, %v19525_v5  ;;  %v13664_v5 = vld [vmem:[%s22451_s6 + $0x70] sm:$0xff] }
 0x388   : > { %16115 = vmatprep.mubr.msk.f32.mxu1 %vm3814_vm2, %v19759_v54  ;;  %v13665_v54 = vld [vmem:[%s22451_s6 + $0x78] sm:$0xff] }
 0x389   : > { %v16981_v12 = vpack.c.bf16 %v13665_v54, %v13664_v5 }
 0x38b   : > { %16116 = vmatmul.mubr.msk.f32.gmra.mrb[60].mxu1 %vm3814_vm2, %v19763_v48  ;;  %v6601_v48 = vld [vmem:[#allocation2 + $0x61] sm:$0xff]  ;;  %16982 = vmatprep.subr.bf16.mxu0 %v16981_v12 }
 0x38c   : > { %16118 = vmatprep.mubr.msk.f32.mxu1 %vm3814_vm2, %v6233_v14  ;;  %16984 = vmatpush3.bf16.msra.mxu0 %v16981_v12  ;;  %v6611_v14 = vld [vmem:[#allocation2 + $0xd9] sm:$0xff] }
 0x38f   : > { %16119 = vmatmul.mubr.msk.f32.gmra.mrb[62].mxu1 %vm3814_vm2, %v6234_v18  ;;  %v6612_v18 = vld [vmem:[#allocation2 + $0xe1] sm:$0xff] }
 0x390   : > { %16137 = vmatprep.mubr.msk.f32.mxu1 %vm3814_vm2, %v6597_v23  ;;  %v6613_v23 = vld [vmem:[#allocation2 + $0xf1] sm:$0xff] }
 0x393   : > { %16138 = vmatmul.mubr.msk.f32.vlgmr.msra.gmra.mrb[32].mxu1 %vm3814_vm2, %v6598_v44  ;;  %v6621_v44 = vld [vmem:[#allocation2 + $0x151] sm:$0xff] }
 0x394   : > { %16956 = vmatpush3.bf16.msra.mxu1 %v16953_v61  ;;  %16140 = vmatprep.mubr.msk.f32.mxu1 %vm3814_vm2, %v6599_v2  ;;  %v6610_v61 = vld [vmem:[#allocation2 + $0xc9] sm:$0xff] }
 0x395   : > { %16958 = vmatprep.subr.bf16.mxu1 %v16957_v46 }
 0x397   : > { %16141 = vmatmul.mubr.msk.f32.gmra.mrb[34].mxu1 %vm3814_vm2, %v6600_v6 }
 0x398   : > { %16143 = vmatprep.mubr.msk.f32.mxu1 %vm3814_vm2, %v6601_v48  ;;  %16960 = vmatpush3.bf16.msra.mxu1 %v16957_v46  ;;  %v6622_v46 = vld [vmem:[#allocation2 + $0x159] sm:$0xff] }
 0x399   : > { %16962 = vmatprep.subr.bf16.mxu1 %v16961_v9 }
 0x39b   : > { %16144 = vmatmul.mubr.msk.f32.gmra.mrb[36].mxu1 %vm3814_vm2, %v6602_v31 }
 0x39c   : > { %16146 = vmatprep.mubr.msk.f32.mxu1 %vm3814_vm2, %v6603_v28  ;;  %16964 = vmatpush3.bf16.msra.mxu1 %v16961_v9 }
 0x39d   : > { %16966 = vmatprep.subr.bf16.mxu1 %v16965_v22 }
 0x39f   : > { %16147 = vmatmul.mubr.msk.f32.gmra.mrb[38].mxu1 %vm3814_vm2, %v6604_v3 }
 0x3a0   : > { %16149 = vmatprep.mubr.msk.f32.mxu1 %vm3814_vm2, %v6605_v17  ;;  %16968 = vmatpush3.bf16.msra.mxu1 %v16965_v22 }
 0x3a3   : > { %16150 = vmatmul.mubr.msk.f32.gmra.mrb[40].mxu1 %vm3814_vm2, %v6606_v57 }
 0x3a4   : > { %16152 = vmatprep.mubr.msk.f32.mxu1 %vm3814_vm2, %v6607_v19 }
 0x3a7   : > { %16153 = vmatmul.mubr.msk.f32.gmra.mrb[42].mxu1 %vm3814_vm2, %v6608_v1 }
 0x3a8   : > { %16155 = vmatprep.mubr.msk.f32.mxu1 %vm3814_vm2, %v6609_v60 }
 0x3ab   : > { %16156 = vmatmul.mubr.msk.f32.gmra.mrb[44].mxu1 %vm3814_vm2, %v6610_v61 }
 0x3ac   : > { %16158 = vmatprep.mubr.msk.f32.mxu1 %vm3814_vm2, %v6611_v14 }
 0x3af   : > { %16159 = vmatmul.mubr.msk.f32.gmra.mrb[46].mxu1 %vm3814_vm2, %v6612_v18 }
 0x3b0   : > { %16161 = vmatprep.mubr.msk.f32.mxu1 %vm3814_vm2, %v6613_v23 }
 0x3b3   : > { %16162 = vmatmul.mubr.msk.f32.gmra.mrb[48].mxu1 %vm3814_vm2, %v6614_v30 }
 0x3b4   : > { %16164 = vmatprep.mubr.msk.f32.mxu1 %vm3814_vm2, %v6615_v32 }
 0x3b7   : > { %16165 = vmatmul.mubr.msk.f32.gmra.mrb[50].mxu1 %vm3814_vm2, %v6616_v34 }
 0x3b8   : > { %16167 = vmatprep.mubr.msk.f32.mxu1 %vm3814_vm2, %v6617_v35 }
 0x3bb   : > { %16168 = vmatmul.mubr.msk.f32.gmra.mrb[52].mxu1 %vm3814_vm2, %v6618_v36 }
 0x3bc   : > { %16170 = vmatprep.mubr.msk.f32.mxu1 %vm3814_vm2, %v6619_v38 }
 0x3bf   : > { %16171 = vmatmul.mubr.msk.f32.gmra.mrb[54].mxu1 %vm3814_vm2, %v6620_v42 }
 0x3c0   : > { %16173 = vmatprep.mubr.msk.f32.mxu1 %vm3814_vm2, %v6621_v44 }
 0x3c3   : > { %16174 = vmatmul.mubr.msk.f32.gmra.mrb[56].mxu1 %vm3814_vm2, %v6622_v46 }
 0x3c4   : > { %16176 = vmatprep.mubr.msk.f32.mxu1 %vm3814_vm2, %v6623_v50 }
 0x3c7   : > { %16177 = vmatmul.mubr.msk.f32.gmra.mrb[58].mxu1 %vm3814_vm2, %v6624_v51 }
 0x3c8   : > { %16179 = vmatprep.mubr.msk.f32.mxu1 %vm3814_vm2, %v19851_v21  ;;  %v22754_v21 = vld [vmem:[#allocation4_spill] sm:$0xff] }
 0x3cb   : > { %16180 = vmatmul.mubr.msk.f32.gmra.mrb[60].mxu1 %vm3814_vm2, %v19855_v16  ;;  %v7021_v16 = vld [vmem:[#allocation2 + $0x19a] sm:$0xff] }
 0x3cc   : > { %16182 = vmatprep.mubr.msk.f32.mxu1 %vm3814_vm2, %v6627_v62 }
 0x3cf   : > { %16183 = vmatmul.mubr.msk.f32.gmra.mrb[62].mxu1 %vm3814_vm2, %v6628_v63 }
 0x3d0   : > { %16201 = vmatprep.mubr.msk.f32.mxu1 %vm3814_vm2, %v19557_v37  ;;  %v22752_v37 = vld [vmem:[#allocation35_spill] sm:$0xff] }
 0x3d3   : > { %16202 = vmatmul.mubr.msk.f32.vlgmr.msra.gmra.mrb[32].mxu1 %vm3814_vm2, %v22724_v27  ;;  %v22755_v27 = vld [vmem:[#allocation17_spill] sm:$0xff] }
 0x3d4   : > { %16204 = vmatprep.mubr.msk.f32.mxu1 %vm3814_vm2, %v19571_v45  ;;  %v22751_v45 = vld [vmem:[#allocation33_spill] sm:$0xff] }
 0x3d7   : > { %16205 = vmatmul.mubr.msk.f32.gmra.mrb[34].mxu1 %vm3814_vm2, %v19575_v33  ;;  %v22753_v33 = vld [vmem:[#allocation36_spill] sm:$0xff] }
 0x3d8   : > { %16207 = vmatprep.mubr.msk.f32.mxu1 %vm3814_vm2, %v22725_v11  ;;  %v7022_v11 = vld [vmem:[#allocation2 + $0x1a2] sm:$0xff] }
 0x3db   : > { %16208 = vmatmul.mubr.msk.f32.gmra.mrb[36].mxu1 %vm3814_vm2, %v22726_v20  ;;  %v7551_v20 = vld [vmem:[#allocation3 + $0x1] sm:$0xff] }
 0x3dc   : > { %16210 = vmatprep.mubr.msk.f32.mxu1 %vm3814_vm2, %v22727_v39  ;;  %16265 = vmatprep.mubr.msk.f32.mxu0 %vm3814_vm2, %v7551_v20  ;;  %v7543_v39 = vld [vmem:[%s22451_s6] sm:$0xff] }
 0x3df   : > { %16211 = vmatmul.mubr.msk.f32.gmra.mrb[38].mxu1 %vm3814_vm2, %v22728_v52  ;;  %v7544_v52 = vld [vmem:[%s22451_s6 + $0x8] sm:$0xff] }
 0x3e0   : > { %16213 = vmatprep.mubr.msk.f32.mxu1 %vm3814_vm2, %v22729_v41  ;;  %v7552_v41 = vld [vmem:[#allocation3 + $0x9] sm:$0xff] }
 0x3e1   : > { %16266 = vmatmul.mubr.msk.f32.vlgmr.msra.gmra.mrb[32].mxu0 %vm3814_vm2, %v7552_v41 }
 0x3e3   : > { %16214 = vmatmul.mubr.msk.f32.gmra.mrb[40].mxu1 %vm3814_vm2, %v22730_v47  ;;  %v16985_v47 = vpack.c.bf16 %v7544_v52, %v7543_v39 }
 0x3e4   : > { %16216 = vmatprep.mubr.msk.f32.mxu1 %vm3814_vm2, %v22731_v15  ;;  %v7545_v15 = vld [vmem:[%s22451_s6 + $0x10] sm:$0xff] }
 0x3e5   : > { %16986 = vmatprep.subr.bf16.mxu0 %v16985_v47 }
 0x3e6   : > { %16988 = vmatpush3.bf16.msra.mxu0 %v16985_v47 }
 0x3e7   : > { %16217 = vmatmul.mubr.msk.f32.gmra.mrb[42].mxu1 %vm3814_vm2, %v22732_v49  ;;  %v7546_v49 = vld [vmem:[%s22451_s6 + $0x18] sm:$0xff] }
 0x3e8   : > { %16219 = vmatprep.mubr.msk.f32.mxu1 %vm3814_vm2, %v22733_v56  ;;  %v16989_v56 = vpack.c.bf16 %v7546_v49, %v7545_v15 }
 0x3ea   : > { %16990 = vmatprep.subr.bf16.mxu0 %v16989_v56 }
 0x3eb   : > { %16220 = vmatmul.mubr.msk.f32.gmra.mrb[44].mxu1 %vm3814_vm2, %v22734_v59  ;;  %16992 = vmatpush3.bf16.msra.mxu0 %v16989_v56  ;;  %v7547_v59 = vld [vmem:[%s22451_s6 + $0x20] sm:$0xff] }
 0x3ec   : > { %16222 = vmatprep.mubr.msk.f32.mxu1 %vm3814_vm2, %v22735_v4  ;;  %v7548_v4 = vld [vmem:[%s22451_s6 + $0x28] sm:$0xff] }
 0x3ef   : > { %16223 = vmatmul.mubr.msk.f32.gmra.mrb[46].mxu1 %vm3814_vm2, %v22736_v7  ;;  %v16993_v7 = vpack.c.bf16 %v7548_v4, %v7547_v59 }
 0x3f0   : > { %16225 = vmatprep.mubr.msk.f32.mxu1 %vm3814_vm2, %v22737_v24  ;;  %v7549_v24 = vld [vmem:[%s22451_s6 + $0x30] sm:$0xff] }
 0x3f1   : > { %16994 = vmatprep.subr.bf16.mxu0 %v16993_v7 }
 0x3f2   : > { %16996 = vmatpush3.bf16.msra.mxu0 %v16993_v7 }
 0x3f3   : > { %16226 = vmatmul.mubr.msk.f32.gmra.mrb[48].mxu1 %vm3814_vm2, %v22738_v8  ;;  %v7550_v8 = vld [vmem:[%s22451_s6 + $0x38] sm:$0xff] }
 0x3f4   : > { %16228 = vmatprep.mubr.msk.f32.mxu1 %vm3814_vm2, %v22739_v26  ;;  %v16997_v26 = vpack.c.bf16 %v7550_v8, %v7549_v24 }
 0x3f6   : > { %16998 = vmatprep.subr.bf16.mxu0 %v16997_v26 }
 0x3f7   : > { %16229 = vmatmul.mubr.msk.f32.gmra.mrb[50].mxu1 %vm3814_vm2, %v22740_v29  ;;  %17000 = vmatpush3.bf16.msra.mxu0 %v16997_v26  ;;  %v13730_v29 = vld [vmem:[%s22451_s6 + $0x80] sm:$0xff] }
 0x3f8   : > { %16231 = vmatprep.mubr.msk.f32.mxu1 %vm3814_vm2, %v22741_v40  ;;  %v13731_v40 = vld [vmem:[%s22451_s6 + $0x88] sm:$0xff] }
 0x3fb   : > { %16232 = vmatmul.mubr.msk.f32.gmra.mrb[52].mxu1 %vm3814_vm2, %v22742_v43  ;;  %v20207_v43 = vpack.c.bf16 %v13731_v40, %v13730_v29 }
 0x3fc   : > { %16234 = vmatprep.mubr.msk.f32.mxu1 %vm3814_vm2, %v22743_v53  ;;  %v20213_v53 = vld [vmem:[%s22450_s5] ss:$0 sm:$0xff] }
 0x3fd   : > { %17002 = vmatprep.subr.bf16.mxu0 %v20207_v43 }
 0x3ff   : > { %16235 = vmatmul.mubr.msk.f32.gmra.mrb[54].mxu1 %vm3814_vm2, %v22744_v58 }
 0x400   : > { %16237 = vmatprep.mubr.msk.f32.mxu1 %vm3814_vm2, %v22745_v10 }
 0x403   : > { %16238 = vmatmul.mubr.msk.f32.gmra.mrb[56].mxu1 %vm3814_vm2, %v22751_v45 }
 0x404   : > { %16240 = vmatprep.mubr.msk.f32.mxu1 %vm3814_vm2, %v22752_v37 }
 0x407   : > { %16241 = vmatmul.mubr.msk.f32.gmra.mrb[58].mxu1 %vm3814_vm2, %v22753_v33 }
 0x408   : > { %16243 = vmatprep.mubr.msk.f32.mxu1 %vm3814_vm2, %v22754_v21 }
 0x40b   : > { %16244 = vmatmul.mubr.msk.f32.gmra.mrb[60].mxu1 %vm3814_vm2, %v22755_v27 }
 0x40c   : > { %16246 = vmatprep.mubr.msk.f32.mxu1 %vm3814_vm2, %v7021_v16 }
 0x40f   : > { %16247 = vmatmul.mubr.msk.f32.gmra.mrb[62].mxu1 %vm3814_vm2, %v7022_v11 }
 0x4a6   : > { %v16203_v58 = vpop.f32.mrb[32].mxu1 }
 0x4a7   : > { %v7393_v10 = vadd.f32 %v16203_v58, %v20213_v53  ;;  %v7194_v0 = vpop.f32.mrb[33].mxu1 }
 0x4a8   : > { %v7392_v2 = vadd.f32 %v20213_v53, %v7194_v0 }
 0x4a9   : > { %7480 = vst.msk [vmem:[#allocation3 + $0x21] sm:$0xff] %vm3814_vm2, %v7393_v10 }
 0x4aa   : > { %7479 = vst.msk [vmem:[#allocation3 + $0x19] sm:$0xff] %vm3814_vm2, %v7392_v2  ;;  %v16206_v6 = vpop.f32.mrb[34].mxu1 }
 0x4ab   : > { %v7395_v9 = vadd.f32 %v16206_v6, %v20213_v53  ;;  %v7204_v55 = vpop.f32.mrb[35].mxu1 }
 0x4ac   : > { %v7394_v25 = vadd.f32 %v20213_v53, %v7204_v55 }
 0x4ad   : > { %7482 = vst.msk [vmem:[#allocation3 + $0x39] sm:$0xff] %vm3814_vm2, %v7395_v9 }
 0x4ae   : > { %7481 = vst.msk [vmem:[#allocation3 + $0x31] sm:$0xff] %vm3814_vm2, %v7394_v25  ;;  %v16209_v13 = vpop.f32.mrb[36].mxu1 }
 0x4af   : > { %v7397_v5 = vadd.f32 %v16209_v13, %v20213_v53  ;;  %v7214_v54 = vpop.f32.mrb[37].mxu1 }
 0x4b0   : > { %v7396_v48 = vadd.f32 %v20213_v53, %v7214_v54  ;;  %v20231_v31 = vld [vmem:[#allocation3 + $0x21] sm:$0xff] }
 0x4b1   : > { %7484 = vst.msk [vmem:[#allocation3 + $0x51] sm:$0xff] %vm3814_vm2, %v7397_v5  ;;  %v20226_v22 = vld [vmem:[#allocation3 + $0x19] sm:$0xff] }
 0x4b2   : > { %7483 = vst.msk [vmem:[#allocation3 + $0x49] sm:$0xff] %vm3814_vm2, %v7396_v48  ;;  %v16212_v12 = vpop.f32.mrb[38].mxu1  ;;  %16268 = vmatprep.mubr.msk.f32.mxu0 %vm3814_vm2, %v20226_v22 }
 0x4b3   : > { %v7399_v28 = vadd.f32 %v16212_v12, %v20213_v53  ;;  %v7224_v3 = vpop.f32.mrb[39].mxu1  ;;  %16269 = vmatmul.mubr.msk.f32.gmra.mrb[34].mxu0 %vm3814_vm2, %v20231_v31 }
 0x4b4   : > { %v7398_v17 = vadd.f32 %v20213_v53, %v7224_v3  ;;  %v20243_v1 = vld [vmem:[#allocation3 + $0x39] sm:$0xff] }
 0x4b5   : > { %7486 = vst.msk [vmem:[#allocation3 + $0x69] sm:$0xff] %vm3814_vm2, %v7399_v28  ;;  %v20238_v57 = vld [vmem:[#allocation3 + $0x31] sm:$0xff] }
 0x4b6   : > { %7485 = vst.msk [vmem:[#allocation3 + $0x61] sm:$0xff] %vm3814_vm2, %v7398_v17  ;;  %v16215_v19 = vpop.f32.mrb[40].mxu1  ;;  %16271 = vmatprep.mubr.msk.f32.mxu0 %vm3814_vm2, %v20238_v57 }
 0x4b7   : > { %v7401_v60 = vadd.f32 %v16215_v19, %v20213_v53  ;;  %v7234_v61 = vpop.f32.mrb[41].mxu1  ;;  %16272 = vmatmul.mubr.msk.f32.gmra.mrb[36].mxu0 %vm3814_vm2, %v20243_v1 }
 0x4b8   : > { %v7400_v14 = vadd.f32 %v20213_v53, %v7234_v61  ;;  %v20255_v30 = vld [vmem:[#allocation3 + $0x51] sm:$0xff] }
 0x4b9   : > { %7488 = vst.msk [vmem:[#allocation3 + $0x81] sm:$0xff] %vm3814_vm2, %v7401_v60  ;;  %v20250_v18 = vld [vmem:[#allocation3 + $0x49] sm:$0xff] }
 0x4ba   : > { %7487 = vst.msk [vmem:[#allocation3 + $0x79] sm:$0xff] %vm3814_vm2, %v7400_v14  ;;  %v16218_v23 = vpop.f32.mrb[42].mxu1  ;;  %16274 = vmatprep.mubr.msk.f32.mxu0 %vm3814_vm2, %v20250_v18 }
 0x4bb   : > { %v7403_v32 = vadd.f32 %v16218_v23, %v20213_v53  ;;  %v7244_v34 = vpop.f32.mrb[43].mxu1  ;;  %16275 = vmatmul.mubr.msk.f32.gmra.mrb[38].mxu0 %vm3814_vm2, %v20255_v30 }
 0x4bc   : > { %v7402_v35 = vadd.f32 %v20213_v53, %v7244_v34  ;;  %v20267_v42 = vld [vmem:[#allocation3 + $0x69] sm:$0xff] }
 0x4bd   : > { %7490 = vst.msk [vmem:[#allocation3 + $0x99] sm:$0xff] %vm3814_vm2, %v7403_v32  ;;  %v20262_v36 = vld [vmem:[#allocation3 + $0x61] sm:$0xff] }
 0x4be   : > { %7489 = vst.msk [vmem:[#allocation3 + $0x91] sm:$0xff] %vm3814_vm2, %v7402_v35  ;;  %v16221_v38 = vpop.f32.mrb[44].mxu1  ;;  %16277 = vmatprep.mubr.msk.f32.mxu0 %vm3814_vm2, %v20262_v36 }
 0x4bf   : > { %v7405_v44 = vadd.f32 %v16221_v38, %v20213_v53  ;;  %v7254_v46 = vpop.f32.mrb[45].mxu1  ;;  %16278 = vmatmul.mubr.msk.f32.gmra.mrb[40].mxu0 %vm3814_vm2, %v20267_v42 }
 0x4c0   : > { %v7404_v50 = vadd.f32 %v20213_v53, %v7254_v46  ;;  %v20279_v63 = vld [vmem:[#allocation3 + $0x81] sm:$0xff] }
 0x4c1   : > { %7492 = vst.msk [vmem:[#allocation3 + $0xb1] sm:$0xff] %vm3814_vm2, %v7405_v44  ;;  %v20274_v51 = vld [vmem:[#allocation3 + $0x79] sm:$0xff] }
 0x4c2   : > { %7491 = vst.msk [vmem:[#allocation3 + $0xa9] sm:$0xff] %vm3814_vm2, %v7404_v50  ;;  %v16224_v62 = vpop.f32.mrb[46].mxu1  ;;  %16280 = vmatprep.mubr.msk.f32.mxu0 %vm3814_vm2, %v20274_v51 }
 0x4c3   : > { %v7407_v45 = vadd.f32 %v16224_v62, %v20213_v53  ;;  %v7264_v37 = vpop.f32.mrb[47].mxu1  ;;  %16281 = vmatmul.mubr.msk.f32.gmra.mrb[42].mxu0 %vm3814_vm2, %v20279_v63 }
 0x4c4   : > { %v7406_v33 = vadd.f32 %v20213_v53, %v7264_v37  ;;  %v20291_v27 = vld [vmem:[#allocation3 + $0x99] sm:$0xff] }
 0x4c5   : > { %7494 = vst.msk [vmem:[#allocation3 + $0xc9] sm:$0xff] %vm3814_vm2, %v7407_v45  ;;  %v20286_v21 = vld [vmem:[#allocation3 + $0x91] sm:$0xff] }
 0x4c6   : > { %7493 = vst.msk [vmem:[#allocation3 + $0xc1] sm:$0xff] %vm3814_vm2, %v7406_v33  ;;  %v16227_v16 = vpop.f32.mrb[48].mxu1  ;;  %16283 = vmatprep.mubr.msk.f32.mxu0 %vm3814_vm2, %v20286_v21  ;;  %v7511_v33 = vld [vmem:[#allocation3] sm:$0xff] }
 0x4c7   : > { %v7409_v11 = vadd.f32 %v16227_v16, %v20213_v53  ;;  %v7274_v20 = vpop.f32.mrb[49].mxu1  ;;  %16284 = vmatmul.mubr.msk.f32.gmra.mrb[44].mxu0 %vm3814_vm2, %v20291_v27  ;;  %v13732_v16 = vld [vmem:[%s22451_s6 + $0x90] sm:$0xff] }
 0x4c8   : > { %v7408_v39 = vadd.f32 %v20213_v53, %v7274_v20  ;;  %v20303_v47 = vld [vmem:[#allocation3 + $0xb1] sm:$0xff]  ;;  %v7512_v20 = vld [vmem:[#allocation3 + $0x8] sm:$0xff] }
 0x4c9   : > { %7496 = vst.msk [vmem:[#allocation3 + $0xe1] sm:$0xff] %vm3814_vm2, %v7409_v11  ;;  %v20298_v52 = vld [vmem:[#allocation3 + $0xa9] sm:$0xff] }
 0x4ca   : > { %7495 = vst.msk [vmem:[#allocation3 + $0xd9] sm:$0xff] %vm3814_vm2, %v7408_v39  ;;  %v16230_v41 = vpop.f32.mrb[50].mxu1  ;;  %16286 = vmatprep.mubr.msk.f32.mxu0 %vm3814_vm2, %v20298_v52  ;;  %v13733_v11 = vld [vmem:[%s22451_s6 + $0x98] sm:$0xff] }
 0x4cb   : > { %v7411_v15 = vadd.f32 %v16230_v41, %v20213_v53  ;;  %v7284_v49 = vpop.f32.mrb[51].mxu1  ;;  %16287 = vmatmul.mubr.msk.f32.gmra.mrb[46].mxu0 %vm3814_vm2, %v20303_v47  ;;  %v17005_v39 = vpack.c.bf16 %v13733_v11, %v13732_v16  ;;  %v13734_v41 = vld [vmem:[%s22451_s6 + $0xa0] sm:$0xff] }
 0x4cc   : > { %v7410_v56 = vadd.f32 %v20213_v53, %v7284_v49  ;;  %v20315_v7 = vld [vmem:[#allocation3 + $0xc9] sm:$0xff]  ;;  %v20413_v49 = vld [vmem:[#allocation3 + $0x18] sm:$0xff] }
 0x4cd   : > { %7498 = vst.msk [vmem:[#allocation3 + $0xf9] sm:$0xff] %vm3814_vm2, %v7411_v15  ;;  %v20310_v59 = vld [vmem:[#allocation3 + $0xc1] sm:$0xff]  ;;  %v13735_v15 = vld [vmem:[%s22451_s6 + $0xa8] sm:$0xff] }
 0x4ce   : > { %7497 = vst.msk [vmem:[#allocation3 + $0xf1] sm:$0xff] %vm3814_vm2, %v7410_v56  ;;  %v16233_v4 = vpop.f32.mrb[52].mxu1  ;;  %16289 = vmatprep.mubr.msk.f32.mxu0 %vm3814_vm2, %v20310_v59  ;;  %v17009_v56 = vpack.c.bf16 %v13735_v15, %v13734_v41 }
 0x4cf   : > { %v7413_v24 = vadd.f32 %v16233_v4, %v20213_v53  ;;  %v7294_v8 = vpop.f32.mrb[53].mxu1  ;;  %16290 = vmatmul.mubr.msk.f32.gmra.mrb[48].mxu0 %vm3814_vm2, %v20315_v7  ;;  %v20418_v4 = vld [vmem:[#allocation3 + $0x20] sm:$0xff] }
 0x4d0   : > { %v7412_v26 = vadd.f32 %v20213_v53, %v7294_v8  ;;  %v20327_v58 = vld [vmem:[#allocation3 + $0xe1] sm:$0xff] }
 0x4d1   : > { %7500 = vst.msk [vmem:[#allocation3 + $0x111] sm:$0xff] %vm3814_vm2, %v7413_v24  ;;  %v20322_v29 = vld [vmem:[#allocation3 + $0xd9] sm:$0xff]  ;;  %v13737_v8 = vld [vmem:[%s22451_s6 + $0xb8] sm:$0xff] }
 0x4d2   : > { %7499 = vst.msk [vmem:[#allocation3 + $0x109] sm:$0xff] %vm3814_vm2, %v7412_v26  ;;  %v16236_v40 = vpop.f32.mrb[54].mxu1  ;;  %16292 = vmatprep.mubr.msk.f32.mxu0 %vm3814_vm2, %v20322_v29  ;;  %v13736_v24 = vld [vmem:[%s22451_s6 + $0xb0] sm:$0xff]  ;;  %v20428_v26 = vld [vmem:[#allocation3 + $0x30] sm:$0xff] }
 0x4d3   : > { %v7415_v10 = vadd.f32 %v16236_v40, %v20213_v53  ;;  %v7304_v0 = vpop.f32.mrb[55].mxu1  ;;  %16293 = vmatmul.mubr.msk.f32.gmra.mrb[50].mxu0 %vm3814_vm2, %v20327_v58  ;;  %v20432_v40 = vld [vmem:[#allocation3 + $0x38] sm:$0xff] }
 0x4d4   : > { %v7414_v2 = vadd.f32 %v20213_v53, %v7304_v0  ;;  %v20339_v55 = vld [vmem:[#allocation3 + $0xf9] sm:$0xff] }
 0x4d5   : > { %7502 = vst.msk [vmem:[#allocation3 + $0x129] sm:$0xff] %vm3814_vm2, %v7415_v10  ;;  %v20334_v6 = vld [vmem:[#allocation3 + $0xf1] sm:$0xff] }
 0x4d6   : > { %7501 = vst.msk [vmem:[#allocation3 + $0x121] sm:$0xff] %vm3814_vm2, %v7414_v2  ;;  %v16239_v9 = vpop.f32.mrb[56].mxu1  ;;  %16295 = vmatprep.mubr.msk.f32.mxu0 %vm3814_vm2, %v20334_v6  ;;  %v13770_v10 = vld [vmem:[%s22451_s6 + $0xc0] sm:$0xff]  ;;  %v13771_v0 = vld [vmem:[%s22451_s6 + $0xc8] sm:$0xff]  ;;  %v20442_v2 = vld [vmem:[#allocation3 + $0x48] sm:$0xff] }
 0x4d7   : > { %v7417_v25 = vadd.f32 %v16239_v9, %v20213_v53  ;;  %v7314_v13 = vpop.f32.mrb[57].mxu1  ;;  %16296 = vmatmul.mubr.msk.f32.gmra.mrb[52].mxu0 %vm3814_vm2, %v20339_v55  ;;  %v17017_v9 = vpack.c.bf16 %v13771_v0, %v13770_v10  ;;  %v13772_v10 = vld [vmem:[%s22451_s6 + $0xd0] sm:$0xff]  ;;  %v13773_v0 = vld [vmem:[%s22451_s6 + $0xd8] sm:$0xff] }
 0x4d8   : > { %v7416_v5 = vadd.f32 %v20213_v53, %v7314_v13  ;;  %v20351_v12 = vld [vmem:[#allocation3 + $0x111] sm:$0xff]  ;;  %v20450_v13 = vld [vmem:[#allocation3 + $0x60] sm:$0xff] }
 0x4d9   : > { %7504 = vst.msk [vmem:[#allocation3 + $0x141] sm:$0xff] %vm3814_vm2, %v7417_v25  ;;  %v20346_v54 = vld [vmem:[#allocation3 + $0x109] sm:$0xff] }
 0x4da   : > { %7503 = vst.msk [vmem:[#allocation3 + $0x139] sm:$0xff] %vm3814_vm2, %v7416_v5  ;;  %v16242_v48 = vpop.f32.mrb[58].mxu1  ;;  %16298 = vmatprep.mubr.msk.f32.mxu0 %vm3814_vm2, %v20346_v54  ;;  %v20446_v25 = vld [vmem:[#allocation3 + $0x50] sm:$0xff]  ;;  %v20454_v5 = vld [vmem:[#allocation3 + $0x68] sm:$0xff] }
 0x4db   : > { %v7419_v28 = vadd.f32 %v16242_v48, %v20213_v53  ;;  %v7324_v3 = vpop.f32.mrb[59].mxu1  ;;  %16299 = vmatmul.mubr.msk.f32.gmra.mrb[54].mxu0 %vm3814_vm2, %v20351_v12  ;;  %v20458_v48 = vld [vmem:[#allocation3 + $0x78] sm:$0xff]  ;;  %v20510_v16 = vld [vmem:[#allocation3 + $0x110] sm:$0xff] }
 0x4dc   : > { %v7418_v17 = vadd.f32 %v20213_v53, %v7324_v3  ;;  %v20363_v61 = vld [vmem:[#allocation3 + $0x129] sm:$0xff] }
 0x4dd   : > { %7506 = vst.msk [vmem:[#allocation3 + $0x159] sm:$0xff] %vm3814_vm2, %v7419_v28  ;;  %v20358_v19 = vld [vmem:[#allocation3 + $0x121] sm:$0xff]  ;;  %v20466_v3 = vld [vmem:[#allocation3 + $0x90] sm:$0xff] }
 0x4de   : > { %7505 = vst.msk [vmem:[#allocation3 + $0x151] sm:$0xff] %vm3814_vm2, %v7418_v17  ;;  %v16245_v60 = vpop.f32.mrb[60].mxu1  ;;  %16301 = vmatprep.mubr.msk.f32.mxu0 %vm3814_vm2, %v20358_v19  ;;  %v20462_v28 = vld [vmem:[#allocation3 + $0x80] sm:$0xff]  ;;  %v20470_v17 = vld [vmem:[#allocation3 + $0x98] sm:$0xff] }
 0x4df   : > { %v7421_v14 = vadd.f32 %v16245_v60, %v20213_v53  ;;  %v7334_v23 = vpop.f32.mrb[61].mxu1  ;;  %16302 = vmatmul.mubr.msk.f32.gmra.mrb[56].mxu0 %vm3814_vm2, %v20363_v61  ;;  %v20474_v60 = vld [vmem:[#allocation3 + $0xa8] sm:$0xff]  ;;  %v20514_v11 = vld [vmem:[#allocation3 + $0x120] sm:$0xff] }
 0x4e0   : > { %v7420_v32 = vadd.f32 %v20213_v53, %v7334_v23  ;;  %v20375_v38 = vld [vmem:[#allocation3 + $0x141] sm:$0xff] }
 0x4e1   : > { %7508 = vst.msk [vmem:[#allocation3 + $0x171] sm:$0xff] %vm3814_vm2, %v7421_v14  ;;  %v20370_v34 = vld [vmem:[#allocation3 + $0x139] sm:$0xff]  ;;  %22757 = vst [vmem:[#allocation18_spill] sm:$0xff] %v20375_v38  ;;  %v20478_v14 = vld [vmem:[#allocation3 + $0xb0] sm:$0xff] }
 0x4e2   : > { %22756 = vst [vmem:[#allocation5_spill] sm:$0xff] %v20370_v34  ;;  %7507 = vst.msk [vmem:[#allocation3 + $0x169] sm:$0xff] %vm3814_vm2, %v7420_v32  ;;  %v16248_v35 = vpop.f32.mrb[62].mxu1  ;;  %16304 = vmatprep.mubr.msk.f32.mxu0 %vm3814_vm2, %v20370_v34  ;;  %v20482_v23 = vld [vmem:[#allocation3 + $0xc0] sm:$0xff]  ;;  %v20486_v32 = vld [vmem:[#allocation3 + $0xc8] sm:$0xff] }
 0x4e3   : > { %v7423_v44 = vadd.f32 %v16248_v35, %v20213_v53  ;;  %v7344_v46 = vpop.f32.mrb[63].mxu1  ;;  %16305 = vmatmul.mubr.msk.f32.gmra.mrb[58].mxu0 %vm3814_vm2, %v20375_v38  ;;  %v20490_v35 = vld [vmem:[#allocation3 + $0xd8] sm:$0xff]  ;;  %v20526_v41 = vld [vmem:[#allocation3 + $0x140] sm:$0xff] }
 0x4e4   : > { %v7422_v50 = vadd.f32 %v20213_v53, %v7344_v46  ;;  %v20387_v45 = vld [vmem:[#allocation3 + $0x159] sm:$0xff]  ;;  %v20498_v46 = vld [vmem:[#allocation3 + $0xf0] sm:$0xff]  ;;  %v20564_v34 = vld [vmem:[#allocation3 + $0x22] sm:$0xff] }
 0x4e5   : > { %7510 = vst.msk [vmem:[#allocation3 + $0x189] sm:$0xff] %vm3814_vm2, %v7423_v44  ;;  %v20382_v62 = vld [vmem:[#allocation3 + $0x151] sm:$0xff]  ;;  %22759 = vst [vmem:[#allocation19_spill] sm:$0xff] %v20387_v45  ;;  %v20494_v44 = vld [vmem:[#allocation3 + $0xe0] sm:$0xff] }
 0x4e6   : > { %22758 = vst [vmem:[#allocation6_spill] sm:$0xff] %v20382_v62  ;;  %7509 = vst.msk [vmem:[#allocation3 + $0x181] sm:$0xff] %vm3814_vm2, %v7422_v50  ;;  %16307 = vmatprep.mubr.msk.f32.mxu0 %vm3814_vm2, %v20382_v62  ;;  %v20502_v50 = vld [vmem:[#allocation3 + $0xf8] sm:$0xff]  ;;  %v20530_v15 = vld [vmem:[#allocation3 + $0x150] sm:$0xff] }
 0x4e7   : > { %16308 = vmatmul.mubr.msk.f32.gmra.mrb[60].mxu0 %vm3814_vm2, %v20387_v45  ;;  %v13774_v45 = vld [vmem:[%s22451_s6 + $0xe0] sm:$0xff]  ;;  %v13775_v62 = vld [vmem:[%s22451_s6 + $0xe8] sm:$0xff]  ;;  %22763 = vst [vmem:[#allocation21_spill] sm:$0xff] %v20564_v34 }
 0x4e8   : > { %v20395_v53 = vld [vmem:[#allocation3 + $0x171] sm:$0xff]  ;;  %v20560_v38 = vld [vmem:[#allocation3 + $0x1a] sm:$0xff] }
 0x4e9   : > { %v20391_v37 = vld [vmem:[#allocation3 + $0x169] sm:$0xff]  ;;  %22761 = vst [vmem:[#allocation20_spill] sm:$0xff] %v20395_v53  ;;  %22762 = vst [vmem:[#allocation8_spill] sm:$0xff] %v20560_v38 }
 0x4ea   : > { %22760 = vst [vmem:[#allocation7_spill] sm:$0xff] %v20391_v37  ;;  %16310 = vmatprep.mubr.msk.f32.mxu0 %vm3814_vm2, %v20391_v37  ;;  %v17021_v37 = vpack.c.bf16 %v13773_v0, %v13772_v10  ;;  %v13776_v10 = vld [vmem:[%s22451_s6 + $0xf0] sm:$0xff]  ;;  %v13777_v0 = vld [vmem:[%s22451_s6 + $0xf8] sm:$0xff] }
 0x4eb   : > { %16311 = vmatmul.mubr.msk.f32.gmra.mrb[62].mxu0 %vm3814_vm2, %v20395_v53  ;;  %v8235_v53 = vld [vmem:[#allocation3 + $0xa] sm:$0xff] }
 0x4ec   : > { %16329 = vmatprep.mubr.msk.f32.mxu0 %vm3814_vm2, %v7511_v33  ;;  %v20506_v33 = vld [vmem:[#allocation3 + $0x108] sm:$0xff] }
 0x4ef   : > { %16330 = vmatmul.mubr.msk.f32.vlgmr.msra.gmra.mrb[32].mxu0 %vm3814_vm2, %v7512_v20  ;;  %v20518_v20 = vld [vmem:[#allocation3 + $0x128] sm:$0xff] }
 0x4f0   : > { %17004 = vmatpush3.bf16.msra.mxu0 %v20207_v43  ;;  %16332 = vmatprep.mubr.msk.f32.mxu0 %vm3814_vm2, %v20413_v49  ;;  %v17013_v43 = vpack.c.bf16 %v13737_v8, %v13736_v24  ;;  %v20538_v24 = vld [vmem:[#allocation3 + $0x168] sm:$0xff] }
 0x4f1   : > { %17006 = vmatprep.subr.bf16.mxu0 %v17005_v39  ;;  %v8234_v8 = vld [vmem:[#allocation3 + $0x2] sm:$0xff] }
 0x4f3   : > { %16333 = vmatmul.mubr.msk.f32.gmra.mrb[34].mxu0 %vm3814_vm2, %v20418_v4 }
 0x4f4   : > { %16335 = vmatprep.mubr.msk.f32.mxu0 %vm3814_vm2, %v20428_v26  ;;  %17008 = vmatpush3.bf16.msra.mxu0 %v17005_v39  ;;  %v20522_v39 = vld [vmem:[#allocation3 + $0x138] sm:$0xff] }
 0x4f5   : > { %17010 = vmatprep.subr.bf16.mxu0 %v17009_v56 }
 0x4f7   : > { %16336 = vmatmul.mubr.msk.f32.gmra.mrb[36].mxu0 %vm3814_vm2, %v20432_v40 }
 0x4f8   : > { %16338 = vmatprep.mubr.msk.f32.mxu0 %vm3814_vm2, %v20442_v2  ;;  %17012 = vmatpush3.bf16.msra.mxu0 %v17009_v56  ;;  %v20534_v56 = vld [vmem:[#allocation3 + $0x158] sm:$0xff] }
 0x4f9   : > { %17014 = vmatprep.subr.bf16.mxu0 %v17013_v43 }
 0x4fb   : > { %16339 = vmatmul.mubr.msk.f32.gmra.mrb[38].mxu0 %vm3814_vm2, %v20446_v25 }
 0x4fc   : > { %16341 = vmatprep.mubr.msk.f32.mxu0 %vm3814_vm2, %v20450_v13  ;;  %17016 = vmatpush3.bf16.msra.mxu0 %v17013_v43  ;;  %v20542_v43 = vld [vmem:[#allocation3 + $0x170] sm:$0xff] }
 0x4fd   : > { %17018 = vmatprep.subr.bf16.mxu0 %v17017_v9 }
 0x4ff   : > { %16342 = vmatmul.mubr.msk.f32.gmra.mrb[40].mxu0 %vm3814_vm2, %v20454_v5 }
 0x500   : > { %16344 = vmatprep.mubr.msk.f32.mxu0 %vm3814_vm2, %v20458_v48 }
 0x503   : > { %16345 = vmatmul.mubr.msk.f32.gmra.mrb[42].mxu0 %vm3814_vm2, %v20462_v28 }
 0x504   : > { %16347 = vmatprep.mubr.msk.f32.mxu0 %vm3814_vm2, %v20466_v3 }
 0x507   : > { %16348 = vmatmul.mubr.msk.f32.gmra.mrb[44].mxu0 %vm3814_vm2, %v20470_v17 }
 0x508   : > { %16350 = vmatprep.mubr.msk.f32.mxu0 %vm3814_vm2, %v20474_v60 }
 0x50b   : > { %16351 = vmatmul.mubr.msk.f32.gmra.mrb[46].mxu0 %vm3814_vm2, %v20478_v14 }
 0x50c   : > { %16353 = vmatprep.mubr.msk.f32.mxu0 %vm3814_vm2, %v20482_v23 }
 0x50f   : > { %16354 = vmatmul.mubr.msk.f32.gmra.mrb[48].mxu0 %vm3814_vm2, %v20486_v32 }
 0x510   : > { %16356 = vmatprep.mubr.msk.f32.mxu0 %vm3814_vm2, %v20490_v35 }
 0x513   : > { %16357 = vmatmul.mubr.msk.f32.gmra.mrb[50].mxu0 %vm3814_vm2, %v20494_v44 }
 0x514   : > { %16359 = vmatprep.mubr.msk.f32.mxu0 %vm3814_vm2, %v20498_v46 }
 0x517   : > { %16360 = vmatmul.mubr.msk.f32.gmra.mrb[52].mxu0 %vm3814_vm2, %v20502_v50 }
 0x518   : > { %16362 = vmatprep.mubr.msk.f32.mxu0 %vm3814_vm2, %v20506_v33 }
 0x51b   : > { %16363 = vmatmul.mubr.msk.f32.gmra.mrb[54].mxu0 %vm3814_vm2, %v20510_v16 }
 0x51c   : > { %16365 = vmatprep.mubr.msk.f32.mxu0 %vm3814_vm2, %v20514_v11 }
 0x51f   : > { %16366 = vmatmul.mubr.msk.f32.gmra.mrb[56].mxu0 %vm3814_vm2, %v20518_v20 }
 0x520   : > { %16368 = vmatprep.mubr.msk.f32.mxu0 %vm3814_vm2, %v20522_v39 }
 0x523   : > { %16369 = vmatmul.mubr.msk.f32.gmra.mrb[58].mxu0 %vm3814_vm2, %v20526_v41 }
 0x524   : > { %16371 = vmatprep.mubr.msk.f32.mxu0 %vm3814_vm2, %v20530_v15 }
 0x527   : > { %16372 = vmatmul.mubr.msk.f32.gmra.mrb[60].mxu0 %vm3814_vm2, %v20534_v56 }
 0x528   : > { %16374 = vmatprep.mubr.msk.f32.mxu0 %vm3814_vm2, %v20538_v24 }
 0x52b   : > { %16375 = vmatmul.mubr.msk.f32.gmra.mrb[62].mxu0 %vm3814_vm2, %v20542_v43 }
 0x52c   : > { %16393 = vmatprep.mubr.msk.f32.mxu0 %vm3814_vm2, %v8234_v8  ;;  %v17025_v8 = vpack.c.bf16 %v13775_v62, %v13774_v45  ;;  %v17029_v62 = vpack.c.bf16 %v13777_v0, %v13776_v10  ;;  %v20578_v45 = vld [vmem:[#allocation3 + $0x3a] sm:$0xff]  ;;  %v20592_v10 = vld [vmem:[#allocation3 + $0x52] sm:$0xff]  ;;  %v20596_v0 = vld [vmem:[#allocation3 + $0x62] sm:$0xff] }
 0x52d   : > { %22764 = vst [vmem:[#allocation9_spill] sm:$0xff] %v20578_v45  ;;  %22765 = vst [vmem:[#allocation22_spill] sm:$0xff] %v20596_v0 }
 0x52f   : > { %16394 = vmatmul.mubr.msk.f32.vlgmr.msra.gmra.mrb[32].mxu0 %vm3814_vm2, %v8235_v53  ;;  %v20574_v53 = vld [vmem:[#allocation3 + $0x32] sm:$0xff] }
 0x530   : > { %17020 = vmatpush3.bf16.msra.mxu0 %v17017_v9  ;;  %16396 = vmatprep.mubr.msk.f32.mxu0 %vm3814_vm2, %v20560_v38  ;;  %v13810_v9 = vld [vmem:[%s22451_s6 + $0x100] sm:$0xff]  ;;  %v13811_v38 = vld [vmem:[%s22451_s6 + $0x108] sm:$0xff] }
 0x531   : > { %17022 = vmatprep.subr.bf16.mxu0 %v17021_v37 }
 0x533   : > { %16397 = vmatmul.mubr.msk.f32.gmra.mrb[34].mxu0 %vm3814_vm2, %v20564_v34  ;;  %v20588_v34 = vld [vmem:[#allocation3 + $0x4a] sm:$0xff] }
 0x534   : > { %16399 = vmatprep.mubr.msk.f32.mxu0 %vm3814_vm2, %v20574_v53  ;;  %17024 = vmatpush3.bf16.msra.mxu0 %v17021_v37  ;;  %v17033_v37 = vpack.c.bf16 %v13811_v38, %v13810_v9  ;;  %v20608_v38 = vld [vmem:[#allocation3 + $0x82] sm:$0xff]  ;;  %v20612_v9 = vld [vmem:[#allocation3 + $0x92] sm:$0xff] }
 0x535   : > { %17026 = vmatprep.subr.bf16.mxu0 %v17025_v8  ;;  %22768 = vst [vmem:[#allocation11_spill] sm:$0xff] %v20608_v38  ;;  %22769 = vst [vmem:[#allocation24_spill] sm:$0xff] %v20612_v9 }
 0x537   : > { %16400 = vmatmul.mubr.msk.f32.gmra.mrb[36].mxu0 %vm3814_vm2, %v20578_v45  ;;  %v20600_v45 = vld [vmem:[#allocation3 + $0x6a] sm:$0xff] }
 0x538   : > { %16402 = vmatprep.mubr.msk.f32.mxu0 %vm3814_vm2, %v20588_v34  ;;  %17028 = vmatpush3.bf16.msra.mxu0 %v17025_v8  ;;  %22766 = vst [vmem:[#allocation10_spill] sm:$0xff] %v20600_v45  ;;  %v20604_v8 = vld [vmem:[#allocation3 + $0x7a] sm:$0xff] }
 0x539   : > { %17030 = vmatprep.subr.bf16.mxu0 %v17029_v62  ;;  %22767 = vst [vmem:[#allocation23_spill] sm:$0xff] %v20604_v8 }
 0x53b   : > { %16403 = vmatmul.mubr.msk.f32.gmra.mrb[38].mxu0 %vm3814_vm2, %v20592_v10 }
 0x53c   : > { %16405 = vmatprep.mubr.msk.f32.mxu0 %vm3814_vm2, %v20596_v0  ;;  %17032 = vmatpush3.bf16.msra.mxu0 %v17029_v62  ;;  %v20616_v62 = vld [vmem:[#allocation3 + $0x9a] sm:$0xff] }
 0x53d   : > { %17034 = vmatprep.subr.bf16.mxu0 %v17033_v37  ;;  %22770 = vst [vmem:[#allocation12_spill] sm:$0xff] %v20616_v62  ;;  %v13815_v0 = vld [vmem:[%s22451_s6 + $0x128] sm:$0xff] }
 0x53f   : > { %16406 = vmatmul.mubr.msk.f32.gmra.mrb[40].mxu0 %vm3814_vm2, %v20600_v45  ;;  %v20620_v45 = vld [vmem:[#allocation3 + $0xaa] sm:$0xff] }
 0x540   : > { %16408 = vmatprep.mubr.msk.f32.mxu0 %vm3814_vm2, %v20604_v8  ;;  %22771 = vst [vmem:[#allocation25_spill] sm:$0xff] %v20620_v45  ;;  %v20624_v8 = vld [vmem:[#allocation3 + $0xb2] sm:$0xff] }
 0x541   : > { %22772 = vst [vmem:[#allocation13_spill] sm:$0xff] %v20624_v8 }
 0x543   : > { %16409 = vmatmul.mubr.msk.f32.gmra.mrb[42].mxu0 %vm3814_vm2, %v20608_v38  ;;  %v20628_v38 = vld [vmem:[#allocation3 + $0xc2] sm:$0xff] }
 0x544   : > { %16411 = vmatprep.mubr.msk.f32.mxu0 %vm3814_vm2, %v20612_v9  ;;  %22773 = vst [vmem:[#allocation26_spill] sm:$0xff] %v20628_v38  ;;  %v20632_v9 = vld [vmem:[#allocation3 + $0xca] sm:$0xff] }
 0x545   : > { %22774 = vst [vmem:[#allocation14_spill] sm:$0xff] %v20632_v9 }
 0x547   : > { %16412 = vmatmul.mubr.msk.f32.gmra.mrb[44].mxu0 %vm3814_vm2, %v20616_v62  ;;  %v20636_v62 = vld [vmem:[#allocation3 + $0xda] sm:$0xff] }
 0x548   : > { %16414 = vmatprep.mubr.msk.f32.mxu0 %vm3814_vm2, %v20620_v45  ;;  %22775 = vst [vmem:[#allocation27_spill] sm:$0xff] %v20636_v62  ;;  %v20640_v45 = vld [vmem:[#allocation3 + $0xe2] sm:$0xff] }
 0x549   : > { %22776 = vst [vmem:[#allocation15_spill] sm:$0xff] %v20640_v45 }
 0x54b   : > { %16415 = vmatmul.mubr.msk.f32.gmra.mrb[46].mxu0 %vm3814_vm2, %v20624_v8  ;;  %v20644_v8 = vld [vmem:[#allocation3 + $0xf2] sm:$0xff] }
 0x54c   : > { %16417 = vmatprep.mubr.msk.f32.mxu0 %vm3814_vm2, %v20628_v38  ;;  %22777 = vst [vmem:[#allocation28_spill] sm:$0xff] %v20644_v8  ;;  %v20648_v38 = vld [vmem:[#allocation3 + $0xfa] sm:$0xff] }
 0x54d   : > { %22778 = vst [vmem:[#allocation30_spill] sm:$0xff] %v20648_v38 }
 0x54f   : > { %16418 = vmatmul.mubr.msk.f32.gmra.mrb[48].mxu0 %vm3814_vm2, %v20632_v9  ;;  %v20652_v9 = vld [vmem:[#allocation3 + $0x10a] sm:$0xff] }
 0x550   : > { %16420 = vmatprep.mubr.msk.f32.mxu0 %vm3814_vm2, %v20636_v62  ;;  %22779 = vst [vmem:[#allocation32_spill] sm:$0xff] %v20652_v9  ;;  %v20656_v62 = vld [vmem:[#allocation3 + $0x112] sm:$0xff] }
 0x551   : > { %22780 = vst [vmem:[#allocation34_spill] sm:$0xff] %v20656_v62 }
 0x553   : > { %16421 = vmatmul.mubr.msk.f32.gmra.mrb[50].mxu0 %vm3814_vm2, %v20640_v45  ;;  %v20660_v45 = vld [vmem:[#allocation3 + $0x122] sm:$0xff] }
 0x554   : > { %16423 = vmatprep.mubr.msk.f32.mxu0 %vm3814_vm2, %v20644_v8  ;;  %22781 = vst [vmem:[#allocation29_spill] sm:$0xff] %v20660_v45  ;;  %v20664_v8 = vld [vmem:[#allocation3 + $0x12a] sm:$0xff] }
 0x555   : > { %22782 = vst [vmem:[#allocation31_spill] sm:$0xff] %v20664_v8 }
 0x557   : > { %16424 = vmatmul.mubr.msk.f32.gmra.mrb[52].mxu0 %vm3814_vm2, %v20648_v38  ;;  %v20668_v38 = vld [vmem:[#allocation3 + $0x13a] sm:$0xff] }
 0x558   : > { %16426 = vmatprep.mubr.msk.f32.mxu0 %vm3814_vm2, %v20652_v9  ;;  %22783 = vst [vmem:[#allocation16_spill] sm:$0xff] %v20668_v38  ;;  %v20672_v9 = vld [vmem:[#allocation3 + $0x142] sm:$0xff] }
 0x559   : > { %22784 = vst [vmem:[#allocation33_spill] sm:$0xff] %v20672_v9 }
 0x55b   : > { %16427 = vmatmul.mubr.msk.f32.gmra.mrb[54].mxu0 %vm3814_vm2, %v20656_v62  ;;  %v20676_v62 = vld [vmem:[#allocation3 + $0x152] sm:$0xff] }
 0x55c   : > { %16429 = vmatprep.mubr.msk.f32.mxu0 %vm3814_vm2, %v20660_v45  ;;  %22785 = vst [vmem:[#allocation35_spill] sm:$0xff] %v20676_v62  ;;  %v20680_v45 = vld [vmem:[#allocation3 + $0x15a] sm:$0xff] }
 0x55d   : > { %22786 = vst [vmem:[#allocation36_spill] sm:$0xff] %v20680_v45 }
 0x55f   : > { %16430 = vmatmul.mubr.msk.f32.gmra.mrb[56].mxu0 %vm3814_vm2, %v20664_v8  ;;  %v20684_v8 = vld [vmem:[#allocation3 + $0x16a] sm:$0xff] }
 0x560   : > { %16432 = vmatprep.mubr.msk.f32.mxu0 %vm3814_vm2, %v20668_v38  ;;  %22787 = vst [vmem:[#allocation4_spill] sm:$0xff] %v20684_v8  ;;  %v20688_v38 = vld [vmem:[#allocation3 + $0x172] sm:$0xff] }
 0x561   : > { %22788 = vst [vmem:[#allocation17_spill] sm:$0xff] %v20688_v38 }
 0x563   : > { %16433 = vmatmul.mubr.msk.f32.gmra.mrb[58].mxu0 %vm3814_vm2, %v20672_v9  ;;  %v13812_v9 = vld [vmem:[%s22451_s6 + $0x110] sm:$0xff] }
 0x564   : > { %16435 = vmatprep.mubr.msk.f32.mxu0 %vm3814_vm2, %v20676_v62  ;;  %v13813_v62 = vld [vmem:[%s22451_s6 + $0x118] sm:$0xff] }
 0x567   : > { %16436 = vmatmul.mubr.msk.f32.gmra.mrb[60].mxu0 %vm3814_vm2, %v20680_v45  ;;  %v17037_v45 = vpack.c.bf16 %v13813_v62, %v13812_v9  ;;  %v13817_v9 = vld [vmem:[%s22451_s6 + $0x138] sm:$0xff]  ;;  %v13852_v62 = vld [vmem:[%s22451_s6 + $0x150] sm:$0xff] }
 0x568   : > { %16438 = vmatprep.mubr.msk.f32.mxu0 %vm3814_vm2, %v20684_v8  ;;  %v13814_v8 = vld [vmem:[%s22451_s6 + $0x120] sm:$0xff] }
 0x56b   : > { %16439 = vmatmul.mubr.msk.f32.gmra.mrb[62].mxu0 %vm3814_vm2, %v20688_v38  ;;  %v17041_v38 = vpack.c.bf16 %v13815_v0, %v13814_v8  ;;  %v13851_v0 = vld [vmem:[%s22451_s6 + $0x148] sm:$0xff] }
 0x56c   : > { %16457 = vmatprep.mubr.msk.f32.mxu0 %vm3814_vm2, %v20413_v49  ;;  %v13816_v49 = vld [vmem:[%s22451_s6 + $0x130] sm:$0xff] }
 0x56f   : > { %16458 = vmatmul.mubr.msk.f32.vlgmr.msra.gmra.mrb[32].mxu0 %vm3814_vm2, %v20418_v4  ;;  %v17045_v4 = vpack.c.bf16 %v13817_v9, %v13816_v49  ;;  %v13853_v49 = vld [vmem:[%s22451_s6 + $0x158] sm:$0xff] }
 0x570   : > { %17036 = vmatpush3.bf16.msra.mxu0 %v17033_v37  ;;  %16460 = vmatprep.mubr.msk.f32.mxu0 %vm3814_vm2, %v20428_v26  ;;  %v13850_v37 = vld [vmem:[%s22451_s6 + $0x140] sm:$0xff]  ;;  %v17053_v9 = vpack.c.bf16 %v13853_v49, %v13852_v62  ;;  %v13857_v62 = vld [vmem:[%s22451_s6 + $0x178] sm:$0xff] }
 0x571   : > { %17038 = vmatprep.subr.bf16.mxu0 %v17037_v45  ;;  %v17049_v8 = vpack.c.bf16 %v13851_v0, %v13850_v37  ;;  %v13855_v37 = vld [vmem:[%s22451_s6 + $0x168] sm:$0xff]  ;;  %v13930_v49 = vld [vmem:[%s22451_s6 + $0x1c0] sm:$0xff] }
 0x573   : > { %16461 = vmatmul.mubr.msk.f32.gmra.mrb[34].mxu0 %vm3814_vm2, %v20432_v40 }
 0x574   : > { %16463 = vmatprep.mubr.msk.f32.mxu0 %vm3814_vm2, %v20442_v2  ;;  %17040 = vmatpush3.bf16.msra.mxu0 %v17037_v45  ;;  %v20776_v45 = vld [vmem:[#allocation3 + $0x180] sm:$0xff] }
 0x575   : > { %17042 = vmatprep.subr.bf16.mxu0 %v17041_v38 }
 0x577   : > { %16464 = vmatmul.mubr.msk.f32.gmra.mrb[36].mxu0 %vm3814_vm2, %v20446_v25 }
 0x578   : > { %16466 = vmatprep.mubr.msk.f32.mxu0 %vm3814_vm2, %v20450_v13  ;;  %17044 = vmatpush3.bf16.msra.mxu0 %v17041_v38  ;;  %v20780_v38 = vld [vmem:[#allocation3 + $0x188] sm:$0xff] }
 0x579   : > { %17046 = vmatprep.subr.bf16.mxu0 %v17045_v4 }
 0x57b   : > { %16467 = vmatmul.mubr.msk.f32.gmra.mrb[38].mxu0 %vm3814_vm2, %v20454_v5 }
 0x57c   : > { %16469 = vmatprep.mubr.msk.f32.mxu0 %vm3814_vm2, %v20458_v48  ;;  %17048 = vmatpush3.bf16.msra.mxu0 %v17045_v4  ;;  %v13854_v4 = vld [vmem:[%s22451_s6 + $0x160] sm:$0xff] }
 0x57d   : > { %17050 = vmatprep.subr.bf16.mxu0 %v17049_v8  ;;  %v17057_v0 = vpack.c.bf16 %v13855_v37, %v13854_v4  ;;  %v22798_v4 = vld [vmem:[#allocation22_spill] sm:$0xff] }
 0x57f   : > { %16470 = vmatmul.mubr.msk.f32.gmra.mrb[40].mxu0 %vm3814_vm2, %v20462_v28 }
 0x580   : > { %16472 = vmatprep.mubr.msk.f32.mxu0 %vm3814_vm2, %v20466_v3 }
 0x583   : > { %16473 = vmatmul.mubr.msk.f32.gmra.mrb[42].mxu0 %vm3814_vm2, %v20470_v17 }
 0x584   : > { %16475 = vmatprep.mubr.msk.f32.mxu0 %vm3814_vm2, %v20474_v60 }
 0x587   : > { %16476 = vmatmul.mubr.msk.f32.gmra.mrb[44].mxu0 %vm3814_vm2, %v20478_v14 }
 0x588   : > { %16478 = vmatprep.mubr.msk.f32.mxu0 %vm3814_vm2, %v20482_v23 }
 0x58b   : > { %16479 = vmatmul.mubr.msk.f32.gmra.mrb[46].mxu0 %vm3814_vm2, %v20486_v32 }
 0x58c   : > { %16481 = vmatprep.mubr.msk.f32.mxu0 %vm3814_vm2, %v20490_v35 }
 0x58f   : > { %16482 = vmatmul.mubr.msk.f32.gmra.mrb[48].mxu0 %vm3814_vm2, %v20494_v44 }
 0x590   : > { %16484 = vmatprep.mubr.msk.f32.mxu0 %vm3814_vm2, %v20498_v46 }
 0x593   : > { %16485 = vmatmul.mubr.msk.f32.gmra.mrb[50].mxu0 %vm3814_vm2, %v20502_v50 }
 0x594   : > { %16487 = vmatprep.mubr.msk.f32.mxu0 %vm3814_vm2, %v20506_v33 }
 0x597   : > { %16488 = vmatmul.mubr.msk.f32.gmra.mrb[52].mxu0 %vm3814_vm2, %v20510_v16 }
 0x598   : > { %16490 = vmatprep.mubr.msk.f32.mxu0 %vm3814_vm2, %v20514_v11 }
 0x59b   : > { %16491 = vmatmul.mubr.msk.f32.gmra.mrb[54].mxu0 %vm3814_vm2, %v20518_v20 }
 0x59c   : > { %16493 = vmatprep.mubr.msk.f32.mxu0 %vm3814_vm2, %v20522_v39 }
 0x59f   : > { %16494 = vmatmul.mubr.msk.f32.gmra.mrb[56].mxu0 %vm3814_vm2, %v20526_v41 }
 0x5a0   : > { %16496 = vmatprep.mubr.msk.f32.mxu0 %vm3814_vm2, %v20530_v15 }
 0x5a3   : > { %16497 = vmatmul.mubr.msk.f32.gmra.mrb[58].mxu0 %vm3814_vm2, %v20534_v56 }
 0x5a4   : > { %16499 = vmatprep.mubr.msk.f32.mxu0 %vm3814_vm2, %v20538_v24 }
 0x5a7   : > { %16500 = vmatmul.mubr.msk.f32.gmra.mrb[60].mxu0 %vm3814_vm2, %v20542_v43 }
 0x5a8   : > { %16502 = vmatprep.mubr.msk.f32.mxu0 %vm3814_vm2, %v20776_v45 }
 0x5ab   : > { %16503 = vmatmul.mubr.msk.f32.gmra.mrb[62].mxu0 %vm3814_vm2, %v20780_v38 }
 0x5ac   : > { %16521 = vmatprep.mubr.msk.f32.mxu0 %vm3814_vm2, %v20226_v22  ;;  %v13856_v22 = vld [vmem:[%s22451_s6 + $0x170] sm:$0xff] }
 0x5af   : > { %16522 = vmatmul.mubr.msk.f32.vlgmr.msra.gmra.mrb[32].mxu0 %vm3814_vm2, %v20231_v31  ;;  %v17061_v31 = vpack.c.bf16 %v13857_v62, %v13856_v22  ;;  %v22800_v22 = vld [vmem:[#allocation23_spill] sm:$0xff] }
 0x5b0   : > { %17052 = vmatpush3.bf16.msra.mxu0 %v17049_v8  ;;  %16524 = vmatprep.mubr.msk.f32.mxu0 %vm3814_vm2, %v20238_v57  ;;  %v13890_v57 = vld [vmem:[%s22451_s6 + $0x180] sm:$0xff]  ;;  %v13891_v8 = vld [vmem:[%s22451_s6 + $0x188] sm:$0xff]  ;;  %v22801_v62 = vld [vmem:[#allocation11_spill] sm:$0xff] }
 0x5b1   : > { %17054 = vmatprep.subr.bf16.mxu0 %v17053_v9 }
 0x5b3   : > { %16525 = vmatmul.mubr.msk.f32.gmra.mrb[34].mxu0 %vm3814_vm2, %v20243_v1  ;;  %v17065_v1 = vpack.c.bf16 %v13891_v8, %v13890_v57  ;;  %v22803_v57 = vld [vmem:[#allocation12_spill] sm:$0xff]  ;;  %v22804_v8 = vld [vmem:[#allocation25_spill] sm:$0xff] }
 0x5b4   : > { %16527 = vmatprep.mubr.msk.f32.mxu0 %vm3814_vm2, %v20250_v18  ;;  %17056 = vmatpush3.bf16.msra.mxu0 %v17053_v9  ;;  %v22789_v18 = vld [vmem:[#allocation5_spill] sm:$0xff] }
 0x5b5   : > { %17058 = vmatprep.subr.bf16.mxu0 %v17057_v0  ;;  %v13931_v9 = vld [vmem:[%s22451_s6 + $0x1c8] sm:$0xff] }
 0x5b6   : > { %v17081_v37 = vpack.c.bf16 %v13931_v9, %v13930_v49  ;;  %v20964_v49 = vld [vmem:[#allocation3 + $0x18a] sm:$0xff]  ;;  %v13932_v9 = vld [vmem:[%s22451_s6 + $0x1d0] sm:$0xff] }
 0x5b7   : > { %16528 = vmatmul.mubr.msk.f32.gmra.mrb[36].mxu0 %vm3814_vm2, %v20255_v30  ;;  %v22790_v30 = vld [vmem:[#allocation18_spill] sm:$0xff] }
 0x5b8   : > { %16530 = vmatprep.mubr.msk.f32.mxu0 %vm3814_vm2, %v20262_v36  ;;  %17060 = vmatpush3.bf16.msra.mxu0 %v17057_v0  ;;  %v22791_v36 = vld [vmem:[#allocation6_spill] sm:$0xff]  ;;  %22823 = vst [vmem:[#allocation18_spill] sm:$0xff] %v20964_v49 }
 0x5b9   : > { %17062 = vmatprep.subr.bf16.mxu0 %v17061_v31  ;;  %v22799_v0 = vld [vmem:[#allocation10_spill] sm:$0xff] }
 0x5bb   : > { %16531 = vmatmul.mubr.msk.f32.gmra.mrb[38].mxu0 %vm3814_vm2, %v20267_v42  ;;  %v22792_v42 = vld [vmem:[#allocation19_spill] sm:$0xff] }
 0x5bc   : > { %16533 = vmatprep.mubr.msk.f32.mxu0 %vm3814_vm2, %v20274_v51  ;;  %17064 = vmatpush3.bf16.msra.mxu0 %v17061_v31  ;;  %v22793_v51 = vld [vmem:[#allocation7_spill] sm:$0xff]  ;;  %v22802_v31 = vld [vmem:[#allocation24_spill] sm:$0xff] }
 0x5bd   : > { %17066 = vmatprep.subr.bf16.mxu0 %v17065_v1 }
 0x5bf   : > { %16534 = vmatmul.mubr.msk.f32.gmra.mrb[40].mxu0 %vm3814_vm2, %v20279_v63  ;;  %v22794_v63 = vld [vmem:[#allocation20_spill] sm:$0xff] }
 0x5c0   : > { %16536 = vmatprep.mubr.msk.f32.mxu0 %vm3814_vm2, %v20286_v21  ;;  %v20868_v21 = vld [vmem:[#allocation3 + $0x181] sm:$0xff] }
 0x5c3   : > { %16537 = vmatmul.mubr.msk.f32.gmra.mrb[42].mxu0 %vm3814_vm2, %v20291_v27  ;;  %v20872_v27 = vld [vmem:[#allocation3 + $0x189] sm:$0xff] }
 0x5c4   : > { %16539 = vmatprep.mubr.msk.f32.mxu0 %vm3814_vm2, %v20298_v52  ;;  %v13892_v52 = vld [vmem:[%s22451_s6 + $0x190] sm:$0xff] }
 0x5c7   : > { %16540 = vmatmul.mubr.msk.f32.gmra.mrb[44].mxu0 %vm3814_vm2, %v20303_v47  ;;  %v13893_v47 = vld [vmem:[%s22451_s6 + $0x198] sm:$0xff] }
 0x5c8   : > { %16542 = vmatprep.mubr.msk.f32.mxu0 %vm3814_vm2, %v20310_v59  ;;  %v22795_v59 = vld [vmem:[#allocation8_spill] sm:$0xff] }
 0x5cb   : > { %16543 = vmatmul.mubr.msk.f32.gmra.mrb[46].mxu0 %vm3814_vm2, %v20315_v7  ;;  %v17069_v7 = vpack.c.bf16 %v13893_v47, %v13892_v52  ;;  %v22812_v52 = vld [vmem:[#allocation32_spill] sm:$0xff]  ;;  %v22813_v47 = vld [vmem:[#allocation34_spill] sm:$0xff] }
 0x5cc   : > { %16545 = vmatprep.mubr.msk.f32.mxu0 %vm3814_vm2, %v20322_v29  ;;  %v13894_v29 = vld [vmem:[%s22451_s6 + $0x1a0] sm:$0xff] }
 0x5cf   : > { %16546 = vmatmul.mubr.msk.f32.gmra.mrb[48].mxu0 %vm3814_vm2, %v20327_v58  ;;  %v13895_v58 = vld [vmem:[%s22451_s6 + $0x1a8] sm:$0xff] }
 0x5d0   : > { %16548 = vmatprep.mubr.msk.f32.mxu0 %vm3814_vm2, %v20334_v6  ;;  %v22796_v6 = vld [vmem:[#allocation21_spill] sm:$0xff] }
 0x5d3   : > { %16549 = vmatmul.mubr.msk.f32.gmra.mrb[50].mxu0 %vm3814_vm2, %v20339_v55  ;;  %v17073_v55 = vpack.c.bf16 %v13895_v58, %v13894_v29  ;;  %v22816_v29 = vld [vmem:[#allocation16_spill] sm:$0xff]  ;;  %v22817_v58 = vld [vmem:[#allocation33_spill] sm:$0xff] }
 0x5d4   : > { %16551 = vmatprep.mubr.msk.f32.mxu0 %vm3814_vm2, %v20346_v54  ;;  %v13896_v54 = vld [vmem:[%s22451_s6 + $0x1b0] sm:$0xff] }
 0x5d7   : > { %16552 = vmatmul.mubr.msk.f32.gmra.mrb[52].mxu0 %vm3814_vm2, %v20351_v12  ;;  %v13897_v12 = vld [vmem:[%s22451_s6 + $0x1b8] sm:$0xff] }
 0x5d8   : > { %16554 = vmatprep.mubr.msk.f32.mxu0 %vm3814_vm2, %v20358_v19  ;;  %v22797_v19 = vld [vmem:[#allocation9_spill] sm:$0xff] }
 0x5db   : > { %16555 = vmatmul.mubr.msk.f32.gmra.mrb[54].mxu0 %vm3814_vm2, %v20363_v61  ;;  %v17077_v61 = vpack.c.bf16 %v13897_v12, %v13896_v54  ;;  %v22820_v54 = vld [vmem:[#allocation4_spill] sm:$0xff]  ;;  %v22821_v12 = vld [vmem:[#allocation17_spill] sm:$0xff] }
 0x5dc   : > { %16557 = vmatprep.mubr.msk.f32.mxu0 %vm3814_vm2, %v22789_v18  ;;  %v22806_v18 = vld [vmem:[#allocation26_spill] sm:$0xff] }
 0x5df   : > { %16558 = vmatmul.mubr.msk.f32.gmra.mrb[56].mxu0 %vm3814_vm2, %v22790_v30  ;;  %v22807_v30 = vld [vmem:[#allocation14_spill] sm:$0xff] }
 0x5e0   : > { %16560 = vmatprep.mubr.msk.f32.mxu0 %vm3814_vm2, %v22791_v36  ;;  %v22808_v36 = vld [vmem:[#allocation27_spill] sm:$0xff] }
 0x5e3   : > { %16561 = vmatmul.mubr.msk.f32.gmra.mrb[58].mxu0 %vm3814_vm2, %v22792_v42  ;;  %v22809_v42 = vld [vmem:[#allocation15_spill] sm:$0xff] }
 0x5e4   : > { %16563 = vmatprep.mubr.msk.f32.mxu0 %vm3814_vm2, %v22793_v51  ;;  %v22810_v51 = vld [vmem:[#allocation28_spill] sm:$0xff] }
 0x5e7   : > { %16564 = vmatmul.mubr.msk.f32.gmra.mrb[60].mxu0 %vm3814_vm2, %v22794_v63  ;;  %v22811_v63 = vld [vmem:[#allocation30_spill] sm:$0xff] }
 0x5e8   : > { %16566 = vmatprep.mubr.msk.f32.mxu0 %vm3814_vm2, %v20868_v21 }
 0x5eb   : > { %16567 = vmatmul.mubr.msk.f32.gmra.mrb[62].mxu0 %vm3814_vm2, %v20872_v27 }
 0x5ec   : > { %16585 = vmatprep.mubr.msk.f32.mxu0 %vm3814_vm2, %v22795_v59  ;;  %v22814_v59 = vld [vmem:[#allocation29_spill] sm:$0xff] }
 0x5ef   : > { %16586 = vmatmul.mubr.msk.f32.vlgmr.msra.gmra.mrb[32].mxu0 %vm3814_vm2, %v22796_v6  ;;  %v22818_v6 = vld [vmem:[#allocation35_spill] sm:$0xff] }
 0x5f0   : > { %17068 = vmatpush3.bf16.msra.mxu0 %v17065_v1  ;;  %16588 = vmatprep.mubr.msk.f32.mxu0 %vm3814_vm2, %v20574_v53  ;;  %v22805_v1 = vld [vmem:[#allocation13_spill] sm:$0xff] }
 0x5f1   : > { %17070 = vmatprep.subr.bf16.mxu0 %v17069_v7 }
 0x5f3   : > { %16589 = vmatmul.mubr.msk.f32.gmra.mrb[34].mxu0 %vm3814_vm2, %v22797_v19 }
 0x5f4   : > { %16591 = vmatprep.mubr.msk.f32.mxu0 %vm3814_vm2, %v20588_v34  ;;  %17072 = vmatpush3.bf16.msra.mxu0 %v17069_v7  ;;  %v22815_v7 = vld [vmem:[#allocation31_spill] sm:$0xff] }
 0x5f5   : > { %17074 = vmatprep.subr.bf16.mxu0 %v17073_v55 }
 0x5f7   : > { %16592 = vmatmul.mubr.msk.f32.gmra.mrb[36].mxu0 %vm3814_vm2, %v20592_v10 }
 0x5f8   : > { %16594 = vmatprep.mubr.msk.f32.mxu0 %vm3814_vm2, %v22798_v4  ;;  %17076 = vmatpush3.bf16.msra.mxu0 %v17073_v55  ;;  %v22819_v55 = vld [vmem:[#allocation36_spill] sm:$0xff] }
 0x5f9   : > { %17078 = vmatprep.subr.bf16.mxu0 %v17077_v61 }
 0x5fb   : > { %16595 = vmatmul.mubr.msk.f32.gmra.mrb[38].mxu0 %vm3814_vm2, %v22799_v0 }
 0x5fc   : > { %16597 = vmatprep.mubr.msk.f32.mxu0 %vm3814_vm2, %v22800_v22  ;;  %17080 = vmatpush3.bf16.msra.mxu0 %v17077_v61  ;;  %v20960_v61 = vld [vmem:[#allocation3 + $0x182] sm:$0xff] }
 0x5fd   : > { %17082 = vmatprep.subr.bf16.mxu0 %v17081_v37  ;;  %22822 = vst [vmem:[#allocation5_spill] sm:$0xff] %v20960_v61 }
 0x5ff   : > { %16598 = vmatmul.mubr.msk.f32.gmra.mrb[40].mxu0 %vm3814_vm2, %v22801_v62 }
 0x600   : > { %16600 = vmatprep.mubr.msk.f32.mxu0 %vm3814_vm2, %v22802_v31 }
 0x603   : > { %16601 = vmatmul.mubr.msk.f32.gmra.mrb[42].mxu0 %vm3814_vm2, %v22803_v57 }
 0x604   : > { %16603 = vmatprep.mubr.msk.f32.mxu0 %vm3814_vm2, %v22804_v8 }
 0x607   : > { %16604 = vmatmul.mubr.msk.f32.gmra.mrb[44].mxu0 %vm3814_vm2, %v22805_v1 }
 0x608   : > { %16606 = vmatprep.mubr.msk.f32.mxu0 %vm3814_vm2, %v22806_v18 }
 0x60b   : > { %16607 = vmatmul.mubr.msk.f32.gmra.mrb[46].mxu0 %vm3814_vm2, %v22807_v30 }
 0x60c   : > { %16609 = vmatprep.mubr.msk.f32.mxu0 %vm3814_vm2, %v22808_v36 }
 0x60f   : > { %16610 = vmatmul.mubr.msk.f32.gmra.mrb[48].mxu0 %vm3814_vm2, %v22809_v42 }
 0x610   : > { %16612 = vmatprep.mubr.msk.f32.mxu0 %vm3814_vm2, %v22810_v51 }
 0x613   : > { %16613 = vmatmul.mubr.msk.f32.gmra.mrb[50].mxu0 %vm3814_vm2, %v22811_v63 }
 0x614   : > { %16615 = vmatprep.mubr.msk.f32.mxu0 %vm3814_vm2, %v22812_v52 }
 0x617   : > { %16616 = vmatmul.mubr.msk.f32.gmra.mrb[52].mxu0 %vm3814_vm2, %v22813_v47 }
 0x618   : > { %16618 = vmatprep.mubr.msk.f32.mxu0 %vm3814_vm2, %v22814_v59 }
 0x61b   : > { %16619 = vmatmul.mubr.msk.f32.gmra.mrb[54].mxu0 %vm3814_vm2, %v22815_v7 }
 0x61c   : > { %16621 = vmatprep.mubr.msk.f32.mxu0 %vm3814_vm2, %v22816_v29 }
 0x61f   : > { %16622 = vmatmul.mubr.msk.f32.gmra.mrb[56].mxu0 %vm3814_vm2, %v22817_v58 }
 0x620   : > { %16624 = vmatprep.mubr.msk.f32.mxu0 %vm3814_vm2, %v22818_v6 }
 0x623   : > { %16625 = vmatmul.mubr.msk.f32.gmra.mrb[58].mxu0 %vm3814_vm2, %v22819_v55  ;;  %v13933_v55 = vld [vmem:[%s22451_s6 + $0x1d8] sm:$0xff] }
 0x624   : > { %16627 = vmatprep.mubr.msk.f32.mxu0 %vm3814_vm2, %v22820_v54  ;;  %v13935_v54 = vld [vmem:[%s22451_s6 + $0x1e8] sm:$0xff] }
 0x627   : > { %16628 = vmatmul.mubr.msk.f32.gmra.mrb[60].mxu0 %vm3814_vm2, %v22821_v12  ;;  %v17085_v12 = vpack.c.bf16 %v13933_v55, %v13932_v9  ;;  %v13937_v55 = vld [vmem:[%s22451_s6 + $0x1f8] sm:$0xff]  ;;  %v10224_v9 = vld [vmem:[#allocation3 + $0x111] sm:$0xff] }
 0x628   : > { %16630 = vmatprep.mubr.msk.f32.mxu0 %vm3814_vm2, %v20960_v61  ;;  %v13934_v61 = vld [vmem:[%s22451_s6 + $0x1e0] sm:$0xff] }
 0x62b   : > { %16631 = vmatmul.mubr.msk.f32.gmra.mrb[62].mxu0 %vm3814_vm2, %v20964_v49  ;;  %v17089_v49 = vpack.c.bf16 %v13935_v54, %v13934_v61  ;;  %v10220_v54 = vld [vmem:[#allocation3 + $0xe1] sm:$0xff]  ;;  %v10222_v61 = vld [vmem:[#allocation3 + $0xf9] sm:$0xff] }
 0x62c   : > { %16649 = vmatprep.mubr.msk.f32.mxu0 %vm3814_vm2, %v20428_v26  ;;  %v13936_v26 = vld [vmem:[%s22451_s6 + $0x1f0] sm:$0xff] }
 0x62f   : > { %16650 = vmatmul.mubr.msk.f32.vlgmr.msra.gmra.mrb[32].mxu0 %vm3814_vm2, %v20432_v40  ;;  %v17093_v40 = vpack.c.bf16 %v13937_v55, %v13936_v26  ;;  %v10225_v26 = vld [vmem:[#allocation3 + $0x121] sm:$0xff]  ;;  %v10226_v55 = vld [vmem:[#allocation3 + $0x129] sm:$0xff] }
 0x630   : > { %17084 = vmatpush3.bf16.msra.mxu0 %v17081_v37  ;;  %16652 = vmatprep.mubr.msk.f32.mxu0 %vm3814_vm2, %v20442_v2  ;;  %v13970_v2 = vld [vmem:[%s22451_s6 + $0x200] sm:$0xff]  ;;  %v13971_v37 = vld [vmem:[%s22451_s6 + $0x208] sm:$0xff] }
 0x631   : > { %17086 = vmatprep.subr.bf16.mxu0 %v17085_v12 }
 0x633   : > { %16653 = vmatmul.mubr.msk.f32.gmra.mrb[34].mxu0 %vm3814_vm2, %v20446_v25  ;;  %v17097_v25 = vpack.c.bf16 %v13971_v37, %v13970_v2  ;;  %v10228_v2 = vld [vmem:[#allocation3 + $0x141] sm:$0xff]  ;;  %v10229_v37 = vld [vmem:[#allocation3 + $0x151] sm:$0xff] }
 0x634   : > { %16655 = vmatprep.mubr.msk.f32.mxu0 %vm3814_vm2, %v20450_v13  ;;  %17088 = vmatpush3.bf16.msra.mxu0 %v17085_v12  ;;  %v9841_v13 = vld [vmem:[#allocation3 + $0x198] sm:$0xff] }
 0x635   : > { %17090 = vmatprep.subr.bf16.mxu0 %v17089_v49  ;;  %v10221_v12 = vld [vmem:[#allocation3 + $0xf1] sm:$0xff] }
 0x637   : > { %16656 = vmatmul.mubr.msk.f32.gmra.mrb[36].mxu0 %vm3814_vm2, %v20454_v5  ;;  %v9842_v5 = vld [vmem:[#allocation3 + $0x1a0] sm:$0xff] }
 0x638   : > { %16658 = vmatprep.mubr.msk.f32.mxu0 %vm3814_vm2, %v20458_v48  ;;  %17092 = vmatpush3.bf16.msra.mxu0 %v17089_v49  ;;  %v13972_v48 = vld [vmem:[%s22451_s6 + $0x210] sm:$0xff]  ;;  %v10223_v49 = vld [vmem:[#allocation3 + $0x109] sm:$0xff] }
 0x639   : > { %17094 = vmatprep.subr.bf16.mxu0 %v17093_v40 }
 0x63b   : > { %16659 = vmatmul.mubr.msk.f32.gmra.mrb[38].mxu0 %vm3814_vm2, %v20462_v28  ;;  %v13973_v28 = vld [vmem:[%s22451_s6 + $0x218] sm:$0xff] }
 0x63c   : > { %16661 = vmatprep.mubr.msk.f32.mxu0 %vm3814_vm2, %v20466_v3  ;;  %17096 = vmatpush3.bf16.msra.mxu0 %v17093_v40  ;;  %v10205_v3 = vld [vmem:[#allocation3 + $0x31] sm:$0xff]  ;;  %v10227_v40 = vld [vmem:[#allocation3 + $0x139] sm:$0xff] }
 0x63d   : > { %17098 = vmatprep.subr.bf16.mxu0 %v17097_v25 }
 0x63f   : > { %16662 = vmatmul.mubr.msk.f32.gmra.mrb[40].mxu0 %vm3814_vm2, %v20470_v17  ;;  %v17101_v17 = vpack.c.bf16 %v13973_v28, %v13972_v48  ;;  %v10235_v48 = vld [vmem:[#allocation3 + $0x199] sm:$0xff]  ;;  %v10236_v28 = vld [vmem:[#allocation3 + $0x1a1] sm:$0xff] }
 0x640   : > { %16664 = vmatprep.mubr.msk.f32.mxu0 %vm3814_vm2, %v20474_v60  ;;  %v10206_v60 = vld [vmem:[#allocation3 + $0x39] sm:$0xff] }
 0x643   : > { %16665 = vmatmul.mubr.msk.f32.gmra.mrb[42].mxu0 %vm3814_vm2, %v20478_v14  ;;  %v13974_v14 = vld [vmem:[%s22451_s6 + $0x220] sm:$0xff] }
 0x644   : > { %16667 = vmatprep.mubr.msk.f32.mxu0 %vm3814_vm2, %v20482_v23  ;;  %v13975_v23 = vld [vmem:[%s22451_s6 + $0x228] sm:$0xff] }
 0x647   : > { %16668 = vmatmul.mubr.msk.f32.gmra.mrb[44].mxu0 %vm3814_vm2, %v20486_v32  ;;  %v10207_v32 = vld [vmem:[#allocation3 + $0x49] sm:$0xff] }
 0x648   : > { %16670 = vmatprep.mubr.msk.f32.mxu0 %vm3814_vm2, %v20490_v35  ;;  %v17105_v35 = vpack.c.bf16 %v13975_v23, %v13974_v14 }
 0x64b   : > { %16671 = vmatmul.mubr.msk.f32.gmra.mrb[46].mxu0 %vm3814_vm2, %v20494_v44  ;;  %v10208_v44 = vld [vmem:[#allocation3 + $0x51] sm:$0xff] }
 0x64c   : > { %16673 = vmatprep.mubr.msk.f32.mxu0 %vm3814_vm2, %v20498_v46  ;;  %v13976_v46 = vld [vmem:[%s22451_s6 + $0x230] sm:$0xff] }
 0x64f   : > { %16674 = vmatmul.mubr.msk.f32.gmra.mrb[48].mxu0 %vm3814_vm2, %v20502_v50  ;;  %v13977_v50 = vld [vmem:[%s22451_s6 + $0x238] sm:$0xff] }
 0x650   : > { %16676 = vmatprep.mubr.msk.f32.mxu0 %vm3814_vm2, %v20506_v33  ;;  %v10209_v33 = vld [vmem:[#allocation3 + $0x61] sm:$0xff] }
 0x653   : > { %16677 = vmatmul.mubr.msk.f32.gmra.mrb[50].mxu0 %vm3814_vm2, %v20510_v16  ;;  %v17109_v16 = vpack.c.bf16 %v13977_v50, %v13976_v46 }
 0x654   : > { %16679 = vmatprep.mubr.msk.f32.mxu0 %vm3814_vm2, %v20514_v11  ;;  %v10210_v11 = vld [vmem:[#allocation3 + $0x69] sm:$0xff] }
 0x657   : > { %16680 = vmatmul.mubr.msk.f32.gmra.mrb[52].mxu0 %vm3814_vm2, %v20518_v20  ;;  %v10211_v20 = vld [vmem:[#allocation3 + $0x79] sm:$0xff] }
 0x658   : > { %16682 = vmatprep.mubr.msk.f32.mxu0 %vm3814_vm2, %v20522_v39  ;;  %v10212_v39 = vld [vmem:[#allocation3 + $0x81] sm:$0xff] }
 0x65b   : > { %16683 = vmatmul.mubr.msk.f32.gmra.mrb[54].mxu0 %vm3814_vm2, %v20526_v41  ;;  %v10213_v41 = vld [vmem:[#allocation3 + $0x91] sm:$0xff] }
 0x65c   : > { %16685 = vmatprep.mubr.msk.f32.mxu0 %vm3814_vm2, %v20530_v15  ;;  %v10214_v15 = vld [vmem:[#allocation3 + $0x99] sm:$0xff] }
 0x65f   : > { %16686 = vmatmul.mubr.msk.f32.gmra.mrb[56].mxu0 %vm3814_vm2, %v20534_v56  ;;  %v10215_v56 = vld [vmem:[#allocation3 + $0xa9] sm:$0xff] }
 0x660   : > { %16688 = vmatprep.mubr.msk.f32.mxu0 %vm3814_vm2, %v20538_v24  ;;  %v10216_v24 = vld [vmem:[#allocation3 + $0xb1] sm:$0xff] }
 0x663   : > { %16689 = vmatmul.mubr.msk.f32.gmra.mrb[58].mxu0 %vm3814_vm2, %v20542_v43  ;;  %v10217_v43 = vld [vmem:[#allocation3 + $0xc1] sm:$0xff] }
 0x664   : > { %16691 = vmatprep.mubr.msk.f32.mxu0 %vm3814_vm2, %v20776_v45  ;;  %v10218_v45 = vld [vmem:[#allocation3 + $0xc9] sm:$0xff] }
 0x667   : > { %16692 = vmatmul.mubr.msk.f32.gmra.mrb[60].mxu0 %vm3814_vm2, %v20780_v38  ;;  %v10219_v38 = vld [vmem:[#allocation3 + $0xd9] sm:$0xff] }
 0x668   : > { %16694 = vmatprep.mubr.msk.f32.mxu0 %vm3814_vm2, %v9841_v13  ;;  %v10231_v13 = vld [vmem:[#allocation3 + $0x169] sm:$0xff] }
 0x66b   : > { %16695 = vmatmul.mubr.msk.f32.gmra.mrb[62].mxu0 %vm3814_vm2, %v9842_v5  ;;  %v10232_v5 = vld [vmem:[#allocation3 + $0x171] sm:$0xff] }
 0x66c   : > { %16713 = vmatprep.mubr.msk.f32.mxu0 %vm3814_vm2, %v10205_v3 }
 0x66f   : > { %16714 = vmatmul.mubr.msk.f32.vlgmr.msra.gmra.mrb[32].mxu0 %vm3814_vm2, %v10206_v60 }
 0x670   : > { %17100 = vmatpush3.bf16.msra.mxu0 %v17097_v25  ;;  %16716 = vmatprep.mubr.msk.f32.mxu0 %vm3814_vm2, %v10207_v32  ;;  %v10230_v25 = vld [vmem:[#allocation3 + $0x159] sm:$0xff] }
 0x671   : > { %17102 = vmatprep.subr.bf16.mxu0 %v17101_v17 }
 0x673   : > { %16717 = vmatmul.mubr.msk.f32.gmra.mrb[34].mxu0 %vm3814_vm2, %v10208_v44 }
 0x674   : > { %16719 = vmatprep.mubr.msk.f32.mxu0 %vm3814_vm2, %v10209_v33  ;;  %17104 = vmatpush3.bf16.msra.mxu0 %v17101_v17 }
 0x675   : > { %17106 = vmatprep.subr.bf16.mxu0 %v17105_v35 }
 0x677   : > { %16720 = vmatmul.mubr.msk.f32.gmra.mrb[36].mxu0 %vm3814_vm2, %v10210_v11 }
 0x678   : > { %16722 = vmatprep.mubr.msk.f32.mxu0 %vm3814_vm2, %v10211_v20  ;;  %17108 = vmatpush3.bf16.msra.mxu0 %v17105_v35 }
 0x679   : > { %17110 = vmatprep.subr.bf16.mxu0 %v17109_v16 }
 0x67b   : > { %16723 = vmatmul.mubr.msk.f32.gmra.mrb[38].mxu0 %vm3814_vm2, %v10212_v39 }
 0x67c   : > { %16725 = vmatprep.mubr.msk.f32.mxu0 %vm3814_vm2, %v10213_v41  ;;  %17112 = vmatpush3.bf16.msra.mxu0 %v17109_v16 }
 0x67f   : > { %16726 = vmatmul.mubr.msk.f32.gmra.mrb[40].mxu0 %vm3814_vm2, %v10214_v15 }
 0x680   : > { %16728 = vmatprep.mubr.msk.f32.mxu0 %vm3814_vm2, %v10215_v56 }
 0x683   : > { %16729 = vmatmul.mubr.msk.f32.gmra.mrb[42].mxu0 %vm3814_vm2, %v10216_v24 }
 0x684   : > { %16731 = vmatprep.mubr.msk.f32.mxu0 %vm3814_vm2, %v10217_v43 }
 0x687   : > { %16732 = vmatmul.mubr.msk.f32.gmra.mrb[44].mxu0 %vm3814_vm2, %v10218_v45 }
 0x688   : > { %16734 = vmatprep.mubr.msk.f32.mxu0 %vm3814_vm2, %v10219_v38 }
 0x68b   : > { %16735 = vmatmul.mubr.msk.f32.gmra.mrb[46].mxu0 %vm3814_vm2, %v10220_v54 }
 0x68c   : > { %16737 = vmatprep.mubr.msk.f32.mxu0 %vm3814_vm2, %v10221_v12 }
 0x68f   : > { %16738 = vmatmul.mubr.msk.f32.gmra.mrb[48].mxu0 %vm3814_vm2, %v10222_v61 }
 0x690   : > { %16740 = vmatprep.mubr.msk.f32.mxu0 %vm3814_vm2, %v10223_v49 }
 0x693   : > { %16741 = vmatmul.mubr.msk.f32.gmra.mrb[50].mxu0 %vm3814_vm2, %v10224_v9 }
 0x694   : > { %16743 = vmatprep.mubr.msk.f32.mxu0 %vm3814_vm2, %v10225_v26 }
 0x697   : > { %16744 = vmatmul.mubr.msk.f32.gmra.mrb[52].mxu0 %vm3814_vm2, %v10226_v55 }
 0x698   : > { %16746 = vmatprep.mubr.msk.f32.mxu0 %vm3814_vm2, %v10227_v40 }
 0x69b   : > { %16747 = vmatmul.mubr.msk.f32.gmra.mrb[54].mxu0 %vm3814_vm2, %v10228_v2 }
 0x69c   : > { %16749 = vmatprep.mubr.msk.f32.mxu0 %vm3814_vm2, %v10229_v37 }
 0x69f   : > { %16750 = vmatmul.mubr.msk.f32.gmra.mrb[56].mxu0 %vm3814_vm2, %v10230_v25 }
 0x6a0   : > { %16752 = vmatprep.mubr.msk.f32.mxu0 %vm3814_vm2, %v10231_v13 }
 0x6a3   : > { %16753 = vmatmul.mubr.msk.f32.gmra.mrb[58].mxu0 %vm3814_vm2, %v10232_v5 }
 0x6a4   : > { %16755 = vmatprep.mubr.msk.f32.mxu0 %vm3814_vm2, %v20868_v21  ;;  %v22827_v21 = vld [vmem:[#allocation5_spill] sm:$0xff] }
 0x6a7   : > { %16756 = vmatmul.mubr.msk.f32.gmra.mrb[60].mxu0 %vm3814_vm2, %v20872_v27  ;;  %v10629_v27 = vld [vmem:[#allocation3 + $0x19a] sm:$0xff] }
 0x6a8   : > { %16758 = vmatprep.mubr.msk.f32.mxu0 %vm3814_vm2, %v10235_v48 }
 0x6ab   : > { %16759 = vmatmul.mubr.msk.f32.gmra.mrb[62].mxu0 %vm3814_vm2, %v10236_v28 }
 0x6ac   : > { %16777 = vmatprep.mubr.msk.f32.mxu0 %vm3814_vm2, %v20574_v53  ;;  %v22825_v53 = vld [vmem:[#allocation4_spill] sm:$0xff] }
 0x6af   : > { %16778 = vmatmul.mubr.msk.f32.vlgmr.msra.gmra.mrb[32].mxu0 %vm3814_vm2, %v22797_v19  ;;  %v22828_v19 = vld [vmem:[#allocation18_spill] sm:$0xff] }
 0x6b0   : > { %16780 = vmatprep.mubr.msk.f32.mxu0 %vm3814_vm2, %v20588_v34  ;;  %v22824_v34 = vld [vmem:[#allocation36_spill] sm:$0xff] }
 0x6b3   : > { %16781 = vmatmul.mubr.msk.f32.gmra.mrb[34].mxu0 %vm3814_vm2, %v20592_v10  ;;  %v22826_v10 = vld [vmem:[#allocation17_spill] sm:$0xff] }
 0x6b4   : > { %16783 = vmatprep.mubr.msk.f32.mxu0 %vm3814_vm2, %v22798_v4  ;;  %v10630_v4 = vld [vmem:[#allocation3 + $0x1a2] sm:$0xff] }
 0x6b7   : > { %16784 = vmatmul.mubr.msk.f32.gmra.mrb[36].mxu0 %vm3814_vm2, %v22799_v0  ;;  %v21171_v0 = vld [vmem:[%s22452_s7] ss:$0 sm:$0xff] }
 0x6b8   : > { %16786 = vmatprep.mubr.msk.f32.mxu0 %vm3814_vm2, %v22800_v22 }
 0x6bb   : > { %16787 = vmatmul.mubr.msk.f32.gmra.mrb[38].mxu0 %vm3814_vm2, %v22801_v62 }
 0x6bc   : > { %16789 = vmatprep.mubr.msk.f32.mxu0 %vm3814_vm2, %v22802_v31 }
 0x6bf   : > { %16790 = vmatmul.mubr.msk.f32.gmra.mrb[40].mxu0 %vm3814_vm2, %v22803_v57 }
 0x6c0   : > { %16792 = vmatprep.mubr.msk.f32.mxu0 %vm3814_vm2, %v22804_v8 }
 0x6c3   : > { %16793 = vmatmul.mubr.msk.f32.gmra.mrb[42].mxu0 %vm3814_vm2, %v22805_v1 }
 0x6c4   : > { %16795 = vmatprep.mubr.msk.f32.mxu0 %vm3814_vm2, %v22806_v18 }
 0x6c7   : > { %16796 = vmatmul.mubr.msk.f32.gmra.mrb[44].mxu0 %vm3814_vm2, %v22807_v30 }
 0x6c8   : > { %16798 = vmatprep.mubr.msk.f32.mxu0 %vm3814_vm2, %v22808_v36 }
 0x6cb   : > { %16799 = vmatmul.mubr.msk.f32.gmra.mrb[46].mxu0 %vm3814_vm2, %v22809_v42 }
 0x6cc   : > { %16801 = vmatprep.mubr.msk.f32.mxu0 %vm3814_vm2, %v22810_v51 }
 0x6cf   : > { %16802 = vmatmul.mubr.msk.f32.gmra.mrb[48].mxu0 %vm3814_vm2, %v22811_v63 }
 0x6d0   : > { %16804 = vmatprep.mubr.msk.f32.mxu0 %vm3814_vm2, %v22812_v52 }
 0x6d3   : > { %16805 = vmatmul.mubr.msk.f32.gmra.mrb[50].mxu0 %vm3814_vm2, %v22813_v47 }
 0x6d4   : > { %16807 = vmatprep.mubr.msk.f32.mxu0 %vm3814_vm2, %v22814_v59 }
 0x6d7   : > { %16808 = vmatmul.mubr.msk.f32.gmra.mrb[52].mxu0 %vm3814_vm2, %v22815_v7 }
 0x6d8   : > { %16810 = vmatprep.mubr.msk.f32.mxu0 %vm3814_vm2, %v22816_v29 }
 0x6db   : > { %16811 = vmatmul.mubr.msk.f32.gmra.mrb[54].mxu0 %vm3814_vm2, %v22817_v58 }
 0x6dc   : > { %16813 = vmatprep.mubr.msk.f32.mxu0 %vm3814_vm2, %v22818_v6 }
 0x6df   : > { %16814 = vmatmul.mubr.msk.f32.gmra.mrb[56].mxu0 %vm3814_vm2, %v22824_v34 }
 0x6e0   : > { %16816 = vmatprep.mubr.msk.f32.mxu0 %vm3814_vm2, %v22825_v53 }
 0x6e3   : > { %16817 = vmatmul.mubr.msk.f32.gmra.mrb[58].mxu0 %vm3814_vm2, %v22826_v10 }
 0x6e4   : > { %16819 = vmatprep.mubr.msk.f32.mxu0 %vm3814_vm2, %v22827_v21 }
 0x6e7   : > { %16820 = vmatmul.mubr.msk.f32.gmra.mrb[60].mxu0 %vm3814_vm2, %v22828_v19 }
 0x6e8   : > { %16822 = vmatprep.mubr.msk.f32.mxu0 %vm3814_vm2, %v10629_v27 }
 0x6eb   : > { %16823 = vmatmul.mubr.msk.f32.gmra.mrb[62].mxu0 %vm3814_vm2, %v10630_v4 }
 0x782   : > { %v16779_v22 = vpop.f32.mrb[32].mxu0 }
 0x783   : > { %v21174_v62 = vadd.f32 %v16779_v22, %v21171_v0  ;;  %v10802_v31 = vpop.f32.mrb[33].mxu0 }
 0x784   : > { %v21181_v8 = vadd.f32 %v21171_v0, %v10802_v31 }
 0x785   : > { %11386 = vrot.lane.b32.xlu1 %v21174_v62, %s17910_s19  ;;  %11194 = vrot.lane.b32.xlu0 %v21174_v62, %s17911_s20 }
 0x786   : > { %v16782_v57 = vpop.f32.mrb[34].mxu0 }
 0x787   : > { %v10812_v1 = vpop.f32.mrb[35].mxu0  ;;  %v21238_v46 = vadd.f32 %v16782_v57, %v21171_v0  ;;  %v11129_v57 = vld [vmem:[%s21390_s9 + $0x9] sm:$0xff] }
 0x788   : > { %v21261_v56 = vadd.f32 %v21171_v0, %v10812_v1  ;;  %v11033_v1 = vld [vmem:[%s21390_s9 + $0x8] sm:$0xff] }
 0x789   : > { %11579 = vrot.lane.b32.xlu1 %v21174_v62, %s17912_s21  ;;  %11192 = vrot.lane.b32.xlu0 %v21181_v8, %s17911_s20 }
 0x78a   : > { %v16785_v18 = vpop.f32.mrb[36].mxu0 }
 0x78b   : > { %v21188_v30 = vadd.f32 %v16785_v18, %v21171_v0  ;;  %v10822_v36 = vpop.f32.mrb[37].mxu0 }
 0x78c   : > { %v21191_v42 = vadd.f32 %v21171_v0, %v10822_v36 }
 0x78d   : > { %11771 = vrot.lane.b32.xlu1 %v21174_v62, %s17913_s22  ;;  %11384 = vrot.lane.b32.xlu0 %v21181_v8, %s17910_s19 }
 0x78e   : > { %v16788_v51 = vpop.f32.mrb[38].mxu0 }
 0x78f   : > { %v21198_v63 = vadd.f32 %v16788_v51, %v21171_v0  ;;  %v10832_v52 = vpop.f32.mrb[39].mxu0 }
 0x790   : > { %v21201_v47 = vadd.f32 %v21171_v0, %v10832_v52  ;;  %v11065_v52 = vmul.f32 %v11033_v1, %v21174_v62  ;;  %v21443_v1 = vld [vmem:[%s21390_s9 + $0x19] sm:$0xff] }
 0x791   : > { %11963 = vrot.lane.b32.xlu1 %v21174_v62, %s17914_s23  ;;  %11577 = vrot.lane.b32.xlu0 %v21181_v8, %s17912_s21 }
 0x792   : > { %v16791_v59 = vpop.f32.mrb[40].mxu0 }
 0x793   : > { %v21208_v7 = vadd.f32 %v16791_v59, %v21171_v0  ;;  %v10842_v29 = vpop.f32.mrb[41].mxu0  ;;  %v11353_v59 = vld [vmem:[%s21390_s9 + $0xa] sm:$0xff] }
 0x794   : > { %v21211_v58 = vadd.f32 %v21171_v0, %v10842_v29 }
 0x795   : > { %12156 = vrot.lane.b32.xlu1 %v21174_v62, %s17915_s24  ;;  %11769 = vrot.lane.b32.xlu0 %v21181_v8, %s17913_s22 }
 0x796   : > { %v16794_v6 = vpop.f32.mrb[42].mxu0 }
 0x797   : > { %v21218_v3 = vadd.f32 %v16794_v6, %v21171_v0  ;;  %v10852_v17 = vpop.f32.mrb[43].mxu0 }
 0x798   : > { %v21221_v60 = vadd.f32 %v21171_v0, %v10852_v17 }
 0x799   : > { %12348 = vrot.lane.b32.xlu1 %v21174_v62, %s17916_s25  ;;  %11961 = vrot.lane.b32.xlu0 %v21181_v8, %s17914_s23 }
 0x79a   : > { %v16797_v14 = vpop.f32.mrb[44].mxu0 }
 0x79b   : > { %v21228_v23 = vadd.f32 %v16797_v14, %v21171_v0  ;;  %v10862_v32 = vpop.f32.mrb[45].mxu0 }
 0x79c   : > { %v21231_v35 = vadd.f32 %v21171_v0, %v10862_v32  ;;  %v21409_v32 = vld [vmem:[%s21390_s9 + $0x20] sm:$0xff] }
 0x79d   : > { %12540 = vrot.lane.b32.xlu1 %v21174_v62, %s17917_s26  ;;  %12154 = vrot.lane.b32.xlu0 %v21181_v8, %s17915_s24 }
 0x79e   : > { %v16800_v44 = vpop.f32.mrb[46].mxu0 }
 0x79f   : > { %v21241_v50 = vadd.f32 %v16800_v44, %v21171_v0  ;;  %v10872_v33 = vpop.f32.mrb[47].mxu0  ;;  %v21412_v44 = vld [vmem:[%s21390_s9 + $0x21] sm:$0xff] }
 0x7a0   : > { %v21244_v16 = vadd.f32 %v21171_v0, %v10872_v33 }
 0x7a1   : > { %12346 = vrot.lane.b32.xlu0 %v21181_v8, %s17916_s25  ;;  %11198 = vrot.lane.b32.xlu1 %v21238_v46, %s17911_s20 }
 0x7a2   : > { %v16803_v11 = vpop.f32.mrb[48].mxu0 }
 0x7a3   : > { %v21251_v20 = vadd.f32 %v16803_v11, %v21171_v0  ;;  %v10882_v39 = vpop.f32.mrb[49].mxu0 }
 0x7a4   : > { %v21254_v41 = vadd.f32 %v21171_v0, %v10882_v39 }
 0x7a5   : > { %12538 = vrot.lane.b32.xlu0 %v21181_v8, %s17917_s26  ;;  %11390 = vrot.lane.b32.xlu1 %v21238_v46, %s17910_s19 }
 0x7a6   : > { %v16806_v15 = vpop.f32.mrb[50].mxu0 }
 0x7a7   : > { %v21264_v24 = vadd.f32 %v16806_v15, %v21171_v0  ;;  %v10892_v43 = vpop.f32.mrb[51].mxu0  ;;  %v11128_v15 = vld [vmem:[%s21390_s9 + $0x1] sm:$0xff] }
 0x7a8   : > { %v21267_v45 = vadd.f32 %v21171_v0, %v10892_v43  ;;  %v21417_v43 = vld [vmem:[%s21390_s9 + $0x22] sm:$0xff] }
 0x7a9   : > { %11583 = vrot.lane.b32.xlu1 %v21238_v46, %s17912_s21  ;;  %11388 = vrot.lane.b32.xlu0 %v21261_v56, %s17910_s19 }
 0x7aa   : > { %v16809_v38 = vpop.f32.mrb[52].mxu0 }
 0x7ab   : > { %v21274_v54 = vadd.f32 %v16809_v38, %v21171_v0  ;;  %v10902_v12 = vpop.f32.mrb[53].mxu0 }
 0x7ac   : > { %v21277_v61 = vadd.f32 %v21171_v0, %v10902_v12  ;;  %v11032_v12 = vld [vmem:[%s21390_s9] sm:$0xff] }
 0x7ad   : > { %11775 = vrot.lane.b32.xlu1 %v21238_v46, %s17913_s22  ;;  %11581 = vrot.lane.b32.xlu0 %v21261_v56, %s17912_s21 }
 0x7ae   : > { %v16812_v49 = vpop.f32.mrb[54].mxu0 }
 0x7af   : > { %v21284_v9 = vadd.f32 %v16812_v49, %v21171_v0  ;;  %v10912_v26 = vpop.f32.mrb[55].mxu0  ;;  %v11352_v49 = vld [vmem:[%s21390_s9 + $0x2] sm:$0xff] }
 0x7b0   : > { %v21287_v55 = vadd.f32 %v21171_v0, %v10912_v26 }
 0x7b1   : > { %11967 = vrot.lane.b32.xlu1 %v21238_v46, %s17914_s23  ;;  %11773 = vrot.lane.b32.xlu0 %v21261_v56, %s17913_s22 }
 0x7b2   : > { %v16815_v40 = vpop.f32.mrb[56].mxu0 }
 0x7b3   : > { %v21294_v2 = vadd.f32 %v16815_v40, %v21171_v0  ;;  %v10922_v37 = vpop.f32.mrb[57].mxu0 }
 0x7b4   : > { %v21297_v25 = vadd.f32 %v21171_v0, %v10922_v37 }
 0x7b5   : > { %12160 = vrot.lane.b32.xlu1 %v21238_v46, %s17915_s24  ;;  %11965 = vrot.lane.b32.xlu0 %v21261_v56, %s17914_s23 }
 0x7b6   : > { %v16818_v13 = vpop.f32.mrb[58].mxu0 }
 0x7b7   : > { %v21304_v5 = vadd.f32 %v16818_v13, %v21171_v0  ;;  %v10932_v48 = vpop.f32.mrb[59].mxu0 }
 0x7b8   : > { %v21307_v28 = vadd.f32 %v21171_v0, %v10932_v48 }
 0x7b9   : > { %12352 = vrot.lane.b32.xlu1 %v21238_v46, %s17916_s25  ;;  %12158 = vrot.lane.b32.xlu0 %v21261_v56, %s17915_s24 }
 0x7ba   : > { %v16821_v34 = vpop.f32.mrb[60].mxu0 }
 0x7bb   : > { %v21314_v53 = vadd.f32 %v16821_v34, %v21171_v0  ;;  %v10942_v10 = vpop.f32.mrb[61].mxu0  ;;  %v21428_v34 = vld [vmem:[%s21390_s9 + $0x38] sm:$0xff] }
 0x7bc   : > { %v21317_v21 = vadd.f32 %v21171_v0, %v10942_v10  ;;  %v21435_v10 = vld [vmem:[%s21390_s9 + $0x39] sm:$0xff] }
 0x7bd   : > { %12544 = vrot.lane.b32.xlu1 %v21238_v46, %s17917_s26  ;;  %12350 = vrot.lane.b32.xlu0 %v21261_v56, %s17916_s25 }
 0x7be   : > { %v16824_v27 = vpop.f32.mrb[62].mxu0 }
 0x7bf   : > { %v21324_v19 = vadd.f32 %v16824_v27, %v21171_v0  ;;  %v10952_v4 = vpop.f32.mrb[63].mxu0  ;;  %v11064_v27 = vmul.f32 %v11032_v12, %v21181_v8  ;;  %v21455_v8 = vld [vmem:[%s21390_s9 + $0x3a] sm:$0xff] }
 0x7c0   : > { %v21327_v22 = vadd.f32 %v21171_v0, %v10952_v4 }
 0x7c1   : > { %12542 = vrot.lane.b32.xlu0 %v21261_v56, %s17917_s26  ;;  %11196 = vrot.lane.b32.xlu1 %v21261_v56, %s17911_s20 }
 0x7c5   : > { %11202 = vrot.lane.b32.xlu1 %v21188_v30, %s17911_s20  ;;  %11200 = vrot.lane.b32.xlu0 %v21191_v42, %s17911_s20 }
 0x7c9   : > { %11394 = vrot.lane.b32.xlu1 %v21188_v30, %s17910_s19  ;;  %11392 = vrot.lane.b32.xlu0 %v21191_v42, %s17910_s19 }
 0x7cd   : > { %11587 = vrot.lane.b32.xlu1 %v21188_v30, %s17912_s21  ;;  %11585 = vrot.lane.b32.xlu0 %v21191_v42, %s17912_s21 }
 0x7d1   : > { %11779 = vrot.lane.b32.xlu1 %v21188_v30, %s17913_s22  ;;  %11777 = vrot.lane.b32.xlu0 %v21191_v42, %s17913_s22 }
 0x7d5   : > { %11971 = vrot.lane.b32.xlu1 %v21188_v30, %s17914_s23  ;;  %11969 = vrot.lane.b32.xlu0 %v21191_v42, %s17914_s23 }
 0x7d9   : > { %12164 = vrot.lane.b32.xlu1 %v21188_v30, %s17915_s24  ;;  %12162 = vrot.lane.b32.xlu0 %v21191_v42, %s17915_s24 }
 0x7dd   : > { %12356 = vrot.lane.b32.xlu1 %v21188_v30, %s17916_s25  ;;  %12354 = vrot.lane.b32.xlu0 %v21191_v42, %s17916_s25 }
 0x7e1   : > { %12548 = vrot.lane.b32.xlu1 %v21188_v30, %s17917_s26  ;;  %12546 = vrot.lane.b32.xlu0 %v21191_v42, %s17917_s26 }
 0x7e5   : > { %11206 = vrot.lane.b32.xlu1 %v21198_v63, %s17911_s20  ;;  %11204 = vrot.lane.b32.xlu0 %v21201_v47, %s17911_s20 }
 0x7e9   : > { %11398 = vrot.lane.b32.xlu1 %v21198_v63, %s17910_s19  ;;  %11396 = vrot.lane.b32.xlu0 %v21201_v47, %s17910_s19 }
 0x7ed   : > { %11591 = vrot.lane.b32.xlu1 %v21198_v63, %s17912_s21  ;;  %11589 = vrot.lane.b32.xlu0 %v21201_v47, %s17912_s21 }
 0x7f1   : > { %11783 = vrot.lane.b32.xlu1 %v21198_v63, %s17913_s22  ;;  %11781 = vrot.lane.b32.xlu0 %v21201_v47, %s17913_s22 }
 0x7f5   : > { %11975 = vrot.lane.b32.xlu1 %v21198_v63, %s17914_s23  ;;  %11973 = vrot.lane.b32.xlu0 %v21201_v47, %s17914_s23 }
 0x7f7   : > { %v11387_v0 = vpop.permute.xlu1 %11386  ;;  %v11195_v31 = vpop.permute.xlu0 %11194 }
 0x7f8   : > { %v11289_v51 = vmul.f32 %v11195_v31, %v11129_v57  ;;  %v11481_v14 = vmul.f32 %v11387_v0, %v11353_v59  ;;  %v21440_v57 = vld [vmem:[%s21390_s9 + $0x18] sm:$0xff] }
 0x7f9   : > { %12168 = vrot.lane.b32.xlu1 %v21198_v63, %s17915_s24  ;;  %12166 = vrot.lane.b32.xlu0 %v21201_v47, %s17915_s24 }
 0x7fa   : > { %v11321_v17 = vadd.f32 %v11289_v51, %v11065_v52 }
 0x7fb   : > { %v11580_v18 = vpop.permute.xlu1 %11579  ;;  %v11193_v36 = vpop.permute.xlu0 %11192 }
 0x7fc   : > { %v11513_v11 = vadd.f32 %v11481_v14, %v11321_v17  ;;  %v11674_v39 = vmul.f32 %v21409_v32, %v11580_v18  ;;  %v11288_v13 = vmul.f32 %v11193_v36, %v11128_v15  ;;  %v21448_v17 = vld [vmem:[%s21390_s9 + $0x1a] sm:$0xff] }
 0x7fd   : > { %12360 = vrot.lane.b32.xlu1 %v21198_v63, %s17916_s25  ;;  %12358 = vrot.lane.b32.xlu0 %v21201_v47, %s17916_s25 }
 0x7fe   : > { %v11706_v37 = vadd.f32 %v11674_v39, %v11513_v11  ;;  %v11320_v51 = vadd.f32 %v11288_v13, %v11064_v27 }
 0x7ff   : > { %v11772_v29 = vpop.permute.xlu1 %11771  ;;  %v11385_v6 = vpop.permute.xlu0 %11384 }
 0x800   : > { %v11866_v38 = vmul.f32 %v21412_v44, %v11772_v29  ;;  %v11480_v0 = vmul.f32 %v11385_v6, %v11352_v49  ;;  %v21467_v49 = vld [vmem:[%s21390_s9 + $0x30] sm:$0xff] }
 0x801   : > { %12552 = vrot.lane.b32.xlu1 %v21198_v63, %s17917_s26  ;;  %12550 = vrot.lane.b32.xlu0 %v21201_v47, %s17917_s26 }
 0x802   : > { %v11898_v4 = vadd.f32 %v11866_v38, %v11706_v37  ;;  %v11512_v6 = vadd.f32 %v11480_v0, %v11320_v51 }
 0x803   : > { %v11964_v33 = vpop.permute.xlu1 %11963  ;;  %v11578_v62 = vpop.permute.xlu0 %11577 }
 0x804   : > { %v12058_v48 = vmul.f32 %v21417_v43, %v11964_v33  ;;  %v11673_v59 = vmul.f32 %v21440_v57, %v11578_v62 }
 0x805   : > { %11210 = vrot.lane.b32.xlu1 %v21208_v7, %s17911_s20  ;;  %11208 = vrot.lane.b32.xlu0 %v21211_v58, %s17911_s20 }
 0x806   : > { %v12090_v52 = vadd.f32 %v12058_v48, %v11898_v4  ;;  %v11705_v39 = vadd.f32 %v11673_v59, %v11512_v6 }
 0x807   : > { %v12157_v26 = vpop.permute.xlu1 %12156  ;;  %v11770_v40 = vpop.permute.xlu0 %11769 }
 0x808   : > { %v12251_v31 = vmul.f32 %v21428_v34, %v12157_v26  ;;  %v11865_v33 = vmul.f32 %v21443_v1, %v11770_v40  ;;  %v21474_v26 = vld [vmem:[%s21390_s9 + $0x31] sm:$0xff] }
 0x809   : > { %11402 = vrot.lane.b32.xlu1 %v21208_v7, %s17910_s19  ;;  %11400 = vrot.lane.b32.xlu0 %v21211_v58, %s17910_s19 }
 0x80a   : > { %v12283_v14 = vadd.f32 %v12251_v31, %v12090_v52  ;;  %v11897_v40 = vadd.f32 %v11865_v33, %v11705_v39  ;;  %v21485_v31 = vld [vmem:[%s21390_s9 + $0x32] sm:$0xff]  ;;  %v11067_v39 = vmul.f32 %v21409_v32, %v21238_v46 }
 0x80b   : > { %v12349_v18 = vpop.permute.xlu1 %12348  ;;  %v11962_v36 = vpop.permute.xlu0 %11961 }
 0x80c   : > { %v12443_v29 = vmul.f32 %v21435_v10, %v12349_v18  ;;  %v12057_v38 = vmul.f32 %v21448_v17, %v11962_v36 }
 0x80d   : > { %11595 = vrot.lane.b32.xlu1 %v21208_v7, %s17912_s21  ;;  %11593 = vrot.lane.b32.xlu0 %v21211_v58, %s17912_s21 }
 0x80e   : > { %v12475_v15 = vadd.f32 %v12443_v29, %v12283_v14  ;;  %v12089_v4 = vadd.f32 %v12057_v38, %v11897_v40 }
 0x80f   : > { %v12541_v62 = vpop.permute.xlu1 %12540  ;;  %v12155_v11 = vpop.permute.xlu0 %12154 }
 0x810   : > { %v12635_v12 = vmul.f32 %v21455_v8, %v12541_v62  ;;  %v12250_v13 = vmul.f32 %v21467_v49, %v12155_v11 }
 0x811   : > { %11787 = vrot.lane.b32.xlu1 %v21208_v7, %s17913_s22  ;;  %11785 = vrot.lane.b32.xlu0 %v21211_v58, %s17913_s22 }
 0x812   : > { %v12667_v37 = vadd.f32 %v12635_v12, %v12475_v15  ;;  %v12282_v18 = vadd.f32 %v12250_v13, %v12089_v4  ;;  %v21521_v4 = vld [vmem:[%s21390_s9 + $0x51] sm:$0xff] }
 0x813   : > { %v12347_v48 = vpop.permute.xlu0 %12346  ;;  %v11199_v27 = vpop.permute.xlu1 %11198 }
 0x814   : > { %12700 = vst.msk [vmem:[%s21464_s12 + $0x8] sm:$0xff] %vm12698_vm4, %v12667_v37  ;;  %v12442_v0 = vmul.f32 %v21474_v26, %v12347_v48  ;;  %v11291_v11 = vmul.f32 %v21412_v44, %v11199_v27  ;;  %v21514_v27 = vld [vmem:[%s21390_s9 + $0x50] sm:$0xff] }
 0x815   : > { %11979 = vrot.lane.b32.xlu1 %v21208_v7, %s17914_s23  ;;  %11977 = vrot.lane.b32.xlu0 %v21211_v58, %s17914_s23 }
 0x816   : > { %v12474_v52 = vadd.f32 %v12442_v0, %v12282_v18  ;;  %v11323_v40 = vadd.f32 %v11291_v11, %v11067_v39 }
 0x817   : > { %v12539_v36 = vpop.permute.xlu0 %12538  ;;  %v11391_v51 = vpop.permute.xlu1 %11390 }
 0x818   : > { %v12634_v59 = vmul.f32 %v21485_v31, %v12539_v36  ;;  %v11483_v15 = vmul.f32 %v21417_v43, %v11391_v51 }
 0x819   : > { %12172 = vrot.lane.b32.xlu1 %v21208_v7, %s17915_s24  ;;  %12170 = vrot.lane.b32.xlu0 %v21211_v58, %s17915_s24 }
 0x81a   : > { %v12666_v29 = vadd.f32 %v12634_v59, %v12474_v52  ;;  %v11515_v44 = vadd.f32 %v11483_v15, %v11323_v40 }
 0x81b   : > { %v11584_v6 = vpop.permute.xlu1 %11583  ;;  %v11389_v14 = vpop.permute.xlu0 %11388 }
 0x81c   : > { %12699 = vst.msk [vmem:[%s21464_s12] sm:$0xff] %vm12698_vm4, %v12666_v29  ;;  %v11676_v37 = vmul.f32 %v21428_v34, %v11584_v6  ;;  %v21530_v29 = vld [vmem:[%s21390_s9 + $0x52] sm:$0xff] }
 0x81d   : > { %12364 = vrot.lane.b32.xlu1 %v21208_v7, %s17916_s25  ;;  %12362 = vrot.lane.b32.xlu0 %v21211_v58, %s17916_s25 }
 0x81e   : > { %v11708_v32 = vadd.f32 %v11676_v37, %v11515_v44  ;;  %v11066_v44 = vmul.f32 %v21440_v57, %v21261_v56 }
 0x81f   : > { %v11776_v33 = vpop.permute.xlu1 %11775  ;;  %v11582_v62 = vpop.permute.xlu0 %11581 }
 0x820   : > { %v11868_v13 = vmul.f32 %v21435_v10, %v11776_v33 }
 0x821   : > { %12556 = vrot.lane.b32.xlu1 %v21208_v7, %s17917_s26  ;;  %12554 = vrot.lane.b32.xlu0 %v21211_v58, %s17917_s26 }
 0x822   : > { %v11900_v0 = vadd.f32 %v11868_v13, %v11708_v32 }
 0x823   : > { %v11968_v38 = vpop.permute.xlu1 %11967  ;;  %v11774_v12 = vpop.permute.xlu0 %11773 }
 0x824   : > { %v12060_v43 = vmul.f32 %v21455_v8, %v11968_v38  ;;  %v11867_v56 = vmul.f32 %v21474_v26, %v11774_v12  ;;  %v21566_v12 = vld [vmem:[%s21390_s9 + $0x4a] sm:$0xff] }
 0x825   : > { %11214 = vrot.lane.b32.xlu1 %v21218_v3, %s17911_s20  ;;  %11212 = vrot.lane.b32.xlu0 %v21221_v60, %s17911_s20 }
 0x826   : > { %v12092_v52 = vadd.f32 %v12060_v43, %v11900_v0 }
 0x827   : > { %v12161_v48 = vpop.permute.xlu1 %12160  ;;  %v11966_v46 = vpop.permute.xlu0 %11965 }
 0x828   : > { %v12253_v18 = vmul.f32 %v21514_v27, %v12161_v48  ;;  %v11482_v48 = vmul.f32 %v21448_v17, %v11389_v14  ;;  %v12059_v17 = vmul.f32 %v21485_v31, %v11966_v46 }
 0x829   : > { %11406 = vrot.lane.b32.xlu1 %v21218_v3, %s17910_s19  ;;  %11404 = vrot.lane.b32.xlu0 %v21221_v60, %s17910_s19 }
 0x82a   : > { %v12285_v6 = vadd.f32 %v12253_v18, %v12092_v52  ;;  %v11675_v18 = vmul.f32 %v21467_v49, %v11582_v62 }
 0x82b   : > { %v12353_v36 = vpop.permute.xlu1 %12352  ;;  %v12159_v51 = vpop.permute.xlu0 %12158 }
 0x82c   : > { %v12445_v59 = vmul.f32 %v21521_v4, %v12353_v36 }
 0x82d   : > { %11599 = vrot.lane.b32.xlu1 %v21218_v3, %s17912_s21  ;;  %11597 = vrot.lane.b32.xlu0 %v21221_v60, %s17912_s21 }
 0x82e   : > { %v12477_v39 = vadd.f32 %v12445_v59, %v12285_v6  ;;  %v21555_v59 = vld [vmem:[%s21390_s9 + $0x48] sm:$0xff] }
 0x82f   : > { %v12545_v33 = vpop.permute.xlu1 %12544  ;;  %v12351_v11 = vpop.permute.xlu0 %12350  ;;  %v21558_v6 = vld [vmem:[%s21390_s9 + $0x49] sm:$0xff]  ;;  %v12252_v62 = vmul.f32 %v21555_v59, %v12159_v51 }
 0x830   : > { %v12637_v15 = vmul.f32 %v21530_v29, %v12545_v33  ;;  %v12444_v46 = vmul.f32 %v21558_v6, %v12351_v11  ;;  %v11069_v11 = vmul.f32 %v21428_v34, %v21188_v30 }
 0x831   : > { %11791 = vrot.lane.b32.xlu1 %v21218_v3, %s17913_s22  ;;  %11789 = vrot.lane.b32.xlu0 %v21221_v60, %s17913_s22 }
 0x832   : > { %v12669_v38 = vadd.f32 %v12637_v15, %v12477_v39 }
 0x833   : > { %v12543_v40 = vpop.permute.xlu0 %12542  ;;  %v11197_v37 = vpop.permute.xlu1 %11196 }
 0x834   : > { %12702 = vst.msk [vmem:[%s21464_s12 + $0x18] sm:$0xff] %vm12698_vm4, %v12669_v38  ;;  %v11290_v13 = vmul.f32 %v21443_v1, %v11197_v37  ;;  %v12636_v37 = vmul.f32 %v21566_v12, %v12543_v40  ;;  %v11068_v40 = vmul.f32 %v21467_v49, %v21191_v42 }
 0x835   : > { %11983 = vrot.lane.b32.xlu1 %v21218_v3, %s17914_s23  ;;  %11981 = vrot.lane.b32.xlu0 %v21221_v60, %s17914_s23 }
 0x836   : > { %v11322_v32 = vadd.f32 %v11290_v13, %v11066_v44 }
 0x837   : > { %v11203_v43 = vpop.permute.xlu1 %11202  ;;  %v11201_v0 = vpop.permute.xlu0 %11200 }
 0x838   : > { %v11514_v36 = vadd.f32 %v11482_v48, %v11322_v32  ;;  %v11293_v32 = vmul.f32 %v21435_v10, %v11203_v43 }
 0x839   : > { %12176 = vrot.lane.b32.xlu1 %v21218_v3, %s17915_s24  ;;  %12174 = vrot.lane.b32.xlu0 %v21221_v60, %s17915_s24 }
 0x83a   : > { %v11707_v57 = vadd.f32 %v11675_v18, %v11514_v36  ;;  %v11292_v18 = vmul.f32 %v21474_v26, %v11201_v0  ;;  %v11325_v0 = vadd.f32 %v11293_v32, %v11069_v11 }
 0x83b   : > { %v11395_v1 = vpop.permute.xlu1 %11394  ;;  %v11393_v52 = vpop.permute.xlu0 %11392 }
 0x83c   : > { %v11899_v14 = vadd.f32 %v11867_v56, %v11707_v57  ;;  %v11485_v36 = vmul.f32 %v21455_v8, %v11395_v1  ;;  %v11484_v10 = vmul.f32 %v21485_v31, %v11393_v52  ;;  %v11324_v56 = vadd.f32 %v11292_v18, %v11068_v40 }
 0x83d   : > { %12368 = vrot.lane.b32.xlu1 %v21218_v3, %s17916_s25  ;;  %12366 = vrot.lane.b32.xlu0 %v21221_v60, %s17916_s25 }
 0x83e   : > { %v12091_v33 = vadd.f32 %v12059_v17, %v11899_v14  ;;  %v11517_v30 = vadd.f32 %v11485_v36, %v11325_v0  ;;  %v11516_v42 = vadd.f32 %v11484_v10, %v11324_v56  ;;  %v21623_v36 = vld [vmem:[%s21390_s9 + $0x6a] sm:$0xff]  ;;  %v21626_v10 = vld [vmem:[%s21390_s9 + $0x62] sm:$0xff] }
 0x83f   : > { %v11588_v39 = vpop.permute.xlu1 %11587  ;;  %v11586_v15 = vpop.permute.xlu0 %11585 }
 0x840   : > { %v12284_v38 = vadd.f32 %v12252_v62, %v12091_v33  ;;  %v11678_v57 = vmul.f32 %v21514_v27, %v11588_v39  ;;  %v11677_v17 = vmul.f32 %v21555_v59, %v11586_v15  ;;  %v21599_v33 = vld [vmem:[%s21390_s9 + $0x68] sm:$0xff]  ;;  %v21602_v39 = vld [vmem:[%s21390_s9 + $0x60] sm:$0xff] }
 0x841   : > { %12560 = vrot.lane.b32.xlu1 %v21218_v3, %s17917_s26  ;;  %12558 = vrot.lane.b32.xlu0 %v21221_v60, %s17917_s26  ;;  %v21609_v15 = vld [vmem:[%s21390_s9 + $0x69] sm:$0xff] }
 0x842   : > { %v12476_v44 = vadd.f32 %v12444_v46, %v12284_v38  ;;  %v11710_v1 = vadd.f32 %v11678_v57, %v11517_v30  ;;  %v11709_v52 = vadd.f32 %v11677_v17, %v11516_v42  ;;  %v21612_v46 = vld [vmem:[%s21390_s9 + $0x61] sm:$0xff] }
 0x843   : > { %v11780_v13 = vpop.permute.xlu1 %11779  ;;  %v11778_v51 = vpop.permute.xlu0 %11777 }
 0x844   : > { %v12668_v48 = vadd.f32 %v12636_v37, %v12476_v44  ;;  %v11870_v34 = vmul.f32 %v21521_v4, %v11780_v13  ;;  %v11869_v8 = vmul.f32 %v21558_v6, %v11778_v51 }
 0x845   : > { %11218 = vrot.lane.b32.xlu1 %v21228_v23, %s17911_s20  ;;  %11216 = vrot.lane.b32.xlu0 %v21231_v35, %s17911_s20 }
 0x846   : > { %12701 = vst.msk [vmem:[%s21464_s12 + $0x10] sm:$0xff] %vm12698_vm4, %v12668_v48  ;;  %v11902_v38 = vadd.f32 %v11870_v34, %v11710_v1  ;;  %v11901_v37 = vadd.f32 %v11869_v8, %v11709_v52 }
 0x847   : > { %v11972_v43 = vpop.permute.xlu1 %11971  ;;  %v11970_v26 = vpop.permute.xlu0 %11969 }
 0x848   : > { %v12062_v14 = vmul.f32 %v21530_v29, %v11972_v43  ;;  %v12061_v62 = vmul.f32 %v21566_v12, %v11970_v26 }
 0x849   : > { %11410 = vrot.lane.b32.xlu1 %v21228_v23, %s17910_s19  ;;  %11408 = vrot.lane.b32.xlu0 %v21231_v35, %s17910_s19 }
 0x84a   : > { %v12094_v32 = vadd.f32 %v12062_v14, %v11902_v38  ;;  %v12093_v18 = vadd.f32 %v12061_v62, %v11901_v37 }
 0x84b   : > { %v12165_v49 = vpop.permute.xlu1 %12164  ;;  %v12163_v31 = vpop.permute.xlu0 %12162 }
 0x84c   : > { %v12255_v44 = vmul.f32 %v21599_v33, %v12165_v49  ;;  %v12254_v13 = vmul.f32 %v21602_v39, %v12163_v31 }
 0x84d   : > { %11603 = vrot.lane.b32.xlu1 %v21228_v23, %s17912_s21  ;;  %11601 = vrot.lane.b32.xlu0 %v21231_v35, %s17912_s21 }
 0x84e   : > { %v12287_v43 = vadd.f32 %v12255_v44, %v12094_v32  ;;  %v12286_v26 = vadd.f32 %v12254_v13, %v12093_v18 }
 0x84f   : > { %v12357_v51 = vpop.permute.xlu1 %12356  ;;  %v12355_v48 = vpop.permute.xlu0 %12354 }
 0x850   : > { %v12447_v11 = vmul.f32 %v21609_v15, %v12357_v51  ;;  %v12446_v40 = vmul.f32 %v21612_v46, %v12355_v48  ;;  %v11071_v51 = vmul.f32 %v21514_v27, %v21198_v63  ;;  %v11070_v48 = vmul.f32 %v21555_v59, %v21201_v47 }
 0x851   : > { %11795 = vrot.lane.b32.xlu1 %v21228_v23, %s17913_s22  ;;  %11793 = vrot.lane.b32.xlu0 %v21231_v35, %s17913_s22 }
 0x852   : > { %v12479_v57 = vadd.f32 %v12447_v11, %v12287_v43  ;;  %v12478_v17 = vadd.f32 %v12446_v40, %v12286_v26 }
 0x853   : > { %v12549_v0 = vpop.permute.xlu1 %12548  ;;  %v12547_v56 = vpop.permute.xlu0 %12546 }
 0x854   : > { %v12639_v30 = vmul.f32 %v21623_v36, %v12549_v0  ;;  %v12638_v42 = vmul.f32 %v21626_v10, %v12547_v56 }
 0x855   : > { %11987 = vrot.lane.b32.xlu1 %v21228_v23, %s17914_s23  ;;  %11985 = vrot.lane.b32.xlu0 %v21231_v35, %s17914_s23 }
 0x856   : > { %v12671_v34 = vadd.f32 %v12639_v30, %v12479_v57  ;;  %v12670_v8 = vadd.f32 %v12638_v42, %v12478_v17  ;;  %v21673_v30 = vld [vmem:[%s21390_s9 + $0x80] sm:$0xff]  ;;  %v21676_v42 = vld [vmem:[%s21390_s9 + $0x78] sm:$0xff] }
 0x857   : > { %v11207_v49 = vpop.permute.xlu1 %11206  ;;  %v11205_v31 = vpop.permute.xlu0 %11204 }
 0x858   : > { %12704 = vst.msk [vmem:[%s21464_s12 + $0x28] sm:$0xff] %vm12698_vm4, %v12671_v34  ;;  %12703 = vst.msk [vmem:[%s21464_s12 + $0x20] sm:$0xff] %vm12698_vm4, %v12670_v8  ;;  %v11295_v44 = vmul.f32 %v21521_v4, %v11207_v49  ;;  %v11294_v13 = vmul.f32 %v21558_v6, %v11205_v31  ;;  %v21683_v34 = vld [vmem:[%s21390_s9 + $0x81] sm:$0xff]  ;;  %v21686_v8 = vld [vmem:[%s21390_s9 + $0x79] sm:$0xff] }
 0x859   : > { %12180 = vrot.lane.b32.xlu1 %v21228_v23, %s17915_s24  ;;  %12178 = vrot.lane.b32.xlu0 %v21231_v35, %s17915_s24 }
 0x85a   : > { %v11327_v40 = vadd.f32 %v11295_v44, %v11071_v51  ;;  %v11326_v6 = vadd.f32 %v11294_v13, %v11070_v48  ;;  %v21697_v51 = vld [vmem:[%s21390_s9 + $0x82] sm:$0xff]  ;;  %v21700_v48 = vld [vmem:[%s21390_s9 + $0x7a] sm:$0xff] }
 0x85b   : > { %v11399_v1 = vpop.permute.xlu1 %11398  ;;  %v11397_v52 = vpop.permute.xlu0 %11396 }
 0x85c   : > { %v11487_v32 = vmul.f32 %v21530_v29, %v11399_v1  ;;  %v11486_v18 = vmul.f32 %v21566_v12, %v11397_v52 }
 0x85d   : > { %12372 = vrot.lane.b32.xlu1 %v21228_v23, %s17916_s25  ;;  %12370 = vrot.lane.b32.xlu0 %v21231_v35, %s17916_s25 }
 0x85e   : > { %v11519_v63 = vadd.f32 %v11487_v32, %v11327_v40  ;;  %v11518_v47 = vadd.f32 %v11486_v18, %v11326_v6 }
 0x85f   : > { %v11592_v14 = vpop.permute.xlu1 %11591  ;;  %v11590_v62 = vpop.permute.xlu0 %11589 }
 0x860   : > { %v11680_v43 = vmul.f32 %v21599_v33, %v11592_v14  ;;  %v11679_v26 = vmul.f32 %v21602_v39, %v11590_v62 }
 0x861   : > { %12564 = vrot.lane.b32.xlu1 %v21228_v23, %s17917_s26  ;;  %12562 = vrot.lane.b32.xlu0 %v21231_v35, %s17917_s26 }
 0x862   : > { %v11712_v0 = vadd.f32 %v11680_v43, %v11519_v63  ;;  %v11711_v56 = vadd.f32 %v11679_v26, %v11518_v47 }
 0x863   : > { %v11784_v38 = vpop.permute.xlu1 %11783  ;;  %v11782_v37 = vpop.permute.xlu0 %11781 }
 0x864   : > { %v11872_v27 = vmul.f32 %v21609_v15, %v11784_v38  ;;  %v11871_v29 = vmul.f32 %v21612_v46, %v11782_v37 }
 0x865   : > { %11222 = vrot.lane.b32.xlu1 %v21241_v50, %s17911_s20  ;;  %11220 = vrot.lane.b32.xlu0 %v21244_v16, %s17911_s20 }
 0x866   : > { %v11904_v49 = vadd.f32 %v11872_v27, %v11712_v0  ;;  %v11903_v31 = vadd.f32 %v11871_v29, %v11711_v56 }
 0x867   : > { %v11976_v11 = vpop.permute.xlu1 %11975  ;;  %v11974_v4 = vpop.permute.xlu0 %11973 }
 0x868   : > { %v12064_v57 = vmul.f32 %v21623_v36, %v11976_v11  ;;  %v12063_v17 = vmul.f32 %v21626_v10, %v11974_v4 }
 0x869   : > { %11414 = vrot.lane.b32.xlu1 %v21241_v50, %s17910_s19  ;;  %11412 = vrot.lane.b32.xlu0 %v21244_v16, %s17910_s19 }
 0x86a   : > { %v12096_v38 = vadd.f32 %v12064_v57, %v11904_v49  ;;  %v12095_v37 = vadd.f32 %v12063_v17, %v11903_v31 }
 0x86b   : > { %v12169_v59 = vpop.permute.xlu1 %12168  ;;  %v12167_v12 = vpop.permute.xlu0 %12166 }
 0x86c   : > { %v12257_v1 = vmul.f32 %v21673_v30, %v12169_v59  ;;  %v12256_v52 = vmul.f32 %v21676_v42, %v12167_v12 }
 0x86d   : > { %11607 = vrot.lane.b32.xlu1 %v21241_v50, %s17912_s21  ;;  %11605 = vrot.lane.b32.xlu0 %v21244_v16, %s17912_s21 }
 0x86e   : > { %v12289_v32 = vadd.f32 %v12257_v1, %v12096_v38  ;;  %v12288_v18 = vadd.f32 %v12256_v52, %v12095_v37  ;;  %v11073_v1 = vmul.f32 %v21599_v33, %v21208_v7  ;;  %v11072_v52 = vmul.f32 %v21602_v39, %v21211_v58 }
 0x86f   : > { %v12361_v14 = vpop.permute.xlu1 %12360  ;;  %v12359_v62 = vpop.permute.xlu0 %12358 }
 0x870   : > { %v12449_v44 = vmul.f32 %v21683_v34, %v12361_v14  ;;  %v12448_v13 = vmul.f32 %v21686_v8, %v12359_v62 }
 0x871   : > { %11799 = vrot.lane.b32.xlu1 %v21241_v50, %s17913_s22  ;;  %11797 = vrot.lane.b32.xlu0 %v21244_v16, %s17913_s22 }
 0x872   : > { %v12481_v40 = vadd.f32 %v12449_v44, %v12289_v32  ;;  %v12480_v6 = vadd.f32 %v12448_v13, %v12288_v18 }
 0x873   : > { %v12553_v11 = vpop.permute.xlu1 %12552  ;;  %v12551_v4 = vpop.permute.xlu0 %12550 }
 0x874   : > { %v12641_v43 = vmul.f32 %v21697_v51, %v12553_v11  ;;  %v12640_v26 = vmul.f32 %v21700_v48, %v12551_v4 }
 0x875   : > { %11991 = vrot.lane.b32.xlu1 %v21241_v50, %s17914_s23  ;;  %11989 = vrot.lane.b32.xlu0 %v21244_v16, %s17914_s23 }
 0x876   : > { %v12673_v63 = vadd.f32 %v12641_v43, %v12481_v40  ;;  %v12672_v47 = vadd.f32 %v12640_v26, %v12480_v6  ;;  %v21747_v40 = vld [vmem:[%s21390_s9 + $0x98] sm:$0xff]  ;;  %v21750_v6 = vld [vmem:[%s21390_s9 + $0x90] sm:$0xff] }
 0x877   : > { %v11211_v27 = vpop.permute.xlu1 %11210  ;;  %v11209_v29 = vpop.permute.xlu0 %11208  ;;  %v21757_v43 = vld [vmem:[%s21390_s9 + $0x99] sm:$0xff]  ;;  %v21760_v26 = vld [vmem:[%s21390_s9 + $0x91] sm:$0xff] }
 0x878   : > { %12706 = vst.msk [vmem:[%s21464_s12 + $0x38] sm:$0xff] %vm12698_vm4, %v12673_v63  ;;  %12705 = vst.msk [vmem:[%s21464_s12 + $0x30] sm:$0xff] %vm12698_vm4, %v12672_v47  ;;  %v11297_v49 = vmul.f32 %v21609_v15, %v11211_v27  ;;  %v11296_v31 = vmul.f32 %v21612_v46, %v11209_v29 }
 0x879   : > { %12184 = vrot.lane.b32.xlu1 %v21241_v50, %s17915_s24  ;;  %12182 = vrot.lane.b32.xlu0 %v21244_v16, %s17915_s24 }
 0x87a   : > { %v11329_v37 = vadd.f32 %v11297_v49, %v11073_v1  ;;  %v11328_v46 = vadd.f32 %v11296_v31, %v11072_v52  ;;  %v21771_v49 = vld [vmem:[%s21390_s9 + $0x9a] sm:$0xff]  ;;  %v21774_v31 = vld [vmem:[%s21390_s9 + $0x92] sm:$0xff] }
 0x87b   : > { %v11403_v59 = vpop.permute.xlu1 %11402  ;;  %v11401_v12 = vpop.permute.xlu0 %11400 }
 0x87c   : > { %v11489_v14 = vmul.f32 %v21623_v36, %v11403_v59  ;;  %v11488_v62 = vmul.f32 %v21626_v10, %v11401_v12 }
 0x87d   : > { %12376 = vrot.lane.b32.xlu1 %v21241_v50, %s17916_s25  ;;  %12374 = vrot.lane.b32.xlu0 %v21244_v16, %s17916_s25 }
 0x87e   : > { %v11521_v7 = vadd.f32 %v11489_v14, %v11329_v37  ;;  %v11520_v58 = vadd.f32 %v11488_v62, %v11328_v46 }
 0x87f   : > { %v11596_v0 = vpop.permute.xlu1 %11595  ;;  %v11594_v56 = vpop.permute.xlu0 %11593 }
 0x880   : > { %v11682_v44 = vmul.f32 %v21673_v30, %v11596_v0  ;;  %v11681_v13 = vmul.f32 %v21676_v42, %v11594_v56 }
 0x881   : > { %12568 = vrot.lane.b32.xlu1 %v21241_v50, %s17917_s26  ;;  %12566 = vrot.lane.b32.xlu0 %v21244_v16, %s17917_s26 }
 0x882   : > { %v11714_v32 = vadd.f32 %v11682_v44, %v11521_v7  ;;  %v11713_v18 = vadd.f32 %v11681_v13, %v11520_v58 }
 0x883   : > { %v11788_v57 = vpop.permute.xlu1 %11787  ;;  %v11786_v17 = vpop.permute.xlu0 %11785 }
 0x884   : > { %v11874_v33 = vmul.f32 %v21683_v34, %v11788_v57  ;;  %v11873_v39 = vmul.f32 %v21686_v8, %v11786_v17 }
 0x885   : > { %11226 = vrot.lane.b32.xlu1 %v21251_v20, %s17911_s20  ;;  %11224 = vrot.lane.b32.xlu0 %v21254_v41, %s17911_s20 }
 0x886   : > { %v11906_v63 = vadd.f32 %v11874_v33, %v11714_v32  ;;  %v11905_v47 = vadd.f32 %v11873_v39, %v11713_v18 }
 0x887   : > { %v11980_v38 = vpop.permute.xlu1 %11979  ;;  %v11978_v15 = vpop.permute.xlu0 %11977 }
 0x888   : > { %v12066_v11 = vmul.f32 %v21697_v51, %v11980_v38  ;;  %v12065_v4 = vmul.f32 %v21700_v48, %v11978_v15 }
 0x889   : > { %11418 = vrot.lane.b32.xlu1 %v21251_v20, %s17910_s19  ;;  %11416 = vrot.lane.b32.xlu0 %v21254_v41, %s17910_s19 }
 0x88a   : > { %v12098_v0 = vadd.f32 %v12066_v11, %v11906_v63  ;;  %v12097_v56 = vadd.f32 %v12065_v4, %v11905_v47  ;;  %v11075_v63 = vmul.f32 %v21673_v30, %v21218_v3  ;;  %v11074_v47 = vmul.f32 %v21676_v42, %v21221_v60 }
 0x88b   : > { %v12173_v36 = vpop.permute.xlu1 %12172  ;;  %v12171_v10 = vpop.permute.xlu0 %12170 }
 0x88c   : > { %v12259_v27 = vmul.f32 %v21747_v40, %v12173_v36  ;;  %v12258_v29 = vmul.f32 %v21750_v6, %v12171_v10 }
 0x88d   : > { %11611 = vrot.lane.b32.xlu1 %v21251_v20, %s17912_s21  ;;  %11609 = vrot.lane.b32.xlu0 %v21254_v41, %s17912_s21 }
 0x88e   : > { %v12291_v1 = vadd.f32 %v12259_v27, %v12098_v0  ;;  %v12290_v52 = vadd.f32 %v12258_v29, %v12097_v56 }
 0x88f   : > { %v12365_v59 = vpop.permute.xlu1 %12364  ;;  %v12363_v12 = vpop.permute.xlu0 %12362 }
 0x890   : > { %v12451_v57 = vmul.f32 %v21757_v43, %v12365_v59  ;;  %v12450_v17 = vmul.f32 %v21760_v26, %v12363_v12 }
 0x891   : > { %11803 = vrot.lane.b32.xlu1 %v21251_v20, %s17913_s22  ;;  %11801 = vrot.lane.b32.xlu0 %v21254_v41, %s17913_s22 }
 0x892   : > { %v12483_v38 = vadd.f32 %v12451_v57, %v12291_v1  ;;  %v12482_v15 = vadd.f32 %v12450_v17, %v12290_v52 }
 0x893   : > { %v12557_v14 = vpop.permute.xlu1 %12556  ;;  %v12555_v62 = vpop.permute.xlu0 %12554 }
 0x894   : > { %v12643_v37 = vmul.f32 %v21771_v49, %v12557_v14  ;;  %v12642_v46 = vmul.f32 %v21774_v31, %v12555_v62  ;;  %v21821_v14 = vld [vmem:[%s21390_s9 + $0xb0] sm:$0xff]  ;;  %v21824_v62 = vld [vmem:[%s21390_s9 + $0xa8] sm:$0xff] }
 0x895   : > { %11995 = vrot.lane.b32.xlu1 %v21251_v20, %s17914_s23  ;;  %11993 = vrot.lane.b32.xlu0 %v21254_v41, %s17914_s23 }
 0x896   : > { %v12675_v44 = vadd.f32 %v12643_v37, %v12483_v38  ;;  %v12674_v13 = vadd.f32 %v12642_v46, %v12482_v15  ;;  %v21831_v38 = vld [vmem:[%s21390_s9 + $0xb1] sm:$0xff]  ;;  %v21834_v15 = vld [vmem:[%s21390_s9 + $0xa9] sm:$0xff] }
 0x897   : > { %v11215_v7 = vpop.permute.xlu1 %11214  ;;  %v11213_v58 = vpop.permute.xlu0 %11212 }
 0x898   : > { %12708 = vst.msk [vmem:[%s21464_s12 + $0x48] sm:$0xff] %vm12698_vm4, %v12675_v44  ;;  %12707 = vst.msk [vmem:[%s21464_s12 + $0x40] sm:$0xff] %vm12698_vm4, %v12674_v13  ;;  %v11299_v11 = vmul.f32 %v21683_v34, %v11215_v7  ;;  %v11298_v4 = vmul.f32 %v21686_v8, %v11213_v58 }
 0x899   : > { %12188 = vrot.lane.b32.xlu1 %v21251_v20, %s17915_s24  ;;  %12186 = vrot.lane.b32.xlu0 %v21254_v41, %s17915_s24 }
 0x89a   : > { %v11331_v12 = vadd.f32 %v11299_v11, %v11075_v63  ;;  %v11330_v8 = vadd.f32 %v11298_v4, %v11074_v47 }
 0x89b   : > { %v11407_v33 = vpop.permute.xlu1 %11406  ;;  %v11405_v39 = vpop.permute.xlu0 %11404 }
 0x89c   : > { %v11491_v27 = vmul.f32 %v21697_v51, %v11407_v33  ;;  %v11490_v29 = vmul.f32 %v21700_v48, %v11405_v39 }
 0x89d   : > { %12380 = vrot.lane.b32.xlu1 %v21251_v20, %s17916_s25  ;;  %12378 = vrot.lane.b32.xlu0 %v21254_v41, %s17916_s25 }
 0x89e   : > { %v11523_v3 = vadd.f32 %v11491_v27, %v11331_v12  ;;  %v11522_v60 = vadd.f32 %v11490_v29, %v11330_v8 }
 0x89f   : > { %v11600_v36 = vpop.permute.xlu1 %11599  ;;  %v11598_v10 = vpop.permute.xlu0 %11597 }
 0x8a0   : > { %v11684_v0 = vmul.f32 %v21747_v40, %v11600_v36  ;;  %v11683_v56 = vmul.f32 %v21750_v6, %v11598_v10 }
 0x8a1   : > { %12572 = vrot.lane.b32.xlu1 %v21251_v20, %s17917_s26  ;;  %12570 = vrot.lane.b32.xlu0 %v21254_v41, %s17917_s26 }
 0x8a2   : > { %v11716_v57 = vadd.f32 %v11684_v0, %v11523_v3  ;;  %v11715_v17 = vadd.f32 %v11683_v56, %v11522_v60 }
 0x8a3   : > { %v11792_v32 = vpop.permute.xlu1 %11791  ;;  %v11790_v18 = vpop.permute.xlu0 %11789 }
 0x8a4   : > { %v11876_v30 = vmul.f32 %v21757_v43, %v11792_v32  ;;  %v11875_v42 = vmul.f32 %v21760_v26, %v11790_v18  ;;  %v21845_v32 = vld [vmem:[%s21390_s9 + $0xb2] sm:$0xff]  ;;  %v21848_v18 = vld [vmem:[%s21390_s9 + $0xaa] sm:$0xff] }
 0x8a5   : > { %11230 = vrot.lane.b32.xlu1 %v21264_v24, %s17911_s20  ;;  %11228 = vrot.lane.b32.xlu0 %v21267_v45, %s17911_s20 }
 0x8a6   : > { %v11908_v37 = vadd.f32 %v11876_v30, %v11716_v57  ;;  %v11907_v46 = vadd.f32 %v11875_v42, %v11715_v17 }
 0x8a7   : > { %v11984_v59 = vpop.permute.xlu1 %11983  ;;  %v11982_v34 = vpop.permute.xlu0 %11981 }
 0x8a8   : > { %v12068_v1 = vmul.f32 %v21771_v49, %v11984_v59  ;;  %v12067_v52 = vmul.f32 %v21774_v31, %v11982_v34 }
 0x8a9   : > { %11422 = vrot.lane.b32.xlu1 %v21264_v24, %s17910_s19  ;;  %11420 = vrot.lane.b32.xlu0 %v21267_v45, %s17910_s19 }
 0x8aa   : > { %v12100_v33 = vadd.f32 %v12068_v1, %v11908_v37  ;;  %v12099_v39 = vadd.f32 %v12067_v52, %v11907_v46  ;;  %v11077_v1 = vmul.f32 %v21747_v40, %v21228_v23  ;;  %v11076_v52 = vmul.f32 %v21750_v6, %v21231_v35 }
 0x8ab   : > { %v12177_v51 = vpop.permute.xlu1 %12176  ;;  %v12175_v48 = vpop.permute.xlu0 %12174 }
 0x8ac   : > { %v12261_v44 = vmul.f32 %v21821_v14, %v12177_v51  ;;  %v12260_v13 = vmul.f32 %v21824_v62, %v12175_v48 }
 0x8ad   : > { %11615 = vrot.lane.b32.xlu1 %v21264_v24, %s17912_s21  ;;  %11613 = vrot.lane.b32.xlu0 %v21267_v45, %s17912_s21 }
 0x8ae   : > { %v12293_v11 = vadd.f32 %v12261_v44, %v12100_v33  ;;  %v12292_v4 = vadd.f32 %v12260_v13, %v12099_v39 }
 0x8af   : > { %v12369_v7 = vpop.permute.xlu1 %12368  ;;  %v12367_v58 = vpop.permute.xlu0 %12366 }
 0x8b0   : > { %v12453_v36 = vmul.f32 %v21831_v38, %v12369_v7  ;;  %v12452_v10 = vmul.f32 %v21834_v15, %v12367_v58 }
 0x8b1   : > { %11807 = vrot.lane.b32.xlu1 %v21264_v24, %s17913_s22  ;;  %11805 = vrot.lane.b32.xlu0 %v21267_v45, %s17913_s22 }
 0x8b2   : > { %v12485_v27 = vadd.f32 %v12453_v36, %v12293_v11  ;;  %v12484_v29 = vadd.f32 %v12452_v10, %v12292_v4  ;;  %v21895_v11 = vld [vmem:[%s21390_s9 + $0xc8] sm:$0xff]  ;;  %v21898_v4 = vld [vmem:[%s21390_s9 + $0xc0] sm:$0xff] }
 0x8b3   : > { %v12561_v63 = vpop.permute.xlu1 %12560  ;;  %v12559_v47 = vpop.permute.xlu0 %12558 }
 0x8b4   : > { %v12645_v59 = vmul.f32 %v21845_v32, %v12561_v63  ;;  %v12644_v34 = vmul.f32 %v21848_v18, %v12559_v47  ;;  %v21905_v63 = vld [vmem:[%s21390_s9 + $0xc9] sm:$0xff]  ;;  %v21908_v47 = vld [vmem:[%s21390_s9 + $0xc1] sm:$0xff] }
 0x8b5   : > { %11999 = vrot.lane.b32.xlu1 %v21264_v24, %s17914_s23  ;;  %11997 = vrot.lane.b32.xlu0 %v21267_v45, %s17914_s23 }
 0x8b6   : > { %v12677_v12 = vadd.f32 %v12645_v59, %v12485_v27  ;;  %v12676_v8 = vadd.f32 %v12644_v34, %v12484_v29 }
 0x8b7   : > { %v11219_v0 = vpop.permute.xlu1 %11218  ;;  %v11217_v56 = vpop.permute.xlu0 %11216 }
 0x8b8   : > { %12710 = vst.msk [vmem:[%s21464_s12 + $0x58] sm:$0xff] %vm12698_vm4, %v12677_v12  ;;  %12709 = vst.msk [vmem:[%s21464_s12 + $0x50] sm:$0xff] %vm12698_vm4, %v12676_v8  ;;  %v11301_v57 = vmul.f32 %v21757_v43, %v11219_v0  ;;  %v11300_v17 = vmul.f32 %v21760_v26, %v11217_v56 }
 0x8b9   : > { %12192 = vrot.lane.b32.xlu1 %v21264_v24, %s17915_s24  ;;  %12190 = vrot.lane.b32.xlu0 %v21267_v45, %s17915_s24 }
 0x8ba   : > { %v11333_v13 = vadd.f32 %v11301_v57, %v11077_v1  ;;  %v11332_v26 = vadd.f32 %v11300_v17, %v11076_v52 }
 0x8bb   : > { %v11411_v3 = vpop.permute.xlu1 %11410  ;;  %v11409_v60 = vpop.permute.xlu0 %11408 }
 0x8bc   : > { %v11493_v37 = vmul.f32 %v21771_v49, %v11411_v3  ;;  %v11492_v46 = vmul.f32 %v21774_v31, %v11409_v60 }
 0x8bd   : > { %12384 = vrot.lane.b32.xlu1 %v21264_v24, %s17916_s25  ;;  %12382 = vrot.lane.b32.xlu0 %v21267_v45, %s17916_s25 }
 0x8be   : > { %v11525_v23 = vadd.f32 %v11493_v37, %v11333_v13  ;;  %v11524_v35 = vadd.f32 %v11492_v46, %v11332_v26 }
 0x8bf   : > { %v11604_v30 = vpop.permute.xlu1 %11603  ;;  %v11602_v42 = vpop.permute.xlu0 %11601 }
 0x8c0   : > { %v11686_v7 = vmul.f32 %v21821_v14, %v11604_v30  ;;  %v11685_v58 = vmul.f32 %v21824_v62, %v11602_v42  ;;  %v21919_v30 = vld [vmem:[%s21390_s9 + $0xca] sm:$0xff]  ;;  %v21922_v42 = vld [vmem:[%s21390_s9 + $0xc2] sm:$0xff] }
 0x8c1   : > { %12576 = vrot.lane.b32.xlu1 %v21264_v24, %s17917_s26  ;;  %12574 = vrot.lane.b32.xlu0 %v21267_v45, %s17917_s26 }
 0x8c2   : > { %v11718_v33 = vadd.f32 %v11686_v7, %v11525_v23  ;;  %v11717_v39 = vadd.f32 %v11685_v58, %v11524_v35 }
 0x8c3   : > { %v11796_v51 = vpop.permute.xlu1 %11795  ;;  %v11794_v48 = vpop.permute.xlu0 %11793 }
 0x8c4   : > { %v11878_v40 = vmul.f32 %v21831_v38, %v11796_v51  ;;  %v11877_v6 = vmul.f32 %v21834_v15, %v11794_v48 }
 0x8c5   : > { %11234 = vrot.lane.b32.xlu1 %v21274_v54, %s17911_s20  ;;  %11232 = vrot.lane.b32.xlu0 %v21277_v61, %s17911_s20 }
 0x8c6   : > { %v11910_v27 = vadd.f32 %v11878_v40, %v11718_v33  ;;  %v11909_v29 = vadd.f32 %v11877_v6, %v11717_v39  ;;  %v11079_v33 = vmul.f32 %v21821_v14, %v21241_v50  ;;  %v11078_v39 = vmul.f32 %v21824_v62, %v21244_v16 }
 0x8c7   : > { %v11988_v44 = vpop.permute.xlu1 %11987  ;;  %v11986_v43 = vpop.permute.xlu0 %11985 }
 0x8c8   : > { %v12070_v36 = vmul.f32 %v21845_v32, %v11988_v44  ;;  %v12069_v10 = vmul.f32 %v21848_v18, %v11986_v43 }
 0x8c9   : > { %11426 = vrot.lane.b32.xlu1 %v21274_v54, %s17910_s19  ;;  %11424 = vrot.lane.b32.xlu0 %v21277_v61, %s17910_s19 }
 0x8ca   : > { %v12102_v0 = vadd.f32 %v12070_v36, %v11910_v27  ;;  %v12101_v56 = vadd.f32 %v12069_v10, %v11909_v29 }
 0x8cb   : > { %v12181_v49 = vpop.permute.xlu1 %12180  ;;  %v12179_v31 = vpop.permute.xlu0 %12178 }
 0x8cc   : > { %v12263_v59 = vmul.f32 %v21895_v11, %v12181_v49  ;;  %v12262_v34 = vmul.f32 %v21898_v4, %v12179_v31 }
 0x8cd   : > { %11619 = vrot.lane.b32.xlu1 %v21274_v54, %s17912_s21  ;;  %11617 = vrot.lane.b32.xlu0 %v21277_v61, %s17912_s21 }
 0x8ce   : > { %v12295_v51 = vadd.f32 %v12263_v59, %v12102_v0  ;;  %v12294_v48 = vadd.f32 %v12262_v34, %v12101_v56 }
 0x8cf   : > { %v12373_v12 = vpop.permute.xlu1 %12372  ;;  %v12371_v8 = vpop.permute.xlu0 %12370 }
 0x8d0   : > { %v12455_v3 = vmul.f32 %v21905_v63, %v12373_v12  ;;  %v12454_v60 = vmul.f32 %v21908_v47, %v12371_v8 }
 0x8d1   : > { %11811 = vrot.lane.b32.xlu1 %v21274_v54, %s17913_s22  ;;  %11809 = vrot.lane.b32.xlu0 %v21277_v61, %s17913_s22 }
 0x8d2   : > { %v12487_v1 = vadd.f32 %v12455_v3, %v12295_v51  ;;  %v12486_v52 = vadd.f32 %v12454_v60, %v12294_v48  ;;  %v21969_v3 = vld [vmem:[%s21390_s9 + $0xe0] sm:$0xff]  ;;  %v21972_v60 = vld [vmem:[%s21390_s9 + $0xd8] sm:$0xff] }
 0x8d3   : > { %v12565_v57 = vpop.permute.xlu1 %12564  ;;  %v12563_v17 = vpop.permute.xlu0 %12562  ;;  %v21979_v51 = vld [vmem:[%s21390_s9 + $0xe1] sm:$0xff]  ;;  %v21982_v48 = vld [vmem:[%s21390_s9 + $0xd9] sm:$0xff] }
 0x8d4   : > { %v12647_v37 = vmul.f32 %v21919_v30, %v12565_v57  ;;  %v12646_v46 = vmul.f32 %v21922_v42, %v12563_v17 }
 0x8d5   : > { %12003 = vrot.lane.b32.xlu1 %v21274_v54, %s17914_s23  ;;  %12001 = vrot.lane.b32.xlu0 %v21277_v61, %s17914_s23 }
 0x8d6   : > { %v12679_v44 = vadd.f32 %v12647_v37, %v12487_v1  ;;  %v12678_v43 = vadd.f32 %v12646_v46, %v12486_v52 }
 0x8d7   : > { %v11223_v13 = vpop.permute.xlu1 %11222  ;;  %v11221_v26 = vpop.permute.xlu0 %11220 }
 0x8d8   : > { %12712 = vst.msk [vmem:[%s21464_s12 + $0x68] sm:$0xff] %vm12698_vm4, %v12679_v44  ;;  %12711 = vst.msk [vmem:[%s21464_s12 + $0x60] sm:$0xff] %vm12698_vm4, %v12678_v43  ;;  %v11303_v49 = vmul.f32 %v21831_v38, %v11223_v13  ;;  %v11302_v31 = vmul.f32 %v21834_v15, %v11221_v26 }
 0x8d9   : > { %12196 = vrot.lane.b32.xlu1 %v21274_v54, %s17915_s24  ;;  %12194 = vrot.lane.b32.xlu0 %v21277_v61, %s17915_s24 }
 0x8da   : > { %v11335_v29 = vadd.f32 %v11303_v49, %v11079_v33  ;;  %v11334_v15 = vadd.f32 %v11302_v31, %v11078_v39 }
 0x8db   : > { %v11415_v7 = vpop.permute.xlu1 %11414  ;;  %v11413_v58 = vpop.permute.xlu0 %11412 }
 0x8dc   : > { %v11495_v36 = vmul.f32 %v21845_v32, %v11415_v7  ;;  %v11494_v10 = vmul.f32 %v21848_v18, %v11413_v58  ;;  %v21993_v7 = vld [vmem:[%s21390_s9 + $0xe2] sm:$0xff]  ;;  %v21996_v58 = vld [vmem:[%s21390_s9 + $0xda] sm:$0xff] }
 0x8dd   : > { %12388 = vrot.lane.b32.xlu1 %v21274_v54, %s17916_s25  ;;  %12386 = vrot.lane.b32.xlu0 %v21277_v61, %s17916_s25 }
 0x8de   : > { %v11527_v50 = vadd.f32 %v11495_v36, %v11335_v29  ;;  %v11526_v16 = vadd.f32 %v11494_v10, %v11334_v15 }
 0x8df   : > { %v11608_v23 = vpop.permute.xlu1 %11607  ;;  %v11606_v35 = vpop.permute.xlu0 %11605 }
 0x8e0   : > { %v11688_v59 = vmul.f32 %v21895_v11, %v11608_v23  ;;  %v11687_v34 = vmul.f32 %v21898_v4, %v11606_v35 }
 0x8e1   : > { %12580 = vrot.lane.b32.xlu1 %v21274_v54, %s17917_s26  ;;  %12578 = vrot.lane.b32.xlu0 %v21277_v61, %s17917_s26 }
 0x8e2   : > { %v11720_v12 = vadd.f32 %v11688_v59, %v11527_v50  ;;  %v11719_v8 = vadd.f32 %v11687_v34, %v11526_v16 }
 0x8e3   : > { %v11800_v40 = vpop.permute.xlu1 %11799  ;;  %v11798_v6 = vpop.permute.xlu0 %11797 }
 0x8e4   : > { %v11880_v14 = vmul.f32 %v21905_v63, %v11800_v40  ;;  %v11879_v62 = vmul.f32 %v21908_v47, %v11798_v6 }
 0x8e5   : > { %11238 = vrot.lane.b32.xlu1 %v21284_v9, %s17911_s20  ;;  %11236 = vrot.lane.b32.xlu0 %v21287_v55, %s17911_s20 }
 0x8e6   : > { %v11912_v57 = vadd.f32 %v11880_v14, %v11720_v12  ;;  %v11911_v17 = vadd.f32 %v11879_v62, %v11719_v8 }
 0x8e7   : > { %v11992_v27 = vpop.permute.xlu1 %11991  ;;  %v11990_v38 = vpop.permute.xlu0 %11989 }
 0x8e8   : > { %v12072_v0 = vmul.f32 %v21919_v30, %v11992_v27  ;;  %v12071_v56 = vmul.f32 %v21922_v42, %v11990_v38 }
 0x8e9   : > { %11430 = vrot.lane.b32.xlu1 %v21284_v9, %s17910_s19  ;;  %11428 = vrot.lane.b32.xlu0 %v21287_v55, %s17910_s19 }
 0x8ea   : > { %v12104_v44 = vadd.f32 %v12072_v0, %v11912_v57  ;;  %v12103_v43 = vadd.f32 %v12071_v56, %v11911_v17 }
 0x8eb   : > { %v12185_v32 = vpop.permute.xlu1 %12184  ;;  %v12183_v18 = vpop.permute.xlu0 %12182 }
 0x8ec   : > { %v12265_v1 = vmul.f32 %v21969_v3, %v12185_v32  ;;  %v12264_v52 = vmul.f32 %v21972_v60, %v12183_v18  ;;  %v11081_v32 = vmul.f32 %v21895_v11, %v21251_v20  ;;  %v11080_v18 = vmul.f32 %v21898_v4, %v21254_v41 }
 0x8ed   : > { %11623 = vrot.lane.b32.xlu1 %v21284_v9, %s17912_s21  ;;  %11621 = vrot.lane.b32.xlu0 %v21287_v55, %s17912_s21 }
 0x8ee   : > { %v12297_v23 = vadd.f32 %v12265_v1, %v12104_v44  ;;  %v12296_v35 = vadd.f32 %v12264_v52, %v12103_v43  ;;  %v22043_v44 = vld [vmem:[%s21390_s9 + $0xf8] sm:$0xff]  ;;  %v22046_v43 = vld [vmem:[%s21390_s9 + $0xf0] sm:$0xff] }
 0x8ef   : > { %v12377_v37 = vpop.permute.xlu1 %12376  ;;  %v12375_v46 = vpop.permute.xlu0 %12374 }
 0x8f0   : > { %v12457_v13 = vmul.f32 %v21979_v51, %v12377_v37  ;;  %v12456_v26 = vmul.f32 %v21982_v48, %v12375_v46 }
 0x8f1   : > { %11815 = vrot.lane.b32.xlu1 %v21284_v9, %s17913_s22  ;;  %11813 = vrot.lane.b32.xlu0 %v21287_v55, %s17913_s22 }
 0x8f2   : > { %v12489_v49 = vadd.f32 %v12457_v13, %v12297_v23  ;;  %v12488_v31 = vadd.f32 %v12456_v26, %v12296_v35  ;;  %v22053_v13 = vld [vmem:[%s21390_s9 + $0xf9] sm:$0xff]  ;;  %v22056_v26 = vld [vmem:[%s21390_s9 + $0xf1] sm:$0xff] }
 0x8f3   : > { %v12569_v40 = vpop.permute.xlu1 %12568  ;;  %v12567_v6 = vpop.permute.xlu0 %12566 }
 0x8f4   : > { %v12649_v33 = vmul.f32 %v21993_v7, %v12569_v40  ;;  %v12648_v39 = vmul.f32 %v21996_v58, %v12567_v6 }
 0x8f5   : > { %12007 = vrot.lane.b32.xlu1 %v21284_v9, %s17914_s23  ;;  %12005 = vrot.lane.b32.xlu0 %v21287_v55, %s17914_s23 }
 0x8f6   : > { %v12681_v36 = vadd.f32 %v12649_v33, %v12489_v49  ;;  %v12680_v10 = vadd.f32 %v12648_v39, %v12488_v31 }
 0x8f7   : > { %v11227_v27 = vpop.permute.xlu1 %11226  ;;  %v11225_v38 = vpop.permute.xlu0 %11224 }
 0x8f8   : > { %12714 = vst.msk [vmem:[%s21464_s12 + $0x78] sm:$0xff] %vm12698_vm4, %v12681_v36  ;;  %12713 = vst.msk [vmem:[%s21464_s12 + $0x70] sm:$0xff] %vm12698_vm4, %v12680_v10  ;;  %v11305_v14 = vmul.f32 %v21905_v63, %v11227_v27  ;;  %v11304_v62 = vmul.f32 %v21908_v47, %v11225_v38  ;;  %v22067_v27 = vld [vmem:[%s21390_s9 + $0xfa] sm:$0xff]  ;;  %v22070_v38 = vld [vmem:[%s21390_s9 + $0xf2] sm:$0xff] }
 0x8f9   : > { %12200 = vrot.lane.b32.xlu1 %v21284_v9, %s17915_s24  ;;  %12198 = vrot.lane.b32.xlu0 %v21287_v55, %s17915_s24 }
 0x8fa   : > { %v11337_v56 = vadd.f32 %v11305_v14, %v11081_v32  ;;  %v11336_v47 = vadd.f32 %v11304_v62, %v11080_v18 }
 0x8fb   : > { %v11419_v29 = vpop.permute.xlu1 %11418  ;;  %v11417_v15 = vpop.permute.xlu0 %11416 }
 0x8fc   : > { %v11497_v12 = vmul.f32 %v21919_v30, %v11419_v29  ;;  %v11496_v8 = vmul.f32 %v21922_v42, %v11417_v15 }
 0x8fd   : > { %12392 = vrot.lane.b32.xlu1 %v21284_v9, %s17916_s25  ;;  %12390 = vrot.lane.b32.xlu0 %v21287_v55, %s17916_s25 }
 0x8fe   : > { %v11529_v20 = vadd.f32 %v11497_v12, %v11337_v56  ;;  %v11528_v41 = vadd.f32 %v11496_v8, %v11336_v47 }
 0x8ff   : > { %v11612_v59 = vpop.permute.xlu1 %11611  ;;  %v11610_v34 = vpop.permute.xlu0 %11609 }
 0x900   : > { %v11690_v57 = vmul.f32 %v21969_v3, %v11612_v59  ;;  %v11689_v17 = vmul.f32 %v21972_v60, %v11610_v34 }
 0x901   : > { %12584 = vrot.lane.b32.xlu1 %v21284_v9, %s17917_s26  ;;  %12582 = vrot.lane.b32.xlu0 %v21287_v55, %s17917_s26 }
 0x902   : > { %v11722_v1 = vadd.f32 %v11690_v57, %v11529_v20  ;;  %v11721_v52 = vadd.f32 %v11689_v17, %v11528_v41 }
 0x903   : > { %v11804_v50 = vpop.permute.xlu1 %11803  ;;  %v11802_v16 = vpop.permute.xlu0 %11801 }
 0x904   : > { %v11882_v11 = vmul.f32 %v21979_v51, %v11804_v50  ;;  %v11881_v4 = vmul.f32 %v21982_v48, %v11802_v16 }
 0x905   : > { %11242 = vrot.lane.b32.xlu1 %v21294_v2, %s17911_s20  ;;  %11240 = vrot.lane.b32.xlu0 %v21297_v25, %s17911_s20 }
 0x906   : > { %v11914_v23 = vadd.f32 %v11882_v11, %v11722_v1  ;;  %v11913_v35 = vadd.f32 %v11881_v4, %v11721_v52  ;;  %v11083_v11 = vmul.f32 %v21969_v3, %v21264_v24  ;;  %v11082_v4 = vmul.f32 %v21972_v60, %v21267_v45 }
 0x907   : > { %v11996_v0 = vpop.permute.xlu1 %11995  ;;  %v11994_v63 = vpop.permute.xlu0 %11993 }
 0x908   : > { %v12074_v37 = vmul.f32 %v21993_v7, %v11996_v0  ;;  %v12073_v46 = vmul.f32 %v21996_v58, %v11994_v63 }
 0x909   : > { %11434 = vrot.lane.b32.xlu1 %v21294_v2, %s17910_s19  ;;  %11432 = vrot.lane.b32.xlu0 %v21297_v25, %s17910_s19 }
 0x90a   : > { %v12106_v33 = vadd.f32 %v12074_v37, %v11914_v23  ;;  %v12105_v39 = vadd.f32 %v12073_v46, %v11913_v35 }
 0x90b   : > { %v12189_v30 = vpop.permute.xlu1 %12188  ;;  %v12187_v42 = vpop.permute.xlu0 %12186 }
 0x90c   : > { %v12267_v40 = vmul.f32 %v22043_v44, %v12189_v30  ;;  %v12266_v6 = vmul.f32 %v22046_v43, %v12187_v42 }
 0x90d   : > { %11627 = vrot.lane.b32.xlu1 %v21294_v2, %s17912_s21  ;;  %11625 = vrot.lane.b32.xlu0 %v21297_v25, %s17912_s21 }
 0x90e   : > { %v12299_v29 = vadd.f32 %v12267_v40, %v12106_v33  ;;  %v12298_v15 = vadd.f32 %v12266_v6, %v12105_v39  ;;  %v22127_v33 = vld [vmem:[%s21390_s9 + $0x111] sm:$0xff]  ;;  %v22130_v39 = vld [vmem:[%s21390_s9 + $0x109] sm:$0xff] }
 0x90f   : > { %v12381_v49 = vpop.permute.xlu1 %12380  ;;  %v12379_v31 = vpop.permute.xlu0 %12378 }
 0x910   : > { %v12459_v36 = vmul.f32 %v22053_v13, %v12381_v49  ;;  %v12458_v10 = vmul.f32 %v22056_v26, %v12379_v31  ;;  %v22117_v49 = vld [vmem:[%s21390_s9 + $0x110] sm:$0xff]  ;;  %v22120_v31 = vld [vmem:[%s21390_s9 + $0x108] sm:$0xff] }
 0x911   : > { %11819 = vrot.lane.b32.xlu1 %v21294_v2, %s17913_s22  ;;  %11817 = vrot.lane.b32.xlu0 %v21297_v25, %s17913_s22 }
 0x912   : > { %v12491_v50 = vadd.f32 %v12459_v36, %v12299_v29  ;;  %v12490_v16 = vadd.f32 %v12458_v10, %v12298_v15 }
 0x913   : > { %v12573_v59 = vpop.permute.xlu1 %12572  ;;  %v12571_v34 = vpop.permute.xlu0 %12570 }
 0x914   : > { %v12651_v14 = vmul.f32 %v22067_v27, %v12573_v59  ;;  %v12650_v62 = vmul.f32 %v22070_v38, %v12571_v34 }
 0x915   : > { %12011 = vrot.lane.b32.xlu1 %v21294_v2, %s17914_s23  ;;  %12009 = vrot.lane.b32.xlu0 %v21297_v25, %s17914_s23 }
 0x916   : > { %v12683_v32 = vadd.f32 %v12651_v14, %v12491_v50  ;;  %v12682_v18 = vadd.f32 %v12650_v62, %v12490_v16 }
 0x917   : > { %v11231_v12 = vpop.permute.xlu1 %11230  ;;  %v11229_v8 = vpop.permute.xlu0 %11228 }
 0x918   : > { %12716 = vst.msk [vmem:[%s21464_s12 + $0x88] sm:$0xff] %vm12698_vm4, %v12683_v32  ;;  %12715 = vst.msk [vmem:[%s21464_s12 + $0x80] sm:$0xff] %vm12698_vm4, %v12682_v18  ;;  %v11307_v20 = vmul.f32 %v21979_v51, %v11231_v12  ;;  %v11306_v41 = vmul.f32 %v21982_v48, %v11229_v8  ;;  %v22141_v32 = vld [vmem:[%s21390_s9 + $0x112] sm:$0xff]  ;;  %v22144_v18 = vld [vmem:[%s21390_s9 + $0x10a] sm:$0xff] }
 0x919   : > { %12204 = vrot.lane.b32.xlu1 %v21294_v2, %s17915_s24  ;;  %12202 = vrot.lane.b32.xlu0 %v21297_v25, %s17915_s24 }
 0x91a   : > { %v11339_v52 = vadd.f32 %v11307_v20, %v11083_v11  ;;  %v11338_v48 = vadd.f32 %v11306_v41, %v11082_v4 }
 0x91b   : > { %v11423_v0 = vpop.permute.xlu1 %11422  ;;  %v11421_v63 = vpop.permute.xlu0 %11420 }
 0x91c   : > { %v11499_v30 = vmul.f32 %v21993_v7, %v11423_v0  ;;  %v11498_v42 = vmul.f32 %v21996_v58, %v11421_v63 }
 0x91d   : > { %12396 = vrot.lane.b32.xlu1 %v21294_v2, %s17916_s25  ;;  %12394 = vrot.lane.b32.xlu0 %v21297_v25, %s17916_s25 }
 0x91e   : > { %v11531_v24 = vadd.f32 %v11499_v30, %v11339_v52  ;;  %v11530_v45 = vadd.f32 %v11498_v42, %v11338_v48 }
 0x91f   : > { %v11616_v56 = vpop.permute.xlu1 %11615  ;;  %v11614_v47 = vpop.permute.xlu0 %11613 }
 0x920   : > { %v11692_v37 = vmul.f32 %v22043_v44, %v11616_v56  ;;  %v11691_v46 = vmul.f32 %v22046_v43, %v11614_v47 }
 0x921   : > { %12588 = vrot.lane.b32.xlu1 %v21294_v2, %s17917_s26  ;;  %12586 = vrot.lane.b32.xlu0 %v21297_v25, %s17917_s26 }
 0x922   : > { %v11724_v23 = vadd.f32 %v11692_v37, %v11531_v24  ;;  %v11723_v35 = vadd.f32 %v11691_v46, %v11530_v45  ;;  %v11085_v24 = vmul.f32 %v22043_v44, %v21274_v54  ;;  %v11084_v45 = vmul.f32 %v22046_v43, %v21277_v61 }
 0x923   : > { %v11808_v57 = vpop.permute.xlu1 %11807  ;;  %v11806_v17 = vpop.permute.xlu0 %11805 }
 0x924   : > { %v11884_v3 = vmul.f32 %v22053_v13, %v11808_v57  ;;  %v11883_v60 = vmul.f32 %v22056_v26, %v11806_v17 }
 0x925   : > { %11246 = vrot.lane.b32.xlu1 %v21304_v5, %s17911_s20  ;;  %11244 = vrot.lane.b32.xlu0 %v21307_v28, %s17911_s20 }
 0x926   : > { %v11916_v36 = vadd.f32 %v11884_v3, %v11724_v23  ;;  %v11915_v10 = vadd.f32 %v11883_v60, %v11723_v35 }
 0x927   : > { %v12000_v1 = vpop.permute.xlu1 %11999  ;;  %v11998_v51 = vpop.permute.xlu0 %11997 }
 0x928   : > { %v12076_v40 = vmul.f32 %v22067_v27, %v12000_v1  ;;  %v12075_v6 = vmul.f32 %v22070_v38, %v11998_v51 }
 0x929   : > { %11438 = vrot.lane.b32.xlu1 %v21304_v5, %s17910_s19  ;;  %11436 = vrot.lane.b32.xlu0 %v21307_v28, %s17910_s19 }
 0x92a   : > { %v12108_v50 = vadd.f32 %v12076_v40, %v11916_v36  ;;  %v12107_v16 = vadd.f32 %v12075_v6, %v11915_v10 }
 0x92b   : > { %v12193_v7 = vpop.permute.xlu1 %12192  ;;  %v12191_v58 = vpop.permute.xlu0 %12190 }
 0x92c   : > { %v12269_v29 = vmul.f32 %v22117_v49, %v12193_v7  ;;  %v12268_v15 = vmul.f32 %v22120_v31, %v12191_v58 }
 0x92d   : > { %11631 = vrot.lane.b32.xlu1 %v21304_v5, %s17912_s21  ;;  %11629 = vrot.lane.b32.xlu0 %v21307_v28, %s17912_s21 }
 0x92e   : > { %v12301_v12 = vadd.f32 %v12269_v29, %v12108_v50  ;;  %v12300_v8 = vadd.f32 %v12268_v15, %v12107_v16  ;;  %v22191_v29 = vld [vmem:[%s21390_s9 + $0x128] sm:$0xff]  ;;  %v22194_v15 = vld [vmem:[%s21390_s9 + $0x120] sm:$0xff] }
 0x92f   : > { %v12385_v59 = vpop.permute.xlu1 %12384  ;;  %v12383_v34 = vpop.permute.xlu0 %12382 }
 0x930   : > { %v12461_v14 = vmul.f32 %v22127_v33, %v12385_v59  ;;  %v12460_v62 = vmul.f32 %v22130_v39, %v12383_v34  ;;  %v22201_v59 = vld [vmem:[%s21390_s9 + $0x129] sm:$0xff]  ;;  %v22204_v34 = vld [vmem:[%s21390_s9 + $0x121] sm:$0xff] }
 0x931   : > { %11823 = vrot.lane.b32.xlu1 %v21304_v5, %s17913_s22  ;;  %11821 = vrot.lane.b32.xlu0 %v21307_v28, %s17913_s22 }
 0x932   : > { %v12493_v56 = vadd.f32 %v12461_v14, %v12301_v12  ;;  %v12492_v47 = vadd.f32 %v12460_v62, %v12300_v8 }
 0x933   : > { %v12577_v0 = vpop.permute.xlu1 %12576  ;;  %v12575_v63 = vpop.permute.xlu0 %12574 }
 0x934   : > { %v12653_v57 = vmul.f32 %v22141_v32, %v12577_v0  ;;  %v12652_v17 = vmul.f32 %v22144_v18, %v12575_v63 }
 0x935   : > { %12015 = vrot.lane.b32.xlu1 %v21304_v5, %s17914_s23  ;;  %12013 = vrot.lane.b32.xlu0 %v21307_v28, %s17914_s23 }
 0x936   : > { %v12685_v20 = vadd.f32 %v12653_v57, %v12493_v56  ;;  %v12684_v41 = vadd.f32 %v12652_v17, %v12492_v47  ;;  %v22215_v57 = vld [vmem:[%s21390_s9 + $0x12a] sm:$0xff]  ;;  %v22218_v17 = vld [vmem:[%s21390_s9 + $0x122] sm:$0xff] }
 0x937   : > { %v11235_v11 = vpop.permute.xlu1 %11234  ;;  %v11233_v4 = vpop.permute.xlu0 %11232 }
 0x938   : > { %12718 = vst.msk [vmem:[%s21464_s12 + $0x98] sm:$0xff] %vm12698_vm4, %v12685_v20  ;;  %12717 = vst.msk [vmem:[%s21464_s12 + $0x90] sm:$0xff] %vm12698_vm4, %v12684_v41  ;;  %v11309_v37 = vmul.f32 %v22053_v13, %v11235_v11  ;;  %v11308_v46 = vmul.f32 %v22056_v26, %v11233_v4 }
 0x939   : > { %12208 = vrot.lane.b32.xlu1 %v21304_v5, %s17915_s24  ;;  %12206 = vrot.lane.b32.xlu0 %v21307_v28, %s17915_s24 }
 0x93a   : > { %v11341_v58 = vadd.f32 %v11309_v37, %v11085_v24  ;;  %v11340_v26 = vadd.f32 %v11308_v46, %v11084_v45 }
 0x93b   : > { %v11427_v30 = vpop.permute.xlu1 %11426  ;;  %v11425_v42 = vpop.permute.xlu0 %11424 }
 0x93c   : > { %v11501_v3 = vmul.f32 %v22067_v27, %v11427_v30  ;;  %v11500_v60 = vmul.f32 %v22070_v38, %v11425_v42 }
 0x93d   : > { %12400 = vrot.lane.b32.xlu1 %v21304_v5, %s17916_s25  ;;  %12398 = vrot.lane.b32.xlu0 %v21307_v28, %s17916_s25 }
 0x93e   : > { %v11533_v54 = vadd.f32 %v11501_v3, %v11341_v58  ;;  %v11532_v61 = vadd.f32 %v11500_v60, %v11340_v26 }
 0x93f   : > { %v11620_v1 = vpop.permute.xlu1 %11619  ;;  %v11618_v51 = vpop.permute.xlu0 %11617 }
 0x940   : > { %v11694_v23 = vmul.f32 %v22117_v49, %v11620_v1  ;;  %v11693_v35 = vmul.f32 %v22120_v31, %v11618_v51 }
 0x941   : > { %12592 = vrot.lane.b32.xlu1 %v21304_v5, %s17917_s26  ;;  %12590 = vrot.lane.b32.xlu0 %v21307_v28, %s17917_s26 }
 0x942   : > { %v11726_v40 = vadd.f32 %v11694_v23, %v11533_v54  ;;  %v11725_v6 = vadd.f32 %v11693_v35, %v11532_v61  ;;  %v11087_v23 = vmul.f32 %v22117_v49, %v21284_v9  ;;  %v11086_v35 = vmul.f32 %v22120_v31, %v21287_v55 }
 0x943   : > { %v11812_v52 = vpop.permute.xlu1 %11811  ;;  %v11810_v48 = vpop.permute.xlu0 %11809 }
 0x944   : > { %v11886_v44 = vmul.f32 %v22127_v33, %v11812_v52  ;;  %v11885_v43 = vmul.f32 %v22130_v39, %v11810_v48 }
 0x945   : > { %11250 = vrot.lane.b32.xlu1 %v21314_v53, %s17911_s20  ;;  %11248 = vrot.lane.b32.xlu0 %v21317_v21, %s17911_s20 }
 0x946   : > { %v11918_v50 = vadd.f32 %v11886_v44, %v11726_v40  ;;  %v11917_v16 = vadd.f32 %v11885_v43, %v11725_v6 }
 0x947   : > { %v12004_v7 = vpop.permute.xlu1 %12003  ;;  %v12002_v13 = vpop.permute.xlu0 %12001 }
 0x948   : > { %v12078_v36 = vmul.f32 %v22141_v32, %v12004_v7  ;;  %v12077_v10 = vmul.f32 %v22144_v18, %v12002_v13 }
 0x949   : > { %11442 = vrot.lane.b32.xlu1 %v21314_v53, %s17910_s19  ;;  %11440 = vrot.lane.b32.xlu0 %v21317_v21, %s17910_s19 }
 0x94a   : > { %v12110_v0 = vadd.f32 %v12078_v36, %v11918_v50  ;;  %v12109_v63 = vadd.f32 %v12077_v10, %v11917_v16  ;;  %v22265_v50 = vld [vmem:[%s21390_s9 + $0x140] sm:$0xff]  ;;  %v22268_v16 = vld [vmem:[%s21390_s9 + $0x138] sm:$0xff] }
 0x94b   : > { %v12197_v27 = vpop.permute.xlu1 %12196  ;;  %v12195_v38 = vpop.permute.xlu0 %12194 }
 0x94c   : > { %v12271_v14 = vmul.f32 %v22191_v29, %v12197_v27  ;;  %v12270_v62 = vmul.f32 %v22194_v15, %v12195_v38 }
 0x94d   : > { %11635 = vrot.lane.b32.xlu1 %v21314_v53, %s17912_s21  ;;  %11633 = vrot.lane.b32.xlu0 %v21317_v21, %s17912_s21 }
 0x94e   : > { %v12303_v20 = vadd.f32 %v12271_v14, %v12110_v0  ;;  %v12302_v41 = vadd.f32 %v12270_v62, %v12109_v63  ;;  %v22275_v14 = vld [vmem:[%s21390_s9 + $0x141] sm:$0xff]  ;;  %v22278_v62 = vld [vmem:[%s21390_s9 + $0x139] sm:$0xff] }
 0x94f   : > { %v12389_v12 = vpop.permute.xlu1 %12388  ;;  %v12387_v8 = vpop.permute.xlu0 %12386 }
 0x950   : > { %v12463_v56 = vmul.f32 %v22201_v59, %v12389_v12  ;;  %v12462_v47 = vmul.f32 %v22204_v34, %v12387_v8 }
 0x951   : > { %11827 = vrot.lane.b32.xlu1 %v21314_v53, %s17913_s22  ;;  %11825 = vrot.lane.b32.xlu0 %v21317_v21, %s17913_s22 }
 0x952   : > { %v12495_v30 = vadd.f32 %v12463_v56, %v12303_v20  ;;  %v12494_v42 = vadd.f32 %v12462_v47, %v12302_v41 }
 0x953   : > { %v12581_v11 = vpop.permute.xlu1 %12580  ;;  %v12579_v4 = vpop.permute.xlu0 %12578 }
 0x954   : > { %v12655_v1 = vmul.f32 %v22215_v57, %v12581_v11  ;;  %v12654_v51 = vmul.f32 %v22218_v17, %v12579_v4 }
 0x955   : > { %12019 = vrot.lane.b32.xlu1 %v21314_v53, %s17914_s23  ;;  %12017 = vrot.lane.b32.xlu0 %v21317_v21, %s17914_s23 }
 0x956   : > { %v12687_v52 = vadd.f32 %v12655_v1, %v12495_v30  ;;  %v12686_v48 = vadd.f32 %v12654_v51, %v12494_v42  ;;  %v22289_v30 = vld [vmem:[%s21390_s9 + $0x142] sm:$0xff]  ;;  %v22292_v42 = vld [vmem:[%s21390_s9 + $0x13a] sm:$0xff] }
 0x957   : > { %v11239_v37 = vpop.permute.xlu1 %11238  ;;  %v11237_v46 = vpop.permute.xlu0 %11236 }
 0x958   : > { %12720 = vst.msk [vmem:[%s21464_s12 + $0xa8] sm:$0xff] %vm12698_vm4, %v12687_v52  ;;  %12719 = vst.msk [vmem:[%s21464_s12 + $0xa0] sm:$0xff] %vm12698_vm4, %v12686_v48  ;;  %v11311_v58 = vmul.f32 %v22127_v33, %v11239_v37  ;;  %v11310_v26 = vmul.f32 %v22130_v39, %v11237_v46 }
 0x959   : > { %12212 = vrot.lane.b32.xlu1 %v21314_v53, %s17915_s24  ;;  %12210 = vrot.lane.b32.xlu0 %v21317_v21, %s17915_s24 }
 0x95a   : > { %v11343_v43 = vadd.f32 %v11311_v58, %v11087_v23  ;;  %v11342_v39 = vadd.f32 %v11310_v26, %v11086_v35 }
 0x95b   : > { %v11431_v24 = vpop.permute.xlu1 %11430  ;;  %v11429_v45 = vpop.permute.xlu0 %11428 }
 0x95c   : > { %v11503_v54 = vmul.f32 %v22141_v32, %v11431_v24  ;;  %v11502_v61 = vmul.f32 %v22144_v18, %v11429_v45 }
 0x95d   : > { %12404 = vrot.lane.b32.xlu1 %v21314_v53, %s17916_s25  ;;  %12402 = vrot.lane.b32.xlu0 %v21317_v21, %s17916_s25 }
 0x95e   : > { %v11535_v9 = vadd.f32 %v11503_v54, %v11343_v43  ;;  %v11534_v55 = vadd.f32 %v11502_v61, %v11342_v39  ;;  %v11089_v43 = vmul.f32 %v22191_v29, %v21294_v2  ;;  %v11088_v39 = vmul.f32 %v22194_v15, %v21297_v25 }
 0x95f   : > { %v11624_v3 = vpop.permute.xlu1 %11623  ;;  %v11622_v60 = vpop.permute.xlu0 %11621 }
 0x960   : > { %v11696_v27 = vmul.f32 %v22191_v29, %v11624_v3  ;;  %v11695_v38 = vmul.f32 %v22194_v15, %v11622_v60 }
 0x961   : > { %12596 = vrot.lane.b32.xlu1 %v21314_v53, %s17917_s26  ;;  %12594 = vrot.lane.b32.xlu0 %v21317_v21, %s17917_s26 }
 0x962   : > { %v11728_v40 = vadd.f32 %v11696_v27, %v11535_v9  ;;  %v11727_v6 = vadd.f32 %v11695_v38, %v11534_v55 }
 0x963   : > { %v11816_v7 = vpop.permute.xlu1 %11815  ;;  %v11814_v13 = vpop.permute.xlu0 %11813 }
 0x964   : > { %v11888_v49 = vmul.f32 %v22201_v59, %v11816_v7  ;;  %v11887_v31 = vmul.f32 %v22204_v34, %v11814_v13 }
 0x965   : > { %11254 = vrot.lane.b32.xlu1 %v21324_v19, %s17911_s20  ;;  %11252 = vrot.lane.b32.xlu0 %v21327_v22, %s17911_s20 }
 0x966   : > { %v11920_v12 = vadd.f32 %v11888_v49, %v11728_v40  ;;  %v11919_v8 = vadd.f32 %v11887_v31, %v11727_v6 }
 0x967   : > { %v12008_v44 = vpop.permute.xlu1 %12007  ;;  %v12006_v33 = vpop.permute.xlu0 %12005 }
 0x968   : > { %v12080_v36 = vmul.f32 %v22215_v57, %v12008_v44  ;;  %v12079_v10 = vmul.f32 %v22218_v17, %v12006_v33 }
 0x969   : > { %11446 = vrot.lane.b32.xlu1 %v21324_v19, %s17910_s19  ;;  %11444 = vrot.lane.b32.xlu0 %v21327_v22, %s17910_s19 }
 0x96a   : > { %v12112_v20 = vadd.f32 %v12080_v36, %v11920_v12  ;;  %v12111_v41 = vadd.f32 %v12079_v10, %v11919_v8  ;;  %v22331_v36 = vld [vmem:[%s21390_s9 + $0x158] sm:$0xff]  ;;  %v22334_v10 = vld [vmem:[%s21390_s9 + $0x150] sm:$0xff] }
 0x96b   : > { %v12201_v32 = vpop.permute.xlu1 %12200  ;;  %v12199_v18 = vpop.permute.xlu0 %12198  ;;  %v22337_v12 = vld [vmem:[%s21390_s9 + $0x159] sm:$0xff]  ;;  %v22340_v8 = vld [vmem:[%s21390_s9 + $0x151] sm:$0xff] }
 0x96c   : > { %v12273_v0 = vmul.f32 %v22265_v50, %v12201_v32  ;;  %v12272_v63 = vmul.f32 %v22268_v16, %v12199_v18 }
 0x96d   : > { %11639 = vrot.lane.b32.xlu1 %v21324_v19, %s17912_s21  ;;  %11637 = vrot.lane.b32.xlu0 %v21327_v22, %s17912_s21 }
 0x96e   : > { %v12305_v1 = vadd.f32 %v12273_v0, %v12112_v20  ;;  %v12304_v51 = vadd.f32 %v12272_v63, %v12111_v41 }
 0x96f   : > { %v12393_v56 = vpop.permute.xlu1 %12392  ;;  %v12391_v47 = vpop.permute.xlu0 %12390 }
 0x970   : > { %v12465_v11 = vmul.f32 %v22275_v14, %v12393_v56  ;;  %v12464_v4 = vmul.f32 %v22278_v62, %v12391_v47 }
 0x971   : > { %11831 = vrot.lane.b32.xlu1 %v21324_v19, %s17913_s22  ;;  %11829 = vrot.lane.b32.xlu0 %v21327_v22, %s17913_s22 }
 0x972   : > { %v12497_v37 = vadd.f32 %v12465_v11, %v12305_v1  ;;  %v12496_v46 = vadd.f32 %v12464_v4, %v12304_v51 }
 0x973   : > { %v12585_v52 = vpop.permute.xlu1 %12584  ;;  %v12583_v48 = vpop.permute.xlu0 %12582 }
 0x974   : > { %v12657_v24 = vmul.f32 %v22289_v30, %v12585_v52  ;;  %v12656_v45 = vmul.f32 %v22292_v42, %v12583_v48  ;;  %v22347_v52 = vld [vmem:[%s21390_s9 + $0x15a] sm:$0xff]  ;;  %v22350_v48 = vld [vmem:[%s21390_s9 + $0x152] sm:$0xff] }
 0x975   : > { %12023 = vrot.lane.b32.xlu1 %v21324_v19, %s17914_s23  ;;  %12021 = vrot.lane.b32.xlu0 %v21327_v22, %s17914_s23 }
 0x976   : > { %v12689_v3 = vadd.f32 %v12657_v24, %v12497_v37  ;;  %v12688_v60 = vadd.f32 %v12656_v45, %v12496_v46 }
 0x977   : > { %v11243_v7 = vpop.permute.xlu1 %11242  ;;  %v11241_v13 = vpop.permute.xlu0 %11240 }
 0x978   : > { %12722 = vst.msk [vmem:[%s21464_s12 + $0xb8] sm:$0xff] %vm12698_vm4, %v12689_v3  ;;  %12721 = vst.msk [vmem:[%s21464_s12 + $0xb0] sm:$0xff] %vm12698_vm4, %v12688_v60  ;;  %v11313_v44 = vmul.f32 %v22201_v59, %v11243_v7  ;;  %v11312_v33 = vmul.f32 %v22204_v34, %v11241_v13 }
 0x979   : > { %12216 = vrot.lane.b32.xlu1 %v21324_v19, %s17915_s24  ;;  %12214 = vrot.lane.b32.xlu0 %v21327_v22, %s17915_s24 }
 0x97a   : > { %v11345_v49 = vadd.f32 %v11313_v44, %v11089_v43  ;;  %v11344_v31 = vadd.f32 %v11312_v33, %v11088_v39 }
 0x97b   : > { %v11435_v58 = vpop.permute.xlu1 %11434  ;;  %v11433_v26 = vpop.permute.xlu0 %11432 }
 0x97c   : > { %v11505_v27 = vmul.f32 %v22215_v57, %v11435_v58  ;;  %v11504_v38 = vmul.f32 %v22218_v17, %v11433_v26 }
 0x97d   : > { %12408 = vrot.lane.b32.xlu1 %v21324_v19, %s17916_s25  ;;  %12406 = vrot.lane.b32.xlu0 %v21327_v22, %s17916_s25 }
 0x97e   : > { %v11537_v2 = vadd.f32 %v11505_v27, %v11345_v49  ;;  %v11536_v29 = vadd.f32 %v11504_v38, %v11344_v31 }
 0x97f   : > { %v11628_v23 = vpop.permute.xlu1 %11627  ;;  %v11626_v35 = vpop.permute.xlu0 %11625 }
 0x980   : > { %v11698_v59 = vmul.f32 %v22265_v50, %v11628_v23  ;;  %v11697_v34 = vmul.f32 %v22268_v16, %v11626_v35 }
 0x981   : > { %12600 = vrot.lane.b32.xlu1 %v21324_v19, %s17917_s26  ;;  %12598 = vrot.lane.b32.xlu0 %v21327_v22, %s17917_s26 }
 0x982   : > { %v11730_v32 = vadd.f32 %v11698_v59, %v11537_v2  ;;  %v11729_v18 = vadd.f32 %v11697_v34, %v11536_v29 }
 0x983   : > { %v11820_v54 = vpop.permute.xlu1 %11819  ;;  %v11818_v61 = vpop.permute.xlu0 %11817 }
 0x984   : > { %v11890_v25 = vmul.f32 %v22275_v14, %v11820_v54  ;;  %v11889_v15 = vmul.f32 %v22278_v62, %v11818_v61 }
 0x986   : > { %v11922_v0 = vadd.f32 %v11890_v25, %v11730_v32  ;;  %v11921_v63 = vadd.f32 %v11889_v15, %v11729_v18  ;;  %v22373_v32 = vld [vmem:[%s21390_s9 + $0x170] sm:$0xff]  ;;  %v22376_v18 = vld [vmem:[%s21390_s9 + $0x168] sm:$0xff] }
 0x987   : > { %v12012_v9 = vpop.permute.xlu1 %12011  ;;  %v12010_v55 = vpop.permute.xlu0 %12009 }
 0x988   : > { %v12082_v40 = vmul.f32 %v22289_v30, %v12012_v9  ;;  %v12081_v6 = vmul.f32 %v22292_v42, %v12010_v55  ;;  %v11091_v9 = vmul.f32 %v22265_v50, %v21304_v5  ;;  %v11090_v55 = vmul.f32 %v22268_v16, %v21307_v28 }
 0x98a   : > { %v12114_v11 = vadd.f32 %v12082_v40, %v11922_v0  ;;  %v12113_v4 = vadd.f32 %v12081_v6, %v11921_v63  ;;  %v22379_v40 = vld [vmem:[%s21390_s9 + $0x171] sm:$0xff]  ;;  %v22382_v6 = vld [vmem:[%s21390_s9 + $0x169] sm:$0xff] }
 0x98b   : > { %v12205_v57 = vpop.permute.xlu1 %12204  ;;  %v12203_v17 = vpop.permute.xlu0 %12202 }
 0x98c   : > { %v12275_v56 = vmul.f32 %v22331_v36, %v12205_v57  ;;  %v12274_v47 = vmul.f32 %v22334_v10, %v12203_v17 }
 0x98e   : > { %v12307_v37 = vadd.f32 %v12275_v56, %v12114_v11  ;;  %v12306_v46 = vadd.f32 %v12274_v47, %v12113_v4 }
 0x98f   : > { %v12397_v20 = vpop.permute.xlu1 %12396  ;;  %v12395_v41 = vpop.permute.xlu0 %12394 }
 0x990   : > { %v12467_v1 = vmul.f32 %v22337_v12, %v12397_v20  ;;  %v12466_v51 = vmul.f32 %v22340_v8, %v12395_v41 }
 0x992   : > { %v12499_v3 = vadd.f32 %v12467_v1, %v12307_v37  ;;  %v12498_v60 = vadd.f32 %v12466_v51, %v12306_v46  ;;  %v22389_v37 = vld [vmem:[%s21390_s9 + $0x172] sm:$0xff]  ;;  %v22392_v46 = vld [vmem:[%s21390_s9 + $0x16a] sm:$0xff] }
 0x993   : > { %v12589_v24 = vpop.permute.xlu1 %12588  ;;  %v12587_v45 = vpop.permute.xlu0 %12586 }
 0x994   : > { %v12659_v7 = vmul.f32 %v22347_v52, %v12589_v24  ;;  %v12658_v13 = vmul.f32 %v22350_v48, %v12587_v45 }
 0x996   : > { %v12691_v58 = vadd.f32 %v12659_v7, %v12499_v3  ;;  %v12690_v26 = vadd.f32 %v12658_v13, %v12498_v60 }
 0x997   : > { %v11247_v23 = vpop.permute.xlu1 %11246  ;;  %v11245_v35 = vpop.permute.xlu0 %11244 }
 0x998   : > { %12724 = vst.msk [vmem:[%s21464_s12 + $0xc8] sm:$0xff] %vm12698_vm4, %v12691_v58  ;;  %12723 = vst.msk [vmem:[%s21464_s12 + $0xc0] sm:$0xff] %vm12698_vm4, %v12690_v26  ;;  %v11315_v27 = vmul.f32 %v22275_v14, %v11247_v23  ;;  %v11314_v38 = vmul.f32 %v22278_v62, %v11245_v35 }
 0x99a   : > { %v11347_v2 = vadd.f32 %v11315_v27, %v11091_v9  ;;  %v11346_v29 = vadd.f32 %v11314_v38, %v11090_v55 }
 0x99b   : > { %v11439_v54 = vpop.permute.xlu1 %11438  ;;  %v11437_v61 = vpop.permute.xlu0 %11436 }
 0x99c   : > { %v11507_v49 = vmul.f32 %v22289_v30, %v11439_v54  ;;  %v11506_v31 = vmul.f32 %v22292_v42, %v11437_v61 }
 0x99e   : > { %v11539_v5 = vadd.f32 %v11507_v49, %v11347_v2  ;;  %v11538_v50 = vadd.f32 %v11506_v31, %v11346_v29  ;;  %v11093_v49 = vmul.f32 %v22331_v36, %v21314_v53  ;;  %v11092_v31 = vmul.f32 %v22334_v10, %v21317_v21 }
 0x99f   : > { %v11632_v44 = vpop.permute.xlu1 %11631  ;;  %v11630_v33 = vpop.permute.xlu0 %11629 }
 0x9a0   : > { %v11700_v14 = vmul.f32 %v22331_v36, %v11632_v44  ;;  %v11699_v62 = vmul.f32 %v22334_v10, %v11630_v33  ;;  %v14136_v10 = vld [vmem:[%s21390_s9 + $0x188] sm:$0xff] }
 0x9a2   : > { %v11732_v25 = vadd.f32 %v11700_v14, %v11539_v5  ;;  %v11731_v15 = vadd.f32 %v11699_v62, %v11538_v50  ;;  %v14135_v50 = vld [vmem:[%s21390_s9 + $0x180] sm:$0xff] }
 0x9a3   : > { %v11824_v43 = vpop.permute.xlu1 %11823  ;;  %v11822_v39 = vpop.permute.xlu0 %11821 }
 0x9a4   : > { %v11892_v28 = vmul.f32 %v22337_v12, %v11824_v43  ;;  %v11891_v16 = vmul.f32 %v22340_v8, %v11822_v39 }
 0x9a6   : > { %v11924_v0 = vadd.f32 %v11892_v28, %v11732_v25  ;;  %v11923_v63 = vadd.f32 %v11891_v16, %v11731_v15  ;;  %v14168_v25 = vld [vmem:[%s21390_s9 + $0x189] sm:$0xff]  ;;  %v14167_v15 = vld [vmem:[%s21390_s9 + $0x181] sm:$0xff] }
 0x9a7   : > { %v12016_v59 = vpop.permute.xlu1 %12015  ;;  %v12014_v34 = vpop.permute.xlu0 %12013 }
 0x9a8   : > { %v12084_v57 = vmul.f32 %v22347_v52, %v12016_v59  ;;  %v12083_v17 = vmul.f32 %v22350_v48, %v12014_v34 }
 0x9aa   : > { %v12116_v11 = vadd.f32 %v12084_v57, %v11924_v0  ;;  %v12115_v4 = vadd.f32 %v12083_v17, %v11923_v63 }
 0x9ab   : > { %v12209_v30 = vpop.permute.xlu1 %12208  ;;  %v12207_v42 = vpop.permute.xlu0 %12206 }
 0x9ac   : > { %v12277_v56 = vmul.f32 %v22373_v32, %v12209_v30  ;;  %v12276_v47 = vmul.f32 %v22376_v18, %v12207_v42 }
 0x9ae   : > { %v12309_v24 = vadd.f32 %v12277_v56, %v12116_v11  ;;  %v12308_v45 = vadd.f32 %v12276_v47, %v12115_v4 }
 0x9af   : > { %v12401_v20 = vpop.permute.xlu1 %12400  ;;  %v12399_v41 = vpop.permute.xlu0 %12398 }
 0x9b0   : > { %v12469_v1 = vmul.f32 %v22379_v40, %v12401_v20  ;;  %v12468_v51 = vmul.f32 %v22382_v6, %v12399_v41 }
 0x9b2   : > { %v12501_v7 = vadd.f32 %v12469_v1, %v12309_v24  ;;  %v12500_v13 = vadd.f32 %v12468_v51, %v12308_v45  ;;  %v14200_v1 = vld [vmem:[%s21390_s9 + $0x18a] sm:$0xff]  ;;  %v14199_v51 = vld [vmem:[%s21390_s9 + $0x182] sm:$0xff] }
 0x9b3   : > { %v12593_v3 = vpop.permute.xlu1 %12592  ;;  %v12591_v60 = vpop.permute.xlu0 %12590 }
 0x9b4   : > { %v12661_v58 = vmul.f32 %v22389_v37, %v12593_v3  ;;  %v12660_v26 = vmul.f32 %v22392_v46, %v12591_v60 }
 0x9b6   : > { %v12693_v23 = vadd.f32 %v12661_v58, %v12501_v7  ;;  %v12692_v35 = vadd.f32 %v12660_v26, %v12500_v13 }
 0x9b7   : > { %v11251_v54 = vpop.permute.xlu1 %11250  ;;  %v11249_v61 = vpop.permute.xlu0 %11248 }
 0x9b8   : > { %12726 = vst.msk [vmem:[%s21464_s12 + $0xd8] sm:$0xff] %vm12698_vm4, %v12693_v23  ;;  %12725 = vst.msk [vmem:[%s21464_s12 + $0xd0] sm:$0xff] %vm12698_vm4, %v12692_v35  ;;  %v11317_v9 = vmul.f32 %v22337_v12, %v11251_v54  ;;  %v11316_v55 = vmul.f32 %v22340_v8, %v11249_v61 }
 0x9ba   : > { %v11349_v14 = vadd.f32 %v11317_v9, %v11093_v49  ;;  %v11348_v62 = vadd.f32 %v11316_v55, %v11092_v31  ;;  %v11095_v49 = vmul.f32 %v22373_v32, %v21324_v19  ;;  %v11094_v31 = vmul.f32 %v22376_v18, %v21327_v22 }
 0x9bb   : > { %v11443_v44 = vpop.permute.xlu1 %11442  ;;  %v11441_v33 = vpop.permute.xlu0 %11440 }
 0x9bc   : > { %v11509_v59 = vmul.f32 %v22347_v52, %v11443_v44  ;;  %v11508_v34 = vmul.f32 %v22350_v48, %v11441_v33 }
 0x9be   : > { %v11541_v5 = vadd.f32 %v11509_v59, %v11349_v14  ;;  %v11540_v53 = vadd.f32 %v11508_v34, %v11348_v62 }
 0x9bf   : > { %v11636_v43 = vpop.permute.xlu1 %11635  ;;  %v11634_v39 = vpop.permute.xlu0 %11633 }
 0x9c0   : > { %v11702_v12 = vmul.f32 %v22373_v32, %v11636_v43  ;;  %v11701_v8 = vmul.f32 %v22376_v18, %v11634_v39  ;;  %v14138_v32 = vld [vmem:[%s21390_s9 + $0x1a0] sm:$0xff] }
 0x9c2   : > { %v11734_v28 = vadd.f32 %v11702_v12, %v11541_v5  ;;  %v11733_v16 = vadd.f32 %v11701_v8, %v11540_v53 }
 0x9c3   : > { %v11828_v27 = vpop.permute.xlu1 %11827  ;;  %v11826_v38 = vpop.permute.xlu0 %11825 }
 0x9c4   : > { %v11894_v36 = vmul.f32 %v22379_v40, %v11828_v27  ;;  %v11893_v21 = vmul.f32 %v22382_v6, %v11826_v38 }
 0x9c6   : > { %v11926_v57 = vadd.f32 %v11894_v36, %v11734_v28  ;;  %v11925_v17 = vadd.f32 %v11893_v21, %v11733_v16  ;;  %v14137_v36 = vld [vmem:[%s21390_s9 + $0x198] sm:$0xff] }
 0x9c7   : > { %v12020_v2 = vpop.permute.xlu1 %12019  ;;  %v12018_v29 = vpop.permute.xlu0 %12017 }
 0x9c8   : > { %v12086_v30 = vmul.f32 %v22389_v37, %v12020_v2  ;;  %v12085_v42 = vmul.f32 %v22392_v46, %v12018_v29 }
 0x9ca   : > { %v12118_v20 = vadd.f32 %v12086_v30, %v11926_v57  ;;  %v12117_v41 = vadd.f32 %v12085_v42, %v11925_v17 }
 0x9cb   : > { %v12213_v52 = vpop.permute.xlu1 %12212  ;;  %v12211_v48 = vpop.permute.xlu0 %12210 }
 0x9cc   : > { %v12279_v0 = vmul.f32 %v14136_v10, %v12213_v52  ;;  %v12278_v63 = vmul.f32 %v14135_v50, %v12211_v48  ;;  %v14170_v52 = vld [vmem:[%s21390_s9 + $0x1a1] sm:$0xff]  ;;  %v14169_v48 = vld [vmem:[%s21390_s9 + $0x199] sm:$0xff] }
 0x9ce   : > { %v12311_v24 = vadd.f32 %v12279_v0, %v12118_v20  ;;  %v12310_v45 = vadd.f32 %v12278_v63, %v12117_v41  ;;  %v14202_v0 = vld [vmem:[%s21390_s9 + $0x1a2] sm:$0xff]  ;;  %v14201_v63 = vld [vmem:[%s21390_s9 + $0x19a] sm:$0xff] }
 0x9cf   : > { %v12405_v56 = vpop.permute.xlu1 %12404  ;;  %v12403_v47 = vpop.permute.xlu0 %12402 }
 0x9d0   : > { %v12471_v11 = vmul.f32 %v14168_v25, %v12405_v56  ;;  %v12470_v4 = vmul.f32 %v14167_v15, %v12403_v47 }
 0x9d2   : > { %v12503_v7 = vadd.f32 %v12471_v11, %v12311_v24  ;;  %v12502_v13 = vadd.f32 %v12470_v4, %v12310_v45 }
 0x9d3   : > { %v12597_v3 = vpop.permute.xlu1 %12596  ;;  %v12595_v60 = vpop.permute.xlu0 %12594 }
 0x9d4   : > { %v12663_v58 = vmul.f32 %v14200_v1, %v12597_v3  ;;  %v12662_v26 = vmul.f32 %v14199_v51, %v12595_v60 }
 0x9d6   : > { %v12695_v23 = vadd.f32 %v12663_v58, %v12503_v7  ;;  %v12694_v35 = vadd.f32 %v12662_v26, %v12502_v13 }
 0x9d7   : > { %v11255_v54 = vpop.permute.xlu1 %11254  ;;  %v11253_v61 = vpop.permute.xlu0 %11252 }
 0x9d8   : > { %12728 = vst.msk [vmem:[%s21464_s12 + $0xe8] sm:$0xff] %vm12698_vm4, %v12695_v23  ;;  %12727 = vst.msk [vmem:[%s21464_s12 + $0xe0] sm:$0xff] %vm12698_vm4, %v12694_v35  ;;  %v11319_v9 = vmul.f32 %v22379_v40, %v11255_v54  ;;  %v11318_v55 = vmul.f32 %v22382_v6, %v11253_v61 }
 0x9da   : > { %v11351_v14 = vadd.f32 %v11319_v9, %v11095_v49  ;;  %v11350_v62 = vadd.f32 %v11318_v55, %v11094_v31 }
 0x9db   : > { %v11447_v44 = vpop.permute.xlu1 %11446  ;;  %v11445_v33 = vpop.permute.xlu0 %11444 }
 0x9dc   : > { %v11511_v59 = vmul.f32 %v22389_v37, %v11447_v44  ;;  %v11510_v34 = vmul.f32 %v22392_v46, %v11445_v33 }
 0x9de   : > { %v11543_v6 = vadd.f32 %v11511_v59, %v11351_v14  ;;  %v11542_v8 = vadd.f32 %v11510_v34, %v11350_v62 }
 0x9df   : > { %v11640_v43 = vpop.permute.xlu1 %11639  ;;  %v11638_v39 = vpop.permute.xlu0 %11637 }
 0x9e0   : > { %v11704_v40 = vmul.f32 %v14136_v10, %v11640_v43  ;;  %v11703_v12 = vmul.f32 %v14135_v50, %v11638_v39 }
 0x9e2   : > { %v11736_v18 = vadd.f32 %v11704_v40, %v11543_v6  ;;  %v11735_v37 = vadd.f32 %v11703_v12, %v11542_v8 }
 0x9e3   : > { %v11832_v27 = vpop.permute.xlu1 %11831  ;;  %v11830_v38 = vpop.permute.xlu0 %11829 }
 0x9e4   : > { %v11896_v5 = vmul.f32 %v14168_v25, %v11832_v27  ;;  %v11895_v19 = vmul.f32 %v14167_v15, %v11830_v38 }
 0x9e6   : > { %v11928_v28 = vadd.f32 %v11896_v5, %v11736_v18  ;;  %v11927_v16 = vadd.f32 %v11895_v19, %v11735_v37 }
 0x9e7   : > { %v12024_v2 = vpop.permute.xlu1 %12023  ;;  %v12022_v29 = vpop.permute.xlu0 %12021 }
 0x9e8   : > { %v12088_v46 = vmul.f32 %v14200_v1, %v12024_v2  ;;  %v12087_v21 = vmul.f32 %v14199_v51, %v12022_v29 }
 0x9ea   : > { %v12120_v25 = vadd.f32 %v12088_v46, %v11928_v28  ;;  %v12119_v15 = vadd.f32 %v12087_v21, %v11927_v16 }
 0x9eb   : > { %v12217_v53 = vpop.permute.xlu1 %12216  ;;  %v12215_v22 = vpop.permute.xlu0 %12214 }
 0x9ec   : > { %v12281_v10 = vmul.f32 %v14138_v32, %v12217_v53  ;;  %v12280_v50 = vmul.f32 %v14137_v36, %v12215_v22 }
 0x9ee   : > { %v12313_v56 = vadd.f32 %v12281_v10, %v12120_v25  ;;  %v12312_v47 = vadd.f32 %v12280_v50, %v12119_v15 }
 0x9ef   : > { %v12409_v30 = vpop.permute.xlu1 %12408  ;;  %v12407_v42 = vpop.permute.xlu0 %12406 }
 0x9f0   : > { %v12473_v57 = vmul.f32 %v14170_v52, %v12409_v30  ;;  %v12472_v17 = vmul.f32 %v14169_v48, %v12407_v42 }
 0x9f2   : > { %v12505_v11 = vadd.f32 %v12473_v57, %v12313_v56  ;;  %v12504_v4 = vadd.f32 %v12472_v17, %v12312_v47 }
 0x9f3   : > { %v12601_v20 = vpop.permute.xlu1 %12600  ;;  %v12599_v41 = vpop.permute.xlu0 %12598 }
 0x9f4   : > { %v12665_v1 = vmul.f32 %v14202_v0, %v12601_v20  ;;  %v12664_v51 = vmul.f32 %v14201_v63, %v12599_v41 }
 0x9f6   : > { %v12697_v24 = vadd.f32 %v12665_v1, %v12505_v11  ;;  %v12696_v45 = vadd.f32 %v12664_v51, %v12504_v4 }
 0x9f8   : > { %12730 = vst.msk [vmem:[%s21464_s12 + $0xf8] sm:$0xff] %vm12698_vm4, %v12697_v24  ;;  %12729 = vst.msk [vmem:[%s21464_s12 + $0xf0] sm:$0xff] %vm12698_vm4, %v12696_v45 }
 0x9f9 PF: > { %s18_s27 = sadd.s32 1, %s17907_s27  }
 0x9fa   : > { %p15_p4 = scmp.ge.s32.totalorder %s18_s27, 4  }
 0x9fc   :  { %17 = sbr.rel (!%p15_p4) target bundleno = 1 (0x1), region = 117 }

</bundles_post_ra>
